<compile_context>
chip_gen: v6e
topology: v6e:2x2x1
jax: 0.10.0
libtpu: 0.0.40
codegen_flags: <defaults>
</compile_context>

<pallas_src>
import jax
import jax.numpy as jnp
import numpy as np
from jax.experimental import pallas as pl
from jax.experimental.pallas import tpu as pltpu


# -----------------------------------------------------------------------------
# Sub-pixel decomposition of ConvTranspose2d(1, 1, k=4, s=2, p=1):
#   out[2a + q] taps in[a + dm] with weight-row index wr, where
#     q == 0: (dm, wr) in {(0, 1), (-1, 3)}
#     q == 1: (dm, wr) in {(+1, 0), (0, 2)}
#   (identically for columns with weight-column indices).
# -----------------------------------------------------------------------------
_CONV1_TERMS = {0: ((0, 1), (-1, 3)), 1: ((1, 0), (0, 2))}

# Second ConvTranspose2d applied to the sub-pixel planes Y[phase][m] of the
# first one ( y1[2m + phase] == Y[phase][m] ).  For final output row index
# 4m + 2p + q the taps resolve to (source row-phase rp, dm, w2 row index):
_CONV2_TERMS = {
    (0, 0): ((0, 0, 1), (1, -1, 3)),   # p=0, q=0
    (1, 0): ((1, 0, 1), (0, 0, 3)),    # p=1, q=0
    (0, 1): ((1, 0, 0), (0, 0, 2)),    # p=0, q=1
    (1, 1): ((0, 1, 0), (1, 0, 2)),    # p=1, q=1
}


def _make_fused_kernel(B, H, W):
    """Fused upscaler1 -> upscaler2 -> sigmoid -> interleave on B planes."""

    def kernel(w1_ref, w2_ref, b_ref, prow_ref, pcol_ref, x_ref,
               out_ref, y1_ref, scat_ref):
        # ---- hoist SMEM scalars once (weights + biases) ---------------------
        w1 = [[w1_ref[i, j] for j in range(4)] for i in range(4)]
        w2 = [[w2_ref[i, j] for j in range(4)] for i in range(4)]
        b1 = b_ref[0]
        b2 = b_ref[1]

        # ---- edge-mask iotas, built once and reused by every shifted tap ----
        row_idx = jax.lax.broadcasted_iota(jnp.int32, (B, H, W), 1)
        col_idx = jax.lax.broadcasted_iota(jnp.int32, (B, H, W), 2)

        def shifted(v, dm, dn):
            """v[:, m+dm, n+dn] with zeros outside [0,H)x[0,W) (roll + mask).

            pltpu.roll lands on the XLU slot; the masks are cheap VPU selects.
            No padded halo buffers, no unaligned stores (review item 4/5).
            """
            if dm != 0:
                v = pltpu.roll(v, (-dm) % H, axis=1)
                v = (jnp.where(row_idx < H - dm, v, 0.0) if dm > 0
                     else jnp.where(row_idx >= -dm, v, 0.0))
            if dn != 0:
                v = pltpu.roll(v, (-dn) % W, axis=2)
                v = (jnp.where(col_idx < W - dn, v, 0.0) if dn > 0
                     else jnp.where(col_idx >= -dn, v, 0.0))
            return v

        # ---- upscaler1: 4 sub-pixel planes (f32, aligned scratch) -----------
        xv = x_ref[...]
        xtaps = {}
        for dm in (-1, 0, 1):                       # hoist the 9 input taps
            for dn in (-1, 0, 1):
                xtaps[(dm, dn)] = shifted(xv, dm, dn)

        for q in (0, 1):
            for t in (0, 1):
                acc = None
                for dm, wr in _CONV1_TERMS[q]:
                    for dn, wc in _CONV1_TERMS[t]:
                        term = xtaps[(dm, dn)] * w1[wr][wc]
                        acc = term if acc is None else acc + term
                # Full dense write; scratch never needs zero-initialisation.
                y1_ref[2 * q + t] = acc + b1

        # ---- hoist the 16 distinct shifted conv1-plane taps (review item 6) -
        needed = set()
        for key_r in _CONV2_TERMS:
            for key_c in _CONV2_TERMS:
                for rp, dm, _ in _CONV2_TERMS[key_r]:
                    for cp, dn, _ in _CONV2_TERMS[key_c]:
                        needed.add((2 * rp + cp, dm, dn))
        y1_planes = [y1_ref[i] for i in range(4)]
        ytaps = {}
        for plane, dm, dn in sorted(needed):
            ytaps[(plane, dm, dn)] = shifted(y1_planes[plane], dm, dn)

        # ---- upscaler2 + sigmoid -> phase-stacked bf16 scratch --------------
        # scat[:, rho*H + m, kappa*W + n] = sigmoid(plane[rho][kappa][m, n]);
        # every element is overwritten each step (no init needed).
        for p in (0, 1):
            for q2 in (0, 1):
                rho = 2 * p + q2                     # final row phase
                for s in (0, 1):
                    for t in (0, 1):
                        kappa = 2 * s + t            # final column phase
                        acc = None
                        for rp, dm, wr in _CONV2_TERMS[(p, q2)]:
                            for cp, dn, wc in _CONV2_TERMS[(s, t)]:
                                term = ytaps[(2 * rp + cp, dm, dn)] * w2[wr][wc]
                                acc = term if acc is None else acc + term
                        val = jax.nn.sigmoid(acc + b2).astype(jnp.bfloat16)
                        scat_ref[:,
                                 rho * H:(rho + 1) * H,
                                 kappa * W:(kappa + 1) * W] = val

        # ---- sub-pixel interleave on the (otherwise idle) MXU ---------------
        # out[4m+rho, 4n+kappa] = scat[rho*H+m, kappa*W+n], realised as two
        # exact 0/1 one-hot matmuls; the final store is a single dense,
        # lane-dense (4H, 4W) bf16 write per plane (review items 1 & 2).
        prow = prow_ref[...]
        pcol = pcol_ref[...]
        for b in range(B):
            t1 = jnp.dot(prow, scat_ref[b],
                         preferred_element_type=jnp.float32).astype(jnp.bfloat16)
            out_ref[b] = jnp.dot(t1, pcol,
                                 preferred_element_type=jnp.float32
                                 ).astype(jnp.bfloat16)

    return kernel


def _interleave_mats(H, W):
    """Exact 0/1 permutation matrices for the sub-pixel interleave."""
    r = jnp.arange(4 * H)
    src_row = (r % 4) * H + (r // 4)        # P_row[r, rho*H + m] = (r == 4m+rho)
    prow = (src_row[:, None] == jnp.arange(4 * H)[None, :]).astype(jnp.bfloat16)
    c = jnp.arange(4 * W)
    src_col = (c % 4) * W + (c // 4)        # P_col[kappa*W + n, c] = (c == 4n+kappa)
    pcol = (jnp.arange(4 * W)[:, None] == src_col[None, :]).astype(jnp.bfloat16)
    return prow, pcol


def _pick_batch_block(n):
    for b in range(min(n, 8), 0, -1):
        if n % b == 0:
            return b
    return 1


def ink_head_pallas(x, w1, b1, w2, b2):
    """bf16( sigmoid(convT2(convT1(x))) ) for x: (N, 1, H, W) f32 -> (N, 1, 4H, 4W)."""
    N, C, H, W = x.shape
    assert C == 1
    B = _pick_batch_block(N)                         # batch blocking (review item 7)

    w1s = w1.reshape(4, 4).astype(jnp.float32)
    w2s = w2.reshape(4, 4).astype(jnp.float32)
    bs = jnp.concatenate([b1.reshape(1), b2.reshape(1)]).astype(jnp.float32)
    prow, pcol = _interleave_mats(H, W)
    xin = x[:, 0].astype(jnp.float32)                # (N, H, W)

    out = pl.pallas_call(
        _make_fused_kernel(B, H, W),
        out_shape=jax.ShapeDtypeStruct((N, 4 * H, 4 * W), jnp.bfloat16),
        grid=(N // B,),
        in_specs=[
            pl.BlockSpec(memory_space=pltpu.MemorySpace.SMEM),        # w1 (4,4)
            pl.BlockSpec(memory_space=pltpu.MemorySpace.SMEM),        # w2 (4,4)
            pl.BlockSpec(memory_space=pltpu.MemorySpace.SMEM),        # biases (2,)
            pl.BlockSpec((4 * H, 4 * H), lambda i: (0, 0)),           # row interleave
            pl.BlockSpec((4 * W, 4 * W), lambda i: (0, 0)),           # col interleave
            pl.BlockSpec((B, H, W), lambda i: (i, 0, 0)),             # input planes
        ],
        out_specs=pl.BlockSpec((B, 4 * H, 4 * W), lambda i: (i, 0, 0)),
        scratch_shapes=[
            pltpu.VMEM((4, B, H, W), jnp.float32),      # conv1 phase planes (aligned)
            pltpu.VMEM((B, 4 * H, 4 * W), jnp.bfloat16),  # phase-stacked conv2 output
        ],
        compiler_params=pltpu.CompilerParams(
            dimension_semantics=("parallel",),
            # headroom below v7x's 64 MiB per-TC physical VMEM; large planes
            # would additionally want the H-tile grid axis (see header TODO).
            vmem_limit_bytes=48 * 1024 * 1024),
    )(w1s, w2s, bs, prow, pcol, xin)

    # Only remaining wrapper op: a free (bitcast) reshape, no transpose.
    return out.reshape(N, 1, 4 * H, 4 * W)


# -----------------------------------------------------------------------------
# Pure-JAX reference (verification only)
# -----------------------------------------------------------------------------
def conv_transpose2d_ref(x, weight, bias):
    wf = jnp.flip(jnp.transpose(weight, (1, 0, 2, 3)), axis=(2, 3))   # OIHW, flipped
    y = jax.lax.conv_general_dilated(
        x, wf,
        window_strides=(1, 1),
        padding=((2, 2), (2, 2)),       # k - 1 - p = 2
        lhs_dilation=(2, 2),            # stride of the transposed conv
        dimension_numbers=("NCHW", "OIHW", "NCHW"),
        precision=jax.lax.Precision.HIGHEST,
    )
    return y + bias.reshape(1, -1, 1, 1)


# -----------------------------------------------------------------------------
# InkDetection head (upscaler1 -> upscaler2 -> sigmoid), deterministic params
# -----------------------------------------------------------------------------
class InkDetectionPallas:
    def __init__(self, key):
        k1, k2 = jax.random.split(key)
        # nn.init.normal_ on ConvTranspose2d weights, zero bias (init_params)
        self.w1 = jax.random.normal(k1, (1, 1, 4, 4), jnp.float32)
        self.b1 = jnp.zeros((1,), jnp.float32)
        self.w2 = jax.random.normal(k2, (1, 1, 4, 4), jnp.float32)
        self.b2 = jnp.zeros((1,), jnp.float32)

    def __call__(self, x):
        return ink_head_pallas(x, self.w1, self.b1, self.w2, self.b2)

    def reference(self, x):
        x = conv_transpose2d_ref(x, self.w1, self.b1)
        x = conv_transpose2d_ref(x, self.w2, self.b2)
        return jax.nn.sigmoid(x)


if __name__ == "__main__":
    key = jax.random.PRNGKey(0)
    k_param, k_x = jax.random.split(key)

    model = InkDetectionPallas(k_param)
    # small 1-channel map consistent with the upscaler head
    x = jax.random.normal(k_x, (2, 1, 32, 32), jnp.float32)

    fwd = jax.jit(lambda v: model(v))
    out = jax.block_until_ready(fwd(x))
    assert out.shape == (2, 1, 128, 128), out.shape
    assert out.dtype == jnp.bfloat16, out.dtype

    ref = jax.block_until_ready(model.reference(x))
    # bf16 output -> loosened tolerance (review correctness note)
    np.testing.assert_allclose(np.asarray(out.astype(jnp.float32)),
                               np.asarray(ref[:, 0]).reshape(2, 1, 128, 128),
                               rtol=2e-2, atol=1e-2)

    print("KERNEL_OK")
</pallas_src>

<mosaic_0001>
module attributes {stable_mosaic.version = 11 : i64} {
  func.func @kernel(%arg0: i32, %arg1: memref<4x4xf32, #tpu.memory_space<smem>>, %arg2: memref<4x4xf32, #tpu.memory_space<smem>>, %arg3: memref<2xf32, #tpu.memory_space<smem>>, %arg4: memref<128x128xbf16, #tpu.memory_space<vmem>>, %arg5: memref<128x128xbf16, #tpu.memory_space<vmem>>, %arg6: memref<2x32x32xf32, #tpu.memory_space<vmem>>, %arg7: memref<2x128x128xbf16, #tpu.memory_space<vmem>>, %arg8: memref<4x2x32x32xf32, #tpu.memory_space<vmem>>, %arg9: memref<2x128x128xbf16, #tpu.memory_space<vmem>>) attributes {dimension_semantics = [#tpu.dimension_semantics<parallel>], iteration_bounds = array<i64: 1>, scalar_prefetch = 0 : i64, scratch_operands = 2 : i64, tpu.core_type = #tpu.core_type<tc>, window_params = [{transform_indices = @transform_0, window_bounds = array<i64: 4, 4>}, {transform_indices = @transform_1, window_bounds = array<i64: 4, 4>}, {transform_indices = @transform_2, window_bounds = array<i64: 2>}, {pipeline_mode = #tpu.pipeline_mode<synchronous>, transform_indices = @transform_3, window_bounds = array<i64: 128, 128>}, {pipeline_mode = #tpu.pipeline_mode<synchronous>, transform_indices = @transform_4, window_bounds = array<i64: 128, 128>}, {transform_indices = @transform_5, window_bounds = array<i64: 2, 32, 32>}, {transform_indices = @transform_6, window_bounds = array<i64: 2, 128, 128>}]} {
    %c0 = arith.constant 0 : index
    %c0_0 = arith.constant 0 : index
    %0 = memref.load %arg1[%c0, %c0_0] : memref<4x4xf32, #tpu.memory_space<smem>>
    %c0_1 = arith.constant 0 : index
    %c1 = arith.constant 1 : index
    %1 = memref.load %arg1[%c0_1, %c1] : memref<4x4xf32, #tpu.memory_space<smem>>
    %c0_2 = arith.constant 0 : index
    %c2 = arith.constant 2 : index
    %2 = memref.load %arg1[%c0_2, %c2] : memref<4x4xf32, #tpu.memory_space<smem>>
    %c0_3 = arith.constant 0 : index
    %c3 = arith.constant 3 : index
    %3 = memref.load %arg1[%c0_3, %c3] : memref<4x4xf32, #tpu.memory_space<smem>>
    %c1_4 = arith.constant 1 : index
    %c0_5 = arith.constant 0 : index
    %4 = memref.load %arg1[%c1_4, %c0_5] : memref<4x4xf32, #tpu.memory_space<smem>>
    %c1_6 = arith.constant 1 : index
    %c1_7 = arith.constant 1 : index
    %5 = memref.load %arg1[%c1_6, %c1_7] : memref<4x4xf32, #tpu.memory_space<smem>>
    %c1_8 = arith.constant 1 : index
    %c2_9 = arith.constant 2 : index
    %6 = memref.load %arg1[%c1_8, %c2_9] : memref<4x4xf32, #tpu.memory_space<smem>>
    %c1_10 = arith.constant 1 : index
    %c3_11 = arith.constant 3 : index
    %7 = memref.load %arg1[%c1_10, %c3_11] : memref<4x4xf32, #tpu.memory_space<smem>>
    %c2_12 = arith.constant 2 : index
    %c0_13 = arith.constant 0 : index
    %8 = memref.load %arg1[%c2_12, %c0_13] : memref<4x4xf32, #tpu.memory_space<smem>>
    %c2_14 = arith.constant 2 : index
    %c1_15 = arith.constant 1 : index
    %9 = memref.load %arg1[%c2_14, %c1_15] : memref<4x4xf32, #tpu.memory_space<smem>>
    %c2_16 = arith.constant 2 : index
    %c2_17 = arith.constant 2 : index
    %10 = memref.load %arg1[%c2_16, %c2_17] : memref<4x4xf32, #tpu.memory_space<smem>>
    %c2_18 = arith.constant 2 : index
    %c3_19 = arith.constant 3 : index
    %11 = memref.load %arg1[%c2_18, %c3_19] : memref<4x4xf32, #tpu.memory_space<smem>>
    %c3_20 = arith.constant 3 : index
    %c0_21 = arith.constant 0 : index
    %12 = memref.load %arg1[%c3_20, %c0_21] : memref<4x4xf32, #tpu.memory_space<smem>>
    %c3_22 = arith.constant 3 : index
    %c1_23 = arith.constant 1 : index
    %13 = memref.load %arg1[%c3_22, %c1_23] : memref<4x4xf32, #tpu.memory_space<smem>>
    %c3_24 = arith.constant 3 : index
    %c2_25 = arith.constant 2 : index
    %14 = memref.load %arg1[%c3_24, %c2_25] : memref<4x4xf32, #tpu.memory_space<smem>>
    %c3_26 = arith.constant 3 : index
    %c3_27 = arith.constant 3 : index
    %15 = memref.load %arg1[%c3_26, %c3_27] : memref<4x4xf32, #tpu.memory_space<smem>>
    %c0_28 = arith.constant 0 : index
    %c0_29 = arith.constant 0 : index
    %16 = memref.load %arg2[%c0_28, %c0_29] : memref<4x4xf32, #tpu.memory_space<smem>>
    %c0_30 = arith.constant 0 : index
    %c1_31 = arith.constant 1 : index
    %17 = memref.load %arg2[%c0_30, %c1_31] : memref<4x4xf32, #tpu.memory_space<smem>>
    %c0_32 = arith.constant 0 : index
    %c2_33 = arith.constant 2 : index
    %18 = memref.load %arg2[%c0_32, %c2_33] : memref<4x4xf32, #tpu.memory_space<smem>>
    %c0_34 = arith.constant 0 : index
    %c3_35 = arith.constant 3 : index
    %19 = memref.load %arg2[%c0_34, %c3_35] : memref<4x4xf32, #tpu.memory_space<smem>>
    %c1_36 = arith.constant 1 : index
    %c0_37 = arith.constant 0 : index
    %20 = memref.load %arg2[%c1_36, %c0_37] : memref<4x4xf32, #tpu.memory_space<smem>>
    %c1_38 = arith.constant 1 : index
    %c1_39 = arith.constant 1 : index
    %21 = memref.load %arg2[%c1_38, %c1_39] : memref<4x4xf32, #tpu.memory_space<smem>>
    %c1_40 = arith.constant 1 : index
    %c2_41 = arith.constant 2 : index
    %22 = memref.load %arg2[%c1_40, %c2_41] : memref<4x4xf32, #tpu.memory_space<smem>>
    %c1_42 = arith.constant 1 : index
    %c3_43 = arith.constant 3 : index
    %23 = memref.load %arg2[%c1_42, %c3_43] : memref<4x4xf32, #tpu.memory_space<smem>>
    %c2_44 = arith.constant 2 : index
    %c0_45 = arith.constant 0 : index
    %24 = memref.load %arg2[%c2_44, %c0_45] : memref<4x4xf32, #tpu.memory_space<smem>>
    %c2_46 = arith.constant 2 : index
    %c1_47 = arith.constant 1 : index
    %25 = memref.load %arg2[%c2_46, %c1_47] : memref<4x4xf32, #tpu.memory_space<smem>>
    %c2_48 = arith.constant 2 : index
    %c2_49 = arith.constant 2 : index
    %26 = memref.load %arg2[%c2_48, %c2_49] : memref<4x4xf32, #tpu.memory_space<smem>>
    %c2_50 = arith.constant 2 : index
    %c3_51 = arith.constant 3 : index
    %27 = memref.load %arg2[%c2_50, %c3_51] : memref<4x4xf32, #tpu.memory_space<smem>>
    %c3_52 = arith.constant 3 : index
    %c0_53 = arith.constant 0 : index
    %28 = memref.load %arg2[%c3_52, %c0_53] : memref<4x4xf32, #tpu.memory_space<smem>>
    %c3_54 = arith.constant 3 : index
    %c1_55 = arith.constant 1 : index
    %29 = memref.load %arg2[%c3_54, %c1_55] : memref<4x4xf32, #tpu.memory_space<smem>>
    %c3_56 = arith.constant 3 : index
    %c2_57 = arith.constant 2 : index
    %30 = memref.load %arg2[%c3_56, %c2_57] : memref<4x4xf32, #tpu.memory_space<smem>>
    %c3_58 = arith.constant 3 : index
    %c3_59 = arith.constant 3 : index
    %31 = memref.load %arg2[%c3_58, %c3_59] : memref<4x4xf32, #tpu.memory_space<smem>>
    %c0_60 = arith.constant 0 : index
    %32 = memref.load %arg3[%c0_60] : memref<2xf32, #tpu.memory_space<smem>>
    %c1_61 = arith.constant 1 : index
    %33 = memref.load %arg3[%c1_61] : memref<2xf32, #tpu.memory_space<smem>>
    %34 = tpu.iota {dimensions = array<i32: 1>} : vector<2x32x32xi32>
    %35 = tpu.iota {dimensions = array<i32: 2>} : vector<2x32x32xi32>
    %c0_62 = arith.constant 0 : index
    %c0_63 = arith.constant 0 : index
    %c0_64 = arith.constant 0 : index
    %36 = vector.load %arg6[%c0_62, %c0_63, %c0_64] : memref<2x32x32xf32, #tpu.memory_space<vmem>>, vector<2x32x32xf32>
    %c1_i32 = arith.constant 1 : i32
    %37 = tpu.dynamic_rotate %36 by %c1_i32 dim 1 : vector<2x32x32xf32>, i32 -> vector<2x32x32xf32>
    %c1_i32_65 = arith.constant 1 : i32
    %38 = vector.broadcast %c1_i32_65 : i32 to vector<2x32x32xi32>
    %39 = arith.cmpi sge, %34, %38 : vector<2x32x32xi32>
    %cst = arith.constant 0.000000e+00 : f32
    %40 = vector.broadcast %cst : f32 to vector<2x32x32xf32>
    %41 = arith.select %39, %37, %40 : vector<2x32x32xi1>, vector<2x32x32xf32>
    %c1_i32_66 = arith.constant 1 : i32
    %42 = tpu.dynamic_rotate %41 by %c1_i32_66 dim 2 : vector<2x32x32xf32>, i32 -> vector<2x32x32xf32>
    %c1_i32_67 = arith.constant 1 : i32
    %43 = vector.broadcast %c1_i32_67 : i32 to vector<2x32x32xi32>
    %44 = arith.cmpi sge, %35, %43 : vector<2x32x32xi32>
    %cst_68 = arith.constant 0.000000e+00 : f32
    %45 = vector.broadcast %cst_68 : f32 to vector<2x32x32xf32>
    %46 = arith.select %44, %42, %45 : vector<2x32x32xi1>, vector<2x32x32xf32>
    %c1_i32_69 = arith.constant 1 : i32
    %47 = tpu.dynamic_rotate %36 by %c1_i32_69 dim 1 : vector<2x32x32xf32>, i32 -> vector<2x32x32xf32>
    %c1_i32_70 = arith.constant 1 : i32
    %48 = vector.broadcast %c1_i32_70 : i32 to vector<2x32x32xi32>
    %49 = arith.cmpi sge, %34, %48 : vector<2x32x32xi32>
    %cst_71 = arith.constant 0.000000e+00 : f32
    %50 = vector.broadcast %cst_71 : f32 to vector<2x32x32xf32>
    %51 = arith.select %49, %47, %50 : vector<2x32x32xi1>, vector<2x32x32xf32>
    %c1_i32_72 = arith.constant 1 : i32
    %52 = tpu.dynamic_rotate %36 by %c1_i32_72 dim 1 : vector<2x32x32xf32>, i32 -> vector<2x32x32xf32>
    %c1_i32_73 = arith.constant 1 : i32
    %53 = vector.broadcast %c1_i32_73 : i32 to vector<2x32x32xi32>
    %54 = arith.cmpi sge, %34, %53 : vector<2x32x32xi32>
    %cst_74 = arith.constant 0.000000e+00 : f32
    %55 = vector.broadcast %cst_74 : f32 to vector<2x32x32xf32>
    %56 = arith.select %54, %52, %55 : vector<2x32x32xi1>, vector<2x32x32xf32>
    %c31_i32 = arith.constant 31 : i32
    %57 = tpu.dynamic_rotate %56 by %c31_i32 dim 2 : vector<2x32x32xf32>, i32 -> vector<2x32x32xf32>
    %c31_i32_75 = arith.constant 31 : i32
    %58 = vector.broadcast %c31_i32_75 : i32 to vector<2x32x32xi32>
    %59 = arith.cmpi slt, %35, %58 : vector<2x32x32xi32>
    %cst_76 = arith.constant 0.000000e+00 : f32
    %60 = vector.broadcast %cst_76 : f32 to vector<2x32x32xf32>
    %61 = arith.select %59, %57, %60 : vector<2x32x32xi1>, vector<2x32x32xf32>
    %c1_i32_77 = arith.constant 1 : i32
    %62 = tpu.dynamic_rotate %36 by %c1_i32_77 dim 2 : vector<2x32x32xf32>, i32 -> vector<2x32x32xf32>
    %c1_i32_78 = arith.constant 1 : i32
    %63 = vector.broadcast %c1_i32_78 : i32 to vector<2x32x32xi32>
    %64 = arith.cmpi sge, %35, %63 : vector<2x32x32xi32>
    %cst_79 = arith.constant 0.000000e+00 : f32
    %65 = vector.broadcast %cst_79 : f32 to vector<2x32x32xf32>
    %66 = arith.select %64, %62, %65 : vector<2x32x32xi1>, vector<2x32x32xf32>
    %c31_i32_80 = arith.constant 31 : i32
    %67 = tpu.dynamic_rotate %36 by %c31_i32_80 dim 2 : vector<2x32x32xf32>, i32 -> vector<2x32x32xf32>
    %c31_i32_81 = arith.constant 31 : i32
    %68 = vector.broadcast %c31_i32_81 : i32 to vector<2x32x32xi32>
    %69 = arith.cmpi slt, %35, %68 : vector<2x32x32xi32>
    %cst_82 = arith.constant 0.000000e+00 : f32
    %70 = vector.broadcast %cst_82 : f32 to vector<2x32x32xf32>
    %71 = arith.select %69, %67, %70 : vector<2x32x32xi1>, vector<2x32x32xf32>
    %c31_i32_83 = arith.constant 31 : i32
    %72 = tpu.dynamic_rotate %36 by %c31_i32_83 dim 1 : vector<2x32x32xf32>, i32 -> vector<2x32x32xf32>
    %c31_i32_84 = arith.constant 31 : i32
    %73 = vector.broadcast %c31_i32_84 : i32 to vector<2x32x32xi32>
    %74 = arith.cmpi slt, %34, %73 : vector<2x32x32xi32>
    %cst_85 = arith.constant 0.000000e+00 : f32
    %75 = vector.broadcast %cst_85 : f32 to vector<2x32x32xf32>
    %76 = arith.select %74, %72, %75 : vector<2x32x32xi1>, vector<2x32x32xf32>
    %c1_i32_86 = arith.constant 1 : i32
    %77 = tpu.dynamic_rotate %76 by %c1_i32_86 dim 2 : vector<2x32x32xf32>, i32 -> vector<2x32x32xf32>
    %c1_i32_87 = arith.constant 1 : i32
    %78 = vector.broadcast %c1_i32_87 : i32 to vector<2x32x32xi32>
    %79 = arith.cmpi sge, %35, %78 : vector<2x32x32xi32>
    %cst_88 = arith.constant 0.000000e+00 : f32
    %80 = vector.broadcast %cst_88 : f32 to vector<2x32x32xf32>
    %81 = arith.select %79, %77, %80 : vector<2x32x32xi1>, vector<2x32x32xf32>
    %c31_i32_89 = arith.constant 31 : i32
    %82 = tpu.dynamic_rotate %36 by %c31_i32_89 dim 1 : vector<2x32x32xf32>, i32 -> vector<2x32x32xf32>
    %c31_i32_90 = arith.constant 31 : i32
    %83 = vector.broadcast %c31_i32_90 : i32 to vector<2x32x32xi32>
    %84 = arith.cmpi slt, %34, %83 : vector<2x32x32xi32>
    %cst_91 = arith.constant 0.000000e+00 : f32
    %85 = vector.broadcast %cst_91 : f32 to vector<2x32x32xf32>
    %86 = arith.select %84, %82, %85 : vector<2x32x32xi1>, vector<2x32x32xf32>
    %c31_i32_92 = arith.constant 31 : i32
    %87 = tpu.dynamic_rotate %36 by %c31_i32_92 dim 1 : vector<2x32x32xf32>, i32 -> vector<2x32x32xf32>
    %c31_i32_93 = arith.constant 31 : i32
    %88 = vector.broadcast %c31_i32_93 : i32 to vector<2x32x32xi32>
    %89 = arith.cmpi slt, %34, %88 : vector<2x32x32xi32>
    %cst_94 = arith.constant 0.000000e+00 : f32
    %90 = vector.broadcast %cst_94 : f32 to vector<2x32x32xf32>
    %91 = arith.select %89, %87, %90 : vector<2x32x32xi1>, vector<2x32x32xf32>
    %c31_i32_95 = arith.constant 31 : i32
    %92 = tpu.dynamic_rotate %91 by %c31_i32_95 dim 2 : vector<2x32x32xf32>, i32 -> vector<2x32x32xf32>
    %c31_i32_96 = arith.constant 31 : i32
    %93 = vector.broadcast %c31_i32_96 : i32 to vector<2x32x32xi32>
    %94 = arith.cmpi slt, %35, %93 : vector<2x32x32xi32>
    %cst_97 = arith.constant 0.000000e+00 : f32
    %95 = vector.broadcast %cst_97 : f32 to vector<2x32x32xf32>
    %96 = arith.select %94, %92, %95 : vector<2x32x32xi1>, vector<2x32x32xf32>
    %97 = vector.broadcast %5 : f32 to vector<2x32x32xf32>
    %98 = arith.mulf %36, %97 : vector<2x32x32xf32>
    %99 = vector.broadcast %7 : f32 to vector<2x32x32xf32>
    %100 = arith.mulf %66, %99 : vector<2x32x32xf32>
    %101 = arith.addf %98, %100 : vector<2x32x32xf32>
    %102 = vector.broadcast %13 : f32 to vector<2x32x32xf32>
    %103 = arith.mulf %51, %102 : vector<2x32x32xf32>
    %104 = arith.addf %101, %103 : vector<2x32x32xf32>
    %105 = vector.broadcast %15 : f32 to vector<2x32x32xf32>
    %106 = arith.mulf %46, %105 : vector<2x32x32xf32>
    %107 = arith.addf %104, %106 : vector<2x32x32xf32>
    %108 = vector.broadcast %32 : f32 to vector<2x32x32xf32>
    %109 = arith.addf %107, %108 : vector<2x32x32xf32>
    %c0_98 = arith.constant 0 : index
    %c0_99 = arith.constant 0 : index
    %c0_100 = arith.constant 0 : index
    %c0_101 = arith.constant 0 : index
    %110 = vector.load %arg8[%c0_98, %c0_99, %c0_100, %c0_101] : memref<4x2x32x32xf32, #tpu.memory_space<vmem>>, vector<1x2x32x32xf32>
    %111 = vector.shape_cast %110 : vector<1x2x32x32xf32> to vector<2x32x32xf32>
    %112 = vector.shape_cast %109 : vector<2x32x32xf32> to vector<1x2x32x32xf32>
    tpu.vector_store %arg8[%c0_98, %c0_99, %c0_100, %c0_101], %112 {strides = array<i32>} : memref<4x2x32x32xf32, #tpu.memory_space<vmem>>, vector<1x2x32x32xf32>,
    %113 = vector.broadcast %4 : f32 to vector<2x32x32xf32>
    %114 = arith.mulf %71, %113 : vector<2x32x32xf32>
    %115 = vector.broadcast %6 : f32 to vector<2x32x32xf32>
    %116 = arith.mulf %36, %115 : vector<2x32x32xf32>
    %117 = arith.addf %114, %116 : vector<2x32x32xf32>
    %118 = vector.broadcast %12 : f32 to vector<2x32x32xf32>
    %119 = arith.mulf %61, %118 : vector<2x32x32xf32>
    %120 = arith.addf %117, %119 : vector<2x32x32xf32>
    %121 = vector.broadcast %14 : f32 to vector<2x32x32xf32>
    %122 = arith.mulf %51, %121 : vector<2x32x32xf32>
    %123 = arith.addf %120, %122 : vector<2x32x32xf32>
    %124 = vector.broadcast %32 : f32 to vector<2x32x32xf32>
    %125 = arith.addf %123, %124 : vector<2x32x32xf32>
    %c1_102 = arith.constant 1 : index
    %c0_103 = arith.constant 0 : index
    %c0_104 = arith.constant 0 : index
    %c0_105 = arith.constant 0 : index
    %126 = vector.load %arg8[%c1_102, %c0_103, %c0_104, %c0_105] : memref<4x2x32x32xf32, #tpu.memory_space<vmem>>, vector<1x2x32x32xf32>
    %127 = vector.shape_cast %126 : vector<1x2x32x32xf32> to vector<2x32x32xf32>
    %128 = vector.shape_cast %125 : vector<2x32x32xf32> to vector<1x2x32x32xf32>
    tpu.vector_store %arg8[%c1_102, %c0_103, %c0_104, %c0_105], %128 {strides = array<i32>} : memref<4x2x32x32xf32, #tpu.memory_space<vmem>>, vector<1x2x32x32xf32>,
    %129 = vector.broadcast %1 : f32 to vector<2x32x32xf32>
    %130 = arith.mulf %86, %129 : vector<2x32x32xf32>
    %131 = vector.broadcast %3 : f32 to vector<2x32x32xf32>
    %132 = arith.mulf %81, %131 : vector<2x32x32xf32>
    %133 = arith.addf %130, %132 : vector<2x32x32xf32>
    %134 = vector.broadcast %9 : f32 to vector<2x32x32xf32>
    %135 = arith.mulf %36, %134 : vector<2x32x32xf32>
    %136 = arith.addf %133, %135 : vector<2x32x32xf32>
    %137 = vector.broadcast %11 : f32 to vector<2x32x32xf32>
    %138 = arith.mulf %66, %137 : vector<2x32x32xf32>
    %139 = arith.addf %136, %138 : vector<2x32x32xf32>
    %140 = vector.broadcast %32 : f32 to vector<2x32x32xf32>
    %141 = arith.addf %139, %140 : vector<2x32x32xf32>
    %c2_106 = arith.constant 2 : index
    %c0_107 = arith.constant 0 : index
    %c0_108 = arith.constant 0 : index
    %c0_109 = arith.constant 0 : index
    %142 = vector.load %arg8[%c2_106, %c0_107, %c0_108, %c0_109] : memref<4x2x32x32xf32, #tpu.memory_space<vmem>>, vector<1x2x32x32xf32>
    %143 = vector.shape_cast %142 : vector<1x2x32x32xf32> to vector<2x32x32xf32>
    %144 = vector.shape_cast %141 : vector<2x32x32xf32> to vector<1x2x32x32xf32>
    tpu.vector_store %arg8[%c2_106, %c0_107, %c0_108, %c0_109], %144 {strides = array<i32>} : memref<4x2x32x32xf32, #tpu.memory_space<vmem>>, vector<1x2x32x32xf32>,
    %145 = vector.broadcast %0 : f32 to vector<2x32x32xf32>
    %146 = arith.mulf %96, %145 : vector<2x32x32xf32>
    %147 = vector.broadcast %2 : f32 to vector<2x32x32xf32>
    %148 = arith.mulf %86, %147 : vector<2x32x32xf32>
    %149 = arith.addf %146, %148 : vector<2x32x32xf32>
    %150 = vector.broadcast %8 : f32 to vector<2x32x32xf32>
    %151 = arith.mulf %71, %150 : vector<2x32x32xf32>
    %152 = arith.addf %149, %151 : vector<2x32x32xf32>
    %153 = vector.broadcast %10 : f32 to vector<2x32x32xf32>
    %154 = arith.mulf %36, %153 : vector<2x32x32xf32>
    %155 = arith.addf %152, %154 : vector<2x32x32xf32>
    %156 = vector.broadcast %32 : f32 to vector<2x32x32xf32>
    %157 = arith.addf %155, %156 : vector<2x32x32xf32>
    %c3_110 = arith.constant 3 : index
    %c0_111 = arith.constant 0 : index
    %c0_112 = arith.constant 0 : index
    %c0_113 = arith.constant 0 : index
    %158 = vector.load %arg8[%c3_110, %c0_111, %c0_112, %c0_113] : memref<4x2x32x32xf32, #tpu.memory_space<vmem>>, vector<1x2x32x32xf32>
    %159 = vector.shape_cast %158 : vector<1x2x32x32xf32> to vector<2x32x32xf32>
    %160 = vector.shape_cast %157 : vector<2x32x32xf32> to vector<1x2x32x32xf32>
    tpu.vector_store %arg8[%c3_110, %c0_111, %c0_112, %c0_113], %160 {strides = array<i32>} : memref<4x2x32x32xf32, #tpu.memory_space<vmem>>, vector<1x2x32x32xf32>,
    %c0_114 = arith.constant 0 : index
    %c0_115 = arith.constant 0 : index
    %c0_116 = arith.constant 0 : index
    %c0_117 = arith.constant 0 : index
    %161 = vector.load %arg8[%c0_114, %c0_115, %c0_116, %c0_117] : memref<4x2x32x32xf32, #tpu.memory_space<vmem>>, vector<1x2x32x32xf32>
    %162 = vector.shape_cast %161 : vector<1x2x32x32xf32> to vector<2x32x32xf32>
    %c1_118 = arith.constant 1 : index
    %c0_119 = arith.constant 0 : index
    %c0_120 = arith.constant 0 : index
    %c0_121 = arith.constant 0 : index
    %163 = vector.load %arg8[%c1_118, %c0_119, %c0_120, %c0_121] : memref<4x2x32x32xf32, #tpu.memory_space<vmem>>, vector<1x2x32x32xf32>
    %164 = vector.shape_cast %163 : vector<1x2x32x32xf32> to vector<2x32x32xf32>
    %c2_122 = arith.constant 2 : index
    %c0_123 = arith.constant 0 : index
    %c0_124 = arith.constant 0 : index
    %c0_125 = arith.constant 0 : index
    %165 = vector.load %arg8[%c2_122, %c0_123, %c0_124, %c0_125] : memref<4x2x32x32xf32, #tpu.memory_space<vmem>>, vector<1x2x32x32xf32>
    %166 = vector.shape_cast %165 : vector<1x2x32x32xf32> to vector<2x32x32xf32>
    %c3_126 = arith.constant 3 : index
    %c0_127 = arith.constant 0 : index
    %c0_128 = arith.constant 0 : index
    %c0_129 = arith.constant 0 : index
    %167 = vector.load %arg8[%c3_126, %c0_127, %c0_128, %c0_129] : memref<4x2x32x32xf32, #tpu.memory_space<vmem>>, vector<1x2x32x32xf32>
    %168 = vector.shape_cast %167 : vector<1x2x32x32xf32> to vector<2x32x32xf32>
    %c31_i32_130 = arith.constant 31 : i32
    %169 = tpu.dynamic_rotate %162 by %c31_i32_130 dim 2 : vector<2x32x32xf32>, i32 -> vector<2x32x32xf32>
    %c31_i32_131 = arith.constant 31 : i32
    %170 = vector.broadcast %c31_i32_131 : i32 to vector<2x32x32xi32>
    %171 = arith.cmpi slt, %35, %170 : vector<2x32x32xi32>
    %cst_132 = arith.constant 0.000000e+00 : f32
    %172 = vector.broadcast %cst_132 : f32 to vector<2x32x32xf32>
    %173 = arith.select %171, %169, %172 : vector<2x32x32xi1>, vector<2x32x32xf32>
    %c31_i32_133 = arith.constant 31 : i32
    %174 = tpu.dynamic_rotate %162 by %c31_i32_133 dim 1 : vector<2x32x32xf32>, i32 -> vector<2x32x32xf32>
    %c31_i32_134 = arith.constant 31 : i32
    %175 = vector.broadcast %c31_i32_134 : i32 to vector<2x32x32xi32>
    %176 = arith.cmpi slt, %34, %175 : vector<2x32x32xi32>
    %cst_135 = arith.constant 0.000000e+00 : f32
    %177 = vector.broadcast %cst_135 : f32 to vector<2x32x32xf32>
    %178 = arith.select %176, %174, %177 : vector<2x32x32xi1>, vector<2x32x32xf32>
    %c31_i32_136 = arith.constant 31 : i32
    %179 = tpu.dynamic_rotate %162 by %c31_i32_136 dim 1 : vector<2x32x32xf32>, i32 -> vector<2x32x32xf32>
    %c31_i32_137 = arith.constant 31 : i32
    %180 = vector.broadcast %c31_i32_137 : i32 to vector<2x32x32xi32>
    %181 = arith.cmpi slt, %34, %180 : vector<2x32x32xi32>
    %cst_138 = arith.constant 0.000000e+00 : f32
    %182 = vector.broadcast %cst_138 : f32 to vector<2x32x32xf32>
    %183 = arith.select %181, %179, %182 : vector<2x32x32xi1>, vector<2x32x32xf32>
    %c31_i32_139 = arith.constant 31 : i32
    %184 = tpu.dynamic_rotate %183 by %c31_i32_139 dim 2 : vector<2x32x32xf32>, i32 -> vector<2x32x32xf32>
    %c31_i32_140 = arith.constant 31 : i32
    %185 = vector.broadcast %c31_i32_140 : i32 to vector<2x32x32xi32>
    %186 = arith.cmpi slt, %35, %185 : vector<2x32x32xi32>
    %cst_141 = arith.constant 0.000000e+00 : f32
    %187 = vector.broadcast %cst_141 : f32 to vector<2x32x32xf32>
    %188 = arith.select %186, %184, %187 : vector<2x32x32xi1>, vector<2x32x32xf32>
    %c1_i32_142 = arith.constant 1 : i32
    %189 = tpu.dynamic_rotate %164 by %c1_i32_142 dim 2 : vector<2x32x32xf32>, i32 -> vector<2x32x32xf32>
    %c1_i32_143 = arith.constant 1 : i32
    %190 = vector.broadcast %c1_i32_143 : i32 to vector<2x32x32xi32>
    %191 = arith.cmpi sge, %35, %190 : vector<2x32x32xi32>
    %cst_144 = arith.constant 0.000000e+00 : f32
    %192 = vector.broadcast %cst_144 : f32 to vector<2x32x32xf32>
    %193 = arith.select %191, %189, %192 : vector<2x32x32xi1>, vector<2x32x32xf32>
    %c31_i32_145 = arith.constant 31 : i32
    %194 = tpu.dynamic_rotate %164 by %c31_i32_145 dim 1 : vector<2x32x32xf32>, i32 -> vector<2x32x32xf32>
    %c31_i32_146 = arith.constant 31 : i32
    %195 = vector.broadcast %c31_i32_146 : i32 to vector<2x32x32xi32>
    %196 = arith.cmpi slt, %34, %195 : vector<2x32x32xi32>
    %cst_147 = arith.constant 0.000000e+00 : f32
    %197 = vector.broadcast %cst_147 : f32 to vector<2x32x32xf32>
    %198 = arith.select %196, %194, %197 : vector<2x32x32xi1>, vector<2x32x32xf32>
    %c1_i32_148 = arith.constant 1 : i32
    %199 = tpu.dynamic_rotate %198 by %c1_i32_148 dim 2 : vector<2x32x32xf32>, i32 -> vector<2x32x32xf32>
    %c1_i32_149 = arith.constant 1 : i32
    %200 = vector.broadcast %c1_i32_149 : i32 to vector<2x32x32xi32>
    %201 = arith.cmpi sge, %35, %200 : vector<2x32x32xi32>
    %cst_150 = arith.constant 0.000000e+00 : f32
    %202 = vector.broadcast %cst_150 : f32 to vector<2x32x32xf32>
    %203 = arith.select %201, %199, %202 : vector<2x32x32xi1>, vector<2x32x32xf32>
    %c31_i32_151 = arith.constant 31 : i32
    %204 = tpu.dynamic_rotate %164 by %c31_i32_151 dim 1 : vector<2x32x32xf32>, i32 -> vector<2x32x32xf32>
    %c31_i32_152 = arith.constant 31 : i32
    %205 = vector.broadcast %c31_i32_152 : i32 to vector<2x32x32xi32>
    %206 = arith.cmpi slt, %34, %205 : vector<2x32x32xi32>
    %cst_153 = arith.constant 0.000000e+00 : f32
    %207 = vector.broadcast %cst_153 : f32 to vector<2x32x32xf32>
    %208 = arith.select %206, %204, %207 : vector<2x32x32xi1>, vector<2x32x32xf32>
    %c1_i32_154 = arith.constant 1 : i32
    %209 = tpu.dynamic_rotate %166 by %c1_i32_154 dim 1 : vector<2x32x32xf32>, i32 -> vector<2x32x32xf32>
    %c1_i32_155 = arith.constant 1 : i32
    %210 = vector.broadcast %c1_i32_155 : i32 to vector<2x32x32xi32>
    %211 = arith.cmpi sge, %34, %210 : vector<2x32x32xi32>
    %cst_156 = arith.constant 0.000000e+00 : f32
    %212 = vector.broadcast %cst_156 : f32 to vector<2x32x32xf32>
    %213 = arith.select %211, %209, %212 : vector<2x32x32xi1>, vector<2x32x32xf32>
    %c1_i32_157 = arith.constant 1 : i32
    %214 = tpu.dynamic_rotate %166 by %c1_i32_157 dim 1 : vector<2x32x32xf32>, i32 -> vector<2x32x32xf32>
    %c1_i32_158 = arith.constant 1 : i32
    %215 = vector.broadcast %c1_i32_158 : i32 to vector<2x32x32xi32>
    %216 = arith.cmpi sge, %34, %215 : vector<2x32x32xi32>
    %cst_159 = arith.constant 0.000000e+00 : f32
    %217 = vector.broadcast %cst_159 : f32 to vector<2x32x32xf32>
    %218 = arith.select %216, %214, %217 : vector<2x32x32xi1>, vector<2x32x32xf32>
    %c31_i32_160 = arith.constant 31 : i32
    %219 = tpu.dynamic_rotate %218 by %c31_i32_160 dim 2 : vector<2x32x32xf32>, i32 -> vector<2x32x32xf32>
    %c31_i32_161 = arith.constant 31 : i32
    %220 = vector.broadcast %c31_i32_161 : i32 to vector<2x32x32xi32>
    %221 = arith.cmpi slt, %35, %220 : vector<2x32x32xi32>
    %cst_162 = arith.constant 0.000000e+00 : f32
    %222 = vector.broadcast %cst_162 : f32 to vector<2x32x32xf32>
    %223 = arith.select %221, %219, %222 : vector<2x32x32xi1>, vector<2x32x32xf32>
    %c31_i32_163 = arith.constant 31 : i32
    %224 = tpu.dynamic_rotate %166 by %c31_i32_163 dim 2 : vector<2x32x32xf32>, i32 -> vector<2x32x32xf32>
    %c31_i32_164 = arith.constant 31 : i32
    %225 = vector.broadcast %c31_i32_164 : i32 to vector<2x32x32xi32>
    %226 = arith.cmpi slt, %35, %225 : vector<2x32x32xi32>
    %cst_165 = arith.constant 0.000000e+00 : f32
    %227 = vector.broadcast %cst_165 : f32 to vector<2x32x32xf32>
    %228 = arith.select %226, %224, %227 : vector<2x32x32xi1>, vector<2x32x32xf32>
    %c1_i32_166 = arith.constant 1 : i32
    %229 = tpu.dynamic_rotate %168 by %c1_i32_166 dim 1 : vector<2x32x32xf32>, i32 -> vector<2x32x32xf32>
    %c1_i32_167 = arith.constant 1 : i32
    %230 = vector.broadcast %c1_i32_167 : i32 to vector<2x32x32xi32>
    %231 = arith.cmpi sge, %34, %230 : vector<2x32x32xi32>
    %cst_168 = arith.constant 0.000000e+00 : f32
    %232 = vector.broadcast %cst_168 : f32 to vector<2x32x32xf32>
    %233 = arith.select %231, %229, %232 : vector<2x32x32xi1>, vector<2x32x32xf32>
    %c1_i32_169 = arith.constant 1 : i32
    %234 = tpu.dynamic_rotate %233 by %c1_i32_169 dim 2 : vector<2x32x32xf32>, i32 -> vector<2x32x32xf32>
    %c1_i32_170 = arith.constant 1 : i32
    %235 = vector.broadcast %c1_i32_170 : i32 to vector<2x32x32xi32>
    %236 = arith.cmpi sge, %35, %235 : vector<2x32x32xi32>
    %cst_171 = arith.constant 0.000000e+00 : f32
    %237 = vector.broadcast %cst_171 : f32 to vector<2x32x32xf32>
    %238 = arith.select %236, %234, %237 : vector<2x32x32xi1>, vector<2x32x32xf32>
    %c1_i32_172 = arith.constant 1 : i32
    %239 = tpu.dynamic_rotate %168 by %c1_i32_172 dim 1 : vector<2x32x32xf32>, i32 -> vector<2x32x32xf32>
    %c1_i32_173 = arith.constant 1 : i32
    %240 = vector.broadcast %c1_i32_173 : i32 to vector<2x32x32xi32>
    %241 = arith.cmpi sge, %34, %240 : vector<2x32x32xi32>
    %cst_174 = arith.constant 0.000000e+00 : f32
    %242 = vector.broadcast %cst_174 : f32 to vector<2x32x32xf32>
    %243 = arith.select %241, %239, %242 : vector<2x32x32xi1>, vector<2x32x32xf32>
    %c1_i32_175 = arith.constant 1 : i32
    %244 = tpu.dynamic_rotate %168 by %c1_i32_175 dim 2 : vector<2x32x32xf32>, i32 -> vector<2x32x32xf32>
    %c1_i32_176 = arith.constant 1 : i32
    %245 = vector.broadcast %c1_i32_176 : i32 to vector<2x32x32xi32>
    %246 = arith.cmpi sge, %35, %245 : vector<2x32x32xi32>
    %cst_177 = arith.constant 0.000000e+00 : f32
    %247 = vector.broadcast %cst_177 : f32 to vector<2x32x32xf32>
    %248 = arith.select %246, %244, %247 : vector<2x32x32xi1>, vector<2x32x32xf32>
    %249 = vector.broadcast %21 : f32 to vector<2x32x32xf32>
    %250 = arith.mulf %162, %249 : vector<2x32x32xf32>
    %251 = vector.broadcast %23 : f32 to vector<2x32x32xf32>
    %252 = arith.mulf %193, %251 : vector<2x32x32xf32>
    %253 = arith.addf %250, %252 : vector<2x32x32xf32>
    %254 = vector.broadcast %29 : f32 to vector<2x32x32xf32>
    %255 = arith.mulf %213, %254 : vector<2x32x32xf32>
    %256 = arith.addf %253, %255 : vector<2x32x32xf32>
    %257 = vector.broadcast %31 : f32 to vector<2x32x32xf32>
    %258 = arith.mulf %238, %257 : vector<2x32x32xf32>
    %259 = arith.addf %256, %258 : vector<2x32x32xf32>
    %260 = vector.broadcast %33 : f32 to vector<2x32x32xf32>
    %261 = arith.addf %259, %260 : vector<2x32x32xf32>
    %262 = arith.negf %261 : vector<2x32x32xf32>
    %263 = math.exp %262 : vector<2x32x32xf32>
    %cst_178 = arith.constant 1.000000e+00 : f32
    %264 = vector.broadcast %cst_178 : f32 to vector<2x32x32xf32>
    %265 = arith.addf %264, %263 : vector<2x32x32xf32>
    %266 = arith.divf %264, %265 : vector<2x32x32xf32>
    %267 = arith.truncf %266 : vector<2x32x32xf32> to vector<2x32x32xbf16>
    %c0_179 = arith.constant 0 : index
    %c0_180 = arith.constant 0 : index
    %c0_181 = arith.constant 0 : index
    %268 = vector.load %arg9[%c0_179, %c0_180, %c0_181] : memref<2x128x128xbf16, #tpu.memory_space<vmem>>, vector<2x32x32xbf16>
    tpu.vector_store %arg9[%c0_179, %c0_180, %c0_181], %267 {strides = array<i32>} : memref<2x128x128xbf16, #tpu.memory_space<vmem>>, vector<2x32x32xbf16>,
    %269 = vector.broadcast %20 : f32 to vector<2x32x32xf32>
    %270 = arith.mulf %164, %269 : vector<2x32x32xf32>
    %271 = vector.broadcast %22 : f32 to vector<2x32x32xf32>
    %272 = arith.mulf %162, %271 : vector<2x32x32xf32>
    %273 = arith.addf %270, %272 : vector<2x32x32xf32>
    %274 = vector.broadcast %28 : f32 to vector<2x32x32xf32>
    %275 = arith.mulf %243, %274 : vector<2x32x32xf32>
    %276 = arith.addf %273, %275 : vector<2x32x32xf32>
    %277 = vector.broadcast %30 : f32 to vector<2x32x32xf32>
    %278 = arith.mulf %213, %277 : vector<2x32x32xf32>
    %279 = arith.addf %276, %278 : vector<2x32x32xf32>
    %280 = vector.broadcast %33 : f32 to vector<2x32x32xf32>
    %281 = arith.addf %279, %280 : vector<2x32x32xf32>
    %282 = arith.negf %281 : vector<2x32x32xf32>
    %283 = math.exp %282 : vector<2x32x32xf32>
    %cst_182 = arith.constant 1.000000e+00 : f32
    %284 = vector.broadcast %cst_182 : f32 to vector<2x32x32xf32>
    %285 = arith.addf %284, %283 : vector<2x32x32xf32>
    %286 = arith.divf %284, %285 : vector<2x32x32xf32>
    %287 = arith.truncf %286 : vector<2x32x32xf32> to vector<2x32x32xbf16>
    %c0_183 = arith.constant 0 : index
    %c0_184 = arith.constant 0 : index
    %c32 = arith.constant 32 : index
    %288 = vector.load %arg9[%c0_183, %c0_184, %c32] : memref<2x128x128xbf16, #tpu.memory_space<vmem>>, vector<2x32x32xbf16>
    tpu.vector_store %arg9[%c0_183, %c0_184, %c32], %287 {strides = array<i32>} : memref<2x128x128xbf16, #tpu.memory_space<vmem>>, vector<2x32x32xbf16>,
    %289 = vector.broadcast %21 : f32 to vector<2x32x32xf32>
    %290 = arith.mulf %164, %289 : vector<2x32x32xf32>
    %291 = vector.broadcast %23 : f32 to vector<2x32x32xf32>
    %292 = arith.mulf %162, %291 : vector<2x32x32xf32>
    %293 = arith.addf %290, %292 : vector<2x32x32xf32>
    %294 = vector.broadcast %29 : f32 to vector<2x32x32xf32>
    %295 = arith.mulf %243, %294 : vector<2x32x32xf32>
    %296 = arith.addf %293, %295 : vector<2x32x32xf32>
    %297 = vector.broadcast %31 : f32 to vector<2x32x32xf32>
    %298 = arith.mulf %213, %297 : vector<2x32x32xf32>
    %299 = arith.addf %296, %298 : vector<2x32x32xf32>
    %300 = vector.broadcast %33 : f32 to vector<2x32x32xf32>
    %301 = arith.addf %299, %300 : vector<2x32x32xf32>
    %302 = arith.negf %301 : vector<2x32x32xf32>
    %303 = math.exp %302 : vector<2x32x32xf32>
    %cst_185 = arith.constant 1.000000e+00 : f32
    %304 = vector.broadcast %cst_185 : f32 to vector<2x32x32xf32>
    %305 = arith.addf %304, %303 : vector<2x32x32xf32>
    %306 = arith.divf %304, %305 : vector<2x32x32xf32>
    %307 = arith.truncf %306 : vector<2x32x32xf32> to vector<2x32x32xbf16>
    %c0_186 = arith.constant 0 : index
    %c0_187 = arith.constant 0 : index
    %c64 = arith.constant 64 : index
    %308 = vector.load %arg9[%c0_186, %c0_187, %c64] : memref<2x128x128xbf16, #tpu.memory_space<vmem>>, vector<2x32x32xbf16>
    tpu.vector_store %arg9[%c0_186, %c0_187, %c64], %307 {strides = array<i32>} : memref<2x128x128xbf16, #tpu.memory_space<vmem>>, vector<2x32x32xbf16>,
    %309 = vector.broadcast %20 : f32 to vector<2x32x32xf32>
    %310 = arith.mulf %173, %309 : vector<2x32x32xf32>
    %311 = vector.broadcast %22 : f32 to vector<2x32x32xf32>
    %312 = arith.mulf %164, %311 : vector<2x32x32xf32>
    %313 = arith.addf %310, %312 : vector<2x32x32xf32>
    %314 = vector.broadcast %28 : f32 to vector<2x32x32xf32>
    %315 = arith.mulf %223, %314 : vector<2x32x32xf32>
    %316 = arith.addf %313, %315 : vector<2x32x32xf32>
    %317 = vector.broadcast %30 : f32 to vector<2x32x32xf32>
    %318 = arith.mulf %243, %317 : vector<2x32x32xf32>
    %319 = arith.addf %316, %318 : vector<2x32x32xf32>
    %320 = vector.broadcast %33 : f32 to vector<2x32x32xf32>
    %321 = arith.addf %319, %320 : vector<2x32x32xf32>
    %322 = arith.negf %321 : vector<2x32x32xf32>
    %323 = math.exp %322 : vector<2x32x32xf32>
    %cst_188 = arith.constant 1.000000e+00 : f32
    %324 = vector.broadcast %cst_188 : f32 to vector<2x32x32xf32>
    %325 = arith.addf %324, %323 : vector<2x32x32xf32>
    %326 = arith.divf %324, %325 : vector<2x32x32xf32>
    %327 = arith.truncf %326 : vector<2x32x32xf32> to vector<2x32x32xbf16>
    %c0_189 = arith.constant 0 : index
    %c0_190 = arith.constant 0 : index
    %c96 = arith.constant 96 : index
    %328 = vector.load %arg9[%c0_189, %c0_190, %c96] : memref<2x128x128xbf16, #tpu.memory_space<vmem>>, vector<2x32x32xbf16>
    tpu.vector_store %arg9[%c0_189, %c0_190, %c96], %327 {strides = array<i32>} : memref<2x128x128xbf16, #tpu.memory_space<vmem>>, vector<2x32x32xbf16>,
    %329 = vector.broadcast %17 : f32 to vector<2x32x32xf32>
    %330 = arith.mulf %166, %329 : vector<2x32x32xf32>
    %331 = vector.broadcast %19 : f32 to vector<2x32x32xf32>
    %332 = arith.mulf %248, %331 : vector<2x32x32xf32>
    %333 = arith.addf %330, %332 : vector<2x32x32xf32>
    %334 = vector.broadcast %25 : f32 to vector<2x32x32xf32>
    %335 = arith.mulf %162, %334 : vector<2x32x32xf32>
    %336 = arith.addf %333, %335 : vector<2x32x32xf32>
    %337 = vector.broadcast %27 : f32 to vector<2x32x32xf32>
    %338 = arith.mulf %193, %337 : vector<2x32x32xf32>
    %339 = arith.addf %336, %338 : vector<2x32x32xf32>
    %340 = vector.broadcast %33 : f32 to vector<2x32x32xf32>
    %341 = arith.addf %339, %340 : vector<2x32x32xf32>
    %342 = arith.negf %341 : vector<2x32x32xf32>
    %343 = math.exp %342 : vector<2x32x32xf32>
    %cst_191 = arith.constant 1.000000e+00 : f32
    %344 = vector.broadcast %cst_191 : f32 to vector<2x32x32xf32>
    %345 = arith.addf %344, %343 : vector<2x32x32xf32>
    %346 = arith.divf %344, %345 : vector<2x32x32xf32>
    %347 = arith.truncf %346 : vector<2x32x32xf32> to vector<2x32x32xbf16>
    %c0_192 = arith.constant 0 : index
    %c32_193 = arith.constant 32 : index
    %c0_194 = arith.constant 0 : index
    %348 = vector.load %arg9[%c0_192, %c32_193, %c0_194] : memref<2x128x128xbf16, #tpu.memory_space<vmem>>, vector<2x32x32xbf16>
    tpu.vector_store %arg9[%c0_192, %c32_193, %c0_194], %347 {strides = array<i32>} : memref<2x128x128xbf16, #tpu.memory_space<vmem>>, vector<2x32x32xbf16>,
    %349 = vector.broadcast %16 : f32 to vector<2x32x32xf32>
    %350 = arith.mulf %168, %349 : vector<2x32x32xf32>
    %351 = vector.broadcast %18 : f32 to vector<2x32x32xf32>
    %352 = arith.mulf %166, %351 : vector<2x32x32xf32>
    %353 = arith.addf %350, %352 : vector<2x32x32xf32>
    %354 = vector.broadcast %24 : f32 to vector<2x32x32xf32>
    %355 = arith.mulf %164, %354 : vector<2x32x32xf32>
    %356 = arith.addf %353, %355 : vector<2x32x32xf32>
    %357 = vector.broadcast %26 : f32 to vector<2x32x32xf32>
    %358 = arith.mulf %162, %357 : vector<2x32x32xf32>
    %359 = arith.addf %356, %358 : vector<2x32x32xf32>
    %360 = vector.broadcast %33 : f32 to vector<2x32x32xf32>
    %361 = arith.addf %359, %360 : vector<2x32x32xf32>
    %362 = arith.negf %361 : vector<2x32x32xf32>
    %363 = math.exp %362 : vector<2x32x32xf32>
    %cst_195 = arith.constant 1.000000e+00 : f32
    %364 = vector.broadcast %cst_195 : f32 to vector<2x32x32xf32>
    %365 = arith.addf %364, %363 : vector<2x32x32xf32>
    %366 = arith.divf %364, %365 : vector<2x32x32xf32>
    %367 = arith.truncf %366 : vector<2x32x32xf32> to vector<2x32x32xbf16>
    %c0_196 = arith.constant 0 : index
    %c32_197 = arith.constant 32 : index
    %c32_198 = arith.constant 32 : index
    %368 = vector.load %arg9[%c0_196, %c32_197, %c32_198] : memref<2x128x128xbf16, #tpu.memory_space<vmem>>, vector<2x32x32xbf16>
    tpu.vector_store %arg9[%c0_196, %c32_197, %c32_198], %367 {strides = array<i32>} : memref<2x128x128xbf16, #tpu.memory_space<vmem>>, vector<2x32x32xbf16>,
    %369 = vector.broadcast %17 : f32 to vector<2x32x32xf32>
    %370 = arith.mulf %168, %369 : vector<2x32x32xf32>
    %371 = vector.broadcast %19 : f32 to vector<2x32x32xf32>
    %372 = arith.mulf %166, %371 : vector<2x32x32xf32>
    %373 = arith.addf %370, %372 : vector<2x32x32xf32>
    %374 = vector.broadcast %25 : f32 to vector<2x32x32xf32>
    %375 = arith.mulf %164, %374 : vector<2x32x32xf32>
    %376 = arith.addf %373, %375 : vector<2x32x32xf32>
    %377 = vector.broadcast %27 : f32 to vector<2x32x32xf32>
    %378 = arith.mulf %162, %377 : vector<2x32x32xf32>
    %379 = arith.addf %376, %378 : vector<2x32x32xf32>
    %380 = vector.broadcast %33 : f32 to vector<2x32x32xf32>
    %381 = arith.addf %379, %380 : vector<2x32x32xf32>
    %382 = arith.negf %381 : vector<2x32x32xf32>
    %383 = math.exp %382 : vector<2x32x32xf32>
    %cst_199 = arith.constant 1.000000e+00 : f32
    %384 = vector.broadcast %cst_199 : f32 to vector<2x32x32xf32>
    %385 = arith.addf %384, %383 : vector<2x32x32xf32>
    %386 = arith.divf %384, %385 : vector<2x32x32xf32>
    %387 = arith.truncf %386 : vector<2x32x32xf32> to vector<2x32x32xbf16>
    %c0_200 = arith.constant 0 : index
    %c32_201 = arith.constant 32 : index
    %c64_202 = arith.constant 64 : index
    %388 = vector.load %arg9[%c0_200, %c32_201, %c64_202] : memref<2x128x128xbf16, #tpu.memory_space<vmem>>, vector<2x32x32xbf16>
    tpu.vector_store %arg9[%c0_200, %c32_201, %c64_202], %387 {strides = array<i32>} : memref<2x128x128xbf16, #tpu.memory_space<vmem>>, vector<2x32x32xbf16>,
    %389 = vector.broadcast %16 : f32 to vector<2x32x32xf32>
    %390 = arith.mulf %228, %389 : vector<2x32x32xf32>
    %391 = vector.broadcast %18 : f32 to vector<2x32x32xf32>
    %392 = arith.mulf %168, %391 : vector<2x32x32xf32>
    %393 = arith.addf %390, %392 : vector<2x32x32xf32>
    %394 = vector.broadcast %24 : f32 to vector<2x32x32xf32>
    %395 = arith.mulf %173, %394 : vector<2x32x32xf32>
    %396 = arith.addf %393, %395 : vector<2x32x32xf32>
    %397 = vector.broadcast %26 : f32 to vector<2x32x32xf32>
    %398 = arith.mulf %164, %397 : vector<2x32x32xf32>
    %399 = arith.addf %396, %398 : vector<2x32x32xf32>
    %400 = vector.broadcast %33 : f32 to vector<2x32x32xf32>
    %401 = arith.addf %399, %400 : vector<2x32x32xf32>
    %402 = arith.negf %401 : vector<2x32x32xf32>
    %403 = math.exp %402 : vector<2x32x32xf32>
    %cst_203 = arith.constant 1.000000e+00 : f32
    %404 = vector.broadcast %cst_203 : f32 to vector<2x32x32xf32>
    %405 = arith.addf %404, %403 : vector<2x32x32xf32>
    %406 = arith.divf %404, %405 : vector<2x32x32xf32>
    %407 = arith.truncf %406 : vector<2x32x32xf32> to vector<2x32x32xbf16>
    %c0_204 = arith.constant 0 : index
    %c32_205 = arith.constant 32 : index
    %c96_206 = arith.constant 96 : index
    %408 = vector.load %arg9[%c0_204, %c32_205, %c96_206] : memref<2x128x128xbf16, #tpu.memory_space<vmem>>, vector<2x32x32xbf16>
    tpu.vector_store %arg9[%c0_204, %c32_205, %c96_206], %407 {strides = array<i32>} : memref<2x128x128xbf16, #tpu.memory_space<vmem>>, vector<2x32x32xbf16>,
    %409 = vector.broadcast %21 : f32 to vector<2x32x32xf32>
    %410 = arith.mulf %166, %409 : vector<2x32x32xf32>
    %411 = vector.broadcast %23 : f32 to vector<2x32x32xf32>
    %412 = arith.mulf %248, %411 : vector<2x32x32xf32>
    %413 = arith.addf %410, %412 : vector<2x32x32xf32>
    %414 = vector.broadcast %29 : f32 to vector<2x32x32xf32>
    %415 = arith.mulf %162, %414 : vector<2x32x32xf32>
    %416 = arith.addf %413, %415 : vector<2x32x32xf32>
    %417 = vector.broadcast %31 : f32 to vector<2x32x32xf32>
    %418 = arith.mulf %193, %417 : vector<2x32x32xf32>
    %419 = arith.addf %416, %418 : vector<2x32x32xf32>
    %420 = vector.broadcast %33 : f32 to vector<2x32x32xf32>
    %421 = arith.addf %419, %420 : vector<2x32x32xf32>
    %422 = arith.negf %421 : vector<2x32x32xf32>
    %423 = math.exp %422 : vector<2x32x32xf32>
    %cst_207 = arith.constant 1.000000e+00 : f32
    %424 = vector.broadcast %cst_207 : f32 to vector<2x32x32xf32>
    %425 = arith.addf %424, %423 : vector<2x32x32xf32>
    %426 = arith.divf %424, %425 : vector<2x32x32xf32>
    %427 = arith.truncf %426 : vector<2x32x32xf32> to vector<2x32x32xbf16>
    %c0_208 = arith.constant 0 : index
    %c64_209 = arith.constant 64 : index
    %c0_210 = arith.constant 0 : index
    %428 = vector.load %arg9[%c0_208, %c64_209, %c0_210] : memref<2x128x128xbf16, #tpu.memory_space<vmem>>, vector<2x32x32xbf16>
    tpu.vector_store %arg9[%c0_208, %c64_209, %c0_210], %427 {strides = array<i32>} : memref<2x128x128xbf16, #tpu.memory_space<vmem>>, vector<2x32x32xbf16>,
    %429 = vector.broadcast %20 : f32 to vector<2x32x32xf32>
    %430 = arith.mulf %168, %429 : vector<2x32x32xf32>
    %431 = vector.broadcast %22 : f32 to vector<2x32x32xf32>
    %432 = arith.mulf %166, %431 : vector<2x32x32xf32>
    %433 = arith.addf %430, %432 : vector<2x32x32xf32>
    %434 = vector.broadcast %28 : f32 to vector<2x32x32xf32>
    %435 = arith.mulf %164, %434 : vector<2x32x32xf32>
    %436 = arith.addf %433, %435 : vector<2x32x32xf32>
    %437 = vector.broadcast %30 : f32 to vector<2x32x32xf32>
    %438 = arith.mulf %162, %437 : vector<2x32x32xf32>
    %439 = arith.addf %436, %438 : vector<2x32x32xf32>
    %440 = vector.broadcast %33 : f32 to vector<2x32x32xf32>
    %441 = arith.addf %439, %440 : vector<2x32x32xf32>
    %442 = arith.negf %441 : vector<2x32x32xf32>
    %443 = math.exp %442 : vector<2x32x32xf32>
    %cst_211 = arith.constant 1.000000e+00 : f32
    %444 = vector.broadcast %cst_211 : f32 to vector<2x32x32xf32>
    %445 = arith.addf %444, %443 : vector<2x32x32xf32>
    %446 = arith.divf %444, %445 : vector<2x32x32xf32>
    %447 = arith.truncf %446 : vector<2x32x32xf32> to vector<2x32x32xbf16>
    %c0_212 = arith.constant 0 : index
    %c64_213 = arith.constant 64 : index
    %c32_214 = arith.constant 32 : index
    %448 = vector.load %arg9[%c0_212, %c64_213, %c32_214] : memref<2x128x128xbf16, #tpu.memory_space<vmem>>, vector<2x32x32xbf16>
    tpu.vector_store %arg9[%c0_212, %c64_213, %c32_214], %447 {strides = array<i32>} : memref<2x128x128xbf16, #tpu.memory_space<vmem>>, vector<2x32x32xbf16>,
    %449 = vector.broadcast %21 : f32 to vector<2x32x32xf32>
    %450 = arith.mulf %168, %449 : vector<2x32x32xf32>
    %451 = vector.broadcast %23 : f32 to vector<2x32x32xf32>
    %452 = arith.mulf %166, %451 : vector<2x32x32xf32>
    %453 = arith.addf %450, %452 : vector<2x32x32xf32>
    %454 = vector.broadcast %29 : f32 to vector<2x32x32xf32>
    %455 = arith.mulf %164, %454 : vector<2x32x32xf32>
    %456 = arith.addf %453, %455 : vector<2x32x32xf32>
    %457 = vector.broadcast %31 : f32 to vector<2x32x32xf32>
    %458 = arith.mulf %162, %457 : vector<2x32x32xf32>
    %459 = arith.addf %456, %458 : vector<2x32x32xf32>
    %460 = vector.broadcast %33 : f32 to vector<2x32x32xf32>
    %461 = arith.addf %459, %460 : vector<2x32x32xf32>
    %462 = arith.negf %461 : vector<2x32x32xf32>
    %463 = math.exp %462 : vector<2x32x32xf32>
    %cst_215 = arith.constant 1.000000e+00 : f32
    %464 = vector.broadcast %cst_215 : f32 to vector<2x32x32xf32>
    %465 = arith.addf %464, %463 : vector<2x32x32xf32>
    %466 = arith.divf %464, %465 : vector<2x32x32xf32>
    %467 = arith.truncf %466 : vector<2x32x32xf32> to vector<2x32x32xbf16>
    %c0_216 = arith.constant 0 : index
    %c64_217 = arith.constant 64 : index
    %c64_218 = arith.constant 64 : index
    %468 = vector.load %arg9[%c0_216, %c64_217, %c64_218] : memref<2x128x128xbf16, #tpu.memory_space<vmem>>, vector<2x32x32xbf16>
    tpu.vector_store %arg9[%c0_216, %c64_217, %c64_218], %467 {strides = array<i32>} : memref<2x128x128xbf16, #tpu.memory_space<vmem>>, vector<2x32x32xbf16>,
    %469 = vector.broadcast %20 : f32 to vector<2x32x32xf32>
    %470 = arith.mulf %228, %469 : vector<2x32x32xf32>
    %471 = vector.broadcast %22 : f32 to vector<2x32x32xf32>
    %472 = arith.mulf %168, %471 : vector<2x32x32xf32>
    %473 = arith.addf %470, %472 : vector<2x32x32xf32>
    %474 = vector.broadcast %28 : f32 to vector<2x32x32xf32>
    %475 = arith.mulf %173, %474 : vector<2x32x32xf32>
    %476 = arith.addf %473, %475 : vector<2x32x32xf32>
    %477 = vector.broadcast %30 : f32 to vector<2x32x32xf32>
    %478 = arith.mulf %164, %477 : vector<2x32x32xf32>
    %479 = arith.addf %476, %478 : vector<2x32x32xf32>
    %480 = vector.broadcast %33 : f32 to vector<2x32x32xf32>
    %481 = arith.addf %479, %480 : vector<2x32x32xf32>
    %482 = arith.negf %481 : vector<2x32x32xf32>
    %483 = math.exp %482 : vector<2x32x32xf32>
    %cst_219 = arith.constant 1.000000e+00 : f32
    %484 = vector.broadcast %cst_219 : f32 to vector<2x32x32xf32>
    %485 = arith.addf %484, %483 : vector<2x32x32xf32>
    %486 = arith.divf %484, %485 : vector<2x32x32xf32>
    %487 = arith.truncf %486 : vector<2x32x32xf32> to vector<2x32x32xbf16>
    %c0_220 = arith.constant 0 : index
    %c64_221 = arith.constant 64 : index
    %c96_222 = arith.constant 96 : index
    %488 = vector.load %arg9[%c0_220, %c64_221, %c96_222] : memref<2x128x128xbf16, #tpu.memory_space<vmem>>, vector<2x32x32xbf16>
    tpu.vector_store %arg9[%c0_220, %c64_221, %c96_222], %487 {strides = array<i32>} : memref<2x128x128xbf16, #tpu.memory_space<vmem>>, vector<2x32x32xbf16>,
    %489 = vector.broadcast %17 : f32 to vector<2x32x32xf32>
    %490 = arith.mulf %178, %489 : vector<2x32x32xf32>
    %491 = vector.broadcast %19 : f32 to vector<2x32x32xf32>
    %492 = arith.mulf %203, %491 : vector<2x32x32xf32>
    %493 = arith.addf %490, %492 : vector<2x32x32xf32>
    %494 = vector.broadcast %25 : f32 to vector<2x32x32xf32>
    %495 = arith.mulf %166, %494 : vector<2x32x32xf32>
    %496 = arith.addf %493, %495 : vector<2x32x32xf32>
    %497 = vector.broadcast %27 : f32 to vector<2x32x32xf32>
    %498 = arith.mulf %248, %497 : vector<2x32x32xf32>
    %499 = arith.addf %496, %498 : vector<2x32x32xf32>
    %500 = vector.broadcast %33 : f32 to vector<2x32x32xf32>
    %501 = arith.addf %499, %500 : vector<2x32x32xf32>
    %502 = arith.negf %501 : vector<2x32x32xf32>
    %503 = math.exp %502 : vector<2x32x32xf32>
    %cst_223 = arith.constant 1.000000e+00 : f32
    %504 = vector.broadcast %cst_223 : f32 to vector<2x32x32xf32>
    %505 = arith.addf %504, %503 : vector<2x32x32xf32>
    %506 = arith.divf %504, %505 : vector<2x32x32xf32>
    %507 = arith.truncf %506 : vector<2x32x32xf32> to vector<2x32x32xbf16>
    %c0_224 = arith.constant 0 : index
    %c96_225 = arith.constant 96 : index
    %c0_226 = arith.constant 0 : index
    %508 = vector.load %arg9[%c0_224, %c96_225, %c0_226] : memref<2x128x128xbf16, #tpu.memory_space<vmem>>, vector<2x32x32xbf16>
    tpu.vector_store %arg9[%c0_224, %c96_225, %c0_226], %507 {strides = array<i32>} : memref<2x128x128xbf16, #tpu.memory_space<vmem>>, vector<2x32x32xbf16>,
    %509 = vector.broadcast %16 : f32 to vector<2x32x32xf32>
    %510 = arith.mulf %208, %509 : vector<2x32x32xf32>
    %511 = vector.broadcast %18 : f32 to vector<2x32x32xf32>
    %512 = arith.mulf %178, %511 : vector<2x32x32xf32>
    %513 = arith.addf %510, %512 : vector<2x32x32xf32>
    %514 = vector.broadcast %24 : f32 to vector<2x32x32xf32>
    %515 = arith.mulf %168, %514 : vector<2x32x32xf32>
    %516 = arith.addf %513, %515 : vector<2x32x32xf32>
    %517 = vector.broadcast %26 : f32 to vector<2x32x32xf32>
    %518 = arith.mulf %166, %517 : vector<2x32x32xf32>
    %519 = arith.addf %516, %518 : vector<2x32x32xf32>
    %520 = vector.broadcast %33 : f32 to vector<2x32x32xf32>
    %521 = arith.addf %519, %520 : vector<2x32x32xf32>
    %522 = arith.negf %521 : vector<2x32x32xf32>
    %523 = math.exp %522 : vector<2x32x32xf32>
    %cst_227 = arith.constant 1.000000e+00 : f32
    %524 = vector.broadcast %cst_227 : f32 to vector<2x32x32xf32>
    %525 = arith.addf %524, %523 : vector<2x32x32xf32>
    %526 = arith.divf %524, %525 : vector<2x32x32xf32>
    %527 = arith.truncf %526 : vector<2x32x32xf32> to vector<2x32x32xbf16>
    %c0_228 = arith.constant 0 : index
    %c96_229 = arith.constant 96 : index
    %c32_230 = arith.constant 32 : index
    %528 = vector.load %arg9[%c0_228, %c96_229, %c32_230] : memref<2x128x128xbf16, #tpu.memory_space<vmem>>, vector<2x32x32xbf16>
    tpu.vector_store %arg9[%c0_228, %c96_229, %c32_230], %527 {strides = array<i32>} : memref<2x128x128xbf16, #tpu.memory_space<vmem>>, vector<2x32x32xbf16>,
    %529 = vector.broadcast %17 : f32 to vector<2x32x32xf32>
    %530 = arith.mulf %208, %529 : vector<2x32x32xf32>
    %531 = vector.broadcast %19 : f32 to vector<2x32x32xf32>
    %532 = arith.mulf %178, %531 : vector<2x32x32xf32>
    %533 = arith.addf %530, %532 : vector<2x32x32xf32>
    %534 = vector.broadcast %25 : f32 to vector<2x32x32xf32>
    %535 = arith.mulf %168, %534 : vector<2x32x32xf32>
    %536 = arith.addf %533, %535 : vector<2x32x32xf32>
    %537 = vector.broadcast %27 : f32 to vector<2x32x32xf32>
    %538 = arith.mulf %166, %537 : vector<2x32x32xf32>
    %539 = arith.addf %536, %538 : vector<2x32x32xf32>
    %540 = vector.broadcast %33 : f32 to vector<2x32x32xf32>
    %541 = arith.addf %539, %540 : vector<2x32x32xf32>
    %542 = arith.negf %541 : vector<2x32x32xf32>
    %543 = math.exp %542 : vector<2x32x32xf32>
    %cst_231 = arith.constant 1.000000e+00 : f32
    %544 = vector.broadcast %cst_231 : f32 to vector<2x32x32xf32>
    %545 = arith.addf %544, %543 : vector<2x32x32xf32>
    %546 = arith.divf %544, %545 : vector<2x32x32xf32>
    %547 = arith.truncf %546 : vector<2x32x32xf32> to vector<2x32x32xbf16>
    %c0_232 = arith.constant 0 : index
    %c96_233 = arith.constant 96 : index
    %c64_234 = arith.constant 64 : index
    %548 = vector.load %arg9[%c0_232, %c96_233, %c64_234] : memref<2x128x128xbf16, #tpu.memory_space<vmem>>, vector<2x32x32xbf16>
    tpu.vector_store %arg9[%c0_232, %c96_233, %c64_234], %547 {strides = array<i32>} : memref<2x128x128xbf16, #tpu.memory_space<vmem>>, vector<2x32x32xbf16>,
    %549 = vector.broadcast %16 : f32 to vector<2x32x32xf32>
    %550 = arith.mulf %188, %549 : vector<2x32x32xf32>
    %551 = vector.broadcast %18 : f32 to vector<2x32x32xf32>
    %552 = arith.mulf %208, %551 : vector<2x32x32xf32>
    %553 = arith.addf %550, %552 : vector<2x32x32xf32>
    %554 = vector.broadcast %24 : f32 to vector<2x32x32xf32>
    %555 = arith.mulf %228, %554 : vector<2x32x32xf32>
    %556 = arith.addf %553, %555 : vector<2x32x32xf32>
    %557 = vector.broadcast %26 : f32 to vector<2x32x32xf32>
    %558 = arith.mulf %168, %557 : vector<2x32x32xf32>
    %559 = arith.addf %556, %558 : vector<2x32x32xf32>
    %560 = vector.broadcast %33 : f32 to vector<2x32x32xf32>
    %561 = arith.addf %559, %560 : vector<2x32x32xf32>
    %562 = arith.negf %561 : vector<2x32x32xf32>
    %563 = math.exp %562 : vector<2x32x32xf32>
    %cst_235 = arith.constant 1.000000e+00 : f32
    %564 = vector.broadcast %cst_235 : f32 to vector<2x32x32xf32>
    %565 = arith.addf %564, %563 : vector<2x32x32xf32>
    %566 = arith.divf %564, %565 : vector<2x32x32xf32>
    %567 = arith.truncf %566 : vector<2x32x32xf32> to vector<2x32x32xbf16>
    %c0_236 = arith.constant 0 : index
    %c96_237 = arith.constant 96 : index
    %c96_238 = arith.constant 96 : index
    %568 = vector.load %arg9[%c0_236, %c96_237, %c96_238] : memref<2x128x128xbf16, #tpu.memory_space<vmem>>, vector<2x32x32xbf16>
    tpu.vector_store %arg9[%c0_236, %c96_237, %c96_238], %567 {strides = array<i32>} : memref<2x128x128xbf16, #tpu.memory_space<vmem>>, vector<2x32x32xbf16>,
    %c0_239 = arith.constant 0 : index
    %c0_240 = arith.constant 0 : index
    %569 = vector.load %arg4[%c0_239, %c0_240] : memref<128x128xbf16, #tpu.memory_space<vmem>>, vector<128x128xbf16>
    %c0_241 = arith.constant 0 : index
    %c0_242 = arith.constant 0 : index
    %570 = vector.load %arg5[%c0_241, %c0_242] : memref<128x128xbf16, #tpu.memory_space<vmem>>, vector<128x128xbf16>
    %c0_243 = arith.constant 0 : index
    %c0_244 = arith.constant 0 : index
    %c0_245 = arith.constant 0 : index
    %571 = vector.load %arg9[%c0_243, %c0_244, %c0_245] : memref<2x128x128xbf16, #tpu.memory_space<vmem>>, vector<1x128x128xbf16>
    %572 = vector.shape_cast %571 : vector<1x128x128xbf16> to vector<128x128xbf16>
    %cst_246 = arith.constant dense<0.000000e+00> : vector<128x128xf32>
    %573 = tpu.matmul %569, %572, %cst_246 {dimension_numbers = #tpu.dot_dimension_numbers<[1], [0], [0], [1], [0, 0, 1, 1], [], []>} : vector<128x128xbf16>, vector<128x128xbf16>, vector<128x128xf32> -> vector<128x128xf32>
    %574 = arith.truncf %573 : vector<128x128xf32> to vector<128x128xbf16>
    %cst_247 = arith.constant dense<0.000000e+00> : vector<128x128xf32>
    %575 = tpu.matmul %574, %570, %cst_247 {dimension_numbers = #tpu.dot_dimension_numbers<[1], [0], [0], [1], [0, 0, 1, 1], [], []>} : vector<128x128xbf16>, vector<128x128xbf16>, vector<128x128xf32> -> vector<128x128xf32>
    %576 = arith.truncf %575 : vector<128x128xf32> to vector<128x128xbf16>
    %c0_248 = arith.constant 0 : index
    %c0_249 = arith.constant 0 : index
    %c0_250 = arith.constant 0 : index
    %577 = vector.load %arg7[%c0_248, %c0_249, %c0_250] : memref<2x128x128xbf16, #tpu.memory_space<vmem>>, vector<1x128x128xbf16>
    %578 = vector.shape_cast %577 : vector<1x128x128xbf16> to vector<128x128xbf16>
    %579 = vector.shape_cast %576 : vector<128x128xbf16> to vector<1x128x128xbf16>
    tpu.vector_store %arg7[%c0_248, %c0_249, %c0_250], %579 {strides = array<i32>} : memref<2x128x128xbf16, #tpu.memory_space<vmem>>, vector<1x128x128xbf16>,
    %c1_251 = arith.constant 1 : index
    %c0_252 = arith.constant 0 : index
    %c0_253 = arith.constant 0 : index
    %580 = vector.load %arg9[%c1_251, %c0_252, %c0_253] : memref<2x128x128xbf16, #tpu.memory_space<vmem>>, vector<1x128x128xbf16>
    %581 = vector.shape_cast %580 : vector<1x128x128xbf16> to vector<128x128xbf16>
    %cst_254 = arith.constant dense<0.000000e+00> : vector<128x128xf32>
    %582 = tpu.matmul %569, %581, %cst_254 {dimension_numbers = #tpu.dot_dimension_numbers<[1], [0], [0], [1], [0, 0, 1, 1], [], []>} : vector<128x128xbf16>, vector<128x128xbf16>, vector<128x128xf32> -> vector<128x128xf32>
    %583 = arith.truncf %582 : vector<128x128xf32> to vector<128x128xbf16>
    %cst_255 = arith.constant dense<0.000000e+00> : vector<128x128xf32>
    %584 = tpu.matmul %583, %570, %cst_255 {dimension_numbers = #tpu.dot_dimension_numbers<[1], [0], [0], [1], [0, 0, 1, 1], [], []>} : vector<128x128xbf16>, vector<128x128xbf16>, vector<128x128xf32> -> vector<128x128xf32>
    %585 = arith.truncf %584 : vector<128x128xf32> to vector<128x128xbf16>
    %c1_256 = arith.constant 1 : index
    %c0_257 = arith.constant 0 : index
    %c0_258 = arith.constant 0 : index
    %586 = vector.load %arg7[%c1_256, %c0_257, %c0_258] : memref<2x128x128xbf16, #tpu.memory_space<vmem>>, vector<1x128x128xbf16>
    %587 = vector.shape_cast %586 : vector<1x128x128xbf16> to vector<128x128xbf16>
    %588 = vector.shape_cast %585 : vector<128x128xbf16> to vector<1x128x128xbf16>
    tpu.vector_store %arg7[%c1_256, %c0_257, %c0_258], %588 {strides = array<i32>} : memref<2x128x128xbf16, #tpu.memory_space<vmem>>, vector<1x128x128xbf16>,
    return
  }
  func.func @transform_0(%arg0: i32) -> (i32, i32) {
    %c0_i32 = arith.constant 0 : i32
    %c0_i32_0 = arith.constant 0 : i32
    %c0_i32_1 = arith.constant 0 : i32
    return %c0_i32, %c0_i32_0 : i32, i32
  }
  func.func @transform_1(%arg0: i32) -> (i32, i32) {
    %c0_i32 = arith.constant 0 : i32
    %c0_i32_0 = arith.constant 0 : i32
    %c0_i32_1 = arith.constant 0 : i32
    return %c0_i32, %c0_i32_0 : i32, i32
  }
  func.func @transform_2(%arg0: i32) -> i32 {
    %c0_i32 = arith.constant 0 : i32
    %c0_i32_0 = arith.constant 0 : i32
    return %c0_i32 : i32
  }
  func.func @transform_3(%arg0: i32) -> (i32, i32) {
    %c0_i32 = arith.constant 0 : i32
    %c0_i32_0 = arith.constant 0 : i32
    %c0_i32_1 = arith.constant 0 : i32
    return %c0_i32, %c0_i32_0 : i32, i32
  }
  func.func @transform_4(%arg0: i32) -> (i32, i32) {
    %c0_i32 = arith.constant 0 : i32
    %c0_i32_0 = arith.constant 0 : i32
    %c0_i32_1 = arith.constant 0 : i32
    return %c0_i32, %c0_i32_0 : i32, i32
  }
  func.func @transform_5(%arg0: i32) -> (i32, i32, i32) {
    %c0_i32 = arith.constant 0 : i32
    %c0_i32_0 = arith.constant 0 : i32
    %c0_i32_1 = arith.constant 0 : i32
    return %arg0, %c0_i32, %c0_i32_0 : i32, i32, i32
  }
  func.func @transform_6(%arg0: i32) -> (i32, i32, i32) {
    %c0_i32 = arith.constant 0 : i32
    %c0_i32_0 = arith.constant 0 : i32
    %c0_i32_1 = arith.constant 0 : i32
    return %arg0, %c0_i32, %c0_i32_0 : i32, i32, i32
  }
}

</mosaic_0001>

<bundles_post_ra>
// kernel: _lambda_.1
= control target key start
LH: loop header
LB: loop body
LE: loop exit
PB: predicated region body
PF: predicated region fallthrough
CT: control target
= control target key end

     0   :  { %11 = vsyncpa [#allocation6], 0  ;;  %s11971_s0 = inlined_call_operand.vmem [shape: f32[4,4], index: 0, kind: input, shape index: {}]   ;;  %s11972_s1 = inlined_call_operand.vmem [shape: f32[4,4], index: 1, kind: input, shape index: {}]   ;;  %s11973_s2 = inlined_call_operand.vmem [shape: f32[2], index: 2, kind: input, shape index: {}]   ;;  %s11974_s3 = inlined_call_operand.vmem [shape: bf16[128,128], index: 3, kind: input, shape index: {}]   ;;  %s11975_s4 = inlined_call_operand.vmem [shape: bf16[128,128], index: 4, kind: input, shape index: {}]   ;;  %s11976_s5 = inlined_call_operand.vmem [shape: f32[2,32,32], index: 5, kind: input, shape index: {}]   ;;  %s11977_s6 = inlined_call_operand.hbm [shape: bf16[2,128,128], index: 6, kind: output, shape index: {}]  }
   0x1   :  { %12 = vsyncpa [#allocation8], 0  ;;  %s30_s23 = sshll.u32 %s11972_s1, 4  ;;  %s31_s23 = int_to_ptr.vmem [resolvable:$true] %s30_s23 }
   0x2   :  { %13 = vsyncpa [#allocation5], 0  ;;  %s20_s26 = sshll.u32 %s11971_s0, 4  ;;  %s6576_s27 = scalar_lea.vmem %s31_s23, 64  ;;  %s21_s26 = int_to_ptr.vmem [resolvable:$true] %s20_s26 }
   0x3   :  { %p6577_p0 = scmp.ne.s32.totalorder %s31_s23, %s6576_s27  ;;  %p6581_p1 = scmp.lt.s32.totalorder %s31_s23, %s31_s23 }
   0x4   :  { %p6582_p2 = scmp.lt.s32.totalorder %s6576_s27, %s6576_s27 }
   0x6   :  { %p6583_p3 = por %p6582_p2, %p6581_p1 }
   0x8   :  { %p6584_p4 = pnand %p6583_p3, %p6577_p0 }
   0xa   :  { %6587 = shalt.err (!%p6584_p4)
}
   0xb   :  { %s6638_s28 = smov [#allocation7]   ;;  %s6588_s29 = scalar_lea.vmem %s21_s26, 64 }
   0xc   :  { %33 = dma.vmem_to_smem %s31_s23, 64, %s6638_s28, [#allocation8]  }
   0xd   :  { %p6589_p5 = scmp.ne.s32.totalorder %s21_s26, %s6588_s29  ;;  %p6593_p6 = scmp.lt.s32.totalorder %s21_s26, %s21_s26 }
   0xe   :  { %p6594_p7 = scmp.lt.s32.totalorder %s6588_s29, %s6588_s29 }
  0x10   :  { %p6595_p8 = por %p6594_p7, %p6593_p6 }
  0x12   :  { %p6596_p9 = pnand %p6595_p8, %p6589_p5 }
  0x14   :  { %6599 = shalt.err (!%p6596_p9)
}
  0x15   :  { %s6639_s1 = smov [#allocation4]   ;;  %s40_s7 = sshll.u32 %s11973_s2, 4  ;;  %s41_s7 = int_to_ptr.vmem [resolvable:$true] %s40_s7 }
  0x16   :  { %23 = dma.vmem_to_smem %s21_s26, 64, %s6639_s1, [#allocation6]  }
  0x17   :  { %s6600_s8 = scalar_lea.vmem %s41_s7, 16  ;;  %p6605_p11 = scmp.lt.s32.totalorder %s41_s7, %s41_s7 }
  0x18   :  { %p6601_p10 = scmp.ne.s32.totalorder %s41_s7, %s6600_s8  ;;  %p6606_p12 = scmp.lt.s32.totalorder %s6600_s8, %s6600_s8 }
  0x1a   :  { %p6607_p13 = por %p6606_p12, %p6605_p11 }
  0x1c   :  { %p6608_p0 = pnand %p6607_p13, %p6601_p10 }
  0x1e   :  { %6611 = shalt.err (!%p6608_p0)
}
  0x1f   :  { %s6640_s9 = smov [#allocation9]  }
  0x20   :  { %43 = dma.vmem_to_smem %s41_s7, 16, %s6640_s9, [#allocation8]  }
  0x21   :  { %6632 = dma.done.wait [#allocation6], 64  }
  0x22   :  { %6633 = vsyncadd [#allocation6], 4294967232 }
  0x23   :  { %6634 = dma.done.wait [#allocation8], 80  }
  0x24   :  { %6635 = vsyncadd [#allocation8], 4294967216 }
  0x25   :  { %59 = sfence }
  0x26   :  { %v6695_v0 = vld [vmem:[%s11976_s5] sm:$0xff]  ;;  %v6700_v1 = vld [vmem:[%s11976_s5 + $0x10] sm:$0xff]  ;;  %v6705_v2 = vld [vmem:[%s11976_s5 + $0x18] sm:$0xff]  ;;  %v95_v3 = vlaneseq  ;;  %s6641_s15 = smov 32   ;;  %vm139_vm4 = vcmask 1047808   ;;  %s6642_s26 = smov 97  }
  0x27   :  { %262 = vrot.lane.b32.xlu0 %v6695_v0, %s6641_s15  ;;  %268 = vrot.lane.b32.xlu1 %v6700_v1, %s6641_s15  ;;  %v110_v4 = vrot.slane %v6695_v0, 7  ;;  %v116_v5 = vrot.slane %v6705_v2, 7  ;;  %v6716_v6 = vld [vmem:[%s11976_s5 + $0x8] sm:$0xff]  ;;  %v114_v8 = vrot.slane %v6700_v1, 7  ;;  %v388_v10 = vrot.slane %v6705_v2, 1  ;;  %v6789_v25 = vld [vmem:[%s11976_s5 + $0x20] sm:$0xff] }
  0x28   :  { %v6719_v7 = vshrl.u32 %v95_v3, 7  ;;  %v112_v9 = vrot.slane %v6716_v6, 7  ;;  %v382_v12 = vrot.slane %v6695_v0, 1  ;;  %v386_v17 = vrot.slane %v6700_v1, 1  ;;  %v6797_v27 = vld [vmem:[%s11976_s5 + $0x38] sm:$0xff]  ;;  %v6804_v28 = vld [vmem:[%s11976_s5 + $0x30] sm:$0xff] }
  0x29   :  { %v384_v21 = vrot.slane %v6716_v6, 1  ;;  %v111_v26 = vrot.slane %v6789_v25, 7  ;;  %v117_v29 = vrot.slane %v6797_v27, 7  ;;  %v115_v31 = vrot.slane %v6804_v28, 7  ;;  %v6817_v32 = vld [vmem:[%s11976_s5 + $0x28] sm:$0xff]  ;;  %s6643_s27 = smov 127  }
  0x2a   :  { %12236 = vst [vmem:[#allocation14_spill] sm:$0xff] %v6719_v7  ;;  %vm118_vm0 = vcmp.lt.s32.totalorder %v6719_v7, 1  ;;  %vm127_vm1 = vcmp.ge.s32.totalorder %v6719_v7, 1  ;;  %vm390_vm2 = vcmp.lt.s32.totalorder %v6719_v7, 7  ;;  %v6741_v15 = vadd.s32 24, %v6719_v7  ;;  %12240 = vst [vmem:[#allocation18_spill] sm:$0xff] %v6817_v32 }
  0x2b   :  { %271 = vrot.lane.b32.xlu0 %v6705_v2, %s6641_s15  ;;  %v125_v11 = vsel %vm118_vm0, %v116_v5, %v110_v4  ;;  %v6738_v14 = vsel %vm118_vm0, %v114_v8, %v116_v5  ;;  %v6747_v16 = vsel %vm118_vm0, %v112_v9, %v114_v8  ;;  %v397_v18 = vsel %vm390_vm2, %v388_v10, %v382_v12  ;;  %s5161_s28 = sld [smem:[#allocation4 + $0x81]]  ;;  %s6644_s21 = smov 64  }
  0x2c   :  { %v6734_v13 = vsel %vm127_vm1, %v125_v11, 0.0  ;;  %12238 = vst [vmem:[#allocation16_spill] sm:$0xff] %v6741_v15  ;;  %vm402_vm3 = vcmp.lt.s32.totalorder %v6741_v15, 31  ;;  %v6759_v19 = vsel %vm390_vm2, %v386_v17, %v388_v10  ;;  %v6772_v22 = vsel %vm118_vm0, %v110_v4, %v112_v9  ;;  %s5163_s29 = sld [smem:[#allocation4 + $0x83]] }
  0x2d   :  { %12237 = vst [vmem:[#allocation15_spill] sm:$0xff] %v6734_v13  ;;  %140 = vrot.lane.b32.xlu1 %v6734_v13, %s6641_s15  ;;  %v6763_v20 = vsel %vm402_vm3, %v397_v18, 0.0  ;;  %v6778_v23 = vsel %vm390_vm2, %v382_v12, %v384_v21  ;;  %v6784_v24 = vsel %vm390_vm2, %v384_v21, %v386_v17  ;;  %v126_v30 = vsel %vm118_vm0, %v117_v29, %v111_v26  ;;  %s5169_s1 = sld [smem:[#allocation4 + $0x181]] }
  0x2e   :  { %12239 = vst [vmem:[#allocation17_spill] sm:$0xff] %v6763_v20  ;;  %v6821_v33 = vsel %vm127_vm1, %v126_v30, 0.0  ;;  %v113_v34 = vrot.slane %v6817_v32, 7  ;;  %v6828_v35 = vsel %vm118_vm0, %v115_v31, %v117_v29  ;;  %v383_v36 = vrot.slane %v6789_v25, 1  ;;  %s5171_s0 = sld [smem:[#allocation4 + $0x183]] }
  0x2f   :  { %149 = vrot.lane.b32.xlu0 %v6738_v14, %s6641_s15  ;;  %12241 = vst [vmem:[#allocation19_spill] sm:$0xff] %v6821_v33  ;;  %12242 = vst [vmem:[#allocation20_spill] sm:$0xff] %v6828_v35  ;;  %v389_v37 = vrot.slane %v6797_v27, 1  ;;  %v387_v39 = vrot.slane %v6804_v28, 1  ;;  %v385_v43 = vrot.slane %v6817_v32, 1  ;;  %s93_s30 = sld [smem:[#allocation9]] }
  0x30   :  { %v6836_v38 = vsel %vm118_vm0, %v113_v34, %v115_v31  ;;  %v6860_v44 = vsel %vm118_vm0, %v111_v26, %v113_v34  ;;  %s5157_s7 = sld [smem:[#allocation4 + $0x1]]  ;;  %vm600_vm6 = vcmask 261120   ;;  %vm1821_vm8 = vcmask 257024  }
  0x31   :  { %146 = vrot.lane.b32.xlu1 %v6747_v16, %s6641_s15  ;;  %v398_v40 = vsel %vm390_vm2, %v389_v37, %v383_v36  ;;  %v6847_v41 = vsel %vm390_vm2, %v387_v39, %v389_v37  ;;  %v6866_v45 = vsel %vm390_vm2, %v383_v36, %v385_v43  ;;  %v6872_v46 = vsel %vm390_vm2, %v385_v43, %v387_v39  ;;  %s5159_s8 = sld [smem:[#allocation4 + $0x3]] }
  0x32   :  { %12243 = vst [vmem:[#allocation21_spill] sm:$0xff] %v6847_v41  ;;  %v6853_v42 = vsel %vm402_vm3, %v398_v40, 0.0  ;;  %s5165_s9 = sld [smem:[#allocation4 + $0x101]]  ;;  %vm1994_vm9 = vcmask 519424   ;;  %vm2163_vm10 = vcmask 781824   ;;  %vm2332_vm11 = vcmask 1044224  }
  0x33   :  { %265 = vrot.lane.b32.xlu0 %v6716_v6, %s6641_s15  ;;  %12244 = vst [vmem:[#allocation22_spill] sm:$0xff] %v6853_v42  ;;  %s5167_s10 = sld [smem:[#allocation4 + $0x103]] }
  0x34   :  { %s5162_s11 = sld [smem:[#allocation4 + $0x82]] }
  0x35   :  { %417 = vrot.lane.b32.xlu1 %v6759_v19, %s6641_s15  ;;  %s7083_s2 = sld [smem:[#allocation4 + $0x80]] }
  0x36   :  { %s7100_s12 = sld [smem:[#allocation4 + $0x100]] }
  0x37   :  { %420 = vrot.lane.b32.xlu0 %v6763_v20, %s6641_s15  ;;  %s7170_s13 = sld [smem:[#allocation4 + $0x180]] }
  0x38   :  { %s7181_s14 = sld [smem:[#allocation4 + $0x182]] }
  0x39   :  { %143 = vrot.lane.b32.xlu1 %v6772_v22, %s6641_s15  ;;  %s7193_s16 = sld [smem:[#allocation4 + $0x2]] }
  0x3a   :  { %s7205_s17 = sld [smem:[#allocation4 + $0x102]] }
  0x3b   :  { %411 = vrot.lane.b32.xlu0 %v6778_v23, %s6641_s15  ;;  %s7229_s18 = sld [smem:[#allocation4]] }
  0x3c   :  { %s7808_s19 = sld [smem:[#allocation7 + $0x100]] }
  0x3d   :  { %414 = vrot.lane.b32.xlu1 %v6784_v24, %s6641_s15  ;;  %s5187_s20 = sld [smem:[#allocation9 + $0x1]] }
  0x3f   :  { %274 = vrot.lane.b32.xlu0 %v6789_v25, %s6641_s15 }
  0x41   :  { %283 = vrot.lane.b32.xlu1 %v6797_v27, %s6641_s15 }
  0x43   :  { %280 = vrot.lane.b32.xlu0 %v6804_v28, %s6641_s15 }
  0x45   :  { %152 = vrot.lane.b32.xlu1 %v6821_v33, %s6641_s15 }
  0x47   :  { %161 = vrot.lane.b32.xlu0 %v6828_v35, %s6641_s15 }
  0x49   :  { %158 = vrot.lane.b32.xlu1 %v6836_v38, %s6641_s15 }
  0x4b   :  { %277 = vrot.lane.b32.xlu0 %v6817_v32, %s6641_s15 }
  0x4d   :  { %429 = vrot.lane.b32.xlu1 %v6847_v41, %s6641_s15 }
  0x4f   :  { %432 = vrot.lane.b32.xlu0 %v6853_v42, %s6641_s15 }
  0x51   :  { %155 = vrot.lane.b32.xlu1 %v6860_v44, %s6641_s15 }
  0x53   :  { %423 = vrot.lane.b32.xlu0 %v6866_v45, %s6641_s15 }
  0x55   :  { %426 = vrot.lane.b32.xlu1 %v6872_v46, %s6641_s15 }
  0x99   :  { %v263_v47 = vpop.permute.xlu0 %262  ;;  %v269_v48 = vpop.permute.xlu1 %268 }
  0x9a   :  { %v264_v49 = vsel %vm139_vm4, %v263_v47, %v6695_v0  ;;  %v270_v51 = vsel %vm139_vm4, %v269_v48, %v6700_v1 }
  0x9b   :  { %286 = vrot.lane.b32.xlu0 %v264_v49, %s6641_s15 }
  0x9d   :  { %v272_v50 = vpop.permute.xlu0 %271 }
  0x9e   :  { %v273_v52 = vsel %vm139_vm4, %v272_v50, %v6705_v2 }
  0x9f   :  { %v141_v53 = vpop.permute.xlu1 %140  ;;  %290 = vrot.lane.b32.xlu0 %v270_v51, %s6641_s15  ;;  %292 = vrot.lane.b32.xlu1 %v273_v52, %s6641_s15 }
  0xa1   :  { %v150_v54 = vpop.permute.xlu0 %149 }
  0xa2   :  { %v151_v31 = vsel %vm139_vm4, %v150_v54, %v6738_v14 }
  0xa3   :  { %v147_v55 = vpop.permute.xlu1 %146 }
  0xa4   :  { %v148_v12 = vsel %vm139_vm4, %v147_v55, %v6747_v16 }
  0xa5   :  { %v266_v56 = vpop.permute.xlu0 %265 }
  0xa6   :  { %v267_v57 = vsel %vm139_vm4, %v266_v56, %v6716_v6 }
  0xa7   :  { %v418_v58 = vpop.permute.xlu1 %417  ;;  %288 = vrot.lane.b32.xlu0 %v267_v57, %s6641_s15  ;;  %v142_v57 = vsel %vm139_vm4, %v141_v53, %v6734_v13 }
  0xa8   :  { %v419_v18 = vsel %vm139_vm4, %v418_v58, %v6759_v19 }
  0xa9   :  { %v421_v59 = vpop.permute.xlu0 %420 }
  0xaa   :  { %v422_v54 = vsel %vm139_vm4, %v421_v59, %v6763_v20 }
  0xab   :  { %v144_v60 = vpop.permute.xlu1 %143 }
  0xac   :  { %v145_v30 = vsel %vm139_vm4, %v144_v60, %v6772_v22 }
  0xad   :  { %v412_v61 = vpop.permute.xlu0 %411 }
  0xae   :  { %v413_v39 = vsel %vm139_vm4, %v412_v61, %v6778_v23 }
  0xaf   :  { %v415_v62 = vpop.permute.xlu1 %414 }
  0xb0   :  { %v416_v37 = vsel %vm139_vm4, %v415_v62, %v6784_v24 }
  0xb1   :  { %v275_v63 = vpop.permute.xlu0 %274 }
  0xb2   :  { %v276_v4 = vsel %vm139_vm4, %v275_v63, %v6789_v25 }
  0xb3   :  { %v284_v5 = vpop.permute.xlu1 %283  ;;  %294 = vrot.lane.b32.xlu0 %v276_v4, %s6641_s15 }
  0xb4   :  { %v285_v8 = vsel %vm139_vm4, %v284_v5, %v6797_v27 }
  0xb5   :  { %300 = vrot.lane.b32.xlu1 %v285_v8, %s6641_s15  ;;  %v281_v9 = vpop.permute.xlu0 %280 }
  0xb6   :  { %v282_v10 = vsel %vm139_vm4, %v281_v9, %v6804_v28 }
  0xb7   :  { %298 = vrot.lane.b32.xlu0 %v282_v10, %s6641_s15  ;;  %v153_v11 = vpop.permute.xlu1 %152 }
  0xb8   :  { %v154_v58 = vsel %vm139_vm4, %v153_v11, %v6821_v33 }
  0xb9   :  { %168 = vrot.lane.b32.xlu1 %v148_v12, %s6641_s15  ;;  %v162_v17 = vpop.permute.xlu0 %161 }
  0xba   :  { %v163_v48 = vsel %vm139_vm4, %v162_v17, %v6828_v35 }
  0xbb   :  { %v159_v26 = vpop.permute.xlu1 %158 }
  0xbc   :  { %v160_v40 = vsel %vm139_vm4, %v159_v26, %v6836_v38 }
  0xbd   :  { %439 = vrot.lane.b32.xlu1 %v419_v18, %s6641_s15  ;;  %v278_v21 = vpop.permute.xlu0 %277 }
  0xbe   :  { %v279_v29 = vsel %vm139_vm4, %v278_v21, %v6817_v32 }
  0xbf   :  { %296 = vrot.lane.b32.xlu0 %v279_v29, %s6641_s15  ;;  %v430_v36 = vpop.permute.xlu1 %429 }
  0xc0   :  { %v431_v49 = vsel %vm139_vm4, %v430_v36, %v6847_v41 }
  0xc1   :  { %166 = vrot.lane.b32.xlu1 %v145_v30, %s6641_s15  ;;  %v433_v34 = vpop.permute.xlu0 %432 }
  0xc2   :  { %v434_v56 = vsel %vm139_vm4, %v433_v34, %v6853_v42 }
  0xc3   :  { %170 = vrot.lane.b32.xlu0 %v151_v31, %s6641_s15  ;;  %v156_v47 = vpop.permute.xlu1 %155 }
  0xc4   :  { %v157_v51 = vsel %vm139_vm4, %v156_v47, %v6860_v44 }
  0xc5   :  { %437 = vrot.lane.b32.xlu1 %v416_v37, %s6641_s15  ;;  %v424_v43 = vpop.permute.xlu0 %423 }
  0xc6   :  { %v425_v50 = vsel %vm139_vm4, %v424_v43, %v6866_v45 }
  0xc7   :  { %435 = vrot.lane.b32.xlu0 %v413_v39, %s6641_s15  ;;  %v427_v52 = vpop.permute.xlu1 %426 }
  0xc8   :  { %v428_v55 = vsel %vm139_vm4, %v427_v52, %v6872_v46 }
  0xc9   :  { %176 = vrot.lane.b32.xlu1 %v160_v40, %s6641_s15 }
  0xcb   :  { %178 = vrot.lane.b32.xlu0 %v163_v48, %s6641_s15 }
  0xcd   :  { %447 = vrot.lane.b32.xlu1 %v431_v49, %s6641_s15 }
  0xcf   :  { %443 = vrot.lane.b32.xlu0 %v425_v50, %s6641_s15 }
  0xd1   :  { %174 = vrot.lane.b32.xlu1 %v157_v51, %s6641_s15 }
  0xd3   :  { %441 = vrot.lane.b32.xlu0 %v422_v54, %s6641_s15 }
  0xd5   :  { %445 = vrot.lane.b32.xlu1 %v428_v55, %s6641_s15 }
  0xd7   :  { %449 = vrot.lane.b32.xlu0 %v434_v56, %s6641_s15 }
  0xd9   :  { %164 = vrot.lane.b32.xlu1 %v142_v57, %s6641_s15 }
  0xdd   :  { %172 = vrot.lane.b32.xlu1 %v154_v58, %s6641_s15 }
 0x10d   :  { %v287_v59 = vpop.permute.xlu0 %286 }
 0x10e   :  { %v302_v60 = vsel %vm139_vm4, %v287_v59, %v6695_v0 }
 0x10f   :  { %318 = vrot.lane.b32.xlu0 %v302_v60, %s6642_s26 }
 0x111   :  { %v291_v61 = vpop.permute.xlu0 %290  ;;  %v293_v62 = vpop.permute.xlu1 %292 }
 0x112   :  { %v304_v63 = vsel %vm139_vm4, %v291_v61, %v6700_v1  ;;  %v305_v53 = vsel %vm139_vm4, %v293_v62, %v6705_v2 }
 0x113   :  { %322 = vrot.lane.b32.xlu0 %v304_v63, %s6642_s26  ;;  %324 = vrot.lane.b32.xlu1 %v305_v53, %s6642_s26 }
 0x119   :  { %v289_v4 = vpop.permute.xlu0 %288 }
 0x11a   :  { %v303_v5 = vsel %vm139_vm4, %v289_v4, %v6716_v6 }
 0x11b   :  { %320 = vrot.lane.b32.xlu0 %v303_v5, %s6642_s26 }
 0x125   :  { %v295_v8 = vpop.permute.xlu0 %294 }
 0x126   :  { %v306_v9 = vsel %vm139_vm4, %v295_v8, %v6789_v25 }
 0x127   :  { %v301_v10 = vpop.permute.xlu1 %300  ;;  %326 = vrot.lane.b32.xlu0 %v306_v9, %s6642_s26 }
 0x128   :  { %v309_v11 = vsel %vm139_vm4, %v301_v10, %v6797_v27 }
 0x129   :  { %332 = vrot.lane.b32.xlu1 %v309_v11, %s6642_s26  ;;  %v299_v12 = vpop.permute.xlu0 %298 }
 0x12a   :  { %v308_v17 = vsel %vm139_vm4, %v299_v12, %v6804_v28 }
 0x12b   :  { %v169_v18 = vpop.permute.xlu1 %168  ;;  %330 = vrot.lane.b32.xlu0 %v308_v17, %s6642_s26 }
 0x12c   :  { %v182_v31 = vsel %vm139_vm4, %v169_v18, %v6747_v16  ;;  %v7049_v18 = vand.u32 127, %v95_v3 }
 0x12d   :  { %356 = vrot.lane.b32.xlu1 %v305_v53, %s6643_s27 }
 0x12e   :  { %12245 = vst [vmem:[#allocation23_spill] sm:$0xff] %v7049_v18  ;;  %vm188_vm5 = vcmp.ge.s32.totalorder %v7049_v18, 1  ;;  %vm229_vm7 = vcmp.lt.s32.totalorder %v7049_v18, 31 }
 0x12f   :  { %v440_v21 = vpop.permute.xlu1 %439 }
 0x130   :  { %v453_v36 = vsel %vm139_vm4, %v440_v21, %v6759_v19 }
 0x131   :  { %364 = vrot.lane.b32.xlu1 %v309_v11, %s6643_s27  ;;  %v297_v26 = vpop.permute.xlu0 %296 }
 0x132   :  { %v307_v29 = vsel %vm139_vm4, %v297_v26, %v6817_v32 }
 0x133   :  { %v167_v30 = vpop.permute.xlu1 %166  ;;  %328 = vrot.lane.b32.xlu0 %v307_v29, %s6642_s26 }
 0x134   :  { %v181_v39 = vsel %vm139_vm4, %v167_v30, %v6772_v22  ;;  %v7058_v30 = vstv %s5161_s28 }
 0x135   :  { %201 = vrot.lane.b32.xlu1 %v182_v31, %s6642_s26  ;;  %v171_v48 = vpop.permute.xlu0 %170 }
 0x136   :  { %v183_v55 = vsel %vm139_vm4, %v171_v48, %v6738_v14 }
 0x137   :  { %v438_v34 = vpop.permute.xlu1 %437  ;;  %350 = vrot.lane.b32.xlu0 %v302_v60, %s6643_s27 }
 0x138   :  { %v452_v40 = vsel %vm139_vm4, %v438_v34, %v6784_v24 }
 0x139   :  { %471 = vrot.lane.b32.xlu1 %v453_v36, %s6642_s26  ;;  %v436_v52 = vpop.permute.xlu0 %435 }
 0x13a   :  { %v451_v58 = vsel %vm139_vm4, %v436_v52, %v6778_v23 }
 0x13b   :  { %v177_v37 = vpop.permute.xlu1 %176  ;;  %354 = vrot.lane.b32.xlu0 %v304_v63, %s6643_s27 }
 0x13c   :  { %v186_v47 = vsel %vm139_vm4, %v177_v37, %v6836_v38  ;;  %v534_v37 = vmul.f32 %v7058_v30, %v6700_v1 }
 0x13d   :  { %199 = vrot.lane.b32.xlu1 %v181_v39, %s6642_s26  ;;  %v179_v57 = vpop.permute.xlu0 %178 }
 0x13e   :  { %v187_v59 = vsel %vm139_vm4, %v179_v57, %v6828_v35 }
 0x13f   :  { %352 = vrot.lane.b32.xlu0 %v303_v5, %s6643_s27  ;;  %v448_v43 = vpop.permute.xlu1 %447 }
 0x140   :  { %v457_v49 = vsel %vm139_vm4, %v448_v43, %v6847_v41 }
 0x141   :  { %469 = vrot.lane.b32.xlu1 %v452_v40, %s6642_s26  ;;  %v444_v60 = vpop.permute.xlu0 %443 }
 0x142   :  { %v455_v61 = vsel %vm139_vm4, %v444_v60, %v6866_v45 }
 0x143   :  { %358 = vrot.lane.b32.xlu0 %v306_v9, %s6643_s27  ;;  %v175_v50 = vpop.permute.xlu1 %174 }
 0x144   :  { %v185_v51 = vsel %vm139_vm4, %v175_v50, %v6860_v44 }
 0x145   :  { %209 = vrot.lane.b32.xlu1 %v186_v47, %s6642_s26  ;;  %v442_v5 = vpop.permute.xlu0 %441 }
 0x146   :  { %v454_v8 = vsel %vm139_vm4, %v442_v5, %v6763_v20  ;;  %v7112_v5 = vmul.f32 %v7058_v30, %v6705_v2  ;;  %v538_v20 = vmul.f32 %v7058_v30, %v6804_v28 }
 0x147   :  { %362 = vrot.lane.b32.xlu0 %v308_v17, %s6643_s27  ;;  %v446_v54 = vpop.permute.xlu1 %445 }
 0x148   :  { %v456_v56 = vsel %vm139_vm4, %v446_v54, %v6872_v46 }
 0x149   :  { %479 = vrot.lane.b32.xlu1 %v457_v49, %s6642_s26  ;;  %v450_v9 = vpop.permute.xlu0 %449 }
 0x14a   :  { %v458_v10 = vsel %vm139_vm4, %v450_v9, %v6853_v42 }
 0x14b   :  { %360 = vrot.lane.b32.xlu0 %v307_v29, %s6643_s27  ;;  %v165_v62 = vpop.permute.xlu1 %164 }
 0x14c   :  { %v180_v63 = vsel %vm139_vm4, %v165_v62, %v6734_v13  ;;  %v7102_v62 = vstv %s93_s30  ;;  %s7750_s30 = sld [smem:[#allocation7 + $0x2]] }
 0x14d   :  { %207 = vrot.lane.b32.xlu1 %v185_v51, %s6642_s26 }
 0x14f   :  { %203 = vrot.lane.b32.xlu0 %v183_v55, %s6642_s26  ;;  %v173_v53 = vpop.permute.xlu1 %172 }
 0x150   :  { %v184_v4 = vsel %vm139_vm4, %v173_v53, %v6821_v33  ;;  %v7106_v53 = vstv %s5165_s9  ;;  %s7766_s9 = sld [smem:[#allocation7 + $0x81]] }
 0x151   :  { %477 = vrot.lane.b32.xlu1 %v456_v56, %s6642_s26 }
 0x153   :  { %467 = vrot.lane.b32.xlu0 %v451_v58, %s6642_s26 }
 0x155   :  { %234 = vrot.lane.b32.xlu1 %v182_v31, %s6643_s27  ;;  %v7060_v31 = vstv %s5163_s29 }
 0x157   :  { %211 = vrot.lane.b32.xlu0 %v187_v59, %s6642_s26 }
 0x159   :  { %232 = vrot.lane.b32.xlu1 %v181_v39, %s6643_s27 }
 0x15b   :  { %475 = vrot.lane.b32.xlu0 %v455_v61, %s6642_s26 }
 0x15d   :  { %501 = vrot.lane.b32.xlu1 %v452_v40, %s6643_s27  ;;  %v7069_v40 = vstv %s5169_s1 }
 0x15e   :  { %v7154_v15 = vmul.f32 %v7069_v40, %v6828_v35 }
 0x15f   :  { %236 = vrot.lane.b32.xlu0 %v183_v55, %s6643_s27  ;;  %v7087_v55 = vstv %s5157_s7  ;;  %s7756_s7 = sld [smem:[#allocation7 + $0x3]] }
 0x161   :  { %242 = vrot.lane.b32.xlu1 %v186_v47, %s6643_s27 }
 0x163   :  { %503 = vrot.lane.b32.xlu0 %v453_v36, %s6643_s27 }
 0x165   :  { %240 = vrot.lane.b32.xlu1 %v185_v51, %s6643_s27  ;;  %v7081_v51 = vstv %s5171_s0  ;;  %s7748_s0 = sld [smem:[#allocation7 + $0x183]] }
 0x167   :  { %499 = vrot.lane.b32.xlu0 %v451_v58, %s6643_s27 }
 0x169   :  { %509 = vrot.lane.b32.xlu1 %v456_v56, %s6643_s27  ;;  %v533_v56 = vmul.f32 %v7058_v30, %v6716_v6 }
 0x16b   :  { %244 = vrot.lane.b32.xlu0 %v187_v59, %s6643_s27 }
 0x16d   :  { %197 = vrot.lane.b32.xlu1 %v180_v63, %s6642_s26 }
 0x16f   :  { %511 = vrot.lane.b32.xlu0 %v457_v49, %s6643_s27  ;;  %v560_v49 = vmul.f32 %v7069_v40, %v6747_v16 }
 0x171   :  { %205 = vrot.lane.b32.xlu1 %v184_v4, %s6642_s26 }
 0x173   :  { %507 = vrot.lane.b32.xlu0 %v455_v61, %s6643_s27  ;;  %v7098_v61 = vmul.f32 %v7058_v30, %v6695_v0 }
 0x175   :  { %230 = vrot.lane.b32.xlu1 %v180_v63, %s6643_s27  ;;  %12247 = vst [vmem:[#allocation25_spill] sm:$0xff] %v7098_v61  ;;  %v7104_v63 = vstv %s5159_s8  ;;  %s7764_s8 = sld [smem:[#allocation7 + $0x1]] }
 0x177   :  { %473 = vrot.lane.b32.xlu0 %v454_v8, %s6642_s26 }
 0x179   :  { %238 = vrot.lane.b32.xlu1 %v184_v4, %s6643_s27  ;;  %v7108_v4 = vstv %s5167_s10  ;;  %s7770_s10 = sld [smem:[#allocation7 + $0x82]] }
 0x17b   :  { %481 = vrot.lane.b32.xlu0 %v458_v10, %s6642_s26 }
 0x17d   :  { %505 = vrot.lane.b32.xlu1 %v454_v8, %s6643_s27 }
 0x181   :  { %513 = vrot.lane.b32.xlu1 %v458_v10, %s6643_s27  ;;  %v7046_v11 = vpop.permute.xlu0 %318  ;;  %v689_v10 = vmul.f32 %v7087_v55, %v6759_v19 }
 0x185   :  { %v323_v12 = vpop.permute.xlu0 %322  ;;  %v7051_v21 = vpop.permute.xlu1 %324 }
 0x186   :  { %v344_v34 = vsel %vm188_vm5, %v323_v12, 0.0  ;;  %v7116_v12 = vstv %s5162_s11  ;;  %s7776_s11 = sld [smem:[#allocation7 + $0x83]] }
 0x187   :  { %v543_v39 = vmul.f32 %v7060_v31, %v344_v34  ;;  %v732_v7 = vmul.f32 %v7108_v4, %v344_v34  ;;  %v7159_v42 = vmul.f32 %v7116_v12, %v6705_v2  ;;  %v7173_v34 = vstv %s7100_s12  ;;  %s7783_s12 = sld [smem:[#allocation7]] }
 0x188   :  { %12250 = vst [vmem:[#allocation28_spill] sm:$0xff] %v7173_v34  ;;  %v7177_v2 = vmul.f32 %v7116_v12, %v6797_v27  ;;  %v7221_v35 = vmul.f32 %v7116_v12, %v6716_v6 }
 0x189   :  { %v551_v47 = vadd.f32 %v543_v39, %v534_v37  ;;  %v559_v37 = vmul.f32 %v7069_v40, %v6772_v22 }
 0x18a   :  { %12251 = vst [vmem:[#allocation29_spill] sm:$0xff] %v7177_v2 }
 0x18b   :  { %v568_v58 = vadd.f32 %v560_v49, %v551_v47 }
 0x18d   :  { %v321_v17 = vpop.permute.xlu0 %320 }
 0x18e   :  { %v7079_v50 = vsel %vm188_vm5, %v321_v17, 0.0 }
 0x18f   :  { %v542_v57 = vmul.f32 %v7060_v31, %v7079_v50 }
 0x191   :  { %v550_v39 = vadd.f32 %v542_v57, %v533_v56  ;;  %v7138_v56 = vmul.f32 %v7069_v40, %v6738_v14  ;;  %v7142_v57 = vmul.f32 %v7069_v40, %v6734_v13 }
 0x193   :  { %12248 = vst [vmem:[#allocation26_spill] sm:$0xff] %v7142_v57 }
 0x199   :  { %v7053_v26 = vpop.permute.xlu0 %326 }
 0x19b   :  { %v7056_v29 = vpop.permute.xlu1 %332 }
 0x19d   :  { %v331_v3 = vpop.permute.xlu0 %330 }
 0x19f   :  { %v7064_v36 = vpop.permute.xlu1 %356 }
 0x1a3   :  { %v7071_v43 = vpop.permute.xlu1 %364 }
 0x1a5   :  { %v7073_v48 = vpop.permute.xlu0 %328 }
 0x1a7   :  { %v202_v52 = vpop.permute.xlu1 %201 }
 0x1a8   :  { %v223_v54 = vsel %vm188_vm5, %v202_v52, 0.0  ;;  %v715_v52 = vmul.f32 %v7106_v53, %v6700_v1 }
 0x1a9   :  { %v577_v59 = vmul.f32 %v7081_v51, %v223_v54  ;;  %v7094_v60 = vpop.permute.xlu0 %350 }
 0x1aa   :  { %12246 = vst [vmem:[#allocation24_spill] sm:$0xff] %v7094_v60 }
 0x1ab   :  { %v585_v8 = vadd.f32 %v577_v59, %v568_v58  ;;  %v472_v9 = vpop.permute.xlu1 %471  ;;  %v7130_v58 = vmul.f32 %v7058_v30, %v6797_v27  ;;  %v7134_v59 = vsel %vm188_vm5, %v331_v3, 0.0  ;;  %v688_v27 = vmul.f32 %v7087_v55, %v6784_v24 }
 0x1ac   :  { %v493_v17 = vsel %vm188_vm5, %v472_v9, 0.0  ;;  %v7149_v9 = vstv %s7083_s2  ;;  %s7781_s2 = sld [smem:[#allocation7 + $0x181]] }
 0x1ad   :  { %v594_v47 = vadd.f32 %v7102_v62, %v585_v8  ;;  %v698_v49 = vmul.f32 %v7104_v63, %v493_v17  ;;  %v7126_v54 = vpop.permute.xlu0 %354  ;;  %v7146_v8 = vmul.f32 %v7058_v30, %v6789_v25 }
 0x1af   :  { %12249 = vst [vmem:[#allocation27_spill] sm:$0xff] %v7146_v8  ;;  %603 = vst.msk [vmem:[#allocation2 + $0x10] sm:$0xff] %vm600_vm6, %v594_v47  ;;  %v706_v17 = vadd.f32 %v698_v49, %v689_v10  ;;  %v200_v3 = vpop.permute.xlu1 %199  ;;  %v547_v10 = vmul.f32 %v7060_v31, %v7134_v59  ;;  %v567_v49 = vadd.f32 %v559_v37, %v550_v39 }
 0x1b0   :  { %v222_v13 = vsel %vm188_vm5, %v200_v3, 0.0  ;;  %v537_v3 = vmul.f32 %v7058_v30, %v6817_v32  ;;  %v7185_v37 = vmul.f32 %v7069_v40, %v6821_v33  ;;  %v7197_v30 = vmul.f32 %v7116_v12, %v6700_v1 }
 0x1b1   :  { %v723_v47 = vadd.f32 %v715_v52, %v706_v17  ;;  %v576_v57 = vmul.f32 %v7081_v51, %v222_v13  ;;  %v7168_v8 = vpop.permute.xlu0 %352  ;;  %v7189_v13 = vmul.f32 %v7116_v12, %v6695_v0 }
 0x1b2   :  { %12252 = vst [vmem:[#allocation30_spill] sm:$0xff] %v7185_v37  ;;  %v714_v37 = vmul.f32 %v7106_v53, %v6716_v6 }
 0x1b3   :  { %12253 = vst [vmem:[#allocation31_spill] sm:$0xff] %v7189_v13  ;;  %v740_v39 = vadd.f32 %v732_v7, %v723_v47  ;;  %v584_v52 = vadd.f32 %v576_v57, %v567_v49  ;;  %v470_v17 = vpop.permute.xlu1 %469  ;;  %v564_v7 = vmul.f32 %v7069_v40, %v6836_v38  ;;  %v555_v57 = vadd.f32 %v547_v10, %v538_v20 }
 0x1b4   :  { %v492_v33 = vsel %vm188_vm5, %v470_v17, 0.0  ;;  %v7215_v17 = vsel %vm188_vm5, %v7073_v48, 0.0  ;;  %v7225_v20 = vmul.f32 %v7116_v12, %v6789_v25 }
 0x1b5   :  { %v748_v47 = vadd.f32 %v740_v39, %v7102_v62  ;;  %v593_v49 = vadd.f32 %v7102_v62, %v584_v52  ;;  %v697_v13 = vmul.f32 %v7104_v63, %v492_v33  ;;  %v7210_v2 = vpop.permute.xlu0 %358  ;;  %v563_v33 = vmul.f32 %v7069_v40, %v6860_v44 }
 0x1b6   :  { %12254 = vst [vmem:[#allocation32_spill] sm:$0xff] %v7210_v2  ;;  %v7217_v61 = vld [vmem:[#allocation2 + $0x10] sm:$0xff]  ;;  %12256 = vst [vmem:[#allocation34_spill] sm:$0xff] %v7225_v20  ;;  %v7237_v39 = vmul.f32 %v7116_v12, %v6804_v28  ;;  %v693_v52 = vmul.f32 %v7087_v55, %v6847_v41  ;;  %v719_v40 = vmul.f32 %v7106_v53, %v6804_v28  ;;  %v7275_v41 = vstv %s7170_s13  ;;  %s5175_s13 = sld [smem:[#allocation7 + $0x80]] }
 0x1b7   :  { %12255 = vst [vmem:[#allocation33_spill] sm:$0xff] %v7217_v61  ;;  %757 = vst.msk [vmem:[#allocation2 + $0x90] sm:$0xff] %vm600_vm6, %v748_v47  ;;  %v705_v48 = vadd.f32 %v697_v13, %v688_v27  ;;  %v210_v10 = vpop.permute.xlu1 %209  ;;  %878 = vrot.lane.b32.xlu0 %v7217_v61, %s6641_s15  ;;  %v7247_v13 = vsel %vm188_vm5, %v7051_v21, 0.0  ;;  %v731_v27 = vmul.f32 %v7108_v4, %v7079_v50 }
 0x1b8   :  { %602 = vst.msk [vmem:[#allocation2 + $0x8] sm:$0xff] %vm600_vm6, %v593_v49  ;;  %12257 = vst [vmem:[#allocation35_spill] sm:$0xff] %v7237_v39  ;;  %v227_v47 = vsel %vm188_vm5, %v210_v10, 0.0  ;;  %v7255_v49 = vmul.f32 %v7116_v12, %v6817_v32  ;;  %v546_v28 = vmul.f32 %v7060_v31, %v7215_v17  ;;  %v572_v20 = vadd.f32 %v564_v7, %v555_v57 }
 0x1b9   :  { %12258 = vst [vmem:[#allocation36_spill] sm:$0xff] %v7247_v13  ;;  %v722_v61 = vadd.f32 %v714_v37, %v705_v48  ;;  %v581_v21 = vmul.f32 %v7081_v51, %v227_v47  ;;  %v7260_v2 = vpop.permute.xlu0 %362  ;;  %v7264_v50 = vmul.f32 %v7087_v55, %v6872_v46  ;;  %v7268_v10 = vmul.f32 %v7106_v53, %v6817_v32 }
 0x1ba   :  { %12259 = vst [vmem:[#allocation37_spill] sm:$0xff] %v7255_v49  ;;  %v7272_v12 = vmul.f32 %v7087_v55, %v6778_v23  ;;  %v544_v37 = vmul.f32 %v7060_v31, %v7247_v13  ;;  %v7280_v47 = vstv %s7181_s14  ;;  %v7286_v49 = vmul.f32 %v7106_v53, %v6695_v0  ;;  %s7791_s14 = sld [smem:[#allocation7 + $0x180]] }
 0x1bb   :  { %v739_v7 = vadd.f32 %v731_v27, %v722_v61  ;;  %v589_v57 = vadd.f32 %v581_v21, %v572_v20  ;;  %v480_v48 = vpop.permute.xlu1 %479  ;;  %v7289_v32 = vstv %s7193_s16  ;;  %v7292_v39 = vstv %s7205_s17  ;;  %s5181_s16 = sld [smem:[#allocation7 + $0x102]] }
 0x1bc   :  { %v497_v60 = vsel %vm188_vm5, %v480_v48, 0.0  ;;  %v554_v34 = vadd.f32 %v546_v28, %v537_v3  ;;  %v7301_v21 = vmul.f32 %v7280_v47, %v6747_v16  ;;  %v7305_v0 = vmul.f32 %v7280_v47, %v6772_v22  ;;  %s5180_s17 = sld [smem:[#allocation7 + $0x101]] }
 0x1bd   :  { %v747_v13 = vadd.f32 %v739_v7, %v7102_v62  ;;  %v598_v61 = vadd.f32 %v7102_v62, %v589_v57  ;;  %v702_v20 = vmul.f32 %v7104_v63, %v497_v60  ;;  %v7297_v27 = vpop.permute.xlu0 %360  ;;  %v7309_v48 = vmul.f32 %v7087_v55, %v6866_v45 }
 0x1be   :  { %v7312_v3 = vstv %s7229_s18  ;;  %v552_v28 = vadd.f32 %v544_v37, %v7112_v5  ;;  %v7318_v60 = vsel %vm188_vm5, %v7056_v29, 0.0  ;;  %v7324_v7 = vmul.f32 %v7106_v53, %v6789_v25  ;;  %s7800_s18 = sld [smem:[#allocation7 + $0x103]] }
 0x1bf   :  { %756 = vst.msk [vmem:[#allocation2 + $0x88] sm:$0xff] %vm600_vm6, %v747_v13  ;;  %607 = vst.msk [vmem:[#allocation2 + $0x30] sm:$0xff] %vm600_vm6, %v598_v61  ;;  %v710_v16 = vadd.f32 %v702_v20, %v693_v52  ;;  %v208_v22 = vpop.permute.xlu1 %207  ;;  %v736_v57 = vmul.f32 %v7108_v4, %v7134_v59  ;;  %v7332_v29 = vmul.f32 %v7289_v32, %v6784_v24  ;;  %v7341_v52 = vsel %vm229_vm7, %v7126_v54, 0.0 }
 0x1c0   :  { %v226_v5 = vsel %vm188_vm5, %v208_v22, 0.0  ;;  %v7336_v13 = vmul.f32 %v7292_v39, %v6716_v6  ;;  %v571_v37 = vadd.f32 %v563_v33, %v554_v34  ;;  %v548_v20 = vmul.f32 %v7060_v31, %v7318_v60 }
 0x1c1   :  { %v727_v25 = vadd.f32 %v719_v40, %v710_v16  ;;  %v580_v59 = vmul.f32 %v7081_v51, %v226_v5  ;;  %v204_v61 = vpop.permute.xlu0 %203  ;;  %v7350_v6 = vmul.f32 %v7280_v47, %v6738_v14  ;;  %v7354_v22 = vmul.f32 %v7280_v47, %v6836_v38 }
 0x1c2   :  { %v224_v24 = vsel %vm188_vm5, %v204_v61, 0.0  ;;  %v569_v34 = vadd.f32 %v7138_v56, %v552_v28  ;;  %v7361_v5 = vsel %vm188_vm5, %v7046_v11, 0.0  ;;  %v612_v14 = vmul.f32 %v7149_v9, %v7341_v52 }
 0x1c3   :  { %v744_v54 = vadd.f32 %v736_v57, %v727_v25  ;;  %v588_v40 = vadd.f32 %v580_v59, %v571_v37  ;;  %v578_v33 = vmul.f32 %v7081_v51, %v224_v24  ;;  %v478_v16 = vpop.permute.xlu1 %477  ;;  %v7369_v38 = vmul.f32 %v7289_v32, %v6759_v19 }
 0x1c4   :  { %v496_v61 = vsel %vm188_vm5, %v478_v16, 0.0  ;;  %v556_v11 = vadd.f32 %v548_v20, %v7130_v58  ;;  %v7381_v16 = vmul.f32 %v7292_v39, %v6700_v1  ;;  %v7385_v19 = vmul.f32 %v7280_v47, %v6860_v44 }
 0x1c5   :  { %v752_v56 = vadd.f32 %v744_v54, %v7102_v62  ;;  %v597_v28 = vadd.f32 %v7102_v62, %v588_v40  ;;  %v586_v57 = vadd.f32 %v578_v33, %v569_v34  ;;  %v701_v25 = vmul.f32 %v7104_v63, %v496_v61  ;;  %v468_v37 = vpop.permute.xlu0 %467 }
 0x1c6   :  { %v7375_v59 = vld [vmem:[#allocation2 + $0x30] sm:$0xff]  ;;  %v491_v24 = vsel %vm188_vm5, %v468_v37, 0.0  ;;  %v7390_v54 = vsel %vm229_vm7, %v7168_v8, 0.0  ;;  %v730_v44 = vmul.f32 %v7108_v4, %v7361_v5  ;;  %v735_v8 = vmul.f32 %v7108_v4, %v7215_v17 }
 0x1c7   :  { %761 = vst.msk [vmem:[#allocation2 + $0xb0] sm:$0xff] %vm600_vm6, %v752_v56  ;;  %606 = vst.msk [vmem:[#allocation2 + $0x28] sm:$0xff] %vm600_vm6, %v597_v28  ;;  %v595_v58 = vadd.f32 %v7102_v62, %v586_v57  ;;  %v709_v20 = vadd.f32 %v701_v25, %v7264_v50  ;;  %v696_v1 = vmul.f32 %v7104_v63, %v491_v24  ;;  %v235_v40 = vpop.permute.xlu1 %234  ;;  %890 = vrot.lane.b32.xlu0 %v7375_v59, %s6641_s15 }
 0x1c8   :  { %v256_v34 = vsel %vm229_vm7, %v235_v40, 0.0  ;;  %v7407_v33 = vmul.f32 %v7289_v32, %v6778_v23  ;;  %v629_v50 = vadd.f32 %v7197_v30, %v612_v14  ;;  %v7417_v17 = vsel %vm229_vm7, %v7064_v36, 0.0 }
 0x1c9   :  { %604 = vst.msk [vmem:[#allocation2 + $0x18] sm:$0xff] %vm600_vm6, %v595_v58  ;;  %v726_v61 = vadd.f32 %v7268_v10, %v709_v20  ;;  %v704_v56 = vadd.f32 %v696_v1, %v7272_v12  ;;  %v638_v28 = vmul.f32 %v7275_v41, %v256_v34  ;;  %v212_v57 = vpop.permute.xlu0 %211  ;;  %v611_v23 = vmul.f32 %v7149_v9, %v7390_v54 }
 0x1ca   :  { %v228_v30 = vsel %vm188_vm5, %v212_v57, 0.0  ;;  %v573_v14 = vadd.f32 %v7154_v15, %v556_v11  ;;  %v346_v36 = vsel %vm188_vm5, %v7053_v26, 0.0  ;;  %v7432_v58 = vsel %vm229_vm7, %v7260_v2, 0.0 }
 0x1cb   :  { %v743_v25 = vadd.f32 %v735_v8, %v726_v61  ;;  %v721_v10 = vadd.f32 %v7286_v49, %v704_v56  ;;  %v646_v12 = vadd.f32 %v638_v28, %v629_v50  ;;  %v582_v37 = vmul.f32 %v7081_v51, %v228_v30  ;;  %v233_v24 = vpop.permute.xlu1 %232  ;;  %v6508_v30 = vld [vmem:[%s11976_s5] sm:$0xff] }
 0x1cc   :  { %v255_v20 = vsel %vm229_vm7, %v233_v24, 0.0  ;;  %v7438_v15 = vmul.f32 %v7289_v32, %v6872_v46  ;;  %v613_v26 = vmul.f32 %v7149_v9, %v7417_v17  ;;  %v628_v2 = vadd.f32 %v7221_v35, %v611_v23 }
 0x1cd   :  { %v751_v49 = vadd.f32 %v743_v25, %v7102_v62  ;;  %v738_v11 = vadd.f32 %v730_v44, %v721_v10  ;;  %v663_v1 = vadd.f32 %v7301_v21, %v646_v12  ;;  %v590_v40 = vadd.f32 %v582_v37, %v573_v14  ;;  %v476_v8 = vpop.permute.xlu0 %475 }
 0x1ce   :  { %v637_v34 = vmul.f32 %v7275_v41, %v255_v20  ;;  %v495_v50 = vsel %vm188_vm5, %v476_v8, 0.0  ;;  %v616_v28 = vmul.f32 %v7149_v9, %v7432_v58  ;;  %v7463_v14 = vmul.f32 %v6508_v30, %v7292_v39 }
 0x1cf   :  { %760 = vst.msk [vmem:[#allocation2 + $0xa8] sm:$0xff] %vm600_vm6, %v751_v49  ;;  %v746_v46 = vadd.f32 %v738_v11, %v7102_v62  ;;  %v671_v44 = vadd.f32 %v663_v1, %v7102_v62  ;;  %v599_v21 = vadd.f32 %v7102_v62, %v590_v40  ;;  %v700_v61 = vmul.f32 %v7104_v63, %v495_v50  ;;  %v502_v56 = vpop.permute.xlu1 %501 }
 0x1d0   :  { %v7455_v35 = vld [vmem:[#allocation2 + $0x18] sm:$0xff]  ;;  %v645_v57 = vadd.f32 %v637_v34, %v628_v2  ;;  %v524_v23 = vsel %vm229_vm7, %v502_v56, 0.0  ;;  %v734_v25 = vmul.f32 %v7108_v4, %v346_v36  ;;  %v7469_v10 = vsel %vm229_vm7, %v7297_v27, 0.0  ;;  %v12261_v34 = vld [vmem:[#allocation35_spill] sm:$0xff] }
 0x1d1   :  { %755 = vst.msk [vmem:[#allocation2 + $0x80] sm:$0xff] %vm600_vm6, %v746_v46  ;;  %680 = vst.msk [vmem:[#allocation2 + $0x50] sm:$0xff] %vm600_vm6, %v671_v44  ;;  %v708_v12 = vadd.f32 %v700_v61, %v7309_v48  ;;  %v765_v37 = vmul.f32 %v7312_v3, %v524_v23  ;;  %v237_v24 = vpop.permute.xlu0 %236  ;;  %881 = vrot.lane.b32.xlu1 %v7455_v35, %s6641_s15  ;;  %v630_v20 = vadd.f32 %v7159_v42, %v613_v26  ;;  %v12260_v48 = vld [vmem:[#allocation28_spill] sm:$0xff]  ;;  %v7492_v26 = vld [vmem:[#allocation2 + $0x8] sm:$0xff] }
 0x1d2   :  { %608 = vst.msk [vmem:[#allocation2 + $0x38] sm:$0xff] %vm600_vm6, %v599_v21  ;;  %v7482_v27 = vsel %vm229_vm7, %v7071_v43, 0.0  ;;  %v662_v49 = vadd.f32 %v7305_v0, %v645_v57  ;;  %v257_v11 = vsel %vm229_vm7, %v237_v24, 0.0  ;;  %v791_v1 = vmul.f32 %v12260_v48, %v7390_v54  ;;  %v12262_v57 = vld [vmem:[#allocation18_spill] sm:$0xff] }
 0x1d3   :  { %v725_v40 = vadd.f32 %v7324_v7, %v708_v12  ;;  %v782_v8 = vadd.f32 %v7332_v29, %v765_v37  ;;  %v639_v2 = vmul.f32 %v7275_v41, %v257_v11  ;;  %v243_v42 = vpop.permute.xlu1 %242  ;;  %v633_v43 = vadd.f32 %v12261_v34, %v616_v28 }
 0x1d4   :  { %v615_v0 = vmul.f32 %v7149_v9, %v7469_v10  ;;  %v670_v50 = vadd.f32 %v662_v49, %v7102_v62  ;;  %v260_v46 = vsel %vm229_vm7, %v243_v42, 0.0  ;;  %v541_v61 = vmul.f32 %v7060_v31, %v7361_v5  ;;  %v12263_v5 = vld [vmem:[#allocation37_spill] sm:$0xff] }
 0x1d5   :  { %v742_v54 = vadd.f32 %v734_v25, %v725_v40  ;;  %v799_v44 = vadd.f32 %v791_v1, %v782_v8  ;;  %v647_v7 = vadd.f32 %v639_v2, %v630_v20  ;;  %v642_v29 = vmul.f32 %v7275_v41, %v260_v46  ;;  %v504_v21 = vpop.permute.xlu0 %503  ;;  %875 = vrot.lane.b32.xlu1 %v7492_v26, %s6641_s15  ;;  %v12264_v2 = vld [vmem:[#allocation24_spill] sm:$0xff] }
 0x1d6   :  { %v545_v56 = vmul.f32 %v7060_v31, %v346_v36  ;;  %679 = vst.msk [vmem:[#allocation2 + $0x48] sm:$0xff] %vm600_vm6, %v670_v50  ;;  %v525_v28 = vsel %vm229_vm7, %v504_v21, 0.0  ;;  %v7511_v23 = vmul.f32 %v7292_v39, %v12262_v57  ;;  %v617_v31 = vmul.f32 %v7149_v9, %v7482_v27  ;;  %v12267_v21 = vld [vmem:[#allocation27_spill] sm:$0xff] }
 0x1d7   :  { %v750_v30 = vadd.f32 %v742_v54, %v7102_v62  ;;  %v816_v25 = vadd.f32 %v7336_v13, %v799_v44  ;;  %v664_v12 = vadd.f32 %v7350_v6, %v647_v7  ;;  %v650_v37 = vadd.f32 %v642_v29, %v633_v43  ;;  %v241_v24 = vpop.permute.xlu1 %240  ;;  %v12265_v44 = vld [vmem:[#allocation20_spill] sm:$0xff]  ;;  %v12266_v29 = vld [vmem:[#allocation25_spill] sm:$0xff] }
 0x1d8   :  { %v632_v36 = vadd.f32 %v12263_v5, %v615_v0  ;;  %v766_v49 = vmul.f32 %v7312_v3, %v525_v28  ;;  %v259_v11 = vsel %vm229_vm7, %v241_v24, 0.0  ;;  %v374_v42 = vsel %vm229_vm7, %v12264_v2, 0.0  ;;  %v7547_v28 = vld [vmem:[#allocation2 + $0x28] sm:$0xff]  ;;  %v12270_v2 = vld [vmem:[#allocation21_spill] sm:$0xff] }
 0x1d9   :  { %v7519_v20 = vld [vmem:[#allocation2 + $0x38] sm:$0xff]  ;;  %759 = vst.msk [vmem:[#allocation2 + $0xa0] sm:$0xff] %vm600_vm6, %v750_v30  ;;  %v824_v13 = vadd.f32 %v816_v25, %v7102_v62  ;;  %v672_v6 = vadd.f32 %v664_v12, %v7102_v62  ;;  %v667_v1 = vadd.f32 %v7354_v22, %v650_v37  ;;  %v641_v40 = vmul.f32 %v7275_v41, %v259_v11  ;;  %v500_v8 = vpop.permute.xlu0 %499 }
 0x1da   :  { %893 = vrot.lane.b32.xlu1 %v7519_v20, %s6641_s15  ;;  %v792_v34 = vmul.f32 %v12260_v48, %v7341_v52  ;;  %v783_v43 = vadd.f32 %v7369_v38, %v766_v49  ;;  %v523_v0 = vsel %vm229_vm7, %v500_v8, 0.0  ;;  %v660_v7 = vmul.f32 %v7280_v47, %v12265_v44  ;;  %v12269_v8 = vld [vmem:[#allocation26_spill] sm:$0xff] }
 0x1db   :  { %833 = vst.msk [vmem:[#allocation2 + $0xc8] sm:$0xff] %vm600_vm6, %v824_v13  ;;  %681 = vst.msk [vmem:[#allocation2 + $0x58] sm:$0xff] %vm600_vm6, %v672_v6  ;;  %v675_v22 = vadd.f32 %v667_v1, %v7102_v62  ;;  %v649_v50 = vadd.f32 %v641_v40, %v632_v36  ;;  %v764_v46 = vmul.f32 %v7312_v3, %v523_v0  ;;  %v510_v54 = vpop.permute.xlu1 %509  ;;  %v12271_v44 = vld [vmem:[#allocation30_spill] sm:$0xff] }
 0x1dc   :  { %v549_v52 = vadd.f32 %v541_v61, %v12266_v29  ;;  %v553_v38 = vadd.f32 %v545_v56, %v12267_v21  ;;  %v800_v57 = vadd.f32 %v792_v34, %v783_v43  ;;  %v528_v30 = vsel %vm229_vm7, %v510_v54, 0.0  ;;  %v12268_v61 = vld [vmem:[#allocation29_spill] sm:$0xff] }
 0x1dd   :  { %v790_v25 = vmul.f32 %v12260_v48, %v374_v42  ;;  %684 = vst.msk [vmem:[#allocation2 + $0x70] sm:$0xff] %vm600_vm6, %v675_v22  ;;  %v666_v12 = vadd.f32 %v7385_v19, %v649_v50  ;;  %v781_v37 = vadd.f32 %v7407_v33, %v764_v46  ;;  %v769_v24 = vmul.f32 %v7312_v3, %v528_v30  ;;  %v245_v5 = vpop.permute.xlu0 %244  ;;  %v6509_v46 = vld [vmem:[%s11976_s5 + $0x30] sm:$0xff] }
 0x1de   :  { %887 = vrot.lane.b32.xlu1 %v7547_v28, %s6641_s15  ;;  %v634_v56 = vadd.f32 %v12268_v61, %v617_v31  ;;  %v795_v36 = vmul.f32 %v12260_v48, %v7469_v10  ;;  %v817_v49 = vadd.f32 %v7381_v16, %v800_v57  ;;  %v261_v11 = vsel %vm229_vm7, %v245_v5, 0.0 }
 0x1df   :  { %v674_v19 = vadd.f32 %v666_v12, %v7102_v62  ;;  %v798_v13 = vadd.f32 %v790_v25, %v781_v37  ;;  %v786_v33 = vadd.f32 %v7438_v15, %v769_v24  ;;  %v643_v6 = vmul.f32 %v7275_v41, %v261_v11  ;;  %v198_v1 = vpop.permute.xlu1 %197  ;;  %v12272_v24 = vld [vmem:[#allocation32_spill] sm:$0xff] }
 0x1e0   :  { %v825_v40 = vadd.f32 %v817_v49, %v7102_v62  ;;  %v221_v31 = vsel %vm188_vm5, %v198_v1, 0.0  ;;  %v566_v10 = vadd.f32 %v12269_v8, %v549_v52  ;;  %v779_v16 = vmul.f32 %v7289_v32, %v12270_v2  ;;  %v12273_v1 = vld [vmem:[#allocation15_spill] sm:$0xff] }
 0x1e1   :  { %683 = vst.msk [vmem:[#allocation2 + $0x68] sm:$0xff] %vm600_vm6, %v674_v19  ;;  %v815_v34 = vadd.f32 %v7463_v14, %v798_v13  ;;  %v803_v43 = vadd.f32 %v795_v36, %v786_v33  ;;  %v651_v0 = vadd.f32 %v643_v6, %v634_v56  ;;  %v575_v15 = vmul.f32 %v7081_v51, %v221_v31  ;;  %v512_v22 = vpop.permute.xlu0 %511  ;;  %v6510_v19 = vld [vmem:[%s11976_s5 + $0x20] sm:$0xff]  ;;  %v7612_v33 = vld [vmem:[#allocation2 + $0x48] sm:$0xff]  ;;  %v12274_v31 = vld [vmem:[#allocation17_spill] sm:$0xff] }
 0x1e2   :  { %834 = vst.msk [vmem:[#allocation2 + $0xd0] sm:$0xff] %vm600_vm6, %v825_v40  ;;  %v529_v50 = vsel %vm229_vm7, %v512_v22, 0.0  ;;  %v813_v54 = vmul.f32 %v6509_v46, %v7292_v39  ;;  %v570_v29 = vadd.f32 %v12271_v44, %v553_v38  ;;  %v7584_v52 = vld [vmem:[#allocation2 + $0x58] sm:$0xff]  ;;  %v777_v14 = vmul.f32 %v7289_v32, %v6866_v45 }
 0x1e3   :  { %v823_v21 = vadd.f32 %v815_v34, %v7102_v62  ;;  %v820_v57 = vadd.f32 %v7511_v23, %v803_v43  ;;  %v668_v30 = vadd.f32 %v660_v7, %v651_v0  ;;  %v583_v25 = vadd.f32 %v575_v15, %v566_v10  ;;  %v206_v12 = vpop.permute.xlu1 %205  ;;  %1081 = vrot.lane.b32.xlu1 %v7584_v52, %s6641_s15  ;;  %v12275_v10 = vld [vmem:[#allocation31_spill] sm:$0xff] }
 0x1e4   :  { %v610_v37 = vmul.f32 %v7149_v9, %v374_v42  ;;  %v378_v38 = vsel %vm229_vm7, %v12272_v24, 0.0  ;;  %v770_v5 = vmul.f32 %v7312_v3, %v529_v50  ;;  %v225_v45 = vsel %vm188_vm5, %v206_v12, 0.0  ;;  %v12276_v12 = vld [vmem:[#allocation34_spill] sm:$0xff] }
 0x1e5   :  { %832 = vst.msk [vmem:[#allocation2 + $0xc0] sm:$0xff] %vm600_vm6, %v823_v21  ;;  %v828_v23 = vadd.f32 %v820_v57, %v7102_v62  ;;  %v676_v7 = vadd.f32 %v668_v30, %v7102_v62  ;;  %v592_v61 = vadd.f32 %v7102_v62, %v583_v25  ;;  %v579_v56 = vmul.f32 %v7081_v51, %v225_v45  ;;  %v508_v42 = vpop.permute.xlu0 %507  ;;  %v6511_v30 = vld [vmem:[%s11976_s5 + $0x18] sm:$0xff] }
 0x1e6   :  { %v796_v36 = vmul.f32 %v12260_v48, %v7432_v58  ;;  %v787_v49 = vadd.f32 %v779_v16, %v770_v5  ;;  %v527_v11 = vsel %vm229_vm7, %v508_v42, 0.0  ;;  %v811_v13 = vmul.f32 %v6510_v19, %v7292_v39  ;;  %v12278_v42 = vld [vmem:[#allocation36_spill] sm:$0xff]  ;;  %v12280_v19 = vld [vmem:[#allocation22_spill] sm:$0xff] }
 0x1e7   :  { %837 = vst.msk [vmem:[#allocation2 + $0xe8] sm:$0xff] %vm600_vm6, %v828_v23  ;;  %685 = vst.msk [vmem:[#allocation2 + $0x78] sm:$0xff] %vm600_vm6, %v676_v7  ;;  %v587_v51 = vadd.f32 %v579_v56, %v570_v29  ;;  %v768_v58 = vmul.f32 %v7312_v3, %v527_v11  ;;  %v231_v6 = vpop.permute.xlu1 %230  ;;  %v653_v40 = vmul.f32 %v7280_v47, %v12273_v1  ;;  %1075 = vrot.lane.b32.xlu1 %v7612_v33, %s6641_s15 }
 0x1e8   :  { %601 = vst.msk [vmem:[#allocation2] sm:$0xff] %vm600_vm6, %v592_v61  ;;  %v690_v8 = vmul.f32 %v7087_v55, %v12274_v31  ;;  %v627_v2 = vadd.f32 %v12275_v10, %v610_v37  ;;  %v614_v16 = vmul.f32 %v7149_v9, %v378_v38  ;;  %v804_v34 = vadd.f32 %v796_v36, %v787_v49 }
 0x1e9   :  { %v254_v43 = vsel %vm229_vm7, %v231_v6, 0.0  ;;  %v794_v0 = vmul.f32 %v12260_v48, %v378_v38  ;;  %v596_v15 = vadd.f32 %v7102_v62, %v587_v51  ;;  %v785_v22 = vadd.f32 %v777_v14, %v768_v58  ;;  %v474_v46 = vpop.permute.xlu0 %473  ;;  %v12277_v38 = vld [vmem:[#allocation19_spill] sm:$0xff] }
 0x1ea   :  { %v636_v50 = vmul.f32 %v7275_v41, %v254_v43  ;;  %v821_v44 = vadd.f32 %v813_v54, %v804_v34  ;;  %v494_v29 = vsel %vm188_vm5, %v474_v46, 0.0  ;;  %v716_v25 = vmul.f32 %v6511_v30, %v7106_v53 }
 0x1eb   :  { %605 = vst.msk [vmem:[#allocation2 + $0x20] sm:$0xff] %vm600_vm6, %v596_v15  ;;  %v802_v21 = vadd.f32 %v794_v0, %v785_v22  ;;  %v699_v57 = vmul.f32 %v7104_v63, %v494_v29  ;;  %v239_v14 = vpop.permute.xlu1 %238  ;;  %v631_v37 = vadd.f32 %v12276_v12, %v614_v16  ;;  %v657_v5 = vmul.f32 %v7280_v47, %v12277_v38  ;;  %v7686_v29 = vld [vmem:[#allocation2 + $0x68] sm:$0xff] }
 0x1ec   :  { %v644_v9 = vadd.f32 %v636_v50, %v627_v2  ;;  %v829_v54 = vadd.f32 %v821_v44, %v7102_v62  ;;  %v258_v24 = vsel %vm229_vm7, %v239_v14, 0.0  ;;  %v733_v36 = vmul.f32 %v7108_v4, %v12278_v42  ;;  %12281 = vst [vmem:[#allocation35_spill] sm:$0xff] %v7686_v29 }
 0x1ed   :  { %v819_v45 = vadd.f32 %v811_v13, %v802_v21  ;;  %v707_v7 = vadd.f32 %v699_v57, %v690_v8  ;;  %v640_v61 = vmul.f32 %v7275_v41, %v258_v24  ;;  %v482_v56 = vpop.permute.xlu0 %481  ;;  %v694_v51 = vmul.f32 %v7087_v55, %v12280_v19  ;;  %v6512_v55 = vld [vmem:[%s11976_s5 + $0x38] sm:$0xff]  ;;  %s7746_s5 = sld [smem:[#allocation7 + $0x182]] }
 0x1ee   :  { %v661_v23 = vadd.f32 %v653_v40, %v644_v9  ;;  %838 = vst.msk [vmem:[#allocation2 + $0xf0] sm:$0xff] %vm600_vm6, %v829_v54  ;;  %v498_v11 = vsel %vm188_vm5, %v482_v56, 0.0  ;;  %v776_v47 = vmul.f32 %v7289_v32, %v12274_v31  ;;  %v7657_v13 = vld [vmem:[#allocation2 + $0x78] sm:$0xff]  ;;  %v720_v31 = vmul.f32 %v6512_v55, %v7106_v53 }
 0x1ef   :  { %v7648_v49 = vld [vmem:[#allocation2] sm:$0xff]  ;;  %v827_v41 = vadd.f32 %v819_v45, %v7102_v62  ;;  %v724_v6 = vadd.f32 %v716_v25, %v707_v7  ;;  %v648_v1 = vadd.f32 %v640_v61, %v631_v37  ;;  %v506_v40 = vpop.permute.xlu1 %505  ;;  %v703_v8 = vmul.f32 %v7104_v63, %v498_v11  ;;  %1093 = vrot.lane.b32.xlu1 %v7657_v13, %s6641_s15  ;;  %v12282_v25 = vld [vmem:[#allocation33_spill] sm:$0xff]  ;;  %v7702_v37 = vld [vmem:[#allocation2 + $0x50] sm:$0xff] }
 0x1f0   :  { %12279 = vst [vmem:[#allocation28_spill] sm:$0xff] %v7648_v49  ;;  %v669_v58 = vadd.f32 %v661_v23, %v7102_v62  ;;  %872 = vrot.lane.b32.xlu0 %v7648_v49, %s6641_s15  ;;  %v526_v10 = vsel %vm229_vm7, %v506_v40, 0.0  ;;  %v793_v34 = vmul.f32 %v12260_v48, %v7417_v17  ;;  %v810_v0 = vmul.f32 %v6511_v30, %v7292_v39  ;;  %v7719_v23 = vld [vmem:[#allocation2 + $0x70] sm:$0xff]  ;;  %v7742_v11 = vld [vmem:[#allocation2 + $0x88] sm:$0xff] }
 0x1f1   :  { %836 = vst.msk [vmem:[#allocation2 + $0xe0] sm:$0xff] %vm600_vm6, %v827_v41  ;;  %v741_v2 = vadd.f32 %v733_v36, %v724_v6  ;;  %v665_v16 = vadd.f32 %v657_v5, %v648_v1  ;;  %v767_v63 = vmul.f32 %v7312_v3, %v526_v10  ;;  %v711_v53 = vadd.f32 %v703_v8, %v694_v51  ;;  %v7774_v51 = vld [vmem:[#allocation2 + $0xc8] sm:$0xff]  ;;  %v7798_v40 = vld [vmem:[#allocation2 + $0x90] sm:$0xff] }
 0x1f2   :  { %678 = vst.msk [vmem:[#allocation2 + $0x40] sm:$0xff] %vm600_vm6, %v669_v58  ;;  %v7677_v43 = vld [vmem:[#allocation2 + $0x20] sm:$0xff]  ;;  %v780_v15 = vmul.f32 %v7289_v32, %v12280_v19  ;;  %v962_v17 = vrot.slane %v7492_v26, 1  ;;  %v737_v21 = vmul.f32 %v7108_v4, %v7318_v60  ;;  %v964_v14 = vrot.slane %v12282_v25, 1  ;;  %v7789_v58 = vld [vmem:[#allocation2 + $0xe8] sm:$0xff]  ;;  %12289 = vst [vmem:[#allocation27_spill] sm:$0xff] %v7798_v40 }
 0x1f3   :  { %v749_v22 = vadd.f32 %v741_v2, %v7102_v62  ;;  %v673_v50 = vadd.f32 %v665_v16, %v7102_v62  ;;  %v784_v46 = vadd.f32 %v776_v47, %v767_v63  ;;  %v514_v44 = vpop.permute.xlu1 %513  ;;  %v728_v9 = vadd.f32 %v720_v31, %v711_v53  ;;  %1087 = vrot.lane.b32.xlu1 %v7686_v29, %s6641_s15 }
 0x1f4   :  { %884 = vrot.lane.b32.xlu0 %v7677_v43, %s6641_s15  ;;  %v530_v32 = vsel %vm229_vm7, %v514_v44, 0.0  ;;  %v797_v12 = vmul.f32 %v12260_v48, %v7482_v27  ;;  %v814_v60 = vmul.f32 %v6512_v55, %v7292_v39  ;;  %v11998_v5 = vrot.slane %v7547_v28, 1  ;;  %12288 = vst [vmem:[#allocation25_spill] sm:$0xff] %v7789_v58 }
 0x1f5   :  { %758 = vst.msk [vmem:[#allocation2 + $0x98] sm:$0xff] %vm600_vm6, %v749_v22  ;;  %682 = vst.msk [vmem:[#allocation2 + $0x60] sm:$0xff] %vm600_vm6, %v673_v50  ;;  %v801_v57 = vadd.f32 %v793_v34, %v784_v46  ;;  %v771_v30 = vmul.f32 %v7312_v3, %v530_v32  ;;  %v745_v4 = vadd.f32 %v737_v21, %v728_v9  ;;  %v965_v45 = vrot.slane %v7375_v59, 1  ;;  %v7860_v9 = vld [vmem:[#allocation2 + $0x80] sm:$0xff] }
 0x1f6   :  { %v7710_v3 = vsel %vm390_vm2, %v962_v17, %v964_v14  ;;  %v966_v7 = vrot.slane %v7455_v35, 1  ;;  %v967_v36 = vrot.slane %v7519_v20, 1  ;;  %v7760_v20 = vld [vmem:[#allocation2 + $0xa8] sm:$0xff]  ;;  %v960_v47 = vrot.slane %v7648_v49, 1 }
 0x1f7   :  { %v818_v54 = vadd.f32 %v810_v0, %v801_v57  ;;  %v788_v24 = vadd.f32 %v780_v15, %v771_v30  ;;  %12284 = vst [vmem:[#allocation18_spill] sm:$0xff] %v7710_v3  ;;  %v753_v27 = vadd.f32 %v745_v4, %v7102_v62  ;;  %987 = vrot.lane.b32.xlu1 %v7710_v3, %s6641_s15  ;;  %v11997_v1 = vrot.slane %v7677_v43, 1 }
 0x1f8   :  { %1078 = vrot.lane.b32.xlu0 %v7702_v37, %s6641_s15  ;;  %v7729_v56 = vsel %vm390_vm2, %v11998_v5, %v965_v45  ;;  %v7736_v42 = vsel %vm390_vm2, %v964_v14, %v966_v7  ;;  %v974_v6 = vsel %vm390_vm2, %v966_v7, %v960_v47  ;;  %v7820_v10 = vsel %vm390_vm2, %v960_v47, %v962_v17 }
 0x1f9   :  { %v826_v39 = vadd.f32 %v818_v54, %v7102_v62  ;;  %v805_v48 = vadd.f32 %v797_v12, %v788_v24  ;;  %762 = vst.msk [vmem:[#allocation2 + $0xb8] sm:$0xff] %vm600_vm6, %v753_v27  ;;  %12285 = vst [vmem:[#allocation37_spill] sm:$0xff] %v7729_v56  ;;  %v7768_v19 = vld [vmem:[#allocation2 + $0x40] sm:$0xff]  ;;  %v7806_v55 = vsel %vm402_vm3, %v974_v6, 0.0  ;;  %v975_v31 = vsel %vm390_vm2, %v967_v36, %v11997_v1 }
 0x1fa   :  { %12286 = vst [vmem:[#allocation24_spill] sm:$0xff] %v7736_v42  ;;  %12291 = vst [vmem:[#allocation29_spill] sm:$0xff] %v7806_v55  ;;  %v7823_v2 = vstv %s7748_s0  ;;  %v7826_v16 = vstv %s7746_s5  ;;  %v7829_v63 = vstv %s7756_s7  ;;  %v7832_v34 = vstv %s7750_s30 }
 0x1fb   :  { %835 = vst.msk [vmem:[#allocation2 + $0xd8] sm:$0xff] %vm600_vm6, %v826_v39  ;;  %v822_v61 = vadd.f32 %v814_v60, %v805_v48  ;;  %999 = vrot.lane.b32.xlu1 %v7729_v56, %s6641_s15  ;;  %12292 = vst [vmem:[#allocation26_spill] sm:$0xff] %v7820_v10  ;;  %v7838_v53 = vsel %vm402_vm3, %v975_v31, 0.0  ;;  %v11995_v0 = vrot.slane %v7612_v33, 1  ;;  %v7844_v15 = vstv %s7764_s8 }
 0x1fc   :  { %1090 = vrot.lane.b32.xlu0 %v7719_v23, %s6641_s15  ;;  %v7785_v41 = vld [vmem:[#allocation2 + $0x60] sm:$0xff]  ;;  %12293 = vst [vmem:[#allocation21_spill] sm:$0xff] %v7826_v16  ;;  %12294 = vst [vmem:[#allocation30_spill] sm:$0xff] %v7829_v63  ;;  %v7847_v22 = vstv %s7766_s9  ;;  %v7849_v50 = vstv %s5175_s13  ;;  %v11996_v46 = vrot.slane %v7702_v37, 1  ;;  %v7853_v44 = vstv %s7776_s11 }
 0x1fd   :  { %v830_v59 = vadd.f32 %v822_v61, %v7102_v62  ;;  %v7754_v62 = vsel %vm390_vm2, %v965_v45, %v967_v36  ;;  %12295 = vst [vmem:[#allocation32_spill] sm:$0xff] %v7838_v53  ;;  %12296 = vst [vmem:[#allocation15_spill] sm:$0xff] %v7847_v22  ;;  %v7856_v17 = vstv %s7770_s10  ;;  %v3158_v21 = vmul.f32 %v7849_v50, %v7774_v51  ;;  %v7909_v36 = vld [vmem:[#allocation2 + $0xb0] sm:$0xff] }
 0x1fe   :  { %12287 = vst [vmem:[#allocation20_spill] sm:$0xff] %v7754_v62  ;;  %12297 = vst [vmem:[#allocation17_spill] sm:$0xff] %v7849_v50  ;;  %v7863_v32 = vstv %s7783_s12  ;;  %v7866_v57 = vstv %s7781_s2  ;;  %v7868_v30 = vstv %s5181_s16  ;;  %v7870_v14 = vstv %s5180_s17 }
 0x1ff   :  { %839 = vst.msk [vmem:[#allocation2 + $0xf8] sm:$0xff] %vm600_vm6, %v830_v59  ;;  %1387 = vrot.lane.b32.xlu1 %v7742_v11, %s6641_s15  ;;  %12298 = vst [vmem:[#allocation31_spill] sm:$0xff] %v7853_v44  ;;  %v7880_v12 = vsel %vm390_vm2, %v11995_v0, %v11996_v46  ;;  %v12003_v4 = vrot.slane %v7686_v29, 1  ;;  %v3166_v60 = vmul.f32 %v7856_v17, %v7742_v11  ;;  %v7886_v54 = vstv %s7800_s18 }
 0x200   :  { %990 = vrot.lane.b32.xlu0 %v7736_v42, %s6641_s15  ;;  %12299 = vst [vmem:[#allocation34_spill] sm:$0xff] %v7856_v17  ;;  %12300 = vst [vmem:[#allocation19_spill] sm:$0xff] %v7866_v57  ;;  %v7891_v24 = vstv %s7791_s14  ;;  %v7893_v27 = vstv %s5187_s20  ;;  %v3326_v39 = vmul.f32 %v7847_v22, %v7774_v51  ;;  %v7898_v48 = vstv %s7808_s19 }
 0x201   :  { %12301 = vst [vmem:[#allocation36_spill] sm:$0xff] %v7868_v30  ;;  %12302 = vst [vmem:[#allocation22_spill] sm:$0xff] %v7870_v14  ;;  %v12004_v45 = vrot.slane %v7719_v23, 1  ;;  %v3174_v7 = vadd.f32 %v3166_v60, %v3158_v21  ;;  %v7903_v61 = vmul.f32 %v7826_v16, %v12282_v25  ;;  %v7907_v59 = vmul.f32 %v7823_v2, %v12282_v25 }
 0x202   :  { %12303 = vst [vmem:[#allocation33_spill] sm:$0xff] %v7880_v12  ;;  %12304 = vst [vmem:[#allocation14_spill] sm:$0xff] %v7886_v54  ;;  %v3334_v6 = vmul.f32 %v7853_v44, %v7742_v11  ;;  %v7916_v31 = vmul.f32 %v7868_v30, %v12282_v25  ;;  %v7920_v21 = vmul.f32 %v7886_v54, %v12282_v25  ;;  %v1274_v47 = vrot.slane %v7742_v11, 7 }
 0x203   :  { %1399 = vrot.lane.b32.xlu1 %v7760_v20, %s6641_s15  ;;  %12305 = vst [vmem:[#allocation16_spill] sm:$0xff] %v7891_v24  ;;  %12306 = vst [vmem:[#allocation38_spill] sm:$0xff] %v7893_v27  ;;  %v3822_v60 = vmul.f32 %v7832_v34, %v7710_v3  ;;  %v3990_v0 = vmul.f32 %v7829_v63, %v7710_v3  ;;  %v7934_v46 = vsel %vm390_vm2, %v12003_v4, %v12004_v45 }
 0x204   :  { %1002 = vrot.lane.b32.xlu0 %v7754_v62, %s6641_s15  ;;  %12307 = vst [vmem:[#allocation39_spill] sm:$0xff] %v7898_v48  ;;  %12308 = vst [vmem:[#allocation40_spill] sm:$0xff] %v7909_v36  ;;  %v3182_v25 = vmul.f32 %v7891_v24, %v7612_v33  ;;  %v3198_v1 = vmul.f32 %v7826_v16, %v7492_v26  ;;  %v3342_v5 = vadd.f32 %v3334_v6, %v3326_v39 }
 0x205   :  { %12309 = vst [vmem:[#allocation41_spill] sm:$0xff] %v7916_v31  ;;  %12310 = vst [vmem:[#allocation42_spill] sm:$0xff] %v7920_v21  ;;  %v3366_v18 = vmul.f32 %v7823_v2, %v7492_v26  ;;  %v3167_v4 = vmul.f32 %v7856_v17, %v7798_v40  ;;  %v7949_v45 = vmul.f32 %v7853_v44, %v7798_v40  ;;  %v12313_v62 = vrot.slane %v7547_v28, 1  ;;  %v7963_v26 = vld [vmem:[#allocation2 + $0xa0] sm:$0xff] }
 0x206   :  { %12311 = vst [vmem:[#allocation43_spill] sm:$0xff] %v7934_v46  ;;  %v12314_v56 = vrot.slane %v7677_v43, 1  ;;  %12316 = vst [vmem:[#allocation46_spill] sm:$0xff] %v7963_v26  ;;  %v3350_v6 = vmul.f32 %v7866_v57, %v7612_v33  ;;  %v3814_v28 = vmul.f32 %v7863_v32, %v7880_v12  ;;  %v7976_v43 = vld [vmem:[#allocation2 + $0x98] sm:$0xff]  ;;  %v1275_v3 = vrot.slane %v7760_v20, 7 }
 0x207   :  { %1587 = vrot.lane.b32.xlu1 %v7774_v51, %s6641_s15  ;;  %v7984_v21 = vmul.f32 %v7868_v30, %v7798_v40  ;;  %v3982_v31 = vmul.f32 %v7844_v15, %v7880_v12  ;;  %v7998_v20 = vmul.f32 %v7886_v54, %v7798_v40  ;;  %v3823_v49 = vmul.f32 %v7832_v34, %v7736_v42 }
 0x208   :  { %1072 = vrot.lane.b32.xlu0 %v7768_v19, %s6641_s15  ;;  %v7961_v39 = vsel %vm390_vm2, %v12314_v56, %v12313_v62  ;;  %v7978_v56 = vld [vmem:[#allocation2 + $0xd0] sm:$0xff]  ;;  %v12322_v29 = vrot.slane %v7702_v37, 1  ;;  %v8020_v62 = vld [vmem:[#allocation2 + $0xb8] sm:$0xff] }
 0x209   :  { %12315 = vst [vmem:[#allocation45_spill] sm:$0xff] %v7961_v39  ;;  %12318 = vst [vmem:[#allocation48_spill] sm:$0xff] %v7984_v21  ;;  %v12325_v21 = vrot.slane %v7860_v9, 7 }
 0x20a   :  { %12321 = vst [vmem:[#allocation50_spill] sm:$0xff] %v7998_v20  ;;  %12324 = vst [vmem:[#allocation52_spill] sm:$0xff] %v8020_v62 }
 0x20b   :  { %1599 = vrot.lane.b32.xlu1 %v7789_v58, %s6641_s15  ;;  %v3358_v58 = vadd.f32 %v3350_v6, %v3342_v5  ;;  %v3159_v6 = vmul.f32 %v7849_v50, %v7978_v56 }
 0x20c   :  { %1084 = vrot.lane.b32.xlu0 %v7785_v41, %s6641_s15 }
 0x20f   :  { %993 = vrot.lane.b32.xlu1 %v7806_v55, %s6641_s15 }
 0x210   :  { %1390 = vrot.lane.b32.xlu0 %v7798_v40, %s6641_s15 }
 0x213   :  { %1005 = vrot.lane.b32.xlu1 %v7838_v53, %s6641_s15  ;;  %v3190_v53 = vadd.f32 %v3182_v25, %v3174_v7  ;;  %v1166_v7 = vrot.slane %v7584_v52, 1  ;;  %v7970_v25 = vmul.f32 %v7829_v63, %v7798_v40 }
 0x214   :  { %984 = vrot.lane.b32.xlu0 %v7820_v10, %s6641_s15 }
 0x215   :  { %12317 = vst [vmem:[#allocation47_spill] sm:$0xff] %v7970_v25  ;;  %v8010_v5 = vsel %vm390_vm2, %v12322_v29, %v1166_v7  ;;  %v8026_v29 = vsel %vm118_vm0, %v12325_v21, %v1274_v47  ;;  %v12329_v21 = vrot.slane %v7963_v26, 7 }
 0x216   :  { %12323 = vst [vmem:[#allocation51_spill] sm:$0xff] %v8010_v5  ;;  %12326 = vst [vmem:[#allocation53_spill] sm:$0xff] %v8026_v29 }
 0x217   :  { %1187 = vrot.lane.b32.xlu1 %v7880_v12, %s6641_s15  ;;  %v3854_v12 = vmul.f32 %v7868_v30, %v7742_v11 }
 0x218   :  { %1384 = vrot.lane.b32.xlu0 %v7860_v9, %s6641_s15 }
 0x21b   :  { %1199 = vrot.lane.b32.xlu1 %v7934_v46, %s6641_s15  ;;  %v7953_v46 = vmul.f32 %v7832_v34, %v7798_v40 }
 0x21c   :  { %1402 = vrot.lane.b32.xlu0 %v7909_v36, %s6641_s15 }
 0x21d   :  { %12312 = vst [vmem:[#allocation44_spill] sm:$0xff] %v7953_v46  ;;  %v3206_v46 = vadd.f32 %v3198_v1, %v3190_v53  ;;  %v3991_v1 = vmul.f32 %v7829_v63, %v7736_v42  ;;  %v3830_v53 = vadd.f32 %v3822_v60, %v3814_v28  ;;  %v8036_v60 = vld [vmem:[#allocation2 + $0xd8] sm:$0xff]  ;;  %v3374_v42 = vadd.f32 %v3366_v18, %v3358_v58  ;;  %v8055_v18 = vld [vmem:[#allocation2 + $0xc0] sm:$0xff] }
 0x21e   :  { %v8053_v28 = vmul.f32 %v7832_v34, %v7806_v55  ;;  %v3983_v58 = vmul.f32 %v7844_v15, %v8010_v5 }
 0x21f   :  { %1393 = vrot.lane.b32.xlu1 %v7976_v43, %s6641_s15 }
 0x220   :  { %996 = vrot.lane.b32.xlu0 %v7961_v39, %s6641_s15  ;;  %v12319_v39 = vrot.slane %v7798_v40, 7  ;;  %v3838_v40 = vmul.f32 %v7898_v48, %v7774_v51 }
 0x222   :  { %v7994_v25 = vsel %vm118_vm0, %v1274_v47, %v12319_v39  ;;  %v4022_v39 = vmul.f32 %v7886_v54, %v7742_v11  ;;  %v12327_v11 = vrot.slane %v7909_v36, 7  ;;  %v1160_v47 = vrot.slane %v7768_v19, 1 }
 0x223   :  { %12320 = vst [vmem:[#allocation49_spill] sm:$0xff] %v7994_v25  ;;  %v3998_v25 = vadd.f32 %v3990_v0, %v3982_v31  ;;  %1405 = vrot.lane.b32.xlu1 %v8020_v62, %s6641_s15  ;;  %v3815_v0 = vmul.f32 %v7863_v32, %v8010_v5  ;;  %v3214_v31 = vadd.f32 %v3206_v46, %v7893_v27 }
 0x224   :  { %1396 = vrot.lane.b32.xlu0 %v7963_v26, %s6641_s15  ;;  %v8032_v20 = vsel %vm118_vm0, %v1275_v3, %v12327_v11  ;;  %v8046_v11 = vsel %vm118_vm0, %v12329_v21, %v1275_v3  ;;  %v4006_v26 = vmul.f32 %v7870_v14, %v7774_v51  ;;  %v3175_v36 = vadd.f32 %v3167_v4, %v3159_v6 }
 0x225   :  { %12328 = vst [vmem:[#allocation54_spill] sm:$0xff] %v8032_v20  ;;  %12330 = vst [vmem:[#allocation55_spill] sm:$0xff] %v8046_v11  ;;  %v8063_v3 = vmul.f32 %v7829_v63, %v7806_v55  ;;  %v8067_v46 = vmul.f32 %v7832_v34, %v7820_v10  ;;  %v1167_v21 = vrot.slane %v7657_v13, 1  ;;  %v3160_v20 = vmul.f32 %v7849_v50, %v8036_v60 }
 0x226   :  { %v8076_v62 = vmul.f32 %v7829_v63, %v7820_v10  ;;  %v3382_v4 = vadd.f32 %v3374_v42, %v7893_v27  ;;  %v3846_v6 = vadd.f32 %v3838_v40, %v3830_v53  ;;  %v3183_v55 = vmul.f32 %v7891_v24, %v7702_v37  ;;  %v8092_v40 = vld [vmem:[#allocation2 + $0xf8] sm:$0xff] }
 0x227   :  { %12331 = vst [vmem:[#allocation56_spill] sm:$0xff] %v8067_v46  ;;  %1593 = vrot.lane.b32.xlu1 %v8036_v60, %s6641_s15  ;;  %v1174_v46 = vsel %vm390_vm2, %v1166_v7, %v1160_v47  ;;  %v12041_v13 = vrot.slane %v8055_v18, 7  ;;  %v5333_v54 = vmul.f32 -1.442695, %v3214_v31  ;;  %v3168_v14 = vmul.f32 %v7856_v17, %v7976_v43 }
 0x228   :  { %1590 = vrot.lane.b32.xlu0 %v7978_v56, %s6641_s15  ;;  %12332 = vst [vmem:[#allocation57_spill] sm:$0xff] %v8076_v62  ;;  %v8088_v10 = vadd.f32 %v3823_v49, %v3815_v0  ;;  %v4014_v62 = vadd.f32 %v4006_v26, %v3998_v25  ;;  %v3191_v30 = vadd.f32 %v3183_v55, %v3175_v36  ;;  %v12333_v7 = vrot.slane %v7719_v23, 1 }
 0x229   :  { %v3327_v42 = vmul.f32 %v7847_v22, %v7978_v56  ;;  %v8096_v53 = vadd.f32 %v3991_v1, %v3983_v58  ;;  %v12335_v49 = vrot.slane %v7612_v33, 1  ;;  %v3176_v36 = vadd.f32 %v3168_v14, %v3160_v20 }
 0x22a   :  { %v8102_v31 = vsel %vm390_vm2, %v12333_v7, %v1167_v21  ;;  %v8114_v26 = vsel %vm402_vm3, %v1174_v46, 0.0  ;;  %v1161_v23 = vrot.slane %v7785_v41, 1  ;;  %v5349_v25 = vmul.f32 -1.442695, %v3382_v4 }
 0x22b   :  { %12334 = vst [vmem:[#allocation58_spill] sm:$0xff] %v8102_v31  ;;  %v8108_v55 = vsel %vm390_vm2, %v1160_v47, %v12335_v49  ;;  %1605 = vrot.lane.b32.xlu1 %v8092_v40, %s6641_s15  ;;  %12337 = vst [vmem:[#allocation60_spill] sm:$0xff] %v8114_v26  ;;  %v3862_v1 = vadd.f32 %v3854_v12, %v3846_v6  ;;  %v12338_v0 = vrot.slane %v7774_v51, 7  ;;  %5996 = vpow2.f32 %v5333_v54  ;;  %v8129_v47 = vld [vmem:[#allocation2 + $0xf0] sm:$0xff] }
 0x22c   :  { %1584 = vrot.lane.b32.xlu0 %v8055_v18, %s6641_s15  ;;  %12336 = vst [vmem:[#allocation59_spill] sm:$0xff] %v8108_v55  ;;  %v3184_v14 = vmul.f32 %v7891_v24, %v7584_v52  ;;  %v3328_v20 = vmul.f32 %v7847_v22, %v8036_v60  ;;  %v8133_v41 = vmul.f32 %v7863_v32, %v8108_v55  ;;  %5998 = vpow2.f32 %v5349_v25 }
 0x22d   :  { %v8123_v33 = vsel %vm118_vm0, %v12041_v13, %v12338_v0  ;;  %v4030_v12 = vadd.f32 %v4022_v39, %v4014_v62  ;;  %v3207_v58 = vadd.f32 %v7903_v61, %v3191_v30  ;;  %v3343_v46 = vadd.f32 %v7949_v45, %v3327_v42 }
 0x22e   :  { %12339 = vst [vmem:[#allocation61_spill] sm:$0xff] %v8123_v33  ;;  %v3816_v54 = vmul.f32 %v7863_v32, %v8114_v26  ;;  %v3984_v4 = vmul.f32 %v7844_v15, %v8114_v26  ;;  %v3192_v6 = vadd.f32 %v3184_v14, %v3176_v36  ;;  %v3336_v7 = vmul.f32 %v7853_v44, %v7976_v43  ;;  %v8158_v36 = vld [vmem:[#allocation2 + $0xe0] sm:$0xff] }
 0x22f   :  { %1299 = vrot.lane.b32.xlu1 %v8026_v29, %s6641_s15  ;;  %v1175_v30 = vsel %vm390_vm2, %v1167_v21, %v1161_v23  ;;  %v3870_v45 = vadd.f32 %v3862_v1, %v7893_v27  ;;  %v3351_v61 = vmul.f32 %v7866_v57, %v7702_v37  ;;  %v3200_v62 = vmul.f32 %v7826_v16, %v7455_v35 }
 0x230   :  { %1602 = vrot.lane.b32.xlu0 %v8129_v47, %s6641_s15  ;;  %v3344_v39 = vadd.f32 %v3336_v7, %v3328_v20  ;;  %v3157_v42 = vmul.f32 %v7849_v50, %v8055_v18  ;;  %v2501_v49 = vmul.f32 %v7863_v32, %v8036_v60  ;;  %12340 = vst [vmem:[#allocation62_spill] sm:$0xff] %v8158_v36 }
 0x231   :  { %v4038_v21 = vadd.f32 %v4030_v12, %v7893_v27  ;;  %v3215_v25 = vadd.f32 %v3207_v58, %v7893_v27  ;;  %v3359_v1 = vadd.f32 %v3351_v61, %v3343_v46  ;;  %v3352_v0 = vmul.f32 %v7866_v57, %v7584_v52 }
 0x232   :  { %v3208_v14 = vadd.f32 %v3200_v62, %v3192_v6  ;;  %v3165_v20 = vmul.f32 %v7856_v17, %v7860_v9  ;;  %v3181_v7 = vmul.f32 %v7891_v24, %v7768_v19  ;;  %v2510_v13 = vmul.f32 %v7832_v34, %v7976_v43 }
 0x233   :  { %v8173_v12 = vadd.f32 %v8053_v28, %v3816_v54  ;;  %v8176_v58 = vadd.f32 %v8063_v3, %v3984_v4  ;;  %1193 = vrot.lane.b32.xlu1 %v8114_v26, %s6641_s15  ;;  %v8182_v46 = vsel %vm402_vm3, %v1175_v30, 0.0  ;;  %v5397_v6 = vmul.f32 -1.442695, %v3870_v45 }
 0x234   :  { %1596 = vrot.lane.b32.xlu0 %v8158_v36, %s6641_s15  ;;  %12341 = vst [vmem:[#allocation63_spill] sm:$0xff] %v8182_v46  ;;  %v3360_v61 = vadd.f32 %v3352_v0, %v3344_v39  ;;  %v3368_v62 = vmul.f32 %v7823_v2, %v7455_v35  ;;  %v3173_v24 = vadd.f32 %v3165_v20, %v3157_v42  ;;  %v5413_v50 = vmul.f32 -1.442695, %v4038_v21 }
 0x235   :  { %v2518_v29 = vadd.f32 %v2510_v13, %v2501_v49  ;;  %v3375_v28 = vadd.f32 %v7907_v59, %v3359_v1  ;;  %v3325_v3 = vmul.f32 %v7847_v22, %v8055_v18  ;;  %v2672_v54 = vmul.f32 %v7844_v15, %v8036_v60  ;;  %v12342_v49 = vld [vmem:[#allocation35_spill] sm:$0xff] }
 0x236   :  { %v5334_v8 = vmul.f32 -1.442695, %v3215_v25  ;;  %v3216_v4 = vadd.f32 %v3208_v14, %v7893_v27  ;;  %v3189_v30 = vadd.f32 %v3181_v7, %v3173_v24  ;;  %v2527_v45 = vmul.f32 %v7898_v48, %v7584_v52  ;;  %v12345_v14 = vld [vmem:[#allocation28_spill] sm:$0xff] }
 0x237   :  { %1311 = vrot.lane.b32.xlu1 %v8046_v11, %s6641_s15  ;;  %v3333_v59 = vmul.f32 %v7853_v44, %v7860_v9  ;;  %v3349_v13 = vmul.f32 %v7866_v57, %v7768_v19  ;;  %v2680_v39 = vmul.f32 %v7829_v63, %v7976_v43  ;;  %v2500_v42 = vmul.f32 %v7863_v32, %v7978_v56  ;;  %v8612_v57 = vld [vmem:[#allocation2 + $0x88] sm:$0xff] }
 0x238   :  { %1190 = vrot.lane.b32.xlu0 %v8010_v5, %s6641_s15  ;;  %v12343_v24 = vrot.slane %v12342_v49, 1  ;;  %6000 = vpow2.f32 %v5397_v6  ;;  %v3376_v25 = vadd.f32 %v3368_v62, %v3360_v61  ;;  %v2535_v1 = vadd.f32 %v2527_v45, %v2518_v29  ;;  %v5997_v0 = vpop.eup %5996  ;;  %v12347_v6 = vld [vmem:[#allocation22_spill] sm:$0xff]  ;;  %v12348_v62 = vld [vmem:[#allocation44_spill] sm:$0xff]  ;;  %12408 = vst [vmem:[#allocation74_spill] sm:$0xff] %v8612_v57 }
 0x239   :  { %6002 = vpow2.f32 %v5413_v50  ;;  %v3197_v19 = vmul.f32 %v7826_v16, %v12345_v14  ;;  %v3341_v20 = vadd.f32 %v3333_v59, %v3325_v3  ;;  %v2688_v7 = vadd.f32 %v2680_v39, %v2672_v54  ;;  %v5999_v54 = vpop.eup %5998 }
 0x23a   :  { %v8210_v21 = vsel %vm390_vm2, %v1161_v23, %v12343_v24  ;;  %6004 = vpow2.f32 %v5334_v8  ;;  %v5335_v5 = vmul.f32 -1.442695, %v3216_v4  ;;  %v3383_v49 = vadd.f32 %v3375_v28, %v7893_v27  ;;  %v12346_v23 = vld [vmem:[#allocation36_spill] sm:$0xff] }
 0x23b   :  { %12344 = vst [vmem:[#allocation35_spill] sm:$0xff] %v8210_v21  ;;  %v2544_v24 = vmul.f32 %v12346_v23, %v7455_v35  ;;  %1205 = vrot.lane.b32.xlu1 %v8182_v46, %s6641_s15  ;;  %v3205_v29 = vadd.f32 %v3197_v19, %v3189_v30  ;;  %v3357_v50 = vadd.f32 %v3349_v13, %v3341_v20  ;;  %v3246_v45 = vadd.f32 1.0, %v5997_v0  ;;  %v12350_v19 = vld [vmem:[#allocation14_spill] sm:$0xff] }
 0x23c   :  { %1202 = vrot.lane.b32.xlu0 %v8102_v31, %s6641_s15  ;;  %v2696_v61 = vmul.f32 %v12347_v6, %v7584_v52  ;;  %v2517_v3 = vadd.f32 %v12348_v62, %v2500_v42  ;;  %v3384_v8 = vadd.f32 %v3376_v25, %v7893_v27  ;;  %v2671_v28 = vmul.f32 %v7844_v15, %v7978_v56  ;;  %v12349_v42 = vld [vmem:[#allocation25_spill] sm:$0xff]  ;;  %v12351_v62 = vld [vmem:[#allocation47_spill] sm:$0xff] }
 0x23d   :  { %v2552_v4 = vadd.f32 %v2544_v24, %v2535_v1  ;;  %v3365_v59 = vmul.f32 %v7823_v2, %v12345_v14  ;;  %v2526_v30 = vmul.f32 %v7898_v48, %v7702_v37  ;;  %v3840_v52 = vmul.f32 %v7898_v48, %v8036_v60 }
 0x23e   :  { %v2704_v39 = vadd.f32 %v2696_v61, %v2688_v7  ;;  %6006 = vpow2.f32 %v5335_v5  ;;  %v5350_v1 = vmul.f32 -1.442695, %v3383_v49  ;;  %v3213_v0 = vadd.f32 %v3205_v29, %v7893_v27 }
 0x23f   :  { %1499 = vrot.lane.b32.xlu1 %v8123_v33, %s6641_s15  ;;  %v3373_v14 = vadd.f32 %v3365_v59, %v3357_v50  ;;  %v2712_v20 = vmul.f32 %v12350_v19, %v7455_v35  ;;  %v2534_v7 = vadd.f32 %v2526_v30, %v2517_v3  ;;  %v12052_v24 = vrot.slane %v7976_v43, 7  ;;  %v12356_v30 = vld [vmem:[#allocation27_spill] sm:$0xff] }
 0x240   :  { %1184 = vrot.lane.b32.xlu0 %v8108_v55, %s6641_s15  ;;  %6008 = vrcp.f32 %v3246_v45  ;;  %v5351_v61 = vmul.f32 -1.442695, %v3384_v8  ;;  %v2687_v13 = vadd.f32 %v12351_v62, %v2671_v28  ;;  %v2560_v25 = vadd.f32 %v2552_v4, %v7893_v27  ;;  %v12355_v28 = vld [vmem:[#allocation41_spill] sm:$0xff] }
 0x241   :  { %v2720_v5 = vadd.f32 %v2712_v20, %v2704_v39  ;;  %v3848_v49 = vadd.f32 %v3840_v52, %v8173_v12  ;;  %v4008_v26 = vmul.f32 %v12347_v6, %v8036_v60  ;;  %v12352_v35 = vrot.slane %v12349_v42, 7 }
 0x242   :  { %v12353_v50 = vrot.slane %v8158_v36, 7  ;;  %v3414_v45 = vadd.f32 1.0, %v5999_v54  ;;  %6010 = vpow2.f32 %v5350_v1  ;;  %v2695_v12 = vmul.f32 %v12347_v6, %v7702_v37 }
 0x243   :  { %v8248_v29 = vpop.permute.xlu1 %881  ;;  %v5332_v8 = vmul.f32 -1.442695, %v3213_v0  ;;  %v3381_v4 = vadd.f32 %v3373_v14, %v7893_v27  ;;  %v2551_v59 = vadd.f32 %v12355_v28, %v2534_v7  ;;  %v3856_v39 = vmul.f32 %v12346_v23, %v7976_v43  ;;  %v12360_v28 = vld [vmem:[#allocation52_spill] sm:$0xff] }
 0x244   :  { %1196 = vrot.lane.b32.xlu0 %v8210_v21, %s6641_s15  ;;  %v8258_v3 = vsel %vm118_vm0, %v12353_v50, %v12352_v35  ;;  %v12357_v52 = vrot.slane %v12356_v30, 7  ;;  %6012 = vpow2.f32 %v5351_v61  ;;  %v2703_v37 = vadd.f32 %v2695_v12, %v2687_v13  ;;  %v12359_v50 = vld [vmem:[#allocation49_spill] sm:$0xff] }
 0x245   :  { %12354 = vst [vmem:[#allocation28_spill] sm:$0xff] %v8258_v3  ;;  %1511 = vrot.lane.b32.xlu1 %v8258_v3, %s6641_s15  ;;  %v3839_v1 = vmul.f32 %v7898_v48, %v7978_v56  ;;  %v6001_v0 = vpop.eup %6000  ;;  %v5271_v14 = vmul.f32 -1.442695, %v2560_v25  ;;  %v2728_v20 = vadd.f32 %v2720_v5, %v7893_v27  ;;  %v3864_v7 = vadd.f32 %v3856_v39, %v3848_v49  ;;  %v12361_v49 = vld [vmem:[#allocation42_spill] sm:$0xff]  ;;  %v8554_v3 = vld [vmem:[#allocation2 + $0x78] sm:$0xff] }
 0x246   :  { %v8274_v54 = vsel %vm118_vm0, %v12357_v52, %v12052_v24  ;;  %v4016_v62 = vadd.f32 %v4008_v26, %v8176_v58  ;;  %v6003_v35 = vpop.eup %6002  ;;  %v1476_v52 = vrot.slane %v7978_v56, 7  ;;  %6014 = vrcp.f32 %v3414_v45  ;;  %12400 = vst [vmem:[#allocation69_spill] sm:$0xff] %v8554_v3 }
 0x247   :  { %12358 = vst [vmem:[#allocation44_spill] sm:$0xff] %v8274_v54  ;;  %v6005_v61 = vpop.eup %6004  ;;  %v8285_v12 = vpop.permute.xlu1 %875  ;;  %6016 = vpow2.f32 %v5332_v8  ;;  %v5348_v25 = vmul.f32 -1.442695, %v3381_v4  ;;  %v2559_v26 = vadd.f32 %v2551_v59, %v7893_v27  ;;  %v4024_v58 = vmul.f32 %v12350_v19, %v7976_v43  ;;  %v12362_v8 = vld [vmem:[#allocation56_spill] sm:$0xff] }
 0x248   :  { %1302 = vrot.lane.b32.xlu0 %v12359_v50, %s6641_s15  ;;  %v3902_v5 = vadd.f32 1.0, %v6001_v0  ;;  %v2719_v39 = vadd.f32 %v12361_v49, %v2703_v37  ;;  %v3847_v24 = vadd.f32 %v3839_v1, %v8088_v10  ;;  %v4007_v45 = vmul.f32 %v12347_v6, %v7978_v56  ;;  %v12363_v0 = vld [vmem:[#allocation54_spill] sm:$0xff]  ;;  %v12365_v10 = vld [vmem:[#allocation40_spill] sm:$0xff] }
 0x249   :  { %1305 = vrot.lane.b32.xlu1 %v8274_v54, %s6641_s15  ;;  %6018 = vpow2.f32 %v5271_v14  ;;  %v5287_v13 = vmul.f32 -1.442695, %v2728_v20  ;;  %v3872_v30 = vadd.f32 %v3864_v7, %v7893_v27  ;;  %v4032_v54 = vadd.f32 %v4024_v58, %v4016_v62 }
 0x24a   :  { %v3829_v4 = vadd.f32 %v12362_v8, %v8133_v41  ;;  %v3981_v59 = vmul.f32 %v7844_v15, %v8108_v55  ;;  %v12364_v37 = vrot.slane %v12360_v28, 7  ;;  %v12366_v1 = vrot.slane %v12365_v10, 7  ;;  %v12370_v8 = vld [vmem:[#allocation48_spill] sm:$0xff] }
 0x24b   :  { %v4070_v14 = vadd.f32 1.0, %v6003_v35  ;;  %v6007_v20 = vpop.eup %6006  ;;  %v12368_v41 = vrot.slane %v7774_v51, 7  ;;  %v1477_v62 = vrot.slane %v8129_v47, 7  ;;  %6020 = vpow2.f32 %v5348_v25 }
 0x24c   :  { %1314 = vrot.lane.b32.xlu0 %v12363_v0, %s6641_s15  ;;  %v8309_v56 = vsel %vm118_vm0, %v12366_v1, %v12364_v37  ;;  %v5270_v58 = vmul.f32 -1.442695, %v2559_v26  ;;  %6022 = vrcp.f32 %v3902_v5  ;;  %v2727_v49 = vadd.f32 %v2719_v39, %v7893_v27  ;;  %v8323_v1 = vpop.permute.xlu1 %893  ;;  %v12373_v39 = vld [vmem:[#allocation57_spill] sm:$0xff]  ;;  %v8538_v0 = vld [vmem:[#allocation2 + $0x48] sm:$0xff] }
 0x24d   :  { %12367 = vst [vmem:[#allocation25_spill] sm:$0xff] %v8309_v56  ;;  %1317 = vrot.lane.b32.xlu1 %v8309_v56, %s6641_s15  ;;  %v8317_v7 = vsel %vm118_vm0, %v12368_v41, %v1476_v52  ;;  %v3863_v37 = vadd.f32 %v12370_v8, %v3847_v24  ;;  %v4015_v35 = vadd.f32 %v4007_v45, %v8096_v53  ;;  %v6009_v10 = vpop.eup %6008  ;;  %v12371_v51 = vrot.slane %v8036_v60, 7  ;;  %v12376_v8 = vld [vmem:[#allocation50_spill] sm:$0xff] }
 0x24e   :  { %12369 = vst [vmem:[#allocation47_spill] sm:$0xff] %v8317_v7  ;;  %6024 = vpow2.f32 %v5287_v13  ;;  %v5399_v55 = vmul.f32 -1.442695, %v3872_v30  ;;  %v4040_v25 = vadd.f32 %v4032_v54, %v7893_v27  ;;  %v3247_v53 = vadd.f32 1.0, %v6005_v61  ;;  %12398 = vst [vmem:[#allocation67_spill] sm:$0xff] %v8538_v0 }
 0x24f   :  { %v8329_v41 = vsel %vm118_vm0, %v1476_v52, %v12371_v51  ;;  %6026 = vrcp.f32 %v4070_v14  ;;  %v3837_v26 = vmul.f32 %v7898_v48, %v8055_v18  ;;  %v6011_v5 = vpop.eup %6010  ;;  %v3997_v45 = vadd.f32 %v12373_v39, %v3981_v59 }
 0x250   :  { %12372 = vst [vmem:[#allocation41_spill] sm:$0xff] %v8329_v41  ;;  %1502 = vrot.lane.b32.xlu0 %v8317_v7, %s6641_s15  ;;  %v12374_v30 = vrot.slane %v7860_v9, 7  ;;  %v12375_v54 = vrot.slane %v7976_v43, 7  ;;  %v3248_v13 = vadd.f32 1.0, %v6007_v20  ;;  %6028 = vpow2.f32 %v5270_v58 }
 0x251   :  { %1505 = vrot.lane.b32.xlu1 %v8329_v41, %s6641_s15  ;;  %v5286_v14 = vmul.f32 -1.442695, %v2727_v49  ;;  %v3871_v61 = vadd.f32 %v3863_v37, %v7893_v27  ;;  %v4031_v51 = vadd.f32 %v12376_v8, %v4015_v35  ;;  %v3845_v24 = vadd.f32 %v3837_v26, %v3829_v4  ;;  %v6013_v56 = vpop.eup %6012  ;;  %v8366_v49 = vpop.permute.xlu1 %887  ;;  %v8506_v41 = vld [vmem:[#allocation2 + $0x28] sm:$0xff] }
 0x252   :  { %v1286_v52 = vsel %vm118_vm0, %v12375_v54, %v12374_v30  ;;  %v12377_v59 = vrot.slane %v12349_v42, 7  ;;  %6030 = vpow2.f32 %v5399_v55  ;;  %v5415_v7 = vmul.f32 -1.442695, %v4040_v25 }
 0x253   :  { %v4005_v30 = vmul.f32 %v12347_v6, %v8055_v18  ;;  %v12379_v20 = vrot.slane %v8092_v40, 7  ;;  %6032 = vrcp.f32 %v3247_v53  ;;  %v3853_v42 = vmul.f32 %v12346_v23, %v7860_v9  ;;  %v6015_v58 = vpop.eup %6014 }
 0x254   :  { %v8352_v39 = vsel %vm118_vm0, %v12377_v59, %v1477_v62  ;;  %v8372_v55 = vsel %vm127_vm1, %v1286_v52, 0.0  ;;  %6034 = vrcp.f32 %v3248_v13  ;;  %v3415_v37 = vadd.f32 1.0, %v6011_v5  ;;  %v6017_v25 = vpop.eup %6016  ;;  %v12382_v52 = vld [vmem:[#allocation46_spill] sm:$0xff] }
 0x255   :  { %12378 = vst [vmem:[#allocation27_spill] sm:$0xff] %v8352_v39  ;;  %1514 = vrot.lane.b32.xlu0 %v8352_v39, %s6641_s15  ;;  %v8362_v4 = vsel %vm118_vm0, %v1477_v62, %v12379_v20  ;;  %12381 = vst [vmem:[#allocation42_spill] sm:$0xff] %v8372_v55  ;;  %v4013_v35 = vadd.f32 %v4005_v30, %v3997_v45  ;;  %6036 = vpow2.f32 %v5286_v14  ;;  %v5398_v62 = vmul.f32 -1.442695, %v3871_v61  ;;  %v8385_v14 = vpop.permute.xlu1 %1081 }
 0x256   :  { %12380 = vst [vmem:[#allocation52_spill] sm:$0xff] %v8362_v4  ;;  %1517 = vrot.lane.b32.xlu1 %v8362_v4, %s6641_s15  ;;  %v4039_v53 = vadd.f32 %v4031_v51, %v7893_v27  ;;  %v3861_v26 = vadd.f32 %v3853_v42, %v3845_v24  ;;  %v5581_v54 = vpack.c.bf16 %v6009_v10, %v6009_v10  ;;  %v3416_v8 = vadd.f32 1.0, %v6013_v56  ;;  %v6019_v20 = vpop.eup %6018 }
 0x257   :  { %6038 = vpow2.f32 %v5415_v7  ;;  %v4021_v59 = vmul.f32 %v12350_v19, %v7860_v9  ;;  %v12383_v13 = vrot.slane %v12382_v52, 7  ;;  %v12384_v5 = vrot.slane %v12360_v28, 7  ;;  %v8388_v9 = vpop.permute.xlu0 %878  ;;  %12394 = vst [vmem:[#allocation46_spill] sm:$0xff] %v8506_v41 }
 0x258   :  { %6040 = vrcp.f32 %v3415_v37  ;;  %v3245_v56 = vadd.f32 1.0, %v6017_v25  ;;  %v6021_v10 = vpop.eup %6020  ;;  %v5414_v24 = vmul.f32 -1.442695, %v4039_v53  ;;  %v3869_v61 = vadd.f32 %v3861_v26, %v7893_v27 }
 0x259   :  { %1296 = vrot.lane.b32.xlu0 %v8372_v55, %s6641_s15  ;;  %v1287_v45 = vsel %vm118_vm0, %v12384_v5, %v12383_v13  ;;  %v4029_v7 = vadd.f32 %v4021_v59, %v4013_v35  ;;  %6042 = vpow2.f32 %v5398_v62  ;;  %v6023_v51 = vpop.eup %6022  ;;  %v5589_v42 = vpack.c.bf16 %v6015_v58, %v6015_v58  ;;  %v8407_v59 = vpop.permute.xlu1 %1075 }
 0x25a   :  { %3295 = vrot.lane.b32.xlu1 %v5581_v54, %s6641_s15  ;;  %v8393_v30 = vsel %vm127_vm1, %v1287_v45, 0.0  ;;  %6044 = vrcp.f32 %v3416_v8  ;;  %v2592_v52 = vadd.f32 1.0, %v6019_v20  ;;  %v12386_v37 = vrot.slane %v8055_v18, 7 }
 0x25b   :  { %12385 = vst [vmem:[#allocation56_spill] sm:$0xff] %v8393_v30  ;;  %v6025_v13 = vpop.eup %6024  ;;  %v12387_v35 = vrot.slane %v8036_v60, 7  ;;  %6046 = vrcp.f32 %v3245_v56  ;;  %v3413_v53 = vadd.f32 1.0, %v6021_v10  ;;  %v4037_v58 = vadd.f32 %v4029_v7, %v7893_v27  ;;  %v8405_v54 = vpop.permute.xlu0 %890 }
 0x25c   :  { %v6027_v62 = vpop.eup %6026  ;;  %6048 = vpow2.f32 %v5414_v24  ;;  %v5396_v8 = vmul.f32 -1.442695, %v3869_v61  ;;  %v5613_v5 = vpack.c.bf16 %v6023_v51, %v6023_v51  ;;  %v2760_v45 = vadd.f32 1.0, %v6025_v13 }
 0x25d   :  { %1308 = vrot.lane.b32.xlu0 %v8393_v30, %s6641_s15  ;;  %v1486_v25 = vsel %vm118_vm0, %v12387_v35, %v12386_v37  ;;  %v6029_v26 = vpop.eup %6028  ;;  %6050 = vrcp.f32 %v2592_v52  ;;  %v12389_v56 = vrot.slane %v8158_v36, 7  ;;  %v12390_v7 = vrot.slane %v8092_v40, 7  ;;  %v8570_v36 = vld [vmem:[#allocation2 + $0x68] sm:$0xff] }
 0x25e   :  { %3463 = vrot.lane.b32.xlu1 %v5589_v42, %s6644_s21  ;;  %v8411_v20 = vsel %vm127_vm1, %v1486_v25, 0.0  ;;  %6052 = vrcp.f32 %v3413_v53  ;;  %v5412_v61 = vmul.f32 -1.442695, %v4037_v58  ;;  %v2591_v52 = vadd.f32 1.0, %v6029_v26  ;;  %12402 = vst [vmem:[#allocation71_spill] sm:$0xff] %v8570_v36 }
 0x25f   :  { %12388 = vst [vmem:[#allocation40_spill] sm:$0xff] %v8411_v20  ;;  %v6031_v37 = vpop.eup %6030  ;;  %v1487_v10 = vsel %vm118_vm0, %v12390_v7, %v12389_v56  ;;  %6054 = vpow2.f32 %v5396_v8 }
 0x260   :  { %v6033_v24 = vpop.eup %6032  ;;  %v8428_v25 = vsel %vm127_vm1, %v1487_v10, 0.0  ;;  %6056 = vrcp.f32 %v2760_v45  ;;  %v3904_v56 = vadd.f32 1.0, %v6031_v37 }
 0x261   :  { %1496 = vrot.lane.b32.xlu0 %v8411_v20, %s6641_s15  ;;  %v6035_v42 = vpop.eup %6034  ;;  %v8424_v35 = vpop.permute.xlu1 %1093  ;;  %12391 = vst [vmem:[#allocation48_spill] sm:$0xff] %v8428_v25  ;;  %v5621_v20 = vpack.c.bf16 %v6027_v62, %v6027_v62  ;;  %6058 = vpow2.f32 %v5412_v61  ;;  %v5582_v26 = vpack.c.bf16 %v6033_v24, %v6033_v24 }
 0x262   :  { %3951 = vrot.lane.b32.xlu1 %v5613_v5, %s6641_s15  ;;  %v8422_v51 = vpop.permute.xlu0 %872  ;;  %v6037_v13 = vpop.eup %6036  ;;  %6060 = vrcp.f32 %v2591_v52  ;;  %v5583_v10 = vpack.c.bf16 %v6035_v42, %v6035_v42 }
 0x263   :  { %v2759_v8 = vadd.f32 1.0, %v6037_v13  ;;  %6062 = vrcp.f32 %v3904_v56 }
 0x264   :  { %v6039_v7 = vpop.eup %6038 }
 0x265   :  { %1508 = vrot.lane.b32.xlu0 %v8428_v25, %s6641_s15  ;;  %v6041_v53 = vpop.eup %6040  ;;  %v8435_v38 = vpop.permute.xlu1 %1087  ;;  %v4072_v62 = vadd.f32 1.0, %v6039_v7  ;;  %6064 = vrcp.f32 %v2759_v8 }
 0x266   :  { %4119 = vrot.lane.b32.xlu1 %v5621_v20, %s6644_s21  ;;  %v8433_v58 = vpop.permute.xlu0 %884  ;;  %v6043_v5 = vpop.eup %6042  ;;  %v5590_v61 = vpack.c.bf16 %v6041_v53, %v6041_v53 }
 0x267   :  { %v6045_v45 = vpop.eup %6044  ;;  %v3903_v25 = vadd.f32 1.0, %v6043_v5  ;;  %6066 = vrcp.f32 %v4072_v62 }
 0x268   :  { %v6047_v37 = vpop.eup %6046  ;;  %v5591_v13 = vpack.c.bf16 %v6045_v45, %v6045_v45 }
 0x269   :  { %3297 = vrot.lane.b32.xlu0 %v5582_v26, %s6641_s15  ;;  %v6049_v24 = vpop.eup %6048  ;;  %v8441_v52 = vpop.permute.xlu1 %987  ;;  %v5580_v7 = vpack.c.bf16 %v6047_v37, %v6047_v37  ;;  %6068 = vrcp.f32 %v3903_v25 }
 0x26a   :  { %3299 = vrot.lane.b32.xlu1 %v5583_v10, %s6641_s15  ;;  %v8439_v20 = vpop.permute.xlu0 %1078  ;;  %v6051_v30 = vpop.eup %6050  ;;  %v4071_v26 = vadd.f32 1.0, %v6049_v24 }
 0x26b   :  { %v6053_v42 = vpop.eup %6052  ;;  %v5551_v8 = vpack.c.bf16 %v6051_v30, %v6051_v30 }
 0x26c   :  { %v6055_v10 = vpop.eup %6054  ;;  %6070 = vrcp.f32 %v4071_v26 }
 0x26d   :  { %3465 = vrot.lane.b32.xlu0 %v5590_v61, %s6644_s21  ;;  %v8447_v53 = vpop.permute.xlu1 %999  ;;  %v6057_v5 = vpop.eup %6056  ;;  %v5588_v61 = vpack.c.bf16 %v6053_v42, %v6053_v42 }
 0x26e   :  { %3467 = vrot.lane.b32.xlu1 %v5591_v13, %s6644_s21  ;;  %v8445_v56 = vpop.permute.xlu0 %1090  ;;  %v6059_v62 = vpop.eup %6058  ;;  %v3901_v13 = vadd.f32 1.0, %v6055_v10  ;;  %v5559_v25 = vpack.c.bf16 %v6057_v5, %v6057_v5 }
 0x26f   :  { %v6061_v55 = vpop.eup %6060 }
 0x270   :  { %v6063_v37 = vpop.eup %6062  ;;  %v5550_v24 = vpack.c.bf16 %v6061_v55, %v6061_v55  ;;  %6072 = vrcp.f32 %v3901_v13 }
 0x271   :  { %3293 = vrot.lane.b32.xlu0 %v5580_v7, %s6641_s15  ;;  %v8453_v4 = vpop.permute.xlu1 %1387  ;;  %v4069_v7 = vadd.f32 1.0, %v6059_v62  ;;  %v5615_v42 = vpack.c.bf16 %v6063_v37, %v6063_v37 }
 0x272   :  { %2643 = vrot.lane.b32.xlu1 %v5551_v8, %s6641_s15  ;;  %v8451_v45 = vpop.permute.xlu0 %990  ;;  %v6065_v8 = vpop.eup %6064 }
 0x273   :  { %v5558_v5 = vpack.c.bf16 %v6065_v8, %v6065_v8  ;;  %6074 = vrcp.f32 %v4069_v7 }
 0x274   :  { %v6067_v26 = vpop.eup %6066 }
 0x275   :  { %3461 = vrot.lane.b32.xlu0 %v5588_v61, %s6644_s21  ;;  %v8459_v27 = vpop.permute.xlu1 %1399  ;;  %v5623_v39 = vpack.c.bf16 %v6067_v26, %v6067_v26 }
 0x276   :  { %2811 = vrot.lane.b32.xlu1 %v5559_v25, %s6644_s21  ;;  %v8457_v30 = vpop.permute.xlu0 %1002  ;;  %v6069_v61 = vpop.eup %6068 }
 0x277   :  { %v5614_v62 = vpack.c.bf16 %v6069_v61, %v6069_v61 }
 0x279   :  { %2641 = vrot.lane.b32.xlu0 %v5550_v24, %s6641_s15  ;;  %v8465_v25 = vpop.permute.xlu1 %1587  ;;  %v6071_v13 = vpop.eup %6070  ;;  %v8473_v24 = vld [vmem:[#allocation2 + $0x18] sm:$0xff] }
 0x27a   :  { %3955 = vrot.lane.b32.xlu1 %v5615_v42, %s6641_s15  ;;  %v8463_v10 = vpop.permute.xlu0 %1072  ;;  %12392 = vst [vmem:[#allocation57_spill] sm:$0xff] %v8473_v24  ;;  %v883_v7 = vsel %vm139_vm4, %v8248_v29, %v8473_v24  ;;  %v5622_v42 = vpack.c.bf16 %v6071_v13, %v6071_v13  ;;  %v8495_v13 = vld [vmem:[#allocation2 + $0x38] sm:$0xff] }
 0x27b   :  { %12393 = vst [vmem:[#allocation50_spill] sm:$0xff] %v8495_v13  ;;  %v895_v6 = vsel %vm139_vm4, %v8323_v1, %v8495_v13  ;;  %v8522_v13 = vld [vmem:[#allocation2 + $0x58] sm:$0xff] }
 0x27c   :  { %12396 = vst [vmem:[#allocation65_spill] sm:$0xff] %v8522_v13 }
 0x27d   :  { %2809 = vrot.lane.b32.xlu0 %v5558_v5, %s6644_s21  ;;  %v8471_v37 = vpop.permute.xlu1 %1599  ;;  %v8484_v5 = vld [vmem:[#allocation2 + $0x8] sm:$0xff] }
 0x27e   :  { %4123 = vrot.lane.b32.xlu1 %v5623_v39, %s6644_s21  ;;  %v8469_v55 = vpop.permute.xlu0 %1084  ;;  %v6073_v39 = vpop.eup %6072  ;;  %v877_v61 = vsel %vm139_vm4, %v8285_v12, %v8484_v5 }
 0x281   :  { %3953 = vrot.lane.b32.xlu0 %v5614_v62, %s6641_s15  ;;  %v8482_v26 = vpop.permute.xlu1 %993  ;;  %v5612_v62 = vpack.c.bf16 %v6073_v39, %v6073_v39  ;;  %v889_v39 = vsel %vm139_vm4, %v8366_v49, %v8506_v41  ;;  %v1083_v49 = vsel %vm139_vm4, %v8385_v14, %v8522_v13  ;;  %v1077_v14 = vsel %vm139_vm4, %v8407_v59, %v8538_v0 }
 0x282   :  { %902 = vrot.lane.b32.xlu1 %v883_v7, %s6641_s15  ;;  %v8480_v8 = vpop.permute.xlu0 %1390  ;;  %v6075_v7 = vpop.eup %6074  ;;  %v1095_v59 = vsel %vm139_vm4, %v8424_v35, %v8554_v3  ;;  %v1089_v35 = vsel %vm139_vm4, %v8435_v38, %v8570_v36  ;;  %v12404_v3 = vld [vmem:[#allocation18_spill] sm:$0xff] }
 0x283   :  { %v989_v21 = vsel %vm139_vm4, %v8441_v52, %v12404_v3 }
 0x285   :  { %4121 = vrot.lane.b32.xlu0 %v5622_v42, %s6644_s21  ;;  %v8493_v19 = vpop.permute.xlu1 %1005  ;;  %v5620_v42 = vpack.c.bf16 %v6075_v7, %v6075_v7 }
 0x286   :  { %898 = vrot.lane.b32.xlu1 %v877_v61, %s6641_s15  ;;  %v8491_v29 = vpop.permute.xlu0 %984 }
 0x289   :  { %3949 = vrot.lane.b32.xlu0 %v5612_v62, %s6641_s15  ;;  %v8504_v61 = vpop.permute.xlu1 %1187  ;;  %v8515_v62 = vld [vmem:[#allocation2 + $0x10] sm:$0xff] }
 0x28a   :  { %910 = vrot.lane.b32.xlu1 %v895_v6, %s6641_s15  ;;  %v8502_v12 = vpop.permute.xlu0 %1384  ;;  %12395 = vst [vmem:[#allocation64_spill] sm:$0xff] %v8515_v62  ;;  %v880_v6 = vsel %vm139_vm4, %v8388_v9, %v8515_v62 }
 0x28d   :  { %4117 = vrot.lane.b32.xlu0 %v5620_v42, %s6644_s21  ;;  %v8520_v7 = vpop.permute.xlu1 %1199 }
 0x28e   :  { %906 = vrot.lane.b32.xlu1 %v889_v39, %s6641_s15  ;;  %v8513_v1 = vpop.permute.xlu0 %1402  ;;  %v8531_v39 = vld [vmem:[#allocation2 + $0x30] sm:$0xff] }
 0x28f   :  { %12397 = vst [vmem:[#allocation66_spill] sm:$0xff] %v8531_v39  ;;  %v892_v9 = vsel %vm139_vm4, %v8405_v54, %v8531_v39 }
 0x291   :  { %900 = vrot.lane.b32.xlu0 %v880_v6, %s6641_s15  ;;  %v8536_v48 = vpop.permute.xlu1 %1393 }
 0x292   :  { %1102 = vrot.lane.b32.xlu1 %v1083_v49, %s6641_s15  ;;  %v8529_v42 = vpop.permute.xlu0 %996  ;;  %v8547_v49 = vld [vmem:[#allocation2] sm:$0xff] }
 0x293   :  { %12399 = vst [vmem:[#allocation68_spill] sm:$0xff] %v8547_v49  ;;  %v874_v54 = vsel %vm139_vm4, %v8422_v51, %v8547_v49 }
 0x295   :  { %908 = vrot.lane.b32.xlu0 %v892_v9, %s6641_s15  ;;  %v8552_v13 = vpop.permute.xlu1 %1405 }
 0x296   :  { %1098 = vrot.lane.b32.xlu1 %v1077_v14, %s6641_s15  ;;  %v8545_v6 = vpop.permute.xlu0 %1396  ;;  %v8563_v14 = vld [vmem:[#allocation2 + $0x20] sm:$0xff] }
 0x297   :  { %12401 = vst [vmem:[#allocation70_spill] sm:$0xff] %v8563_v14  ;;  %v886_v51 = vsel %vm139_vm4, %v8433_v58, %v8563_v14 }
 0x299   :  { %896 = vrot.lane.b32.xlu0 %v874_v54, %s6641_s15  ;;  %v8568_v49 = vpop.permute.xlu1 %1593 }
 0x29a   :  { %1110 = vrot.lane.b32.xlu1 %v1095_v59, %s6641_s15  ;;  %v8561_v9 = vpop.permute.xlu0 %1590  ;;  %v8579_v59 = vld [vmem:[#allocation2 + $0x50] sm:$0xff] }
 0x29b   :  { %12403 = vst [vmem:[#allocation72_spill] sm:$0xff] %v8579_v59  ;;  %v1080_v58 = vsel %vm139_vm4, %v8439_v20, %v8579_v59  ;;  %v12406_v20 = vld [vmem:[#allocation37_spill] sm:$0xff] }
 0x29c   :  { %v1001_v59 = vsel %vm139_vm4, %v8447_v53, %v12406_v20 }
 0x29d   :  { %904 = vrot.lane.b32.xlu0 %v886_v51, %s6641_s15  ;;  %v8584_v14 = vpop.permute.xlu1 %1605  ;;  %v8593_v51 = vld [vmem:[#allocation2 + $0x70] sm:$0xff] }
 0x29e   :  { %1106 = vrot.lane.b32.xlu1 %v1089_v35, %s6641_s15  ;;  %v8577_v54 = vpop.permute.xlu0 %1584  ;;  %12405 = vst [vmem:[#allocation73_spill] sm:$0xff] %v8593_v51  ;;  %v1092_v35 = vsel %vm139_vm4, %v8445_v56, %v8593_v51  ;;  %v1389_v56 = vsel %vm139_vm4, %v8453_v4, %v8612_v57 }
 0x2a1   :  { %1100 = vrot.lane.b32.xlu0 %v1080_v58, %s6641_s15  ;;  %v8598_v36 = vpop.permute.xlu1 %1299 }
 0x2a2   :  { %1010 = vrot.lane.b32.xlu1 %v989_v21, %s6641_s15  ;;  %v8591_v38 = vpop.permute.xlu0 %1602  ;;  %v12407_v21 = vld [vmem:[#allocation24_spill] sm:$0xff] }
 0x2a3   :  { %v992_v58 = vsel %vm139_vm4, %v8451_v45, %v12407_v21  ;;  %v8626_v45 = vld [vmem:[#allocation2 + $0xa8] sm:$0xff] }
 0x2a4   :  { %12411 = vst [vmem:[#allocation76_spill] sm:$0xff] %v8626_v45  ;;  %v1401_v21 = vsel %vm139_vm4, %v8459_v27, %v8626_v45 }
 0x2a5   :  { %1108 = vrot.lane.b32.xlu0 %v1092_v35, %s6641_s15  ;;  %v8610_v3 = vpop.permute.xlu1 %1193 }
 0x2a6   :  { %1018 = vrot.lane.b32.xlu1 %v1001_v59, %s6641_s15  ;;  %v8605_v52 = vpop.permute.xlu0 %1596  ;;  %v12409_v59 = vld [vmem:[#allocation20_spill] sm:$0xff] }
 0x2a7   :  { %v1004_v35 = vsel %vm139_vm4, %v8457_v30, %v12409_v59 }
 0x2a9   :  { %1012 = vrot.lane.b32.xlu0 %v992_v58, %s6641_s15  ;;  %v8624_v51 = vpop.permute.xlu1 %1311  ;;  %v8635_v58 = vld [vmem:[#allocation2 + $0x40] sm:$0xff] }
 0x2aa   :  { %1410 = vrot.lane.b32.xlu1 %v1389_v56, %s6641_s15  ;;  %v8619_v53 = vpop.permute.xlu0 %1190  ;;  %12410 = vst [vmem:[#allocation75_spill] sm:$0xff] %v8624_v51  ;;  %12412 = vst [vmem:[#allocation77_spill] sm:$0xff] %v8635_v58  ;;  %v1074_v30 = vsel %vm139_vm4, %v8463_v10, %v8635_v58  ;;  %v8642_v51 = vld [vmem:[#allocation2 + $0xc8] sm:$0xff] }
 0x2ab   :  { %12414 = vst [vmem:[#allocation79_spill] sm:$0xff] %v8642_v51  ;;  %v1589_v27 = vsel %vm139_vm4, %v8465_v25, %v8642_v51  ;;  %v8658_v58 = vld [vmem:[#allocation2 + $0xe8] sm:$0xff] }
 0x2ac   :  { %12417 = vst [vmem:[#allocation82_spill] sm:$0xff] %v8658_v58  ;;  %v1601_v25 = vsel %vm139_vm4, %v8471_v37, %v8658_v58 }
 0x2ad   :  { %1020 = vrot.lane.b32.xlu0 %v1004_v35, %s6641_s15  ;;  %v8640_v56 = vpop.permute.xlu1 %1205  ;;  %v8651_v35 = vld [vmem:[#allocation2 + $0x60] sm:$0xff] }
 0x2ae   :  { %1418 = vrot.lane.b32.xlu1 %v1401_v21, %s6641_s15  ;;  %v8633_v4 = vpop.permute.xlu0 %1202  ;;  %12413 = vst [vmem:[#allocation78_spill] sm:$0xff] %v8640_v56  ;;  %12416 = vst [vmem:[#allocation81_spill] sm:$0xff] %v8651_v35  ;;  %v1086_v10 = vsel %vm139_vm4, %v8469_v55, %v8651_v35  ;;  %v12419_v55 = vld [vmem:[#allocation29_spill] sm:$0xff] }
 0x2af   :  { %v995_v35 = vsel %vm139_vm4, %v8482_v26, %v12419_v55 }
 0x2b1   :  { %1096 = vrot.lane.b32.xlu0 %v1074_v30, %s6641_s15  ;;  %v8656_v45 = vpop.permute.xlu1 %1499 }
 0x2b2   :  { %1610 = vrot.lane.b32.xlu1 %v1589_v27, %s6641_s15  ;;  %v8649_v21 = vpop.permute.xlu0 %1184  ;;  %v6533_v27 = vld [vmem:[#allocation2 + $0x90] sm:$0xff] }
 0x2b3   :  { %12415 = vst [vmem:[#allocation80_spill] sm:$0xff] %v8649_v21  ;;  %v1392_v21 = vsel %vm139_vm4, %v8480_v8, %v6533_v27 }
 0x2b5   :  { %1104 = vrot.lane.b32.xlu0 %v1086_v10, %s6641_s15  ;;  %v12421_v10 = vld [vmem:[#allocation26_spill] sm:$0xff] }
 0x2b6   :  { %1618 = vrot.lane.b32.xlu1 %v1601_v25, %s6641_s15  ;;  %v8665_v30 = vpop.permute.xlu0 %1196  ;;  %v986_v25 = vsel %vm139_vm4, %v8491_v29, %v12421_v10  ;;  %v12426_v29 = vld [vmem:[#allocation33_spill] sm:$0xff] }
 0x2b7   :  { %12418 = vst [vmem:[#allocation83_spill] sm:$0xff] %v8665_v30  ;;  %v8669_v56 = vpop.permute.xlu1 %1511  ;;  %v12423_v30 = vld [vmem:[#allocation32_spill] sm:$0xff]  ;;  %v1189_v10 = vsel %vm139_vm4, %v8504_v61, %v12426_v29 }
 0x2b8   :  { %v1007_v8 = vsel %vm139_vm4, %v8493_v19, %v12423_v30 }
 0x2b9   :  { %1412 = vrot.lane.b32.xlu0 %v1392_v21, %s6641_s15  ;;  %v8690_v21 = vld [vmem:[#allocation2 + $0x80] sm:$0xff] }
 0x2ba   :  { %1014 = vrot.lane.b32.xlu1 %v995_v35, %s6641_s15  ;;  %v8676_v37 = vpop.permute.xlu0 %1302  ;;  %v1386_v35 = vsel %vm139_vm4, %v8502_v12, %v8690_v21  ;;  %v12430_v12 = vld [vmem:[#allocation43_spill] sm:$0xff] }
 0x2bb   :  { %12420 = vst [vmem:[#allocation84_spill] sm:$0xff] %v8676_v37  ;;  %v8681_v58 = vpop.permute.xlu1 %1305 }
 0x2bc   :  { %12422 = vst [vmem:[#allocation85_spill] sm:$0xff] %v8681_v58  ;;  %v8847_v58 = vmul.f32 %v7826_v16, %v8046_v11 }
 0x2bd   :  { %1008 = vrot.lane.b32.xlu0 %v986_v25, %s6641_s15  ;;  %v8704_v25 = vld [vmem:[#allocation2 + $0xb0] sm:$0xff] }
 0x2be   :  { %1022 = vrot.lane.b32.xlu1 %v1007_v8, %s6641_s15  ;;  %v8688_v26 = vpop.permute.xlu0 %1314  ;;  %12428 = vst [vmem:[#allocation89_spill] sm:$0xff] %v8704_v25  ;;  %v1404_v8 = vsel %vm139_vm4, %v8513_v1, %v8704_v25  ;;  %v1395_v1 = vsel %vm139_vm4, %v8536_v48, %v7976_v43  ;;  %v8743_v48 = vmul.f32 %v8515_v62, %v7856_v17  ;;  %12450 = vst [vmem:[#allocation107_spill] sm:$0xff] %v8847_v58 }
 0x2bf   :  { %12424 = vst [vmem:[#allocation86_spill] sm:$0xff] %v8688_v26  ;;  %v8695_v27 = vpop.permute.xlu1 %1317  ;;  %v1841_v43 = vmul.f32 %v8484_v5, %v7856_v17  ;;  %v1604_v58 = vsel %vm139_vm4, %v8591_v38, %v8129_v47  ;;  %v12458_v38 = vld [vmem:[#allocation35_spill] sm:$0xff] }
 0x2c0   :  { %12425 = vst [vmem:[#allocation87_spill] sm:$0xff] %v8695_v27  ;;  %v1201_v27 = vsel %vm139_vm4, %v8520_v7, %v12430_v12  ;;  %v3985_v37 = vmul.f32 %v7844_v15, %v12458_v38 }
 0x2c1   :  { %1408 = vrot.lane.b32.xlu0 %v1386_v35, %s6641_s15 }
 0x2c2   :  { %1210 = vrot.lane.b32.xlu1 %v1189_v10, %s6641_s15  ;;  %v8702_v19 = vpop.permute.xlu0 %1502  ;;  %v12432_v10 = vld [vmem:[#allocation45_spill] sm:$0xff] }
 0x2c3   :  { %12427 = vst [vmem:[#allocation88_spill] sm:$0xff] %v8702_v19  ;;  %v8709_v55 = vpop.permute.xlu1 %1505  ;;  %v998_v35 = vsel %vm139_vm4, %v8529_v42, %v12432_v10  ;;  %v1407_v42 = vsel %vm139_vm4, %v8552_v13, %v12360_v28  ;;  %v8756_v28 = vmul.f32 %v8531_v39, %v7856_v17  ;;  %v1586_v19 = vsel %vm139_vm4, %v8577_v54, %v8055_v18 }
 0x2c4   :  { %12429 = vst [vmem:[#allocation90_spill] sm:$0xff] %v8709_v55  ;;  %v8851_v18 = vmul.f32 %v7823_v2, %v8046_v11  ;;  %v3819_v54 = vmul.f32 %v7863_v32, %v8102_v31 }
 0x2c5   :  { %1420 = vrot.lane.b32.xlu0 %v1404_v8, %s6641_s15  ;;  %v8730_v8 = vld [vmem:[#allocation2 + $0xa0] sm:$0xff] }
 0x2c6   :  { %1218 = vrot.lane.b32.xlu1 %v1201_v27, %s6641_s15  ;;  %12435 = vst [vmem:[#allocation94_spill] sm:$0xff] %v8730_v8  ;;  %v1398_v27 = vsel %vm139_vm4, %v8545_v6, %v8730_v8  ;;  %v2012_v6 = vmul.f32 %v8484_v5, %v7853_v44  ;;  %12451 = vst [vmem:[#allocation108_spill] sm:$0xff] %v8851_v18 }
 0x2c7   :  { %v8716_v61 = vpop.permute.xlu0 %1514 }
 0x2c8   :  { %12431 = vst [vmem:[#allocation91_spill] sm:$0xff] %v8716_v61  ;;  %v8721_v29 = vpop.permute.xlu1 %1517 }
 0x2c9   :  { %12433 = vst [vmem:[#allocation92_spill] sm:$0xff] %v8721_v29  ;;  %1016 = vrot.lane.b32.xlu0 %v998_v35, %s6641_s15  ;;  %v8752_v35 = vmul.f32 %v8515_v62, %v7853_v44  ;;  %v8812_v29 = vmul.f32 %v8473_v24, %v7856_v17 }
 0x2ca   :  { %1414 = vrot.lane.b32.xlu1 %v1395_v1, %s6641_s15  ;;  %v8762_v1 = vmul.f32 %v7826_v16, %v12359_v50 }
 0x2cb   :  { %v8728_v7 = vpop.permute.xlu0 %1296 }
 0x2cc   :  { %12434 = vst [vmem:[#allocation93_spill] sm:$0xff] %v8728_v7  ;;  %v8735_v25 = vpop.permute.xlu1 %3295  ;;  %12438 = vst [vmem:[#allocation97_spill] sm:$0xff] %v8762_v1  ;;  %v3986_v7 = vmul.f32 %v7844_v15, %v12430_v12  ;;  %v3995_v1 = vmul.f32 %v7829_v63, %v12409_v59 }
 0x2cd   :  { %12436 = vst [vmem:[#allocation95_spill] sm:$0xff] %v8735_v25  ;;  %1416 = vrot.lane.b32.xlu0 %v1398_v27, %s6641_s15  ;;  %v8766_v27 = vmul.f32 %v7823_v2, %v12359_v50  ;;  %v8772_v25 = vld [vmem:[#allocation2 + $0xd0] sm:$0xff] }
 0x2ce   :  { %1422 = vrot.lane.b32.xlu1 %v1407_v42, %s6641_s15  ;;  %v8770_v42 = vmul.f32 %v8531_v39, %v7853_v44  ;;  %12440 = vst [vmem:[#allocation99_spill] sm:$0xff] %v8772_v25  ;;  %v1592_v8 = vsel %vm139_vm4, %v8561_v9, %v8772_v25  ;;  %v8789_v39 = vmul.f32 %v8612_v57, %v7832_v34 }
 0x2cf   :  { %v8758_v13 = vpop.permute.xlu0 %1308  ;;  %12439 = vst [vmem:[#allocation98_spill] sm:$0xff] %v8766_v27  ;;  %v1595_v27 = vsel %vm139_vm4, %v8568_v49, %v8036_v60  ;;  %v3826_v9 = vmul.f32 %v7832_v34, %v12406_v20  ;;  %v8799_v25 = vmul.f32 %v8506_v41, %v7853_v44  ;;  %v8804_v60 = vmul.f32 %v8484_v5, %v12346_v23 }
 0x2d0   :  { %12437 = vst [vmem:[#allocation96_spill] sm:$0xff] %v8758_v13  ;;  %v8777_v62 = vpop.permute.xlu1 %3463  ;;  %v3818_v13 = vmul.f32 %v7863_v32, %v12430_v12  ;;  %v3994_v49 = vmul.f32 %v7829_v63, %v12406_v20  ;;  %v12444_v20 = vld [vmem:[#allocation53_spill] sm:$0xff] }
 0x2d1   :  { %12441 = vst [vmem:[#allocation100_spill] sm:$0xff] %v8777_v62  ;;  %1612 = vrot.lane.b32.xlu0 %v1592_v8, %s6641_s15  ;;  %v8795_v62 = vmul.f32 %v8506_v41, %v7856_v17  ;;  %v12442_v8 = vld [vmem:[#allocation17_spill] sm:$0xff]  ;;  %v8816_v41 = vmul.f32 %v8473_v24, %v7853_v44  ;;  %v8826_v55 = vmul.f32 %v7826_v16, %v12444_v20 }
 0x2d2   :  { %1614 = vrot.lane.b32.xlu1 %v1595_v27, %s6641_s15  ;;  %v1832_v12 = vmul.f32 %v8538_v0, %v12442_v8  ;;  %v3827_v27 = vmul.f32 %v7832_v34, %v12409_v59  ;;  %v8833_v24 = vadd.f32 %v3826_v9, %v3818_v13  ;;  %v8835_v26 = vadd.f32 %v3994_v49, %v3986_v7 }
 0x2d3   :  { %v8818_v61 = vpop.permute.xlu0 %1496  ;;  %12445 = vst [vmem:[#allocation102_spill] sm:$0xff] %v8826_v55  ;;  %v1607_v59 = vsel %vm139_vm4, %v8584_v14, %v8092_v40  ;;  %v3987_v7 = vmul.f32 %v7844_v15, %v8102_v31  ;;  %v3828_v40 = vmul.f32 %v7832_v34, %v12423_v30  ;;  %v3825_v14 = vmul.f32 %v7832_v34, %v12432_v10 }
 0x2d4   :  { %12443 = vst [vmem:[#allocation101_spill] sm:$0xff] %v8818_v61  ;;  %v8831_v23 = vpop.permute.xlu1 %3951  ;;  %12447 = vst [vmem:[#allocation104_spill] sm:$0xff] %v8833_v24  ;;  %v8839_v61 = vmul.f32 %v7823_v2, %v12444_v20  ;;  %v2004_v13 = vmul.f32 %v8538_v0, %v7847_v22  ;;  %v3996_v49 = vmul.f32 %v7829_v63, %v12423_v30  ;;  %v12455_v30 = vld [vmem:[#allocation19_spill] sm:$0xff] }
 0x2d5   :  { %12446 = vst [vmem:[#allocation103_spill] sm:$0xff] %v8831_v23  ;;  %12448 = vst [vmem:[#allocation105_spill] sm:$0xff] %v8835_v26  ;;  %1608 = vrot.lane.b32.xlu0 %v1586_v19, %s6641_s15  ;;  %v1849_v19 = vadd.f32 %v1841_v43, %v1832_v12  ;;  %v3820_v23 = vmul.f32 %v7863_v32, %v8182_v46  ;;  %v3993_v12 = vmul.f32 %v7829_v63, %v12432_v10 }
 0x2d6   :  { %12449 = vst [vmem:[#allocation106_spill] sm:$0xff] %v8839_v61  ;;  %1622 = vrot.lane.b32.xlu1 %v1607_v59, %s6641_s15  ;;  %v12453_v59 = vld [vmem:[#allocation16_spill] sm:$0xff]  ;;  %v3988_v43 = vmul.f32 %v7844_v15, %v8182_v46  ;;  %v1301_v24 = vsel %vm139_vm4, %v8598_v36, %v12444_v20  ;;  %v8887_v61 = vadd.f32 %v3827_v27, %v3819_v54  ;;  %v12459_v36 = vld [vmem:[#allocation71_spill] sm:$0xff] }
 0x2d7   :  { %v8864_v9 = vpop.permute.xlu0 %1508  ;;  %v1858_v18 = vmul.f32 %v12453_v59, %v8123_v33  ;;  %v8889_v47 = vadd.f32 %v3995_v1, %v3987_v7  ;;  %v2499_v10 = vmul.f32 %v8642_v51, %v7863_v32  ;;  %v2020_v55 = vadd.f32 %v2012_v6, %v2004_v13 }
 0x2d8   :  { %12452 = vst [vmem:[#allocation109_spill] sm:$0xff] %v8864_v9  ;;  %v8875_v26 = vpop.permute.xlu1 %4119  ;;  %v2028_v9 = vmul.f32 %v12455_v30, %v8123_v33  ;;  %12456 = vst [vmem:[#allocation111_spill] sm:$0xff] %v8887_v61  ;;  %v1836_v20 = vmul.f32 %v12459_v36, %v12442_v8  ;;  %v8904_v27 = vadd.f32 %v3828_v40, %v3820_v23  ;;  %v12464_v23 = vld [vmem:[#allocation60_spill] sm:$0xff] }
 0x2d9   :  { %12454 = vst [vmem:[#allocation110_spill] sm:$0xff] %v8875_v26  ;;  %1620 = vrot.lane.b32.xlu0 %v1604_v58, %s6641_s15  ;;  %12457 = vst [vmem:[#allocation112_spill] sm:$0xff] %v8889_v47  ;;  %v3817_v26 = vmul.f32 %v7863_v32, %v12458_v38  ;;  %v2008_v58 = vmul.f32 %v12459_v36, %v7847_v22  ;;  %v8906_v54 = vadd.f32 %v1858_v18, %v1849_v19  ;;  %v12463_v36 = vld [vmem:[#allocation28_spill] sm:$0xff] }
 0x2da   :  { %1322 = vrot.lane.b32.xlu1 %v1301_v24, %s6641_s15  ;;  %v12461_v24 = vld [vmem:[#allocation62_spill] sm:$0xff]  ;;  %v2670_v13 = vmul.f32 %v8642_v51, %v7844_v15  ;;  %v8915_v47 = vadd.f32 %v3996_v49, %v3988_v43  ;;  %v8917_v61 = vadd.f32 %v2028_v9, %v2020_v55  ;;  %v1195_v18 = vsel %vm139_vm4, %v8610_v3, %v12464_v23  ;;  %v12467_v43 = vld [vmem:[#allocation65_spill] sm:$0xff] }
 0x2db   :  { %v8902_v1 = vpop.permute.xlu0 %3297  ;;  %v1598_v7 = vsel %vm139_vm4, %v8605_v52, %v12461_v24  ;;  %v8925_v40 = vadd.f32 %v3825_v14, %v3817_v26  ;;  %v2032_v52 = vmul.f32 %v12455_v30, %v12463_v36  ;;  %v2516_v19 = vadd.f32 %v8789_v39, %v2499_v10  ;;  %v12469_v24 = vld [vmem:[#allocation54_spill] sm:$0xff] }
 0x2dc   :  { %12460 = vst [vmem:[#allocation113_spill] sm:$0xff] %v8902_v1  ;;  %v8911_v6 = vpop.permute.xlu1 %3299  ;;  %v1862_v1 = vmul.f32 %v12453_v59, %v12463_v36  ;;  %v2678_v55 = vmul.f32 %v8612_v57, %v7829_v63  ;;  %v8933_v9 = vadd.f32 %v3993_v12, %v3985_v37  ;;  %v1853_v49 = vadd.f32 %v8795_v62, %v1836_v20  ;;  %v12473_v37 = vld [vmem:[#allocation39_spill] sm:$0xff] }
 0x2dd   :  { %12462 = vst [vmem:[#allocation62_spill] sm:$0xff] %v8911_v6  ;;  %1616 = vrot.lane.b32.xlu0 %v1598_v7, %s6641_s15  ;;  %12465 = vst [vmem:[#allocation114_spill] sm:$0xff] %v8925_v40  ;;  %v2024_v3 = vadd.f32 %v8799_v25, %v2008_v58  ;;  %v1834_v26 = vmul.f32 %v12467_v43, %v12442_v8  ;;  %v8943_v7 = vmul.f32 %v7826_v16, %v12469_v24  ;;  %v12476_v58 = vld [vmem:[#allocation41_spill] sm:$0xff] }
 0x2de   :  { %1214 = vrot.lane.b32.xlu1 %v1195_v18, %s6641_s15  ;;  %12466 = vst [vmem:[#allocation115_spill] sm:$0xff] %v8933_v9  ;;  %v12471_v18 = vld [vmem:[#allocation51_spill] sm:$0xff]  ;;  %v2525_v62 = vmul.f32 %v8538_v0, %v12473_v37  ;;  %v2686_v20 = vadd.f32 %v2678_v55, %v2670_v13  ;;  %v8952_v25 = vadd.f32 %v1862_v1, %v1853_v49  ;;  %v12480_v55 = vld [vmem:[#allocation22_spill] sm:$0xff] }
 0x2df   :  { %v8939_v14 = vpop.permute.xlu0 %3465  ;;  %12470 = vst [vmem:[#allocation117_spill] sm:$0xff] %v8943_v7  ;;  %v1192_v39 = vsel %vm139_vm4, %v8619_v53, %v12471_v18  ;;  %v8956_v12 = vmul.f32 %v7823_v2, %v12469_v24  ;;  %v1860_v6 = vmul.f32 %v12453_v59, %v12476_v58  ;;  %v8964_v53 = vadd.f32 %v2032_v52, %v2024_v3 }
 0x2e0   :  { %12468 = vst [vmem:[#allocation116_spill] sm:$0xff] %v8939_v14  ;;  %v8948_v10 = vpop.permute.xlu1 %3467  ;;  %12474 = vst [vmem:[#allocation39_spill] sm:$0xff] %v8952_v25  ;;  %v12477_v14 = vld [vmem:[#allocation75_spill] sm:$0xff]  ;;  %v2533_v1 = vadd.f32 %v2525_v62, %v2516_v19  ;;  %v2694_v49 = vmul.f32 %v8538_v0, %v12480_v55  ;;  %v12481_v25 = vld [vmem:[#allocation72_spill] sm:$0xff]  ;;  %v1851_v52 = vadd.f32 %v8812_v29, %v1834_v26 }
 0x2e1   :  { %12472 = vst [vmem:[#allocation118_spill] sm:$0xff] %v8948_v10  ;;  %12475 = vst [vmem:[#allocation119_spill] sm:$0xff] %v8956_v12  ;;  %v1313_v7 = vsel %vm139_vm4, %v12477_v14, %v8046_v11  ;;  %1212 = vrot.lane.b32.xlu0 %v1192_v39, %s6641_s15  ;;  %v12479_v10 = vld [vmem:[#allocation44_spill] sm:$0xff]  ;;  %v1833_v23 = vmul.f32 %v12481_v25, %v12442_v8  ;;  %v2005_v14 = vmul.f32 %v12481_v25, %v7847_v22  ;;  %v12483_v39 = vld [vmem:[#allocation47_spill] sm:$0xff] }
 0x2e2   :  { %12478 = vst [vmem:[#allocation75_spill] sm:$0xff] %v8964_v53  ;;  %v1877_v13 = vmul.f32 %v7826_v16, %v12479_v10  ;;  %1330 = vrot.lane.b32.xlu1 %v1313_v7, %s6641_s15  ;;  %v2046_v12 = vmul.f32 %v7823_v2, %v12479_v10  ;;  %v1859_v7 = vmul.f32 %v12453_v59, %v12483_v39  ;;  %v12485_v29 = vld [vmem:[#allocation73_spill] sm:$0xff] }
 0x2e3   :  { %v8978_v3 = vpop.permute.xlu0 %3293  ;;  %v2006_v19 = vmul.f32 %v12467_v43, %v7847_v22  ;;  %v1204_v62 = vsel %vm139_vm4, %v8633_v4, %v8102_v31  ;;  %v2702_v11 = vadd.f32 %v2694_v49, %v2686_v20  ;;  %v2029_v9 = vmul.f32 %v12455_v30, %v12483_v39  ;;  %v12494_v31 = vld [vmem:[#allocation80_spill] sm:$0xff] }
 0x2e4   :  { %12482 = vst [vmem:[#allocation22_spill] sm:$0xff] %v8978_v3  ;;  %v8987_v53 = vpop.permute.xlu1 %2643  ;;  %v1868_v40 = vadd.f32 %v1860_v6, %v1851_v52  ;;  %v1837_v26 = vmul.f32 %v12485_v29, %v12442_v8  ;;  %v12486_v3 = vld [vmem:[#allocation78_spill] sm:$0xff]  ;;  %v2030_v57 = vmul.f32 %v12455_v30, %v12476_v58  ;;  %v2009_v4 = vmul.f32 %v12485_v29, %v7847_v22  ;;  %v12488_v52 = vld [vmem:[#allocation25_spill] sm:$0xff] }
 0x2e5   :  { %12484 = vst [vmem:[#allocation120_spill] sm:$0xff] %v8987_v53  ;;  %v1207_v25 = vsel %vm139_vm4, %v12486_v3, %v8182_v46  ;;  %1220 = vrot.lane.b32.xlu0 %v1204_v62, %s6641_s15  ;;  %v2550_v20 = vadd.f32 %v8804_v60, %v2533_v1  ;;  %v12487_v6 = vld [vmem:[#allocation14_spill] sm:$0xff]  ;;  %v9007_v53 = vmul.f32 %v7826_v16, %v12488_v52  ;;  %v12491_v46 = vld [vmem:[#allocation27_spill] sm:$0xff] }
 0x2e6   :  { %1222 = vrot.lane.b32.xlu1 %v1207_v25, %s6641_s15  ;;  %v2710_v49 = vmul.f32 %v8484_v5, %v12487_v6  ;;  %v9011_v3 = vmul.f32 %v7823_v2, %v12488_v52  ;;  %v1850_v62 = vadd.f32 %v8743_v48, %v1833_v23  ;;  %v1863_v29 = vmul.f32 %v12453_v59, %v12491_v46  ;;  %v12493_v1 = vld [vmem:[#allocation59_spill] sm:$0xff] }
 0x2e7   :  { %12489 = vst [vmem:[#allocation78_spill] sm:$0xff] %v9007_v53  ;;  %v9016_v43 = vpop.permute.xlu0 %3461  ;;  %v2021_v60 = vadd.f32 %v8752_v35, %v2005_v14  ;;  %v2022_v25 = vadd.f32 %v8816_v41, %v2006_v19  ;;  %v1186_v0 = vsel %vm139_vm4, %v12494_v31, %v12493_v1  ;;  %v1854_v48 = vadd.f32 %v8756_v28, %v1837_v26  ;;  %v12496_v31 = vld [vmem:[#allocation38_spill] sm:$0xff]  ;;  %v12498_v26 = vld [vmem:[#allocation69_spill] sm:$0xff] }
 0x2e8   :  { %12490 = vst [vmem:[#allocation14_spill] sm:$0xff] %v9011_v3  ;;  %12492 = vst [vmem:[#allocation121_spill] sm:$0xff] %v9016_v43  ;;  %v9023_v53 = vpop.permute.xlu1 %2811  ;;  %v2718_v51 = vadd.f32 %v2710_v49, %v2702_v11  ;;  %v9025_v18 = vadd.f32 %v1859_v7, %v1850_v62  ;;  %v1501_v23 = vsel %vm139_vm4, %v8656_v45, %v8123_v33  ;;  %v12503_v62 = vld [vmem:[#allocation52_spill] sm:$0xff] }
 0x2e9   :  { %12495 = vst [vmem:[#allocation80_spill] sm:$0xff] %v9023_v53  ;;  %1208 = vrot.lane.b32.xlu0 %v1186_v0, %s6641_s15  ;;  %v1885_v35 = vadd.f32 %v1877_v13, %v1868_v40  ;;  %v9032_v14 = vadd.f32 %v2029_v9, %v2021_v60  ;;  %v2038_v41 = vadd.f32 %v2030_v57, %v2022_v25  ;;  %v12500_v57 = vld [vmem:[#allocation50_spill] sm:$0xff]  ;;  %v12501_v9 = vld [vmem:[#allocation83_spill] sm:$0xff] }
 0x2ea   :  { %v2025_v19 = vadd.f32 %v8770_v42, %v2009_v4  ;;  %1522 = vrot.lane.b32.xlu1 %v1501_v23, %s6641_s15  ;;  %v2558_v11 = vadd.f32 %v2550_v20, %v12496_v31  ;;  %v9037_v7 = vadd.f32 %v1863_v29, %v1854_v48  ;;  %v2033_v28 = vmul.f32 %v12455_v30, %v12491_v46  ;;  %v9055_v20 = vld [vmem:[#allocation2 + $0xc0] sm:$0xff] }
 0x2eb   :  { %v1838_v45 = vmul.f32 %v12498_v26, %v12442_v8  ;;  %v2010_v0 = vmul.f32 %v12498_v26, %v7847_v22  ;;  %v9045_v40 = vpop.permute.xlu0 %2641  ;;  %v1847_v42 = vmul.f32 %v12500_v57, %v7856_v17  ;;  %v1198_v13 = vsel %vm139_vm4, %v12501_v9, %v12458_v38 }
 0x2ec   :  { %12497 = vst [vmem:[#allocation38_spill] sm:$0xff] %v9037_v7  ;;  %12499 = vst [vmem:[#allocation69_spill] sm:$0xff] %v9045_v40  ;;  %v9052_v29 = vpop.permute.xlu1 %3955  ;;  %v2726_v4 = vadd.f32 %v2718_v51, %v12496_v31  ;;  %v2498_v49 = vmul.f32 %v9055_v20, %v7863_v32  ;;  %v1864_v60 = vmul.f32 %v12453_v59, %v12503_v62  ;;  %v5269_v51 = vmul.f32 -1.442695, %v2558_v11  ;;  %v12504_v40 = vld [vmem:[#allocation77_spill] sm:$0xff] }
 0x2ed   :  { %12502 = vst [vmem:[#allocation50_spill] sm:$0xff] %v9052_v29  ;;  %v2018_v25 = vmul.f32 %v12500_v57, %v7853_v44  ;;  %v1513_v48 = vsel %vm139_vm4, %v8669_v56, %v12463_v36  ;;  %1216 = vrot.lane.b32.xlu0 %v1198_v13, %s6641_s15  ;;  %v1893_v23 = vadd.f32 %v1885_v35, %v12496_v31  ;;  %v12507_v35 = vld [vmem:[#allocation84_spill] sm:$0xff]  ;;  %v12509_v36 = vld [vmem:[#allocation102_spill] sm:$0xff] }
 0x2ee   :  { %1530 = vrot.lane.b32.xlu1 %v1513_v48, %s6641_s15  ;;  %v2054_v9 = vadd.f32 %v2046_v12, %v2038_v41  ;;  %v2507_v53 = vmul.f32 %v8690_v21, %v7832_v34  ;;  %v2524_v43 = vmul.f32 %v12504_v40, %v12473_v37  ;;  %v9073_v29 = vadd.f32 %v2033_v28, %v2025_v19  ;;  %v12510_v19 = vld [vmem:[#allocation42_spill] sm:$0xff] }
 0x2ef   :  { %v1855_v7 = vadd.f32 %v1847_v42, %v1838_v45  ;;  %v2026_v3 = vadd.f32 %v2018_v25, %v2010_v0  ;;  %v2034_v56 = vmul.f32 %v12455_v30, %v12503_v62  ;;  %v9077_v13 = vpop.permute.xlu0 %2809  ;;  %v1304_v11 = vsel %vm139_vm4, %v12507_v35, %v12359_v50  ;;  %v12511_v0 = vld [vmem:[#allocation85_spill] sm:$0xff] }
 0x2f0   :  { %12505 = vst [vmem:[#allocation83_spill] sm:$0xff] %v9073_v29  ;;  %12506 = vst [vmem:[#allocation77_spill] sm:$0xff] %v9077_v13  ;;  %v9082_v12 = vpop.permute.xlu1 %4123  ;;  %v5285_v41 = vmul.f32 -1.442695, %v2726_v4  ;;  %v2515_v48 = vadd.f32 %v2507_v53, %v2498_v49  ;;  %v1883_v33 = vadd.f32 %v12509_v36, %v8906_v54  ;;  %v9088_v28 = vmul.f32 %v7826_v16, %v12510_v19  ;;  %v12514_v49 = vld [vmem:[#allocation56_spill] sm:$0xff] }
 0x2f1   :  { %12508 = vst [vmem:[#allocation84_spill] sm:$0xff] %v9082_v12  ;;  %v9092_v45 = vmul.f32 %v7823_v2, %v12510_v19  ;;  %v1307_v42 = vsel %vm139_vm4, %v12511_v0, %v12479_v10  ;;  %1324 = vrot.lane.b32.xlu0 %v1304_v11, %s6641_s15  ;;  %v5207_v25 = vmul.f32 -1.442695, %v1893_v23  ;;  %v9098_v4 = vadd.f32 %v1864_v60, %v1855_v7  ;;  %v12517_v60 = vld [vmem:[#allocation86_spill] sm:$0xff]  ;;  %v12521_v12 = vld [vmem:[#allocation40_spill] sm:$0xff] }
 0x2f2   :  { %1326 = vrot.lane.b32.xlu1 %v1307_v42, %s6641_s15  ;;  %6076 = vpow2.f32 %v5269_v51  ;;  %v2062_v36 = vadd.f32 %v2054_v9, %v12496_v31  ;;  %v2532_v54 = vadd.f32 %v2524_v43, %v2515_v48  ;;  %v9102_v53 = vadd.f32 %v2034_v56, %v2026_v3  ;;  %v12518_v43 = vld [vmem:[#allocation36_spill] sm:$0xff]  ;;  %v12520_v42 = vld [vmem:[#allocation87_spill] sm:$0xff] }
 0x2f3   :  { %12512 = vst [vmem:[#allocation102_spill] sm:$0xff] %v9098_v4  ;;  %v9106_v35 = vmul.f32 %v7826_v16, %v12514_v49  ;;  %v1831_v0 = vmul.f32 %v12504_v40, %v12442_v8  ;;  %v2003_v23 = vmul.f32 %v12504_v40, %v7847_v22  ;;  %v9112_v7 = vpop.permute.xlu0 %3953  ;;  %v1316_v51 = vsel %vm139_vm4, %v12517_v60, %v12469_v24  ;;  %v12519_v3 = vld [vmem:[#allocation68_spill] sm:$0xff] }
 0x2f4   :  { %12513 = vst [vmem:[#allocation85_spill] sm:$0xff] %v9102_v53  ;;  %12516 = vst [vmem:[#allocation123_spill] sm:$0xff] %v9112_v7  ;;  %v9117_v9 = vpop.permute.xlu1 %902  ;;  %6078 = vpow2.f32 %v5285_v41  ;;  %v2541_v56 = vmul.f32 %v12519_v3, %v12518_v43  ;;  %v1891_v11 = vadd.f32 %v1883_v33, %v12496_v31  ;;  %v1840_v48 = vmul.f32 %v12519_v3, %v7856_v17  ;;  %v12523_v29 = vld [vmem:[#allocation88_spill] sm:$0xff]  ;;  %v12527_v53 = vld [vmem:[#allocation90_spill] sm:$0xff] }
 0x2f5   :  { %12515 = vst [vmem:[#allocation122_spill] sm:$0xff] %v9106_v35  ;;  %v1319_v13 = vsel %vm139_vm4, %v12520_v42, %v12488_v52  ;;  %1332 = vrot.lane.b32.xlu0 %v1316_v51, %s6641_s15  ;;  %6080 = vpow2.f32 %v5207_v25  ;;  %v2669_v60 = vmul.f32 %v9055_v20, %v7844_v15  ;;  %v2011_v41 = vmul.f32 %v12519_v3, %v7853_v44 }
 0x2f6   :  { %v1857_v7 = vmul.f32 %v12453_v59, %v12521_v12  ;;  %1334 = vrot.lane.b32.xlu1 %v1319_v13, %s6641_s15  ;;  %v5223_v33 = vmul.f32 -1.442695, %v2062_v36  ;;  %v2549_v24 = vadd.f32 %v2541_v56, %v2532_v54  ;;  %v1848_v35 = vadd.f32 %v1840_v48, %v1831_v0  ;;  %v12524_v54 = vld [vmem:[#allocation106_spill] sm:$0xff]  ;;  %v12525_v56 = vld [vmem:[#allocation81_spill] sm:$0xff] }
 0x2f7   :  { %v2027_v42 = vmul.f32 %v12455_v30, %v12521_v12  ;;  %v9137_v52 = vpop.permute.xlu0 %4121  ;;  %v2677_v25 = vmul.f32 %v8690_v21, %v7829_v63  ;;  %v2693_v51 = vmul.f32 %v12504_v40, %v12480_v55  ;;  %v2019_v50 = vadd.f32 %v2011_v41, %v2003_v23 }
 0x2f8   :  { %12522 = vst [vmem:[#allocation86_spill] sm:$0xff] %v9137_v52  ;;  %v1504_v10 = vsel %vm139_vm4, %v12523_v29, %v12483_v39  ;;  %v9146_v13 = vpop.permute.xlu1 %898  ;;  %v5205_v36 = vmul.f32 -1.442695, %v1891_v11  ;;  %v2052_v0 = vadd.f32 %v12524_v54, %v8917_v61  ;;  %v1835_v48 = vmul.f32 %v12525_v56, %v12442_v8  ;;  %v12526_v52 = vld [vmem:[#allocation70_spill] sm:$0xff]  ;;  %v12528_v29 = vld [vmem:[#allocation48_spill] sm:$0xff] }
 0x2f9   :  { %v1844_v21 = vmul.f32 %v12526_v52, %v7856_v17  ;;  %v1507_v40 = vsel %vm139_vm4, %v12527_v53, %v12476_v58  ;;  %1524 = vrot.lane.b32.xlu0 %v1504_v10, %s6641_s15  ;;  %v2685_v23 = vadd.f32 %v2677_v25, %v2669_v60  ;;  %v1861_v41 = vmul.f32 %v12453_v59, %v12528_v29  ;;  %v12530_v10 = vld [vmem:[#allocation97_spill] sm:$0xff] }
 0x2fa   :  { %v2007_v11 = vmul.f32 %v12525_v56, %v7847_v22  ;;  %1526 = vrot.lane.b32.xlu1 %v1507_v40, %s6641_s15  ;;  %6082 = vpow2.f32 %v5223_v33  ;;  %v2557_v61 = vadd.f32 %v2549_v24, %v12496_v31  ;;  %v2015_v54 = vmul.f32 %v12526_v52, %v7853_v44  ;;  %v9170_v25 = vld [vmem:[#allocation2 + $0xf8] sm:$0xff]  ;;  %v12531_v33 = vld [vmem:[#allocation91_spill] sm:$0xff] }
 0x2fb   :  { %v9166_v39 = vpop.permute.xlu0 %3949  ;;  %v2701_v53 = vadd.f32 %v2693_v51, %v2685_v23  ;;  %v1884_v60 = vadd.f32 %v12530_v10, %v9025_v18  ;;  %v3844_v58 = vmul.f32 %v9170_v25, %v12473_v37  ;;  %v2031_v56 = vmul.f32 %v12455_v30, %v12528_v29  ;;  %v12533_v10 = vld [vmem:[#allocation92_spill] sm:$0xff] }
 0x2fc   :  { %12529 = vst [vmem:[#allocation36_spill] sm:$0xff] %v9166_v39  ;;  %v1516_v24 = vsel %vm139_vm4, %v12531_v33, %v12491_v46  ;;  %v9179_v40 = vpop.permute.xlu1 %910  ;;  %6084 = vpow2.f32 %v5205_v36  ;;  %v2060_v51 = vadd.f32 %v2052_v0, %v12496_v31  ;;  %v9184_v18 = vmul.f32 %v7823_v2, %v12514_v49 }
 0x2fd   :  { %v9186_v23 = vadd.f32 %v1857_v7, %v1848_v35  ;;  %v1519_v39 = vsel %vm139_vm4, %v12533_v10, %v12503_v62  ;;  %1532 = vrot.lane.b32.xlu0 %v1516_v24, %s6641_s15  ;;  %v2709_v33 = vmul.f32 %v12519_v3, %v12487_v6  ;;  %v9194_v46 = vadd.f32 %v2027_v42, %v2019_v50  ;;  %v12537_v42 = vld [vmem:[#allocation93_spill] sm:$0xff] }
 0x2fe   :  { %12532 = vst [vmem:[#allocation68_spill] sm:$0xff] %v9184_v18  ;;  %v1852_v36 = vadd.f32 %v1844_v21, %v1835_v48  ;;  %v2023_v4 = vadd.f32 %v2015_v54, %v2007_v11  ;;  %1534 = vrot.lane.b32.xlu1 %v1519_v39, %s6641_s15  ;;  %v5268_v0 = vmul.f32 -1.442695, %v2557_v61  ;;  %v1892_v7 = vadd.f32 %v1884_v60, %v12496_v31  ;;  %v12538_v61 = vld [vmem:[#allocation57_spill] sm:$0xff] }
 0x2ff   :  { %v6077_v63 = vpop.eup %6076  ;;  %v9197_v18 = vpop.permute.xlu0 %4117  ;;  %v2717_v35 = vadd.f32 %v2709_v33, %v2701_v53  ;;  %v3852_v10 = vadd.f32 %v3844_v58, %v8904_v27  ;;  %v4012_v24 = vmul.f32 %v9170_v25, %v12480_v55  ;;  %v1298_v39 = vsel %vm139_vm4, %v12537_v42, %v12510_v19 }
 0x300   :  { %12534 = vst [vmem:[#allocation87_spill] sm:$0xff] %v9197_v18  ;;  %v9203_v62 = vadd.f32 %v1861_v41, %v1852_v36  ;;  %v9205_v50 = vadd.f32 %v2031_v56, %v2023_v4  ;;  %v9210_v48 = vpop.permute.xlu1 %906  ;;  %v5221_v21 = vmul.f32 -1.442695, %v2060_v51  ;;  %v915_v54 = vsel %vm139_vm4, %v9117_v9, %v12538_v61  ;;  %v9224_v4 = vld [vmem:[#allocation2 + $0xb8] sm:$0xff]  ;;  %v12542_v56 = vld [vmem:[#allocation46_spill] sm:$0xff] }
 0x301   :  { %v6079_v11 = vpop.eup %6078  ;;  %1320 = vrot.lane.b32.xlu0 %v1298_v39, %s6641_s15  ;;  %v9218_v27 = vmul.f32 %v12538_v61, %v7847_v22  ;;  %v9222_v58 = vmul.f32 %v8484_v5, %v7847_v22  ;;  %v3860_v41 = vmul.f32 %v9224_v4, %v12518_v43  ;;  %v2590_v60 = vadd.f32 1.0, %v6077_v63 }
 0x302   :  { %12535 = vst [vmem:[#allocation88_spill] sm:$0xff] %v9203_v62  ;;  %12536 = vst [vmem:[#allocation106_spill] sm:$0xff] %v9205_v50  ;;  %v6081_v53 = vpop.eup %6080  ;;  %934 = vrot.lane.b32.xlu1 %v915_v54, %s6643_s27  ;;  %v9231_v9 = vmul.f32 %v12500_v57, %v7847_v22  ;;  %v9235_v51 = vmul.f32 %v12542_v56, %v7847_v22  ;;  %6086 = vpow2.f32 %v5268_v0  ;;  %v5206_v42 = vmul.f32 -1.442695, %v1892_v7  ;;  %v12544_v54 = vld [vmem:[#allocation96_spill] sm:$0xff] }
 0x303   :  { %12539 = vst [vmem:[#allocation81_spill] sm:$0xff] %v9218_v27  ;;  %12540 = vst [vmem:[#allocation70_spill] sm:$0xff] %v9222_v58  ;;  %v9237_v33 = vpop.permute.xlu0 %900  ;;  %v2725_v36 = vadd.f32 %v2717_v35, %v12496_v31  ;;  %v3868_v39 = vadd.f32 %v3860_v41, %v3852_v10  ;;  %v4020_v61 = vadd.f32 %v4012_v24, %v8915_v47  ;;  %v12545_v58 = vld [vmem:[#allocation64_spill] sm:$0xff]  ;;  %6088 = vpow2.f32 %v5221_v21  ;;  %v12547_v47 = vld [vmem:[#allocation98_spill] sm:$0xff] }
 0x304   :  { %12541 = vst [vmem:[#allocation90_spill] sm:$0xff] %v9231_v9  ;;  %12543 = vst [vmem:[#allocation97_spill] sm:$0xff] %v9235_v51  ;;  %v1310_v63 = vsel %vm139_vm4, %v12544_v54, %v12514_v49  ;;  %v9244_v18 = vpop.permute.xlu1 %1102  ;;  %v2758_v9 = vadd.f32 1.0, %v6079_v11  ;;  %v9248_v27 = vmul.f32 %v12545_v58, %v7847_v22  ;;  %v913_v0 = vsel %vm139_vm4, %v9146_v13, %v8484_v5  ;;  %v12548_v24 = vld [vmem:[#allocation33_spill] sm:$0xff]  ;;  %v12550_v21 = vld [vmem:[#allocation66_spill] sm:$0xff] }
 0x305   :  { %1328 = vrot.lane.b32.xlu0 %v1310_v63, %s6641_s15  ;;  %v1925_v35 = vadd.f32 1.0, %v6081_v53  ;;  %v2053_v7 = vadd.f32 %v12547_v47, %v9032_v14  ;;  %v4028_v10 = vmul.f32 %v9224_v4, %v12487_v6  ;;  %6090 = vrcp.f32 %v2590_v60  ;;  %v12552_v5 = vld [vmem:[#allocation82_spill] sm:$0xff]  ;;  %v12553_v60 = vld [vmem:[#allocation101_spill] sm:$0xff] }
 0x306   :  { %12546 = vst [vmem:[#allocation91_spill] sm:$0xff] %v9248_v27  ;;  %930 = vrot.lane.b32.xlu1 %v913_v0, %s6643_s27  ;;  %v9261_v11 = vmul.f32 %v7832_v34, %v12548_v24  ;;  %v9265_v41 = vmul.f32 %v12550_v21, %v7847_v22  ;;  %v3842_v13 = vmul.f32 %v12552_v5, %v12473_v37  ;;  %v5284_v14 = vmul.f32 -1.442695, %v2725_v36  ;;  %v12554_v27 = vld [vmem:[#allocation43_spill] sm:$0xff] }
 0x307   :  { %v6083_v53 = vpop.eup %6082  ;;  %v9269_v54 = vpop.permute.xlu0 %908  ;;  %6092 = vpow2.f32 %v5206_v42  ;;  %v3876_v63 = vadd.f32 %v3868_v39, %v12496_v31  ;;  %v4036_v0 = vadd.f32 %v4028_v10, %v4020_v61  ;;  %v1498_v47 = vsel %vm139_vm4, %v12553_v60, %v12521_v12  ;;  %v12558_v39 = vld [vmem:[#allocation79_spill] sm:$0xff] }
 0x308   :  { %12549 = vst [vmem:[#allocation92_spill] sm:$0xff] %v9261_v11  ;;  %12551 = vst [vmem:[#allocation93_spill] sm:$0xff] %v9265_v41  ;;  %v9275_v51 = vpop.permute.xlu1 %1098  ;;  %6094 = vrcp.f32 %v2758_v9  ;;  %v9279_v41 = vmul.f32 %v7832_v34, %v12554_v27  ;;  %v12556_v11 = vld [vmem:[#allocation51_spill] sm:$0xff]  ;;  %v919_v42 = vsel %vm139_vm4, %v9179_v40, %v12500_v57  ;;  %v9291_v61 = vmul.f32 %v12558_v39, %v7832_v34  ;;  %v12562_v40 = vld [vmem:[#allocation104_spill] sm:$0xff] }
 0x309   :  { %v9283_v49 = vmul.f32 %v7832_v34, %v12556_v11  ;;  %v6085_v36 = vpop.eup %6084  ;;  %1520 = vrot.lane.b32.xlu0 %v1498_v47, %s6641_s15  ;;  %6096 = vrcp.f32 %v1925_v35  ;;  %v2061_v9 = vadd.f32 %v2053_v7, %v12496_v31  ;;  %v2094_v10 = vadd.f32 1.0, %v6083_v53  ;;  %v12560_v60 = vld [vmem:[#allocation67_spill] sm:$0xff]  ;;  %v12563_v53 = vld [vmem:[#allocation109_spill] sm:$0xff] }
 0x30a   :  { %12555 = vst [vmem:[#allocation57_spill] sm:$0xff] %v9279_v41  ;;  %12559 = vst [vmem:[#allocation96_spill] sm:$0xff] %v9291_v61  ;;  %942 = vrot.lane.b32.xlu1 %v919_v42, %s6643_s27  ;;  %v1882_v41 = vadd.f32 %v9088_v28, %v9186_v23  ;;  %v3850_v12 = vadd.f32 %v3842_v13, %v12562_v40  ;;  %6098 = vpow2.f32 %v5284_v14  ;;  %v5403_v35 = vmul.f32 -1.442695, %v3876_v63  ;;  %v12565_v23 = vld [vmem:[#allocation76_spill] sm:$0xff] }
 0x30b   :  { %12557 = vst [vmem:[#allocation46_spill] sm:$0xff] %v9283_v49  ;;  %v9297_v49 = vmul.f32 %v12560_v60, %v12518_v43  ;;  %v9302_v47 = vpop.permute.xlu0 %896  ;;  %v4044_v61 = vadd.f32 %v4036_v0, %v12496_v31  ;;  %v4010_v7 = vmul.f32 %v12552_v5, %v12480_v55  ;;  %v1510_v42 = vsel %vm139_vm4, %v12563_v53, %v12528_v29  ;;  %v12577_v29 = vld [vmem:[#allocation89_spill] sm:$0xff] }
 0x30c   :  { %v9310_v19 = vpop.permute.xlu1 %1110  ;;  %v9314_v28 = vmul.f32 %v12558_v39, %v7856_v17  ;;  %v3858_v13 = vmul.f32 %v12565_v23, %v12518_v43  ;;  %v917_v14 = vsel %vm139_vm4, %v9210_v48, %v12542_v56  ;;  %v9324_v63 = vmul.f32 %v12560_v60, %v7826_v16 }
 0x30d   :  { %12561 = vst [vmem:[#allocation64_spill] sm:$0xff] %v9297_v49  ;;  %v1923_v49 = vadd.f32 1.0, %v6085_v36  ;;  %1528 = vrot.lane.b32.xlu0 %v1510_v42, %s6641_s15  ;;  %v9328_v0 = vmul.f32 %v12558_v39, %v12518_v43  ;;  %v5222_v36 = vmul.f32 -1.442695, %v2061_v9  ;;  %6100 = vrcp.f32 %v2094_v10  ;;  %v12568_v9 = vld [vmem:[#allocation105_spill] sm:$0xff]  ;;  %v12569_v10 = vld [vmem:[#allocation58_spill] sm:$0xff] }
 0x30e   :  { %12564 = vst [vmem:[#allocation98_spill] sm:$0xff] %v9314_v28  ;;  %12566 = vst [vmem:[#allocation33_spill] sm:$0xff] %v9324_v63  ;;  %938 = vrot.lane.b32.xlu1 %v917_v14, %s6643_s27  ;;  %v1890_v40 = vadd.f32 %v1882_v41, %v12496_v31  ;;  %v3866_v53 = vadd.f32 %v3858_v13, %v3850_v12  ;;  %v9332_v28 = vld [vmem:[#allocation2 + $0xf0] sm:$0xff]  ;;  %6102 = vpow2.f32 %v5403_v35  ;;  %v5419_v63 = vmul.f32 -1.442695, %v4044_v61  ;;  %v12571_v14 = vld [vmem:[#allocation65_spill] sm:$0xff] }
 0x30f   :  { %12567 = vst [vmem:[#allocation66_spill] sm:$0xff] %v9328_v0  ;;  %v3843_v48 = vmul.f32 %v9332_v28, %v12473_v37  ;;  %v6087_v56 = vpop.eup %6086  ;;  %v9336_v42 = vpop.permute.xlu0 %904  ;;  %v2051_v39 = vadd.f32 %v9092_v45, %v9194_v46  ;;  %v4018_v0 = vadd.f32 %v4010_v7, %v12568_v9  ;;  %v914_v41 = vsel %vm139_vm4, %v9237_v33, %v12545_v58  ;;  %v12573_v7 = vld [vmem:[#allocation111_spill] sm:$0xff] }
 0x310   :  { %v9344_v12 = vpop.permute.xlu1 %1106  ;;  %6104 = vrcp.f32 %v1923_v49  ;;  %v9348_v13 = vmul.f32 %v7832_v34, %v12569_v10  ;;  %v3164_v35 = vmul.f32 %v9170_v25, %v12442_v8  ;;  %v6089_v61 = vpop.eup %6088  ;;  %v1115_v46 = vsel %vm139_vm4, %v9244_v18, %v12571_v14 }
 0x311   :  { %932 = vrot.lane.b32.xlu0 %v914_v41, %s6643_s27  ;;  %6106 = vpow2.f32 %v5222_v36  ;;  %v9358_v45 = vmul.f32 %v12552_v5, %v7832_v34  ;;  %v4026_v49 = vmul.f32 %v12565_v23, %v12487_v6  ;;  %v5204_v58 = vmul.f32 -1.442695, %v1890_v40  ;;  %v12575_v41 = vld [vmem:[#allocation71_spill] sm:$0xff] }
 0x312   :  { %12570 = vst [vmem:[#allocation82_spill] sm:$0xff] %v9348_v13  ;;  %1134 = vrot.lane.b32.xlu1 %v1115_v46, %s6642_s26  ;;  %v3874_v33 = vadd.f32 %v3866_v53, %v12496_v31  ;;  %v3851_v9 = vadd.f32 %v3843_v48, %v12573_v7  ;;  %v3172_v18 = vmul.f32 %v9224_v4, %v7856_v17  ;;  %v9367_v14 = vpop.eup %6090  ;;  %6108 = vpow2.f32 %v5419_v63 }
 0x313   :  { %12572 = vst [vmem:[#allocation101_spill] sm:$0xff] %v9358_v45  ;;  %12574 = vst [vmem:[#allocation43_spill] sm:$0xff] %v9367_v14  ;;  %v9369_v36 = vpop.permute.xlu0 %1100  ;;  %v9373_v13 = vmul.f32 %v12575_v41, %v12518_v43  ;;  %v2059_v45 = vadd.f32 %v2051_v39, %v12496_v31  ;;  %v4034_v46 = vadd.f32 %v4026_v49, %v4018_v0  ;;  %v2589_v7 = vadd.f32 1.0, %v6087_v56  ;;  %v12619_v14 = vld [vmem:[#allocation60_spill] sm:$0xff] }
 0x314   :  { %v6093_v40 = vpop.eup %6092  ;;  %v918_v53 = vsel %vm139_vm4, %v9269_v54, %v12550_v21  ;;  %v9379_v48 = vpop.permute.xlu1 %1010  ;;  %v3859_v50 = vmul.f32 %v12577_v29, %v12518_v43  ;;  %v3180_v62 = vadd.f32 %v3172_v18, %v3164_v35  ;;  %v2092_v0 = vadd.f32 1.0, %v6089_v61 }
 0x315   :  { %12576 = vst [vmem:[#allocation51_spill] sm:$0xff] %v9373_v13  ;;  %v9383_v63 = vpop.eup %6094  ;;  %v1113_v13 = vsel %vm139_vm4, %v9275_v51, %v12560_v60  ;;  %940 = vrot.lane.b32.xlu0 %v918_v53, %s6643_s27  ;;  %v9391_v39 = vmul.f32 %v12552_v5, %v7856_v17  ;;  %v9395_v21 = vmul.f32 %v12575_v41, %v7826_v16  ;;  %6110 = vpow2.f32 %v5204_v58 }
 0x316   :  { %12578 = vst [vmem:[#allocation79_spill] sm:$0xff] %v9383_v63  ;;  %v9397_v54 = vpop.eup %6096  ;;  %1130 = vrot.lane.b32.xlu1 %v1113_v13, %s6642_s26  ;;  %v5401_v56 = vmul.f32 -1.442695, %v3874_v33  ;;  %v3867_v35 = vadd.f32 %v3859_v50, %v3851_v9  ;;  %v3188_v51 = vmul.f32 %v12498_v26, %v12453_v59  ;;  %v9406_v61 = vmul.f32 %v12552_v5, %v12518_v43 }
 0x317   :  { %12579 = vst [vmem:[#allocation67_spill] sm:$0xff] %v9391_v39  ;;  %12580 = vst [vmem:[#allocation104_spill] sm:$0xff] %v9395_v21  ;;  %v9402_v60 = vpop.permute.xlu0 %1108  ;;  %v5220_v49 = vmul.f32 -1.442695, %v2059_v45  ;;  %v4042_v18 = vadd.f32 %v4034_v46, %v12496_v31  ;;  %v4011_v53 = vmul.f32 %v9332_v28, %v12480_v55  ;;  %v6099_v21 = vpop.eup %6098  ;;  %v912_v50 = vsel %vm139_vm4, %v9302_v47, %v12519_v3 }
 0x318   :  { %12581 = vst [vmem:[#allocation109_spill] sm:$0xff] %v9397_v54  ;;  %12582 = vst [vmem:[#allocation76_spill] sm:$0xff] %v9406_v61  ;;  %v9414_v13 = vpop.permute.xlu1 %1018  ;;  %6112 = vrcp.f32 %v2589_v7  ;;  %v3196_v58 = vadd.f32 %v3188_v51, %v3180_v62  ;;  %v3332_v33 = vmul.f32 %v9170_v25, %v7847_v22  ;;  %v1119_v45 = vsel %vm139_vm4, %v9310_v19, %v12498_v26 }
 0x319   :  { %928 = vrot.lane.b32.xlu0 %v912_v50, %s6643_s27  ;;  %6114 = vrcp.f32 %v2092_v0  ;;  %v1924_v9 = vadd.f32 1.0, %v6093_v40  ;;  %v9424_v46 = vmul.f32 %v12519_v3, %v7847_v22  ;;  %v3875_v62 = vadd.f32 %v3867_v35, %v12496_v31  ;;  %v12585_v0 = vld [vmem:[#allocation112_spill] sm:$0xff] }
 0x31a   :  { %1142 = vrot.lane.b32.xlu1 %v1119_v45, %s6642_s26  ;;  %6116 = vpow2.f32 %v5401_v56  ;;  %v3204_v47 = vmul.f32 %v12500_v57, %v7826_v16  ;;  %v3340_v7 = vmul.f32 %v9224_v4, %v7853_v44  ;;  %v9432_v19 = vpop.eup %6100  ;;  %v5417_v3 = vmul.f32 -1.442695, %v4042_v18 }
 0x31b   :  { %12583 = vst [vmem:[#allocation105_spill] sm:$0xff] %v9424_v46  ;;  %12584 = vst [vmem:[#allocation65_spill] sm:$0xff] %v9432_v19  ;;  %v9434_v51 = vpop.permute.xlu0 %1012  ;;  %6118 = vpow2.f32 %v5220_v49  ;;  %v4019_v50 = vadd.f32 %v4011_v53, %v12585_v0  ;;  %v6103_v56 = vpop.eup %6102  ;;  %v916_v35 = vsel %vm139_vm4, %v9336_v42, %v12526_v52  ;;  %v1117_v49 = vsel %vm139_vm4, %v9344_v12, %v12575_v41  ;;  %v12587_v53 = vld [vmem:[#allocation74_spill] sm:$0xff] }
 0x31c   :  { %v9442_v57 = vpop.permute.xlu1 %1410  ;;  %v3212_v46 = vadd.f32 %v3204_v47, %v3196_v58  ;;  %v3348_v61 = vadd.f32 %v3340_v7, %v3332_v33  ;;  %v2757_v18 = vadd.f32 1.0, %v6099_v21  ;;  %6120 = vrcp.f32 %v1924_v9  ;;  %v6542_v33 = vld [vmem:[#allocation2 + $0x8] sm:$0xff] }
 0x31d   :  { %v9446_v39 = vpop.eup %6104  ;;  %936 = vrot.lane.b32.xlu0 %v916_v35, %s6643_s27  ;;  %v4027_v52 = vmul.f32 %v12577_v29, %v12487_v6  ;;  %v9457_v58 = vmul.f32 %v12587_v53, %v7844_v15  ;;  %v9460_v47 = vmul.f32 %v6542_v33, %v12480_v55  ;;  %v5402_v7 = vmul.f32 -1.442695, %v3875_v62  ;;  %v12590_v35 = vld [vmem:[#allocation72_spill] sm:$0xff] }
 0x31e   :  { %12586 = vst [vmem:[#allocation111_spill] sm:$0xff] %v9446_v39  ;;  %v6107_v42 = vpop.eup %6106  ;;  %1138 = vrot.lane.b32.xlu1 %v1117_v49, %s6642_s26  ;;  %v3356_v12 = vmul.f32 %v12498_v26, %v12455_v30  ;;  %v3908_v21 = vadd.f32 1.0, %v6103_v56  ;;  %6122 = vpow2.f32 %v5417_v3  ;;  %v1114_v49 = vsel %vm139_vm4, %v9369_v36, %v12590_v35 }
 0x31f   :  { %12588 = vst [vmem:[#allocation71_spill] sm:$0xff] %v9457_v58  ;;  %12589 = vst [vmem:[#allocation89_spill] sm:$0xff] %v9460_v47  ;;  %v9464_v41 = vpop.permute.xlu0 %1020  ;;  %v4035_v9 = vadd.f32 %v4027_v52, %v4019_v50  ;;  %v6109_v0 = vpop.eup %6108  ;;  %v3220_v62 = vadd.f32 %v3212_v46, %v12496_v31  ;;  %v9474_v47 = vld [vmem:[#allocation2 + $0xe0] sm:$0xff]  ;;  %6124 = vrcp.f32 %v2757_v18  ;;  %v2093_v50 = vadd.f32 1.0, %v6107_v42  ;;  %v9489_v46 = vld [vmem:[#allocation2 + $0x38] sm:$0xff] }
 0x320   :  { %v9471_v45 = vpop.permute.xlu1 %1418  ;;  %v3364_v40 = vadd.f32 %v3356_v12, %v3348_v61  ;;  %v3841_v26 = vmul.f32 %v9474_v47, %v12473_v37  ;;  %v12591_v58 = vld [vmem:[#allocation18_spill] sm:$0xff]  ;;  %v3162_v36 = vmul.f32 %v12552_v5, %v12442_v8  ;;  %v9487_v61 = vmul.f32 %v12587_v53, %v7847_v22  ;;  %v12594_v53 = vld [vmem:[#allocation73_spill] sm:$0xff] }
 0x321   :  { %v1025_v3 = vsel %vm139_vm4, %v9379_v48, %v12591_v58  ;;  %1132 = vrot.lane.b32.xlu0 %v1114_v49, %s6642_s26  ;;  %6126 = vpow2.f32 %v5402_v7  ;;  %v3372_v56 = vmul.f32 %v9489_v46, %v7823_v2  ;;  %v12593_v48 = vld [vmem:[#allocation114_spill] sm:$0xff]  ;;  %v4076_v42 = vadd.f32 1.0, %v6109_v0 }
 0x322   :  { %1042 = vrot.lane.b32.xlu1 %v1025_v3, %s6643_s27  ;;  %12592 = vst [vmem:[#allocation112_spill] sm:$0xff] %v9487_v61  ;;  %v3849_v52 = vadd.f32 %v3841_v26, %v12593_v48  ;;  %v6111_v12 = vpop.eup %6110  ;;  %6128 = vrcp.f32 %v3908_v21  ;;  %v4043_v5 = vadd.f32 %v4035_v9, %v12496_v31  ;;  %v3170_v35 = vmul.f32 %v12565_v23, %v7856_v17  ;;  %v12595_v26 = vld [vmem:[#allocation94_spill] sm:$0xff]  ;;  %v12597_v21 = vld [vmem:[#allocation37_spill] sm:$0xff] }
 0x323   :  { %v9494_v18 = vpop.permute.xlu0 %1096  ;;  %v1118_v7 = vsel %vm139_vm4, %v9402_v60, %v12594_v53  ;;  %v5339_v3 = vmul.f32 -1.442695, %v3220_v62  ;;  %v3380_v29 = vadd.f32 %v3372_v56, %v3364_v40  ;;  %v3857_v48 = vmul.f32 %v12595_v26, %v12518_v43 }
 0x324   :  { %v9502_v49 = vpop.permute.xlu1 %1610  ;;  %v1029_v9 = vsel %vm139_vm4, %v9414_v13, %v12597_v21  ;;  %6130 = vrcp.f32 %v2093_v50  ;;  %v9513_v0 = vmul.f32 %v6542_v33, %v12455_v30  ;;  %v3178_v60 = vadd.f32 %v3170_v35, %v3162_v36  ;;  %v9526_v33 = vld [vmem:[#allocation2 + $0x28] sm:$0xff] }
 0x325   :  { %v9506_v61 = vpop.eup %6112  ;;  %1140 = vrot.lane.b32.xlu0 %v1118_v7, %s6642_s26  ;;  %v1922_v62 = vadd.f32 1.0, %v6111_v12  ;;  %v9522_v56 = vmul.f32 %v12565_v23, %v7844_v15  ;;  %v3865_v13 = vadd.f32 %v3857_v48, %v3849_v52  ;;  %6132 = vrcp.f32 %v4076_v42  ;;  %12601 = vst [vmem:[#allocation73_spill] sm:$0xff] %v9526_v33  ;;  %v9532_v35 = vld [vmem:[#allocation2 + $0x68] sm:$0xff]  ;;  %v12604_v23 = vld [vmem:[#allocation24_spill] sm:$0xff] }
 0x326   :  { %12596 = vst [vmem:[#allocation74_spill] sm:$0xff] %v9506_v61  ;;  %12598 = vst [vmem:[#allocation72_spill] sm:$0xff] %v9513_v0  ;;  %v9515_v53 = vpop.eup %6114  ;;  %1050 = vrot.lane.b32.xlu1 %v1029_v9, %s6643_s27  ;;  %v9530_v50 = vmul.f32 %v9526_v33, %v12480_v55  ;;  %v5418_v36 = vmul.f32 -1.442695, %v4043_v5  ;;  %v3186_v12 = vmul.f32 %v9532_v35, %v12453_v59  ;;  %v9541_v42 = vld [vmem:[#allocation2 + $0xa8] sm:$0xff]  ;;  %6134 = vpow2.f32 %v5339_v3 }
 0x327   :  { %12599 = vst [vmem:[#allocation18_spill] sm:$0xff] %v9515_v53  ;;  %12600 = vst [vmem:[#allocation114_spill] sm:$0xff] %v9522_v56  ;;  %v6117_v26 = vpop.eup %6116  ;;  %v9524_v7 = vpop.permute.xlu0 %1104  ;;  %v1026_v52 = vsel %vm139_vm4, %v9434_v51, %v12604_v23  ;;  %v9545_v40 = vmul.f32 %v9541_v42, %v7847_v22  ;;  %v3388_v5 = vadd.f32 %v3380_v29, %v12496_v31  ;;  %6136 = vrcp.f32 %v1922_v62  ;;  %v12608_v51 = vld [vmem:[#allocation99_spill] sm:$0xff] }
 0x328   :  { %12602 = vst [vmem:[#allocation94_spill] sm:$0xff] %v9530_v50  ;;  %12603 = vst [vmem:[#allocation37_spill] sm:$0xff] %v9532_v35  ;;  %v6119_v9 = vpop.eup %6118  ;;  %v9539_v48 = vpop.permute.xlu1 %1618  ;;  %v9548_v50 = vld [vmem:[#allocation2 + $0x88] sm:$0xff]  ;;  %v9558_v0 = vmul.f32 %v9526_v33, %v12455_v30  ;;  %v3194_v19 = vadd.f32 %v3186_v12, %v3178_v60  ;;  %v3906_v3 = vadd.f32 1.0, %v6117_v26  ;;  %v9570_v39 = vmul.f32 %v12608_v51, %v7832_v34  ;;  %v9581_v26 = vld [vmem:[#allocation2 + $0x50] sm:$0xff] }
 0x329   :  { %12605 = vst [vmem:[#allocation124_spill] sm:$0xff] %v9545_v40  ;;  %v1425_v56 = vsel %vm139_vm4, %v9442_v57, %v9548_v50  ;;  %1044 = vrot.lane.b32.xlu0 %v1026_v52, %s6643_s27  ;;  %v9560_v40 = vpop.eup %6120  ;;  %v3873_v57 = vadd.f32 %v3865_v13, %v12496_v31  ;;  %v2091_v54 = vadd.f32 1.0, %v6119_v9  ;;  %6138 = vpow2.f32 %v5418_v36  ;;  %12611 = vst [vmem:[#allocation127_spill] sm:$0xff] %v9581_v26  ;;  %v9593_v61 = vld [vmem:[#allocation2 + $0xe8] sm:$0xff] }
 0x32a   :  { %12606 = vst [vmem:[#allocation125_spill] sm:$0xff] %v9558_v0  ;;  %12607 = vst [vmem:[#allocation126_spill] sm:$0xff] %v9560_v40  ;;  %1442 = vrot.lane.b32.xlu1 %v1425_v56, %s6643_s27  ;;  %v3202_v60 = vmul.f32 %v9526_v33, %v7826_v16  ;;  %v12610_v56 = vld [vmem:[#allocation20_spill] sm:$0xff]  ;;  %v9585_v9 = vmul.f32 %v9581_v26, %v12518_v43  ;;  %v5355_v36 = vmul.f32 -1.442695, %v3388_v5  ;;  %6140 = vrcp.f32 %v3906_v3  ;;  %v6551_v40 = vld [vmem:[#allocation2 + $0x40] sm:$0xff] }
 0x32b   :  { %v9566_v52 = vpop.permute.xlu0 %1412  ;;  %12609 = vst [vmem:[#allocation99_spill] sm:$0xff] %v9570_v39  ;;  %v6123_v12 = vpop.eup %6122  ;;  %v1030_v29 = vsel %vm139_vm4, %v9464_v41, %v12610_v56  ;;  %v1429_v0 = vsel %vm139_vm4, %v9471_v45, %v9541_v42  ;;  %v3330_v13 = vmul.f32 %v9593_v61, %v7847_v22  ;;  %v9602_v5 = vmul.f32 %v12608_v51, %v7856_v17 }
 0x32c   :  { %v9577_v62 = vpop.permute.xlu1 %1014  ;;  %12612 = vst [vmem:[#allocation128_spill] sm:$0xff] %v9585_v9  ;;  %v3210_v39 = vadd.f32 %v3202_v60, %v3194_v19  ;;  %v9597_v53 = vpop.eup %6124  ;;  %v5400_v45 = vmul.f32 -1.442695, %v3873_v57  ;;  %6142 = vrcp.f32 %v2091_v54  ;;  %v4074_v60 = vadd.f32 1.0, %v6123_v12  ;;  %v12618_v54 = vld [vmem:[#allocation115_spill] sm:$0xff] }
 0x32d   :  { %1052 = vrot.lane.b32.xlu0 %v1030_v29, %s6643_s27  ;;  %12613 = vst [vmem:[#allocation129_spill] sm:$0xff] %v9597_v53  ;;  %12614 = vst [vmem:[#allocation130_spill] sm:$0xff] %v9602_v5  ;;  %v4009_v29 = vmul.f32 %v9474_v47, %v12480_v55  ;;  %v9610_v9 = vmul.f32 %v9581_v26, %v7826_v16  ;;  %v1112_v57 = vsel %vm139_vm4, %v9494_v18, %v6551_v40  ;;  %v6552_v26 = vld [vmem:[#allocation2 + $0xc8] sm:$0xff] }
 0x32e   :  { %1450 = vrot.lane.b32.xlu1 %v1429_v0, %s6643_s27  ;;  %v6127_v41 = vpop.eup %6126  ;;  %v3338_v0 = vmul.f32 %v9541_v42, %v7853_v44  ;;  %v9622_v63 = vmul.f32 %v12608_v51, %v12518_v43  ;;  %6144 = vpow2.f32 %v5355_v36  ;;  %v9630_v56 = vmul.f32 %v7832_v34, %v12619_v14 }
 0x32f   :  { %v9606_v19 = vpop.permute.xlu0 %1008  ;;  %12615 = vst [vmem:[#allocation131_spill] sm:$0xff] %v9610_v9  ;;  %v9614_v3 = vpop.eup %6128  ;;  %v4017_v12 = vadd.f32 %v4009_v29, %v12618_v54  ;;  %v1625_v9 = vsel %vm139_vm4, %v9502_v49, %v6552_v26  ;;  %v3218_v18 = vadd.f32 %v3210_v39, %v12496_v31  ;;  %v3907_v36 = vadd.f32 1.0, %v6127_v41  ;;  %v9638_v29 = vld [vmem:[#allocation2 + $0xa0] sm:$0xff]  ;;  %v12624_v54 = vld [vmem:[#allocation63_spill] sm:$0xff] }
 0x330   :  { %12616 = vst [vmem:[#allocation132_spill] sm:$0xff] %v9614_v3  ;;  %v9618_v5 = vpop.permute.xlu1 %1022  ;;  %12617 = vst [vmem:[#allocation133_spill] sm:$0xff] %v9622_v63  ;;  %v3346_v23 = vadd.f32 %v3338_v0, %v3330_v13  ;;  %6146 = vpow2.f32 %v5400_v45  ;;  %v4025_v49 = vmul.f32 %v9638_v29, %v12487_v6  ;;  %v9648_v13 = vmul.f32 %v7832_v34, %v12493_v1  ;;  %v9654_v45 = vld [vmem:[#allocation2 + $0x60] sm:$0xff] }
 0x331   :  { %1128 = vrot.lane.b32.xlu0 %v1112_v57, %s6642_s26  ;;  %12620 = vst [vmem:[#allocation115_spill] sm:$0xff] %v9630_v56  ;;  %v9633_v10 = vpop.eup %6130  ;;  %6148 = vrcp.f32 %v4074_v60  ;;  %v1116_v0 = vsel %vm139_vm4, %v9524_v7, %v9654_v45  ;;  %v9663_v60 = vmul.f32 %v7832_v34, %v12624_v54  ;;  %v3163_v51 = vmul.f32 %v9332_v28, %v12442_v8  ;;  %v12638_v54 = vld [vmem:[#allocation32_spill] sm:$0xff] }
 0x332   :  { %12621 = vst [vmem:[#allocation60_spill] sm:$0xff] %v9633_v10  ;;  %1642 = vrot.lane.b32.xlu1 %v1625_v9, %s6642_s26  ;;  %12622 = vst [vmem:[#allocation134_spill] sm:$0xff] %v9648_v13  ;;  %v3354_v9 = vmul.f32 %v9532_v35, %v12455_v30  ;;  %v9652_v41 = vpop.eup %6132  ;;  %v4033_v39 = vadd.f32 %v4025_v49, %v4017_v12  ;;  %v1629_v56 = vsel %vm139_vm4, %v9539_v48, %v9593_v61 }
 0x333   :  { %v9642_v26 = vpop.permute.xlu0 %1408  ;;  %12623 = vst [vmem:[#allocation135_spill] sm:$0xff] %v9652_v41  ;;  %12625 = vst [vmem:[#allocation136_spill] sm:$0xff] %v9663_v60  ;;  %v6135_v13 = vpop.eup %6134  ;;  %v5337_v63 = vmul.f32 -1.442695, %v3218_v18  ;;  %6150 = vrcp.f32 %v3907_v36  ;;  %v9676_v12 = vmul.f32 %v9055_v20, %v7832_v34  ;;  %v9679_v49 = vmul.f32 %v6551_v40, %v12518_v43  ;;  %v9681_v60 = vld [vmem:[#allocation2 + $0xb0] sm:$0xff] }
 0x334   :  { %v9659_v57 = vpop.permute.xlu1 %1210  ;;  %v3362_v3 = vadd.f32 %v3354_v9, %v3346_v23  ;;  %v3171_v48 = vmul.f32 %v9681_v60, %v7856_v17  ;;  %v3370_v18 = vmul.f32 %v9526_v33, %v7823_v2  ;;  %v2505_v36 = vmul.f32 %v9170_v25, %v7863_v32 }
 0x335   :  { %1136 = vrot.lane.b32.xlu0 %v1116_v0, %s6642_s26  ;;  %12626 = vst [vmem:[#allocation137_spill] sm:$0xff] %v9676_v12  ;;  %12627 = vst [vmem:[#allocation138_spill] sm:$0xff] %v9679_v49  ;;  %v9685_v0 = vpop.eup %6136  ;;  %v9699_v49 = vld [vmem:[#allocation2 + $0x90] sm:$0xff]  ;;  %v3252_v23 = vadd.f32 1.0, %v6135_v13  ;;  %v4041_v41 = vadd.f32 %v4033_v39, %v12496_v31  ;;  %6152 = vpow2.f32 %v5337_v63  ;;  %v2514_v35 = vmul.f32 %v9224_v4, %v7832_v34 }
 0x336   :  { %1650 = vrot.lane.b32.xlu1 %v1629_v56, %s6642_s26  ;;  %12628 = vst [vmem:[#allocation139_spill] sm:$0xff] %v9685_v0  ;;  %v9693_v56 = vmul.f32 %v9055_v20, %v7856_v17  ;;  %v6139_v9 = vpop.eup %6138  ;;  %v1426_v12 = vsel %vm139_vm4, %v9566_v52, %v9699_v49  ;;  %v3179_v53 = vadd.f32 %v3171_v48, %v3163_v51  ;;  %v12637_v48 = vld [vmem:[#allocation26_spill] sm:$0xff] }
 0x337   :  { %v9687_v7 = vpop.permute.xlu0 %1420  ;;  %v3378_v1 = vadd.f32 %v3370_v18, %v3362_v3  ;;  %v9715_v52 = vmul.f32 %v6551_v40, %v7826_v16  ;;  %v9719_v39 = vmul.f32 %v9055_v20, %v12518_v43  ;;  %v9723_v51 = vmul.f32 %v7844_v15, %v12591_v58  ;;  %v9729_v3 = vpop.eup %6140 }
 0x338   :  { %12629 = vst [vmem:[#allocation140_spill] sm:$0xff] %v9693_v56  ;;  %v9704_v10 = vpop.permute.xlu1 %1218  ;;  %v12630_v56 = vld [vmem:[#allocation29_spill] sm:$0xff]  ;;  %12634 = vst [vmem:[#allocation144_spill] sm:$0xff] %v9729_v3  ;;  %v9737_v20 = vmul.f32 %v9548_v50, %v12480_v55  ;;  %v1024_v18 = vsel %vm139_vm4, %v9606_v19, %v12637_v48  ;;  %6154 = vrcp.f32 %v3252_v23 }
 0x339   :  { %v1027_v33 = vsel %vm139_vm4, %v9577_v62, %v12630_v56  ;;  %1444 = vrot.lane.b32.xlu0 %v1426_v12, %s6643_s27  ;;  %12631 = vst [vmem:[#allocation141_spill] sm:$0xff] %v9715_v52  ;;  %12632 = vst [vmem:[#allocation142_spill] sm:$0xff] %v9719_v39  ;;  %v9725_v62 = vld [vmem:[#allocation2 + $0x70] sm:$0xff]  ;;  %v2522_v12 = vadd.f32 %v2514_v35, %v2505_v36  ;;  %v9739_v58 = vpop.eup %6142  ;;  %v5416_v39 = vmul.f32 -1.442695, %v4041_v41  ;;  %v9755_v36 = vld [vmem:[#allocation2 + $0x78] sm:$0xff] }
 0x33a   :  { %1046 = vrot.lane.b32.xlu1 %v1027_v33, %s6643_s27  ;;  %12633 = vst [vmem:[#allocation143_spill] sm:$0xff] %v9723_v51  ;;  %v3187_v63 = vmul.f32 %v9725_v62, %v12453_v59  ;;  %v4075_v33 = vadd.f32 1.0, %v6139_v9  ;;  %12635 = vst [vmem:[#allocation145_spill] sm:$0xff] %v9737_v20  ;;  %v1031_v9 = vsel %vm139_vm4, %v9618_v5, %v12638_v54  ;;  %v9770_v41 = vld [vmem:[#allocation2 + $0x30] sm:$0xff]  ;;  %v9784_v20 = vld [vmem:[#allocation2 + $0x80] sm:$0xff] }
 0x33b   :  { %v9731_v13 = vpop.permute.xlu0 %1016  ;;  %12636 = vst [vmem:[#allocation146_spill] sm:$0xff] %v9739_v58  ;;  %v6145_v56 = vpop.eup %6144  ;;  %v3386_v50 = vadd.f32 %v3378_v1, %v12496_v31  ;;  %v9753_v35 = vmul.f32 %v9332_v28, %v7832_v34  ;;  %v2531_v19 = vmul.f32 %v9755_v36, %v12473_v37  ;;  %v9764_v5 = vmul.f32 %v9725_v62, %v12518_v43 }
 0x33c   :  { %v9744_v52 = vpop.permute.xlu1 %1414  ;;  %v3195_v51 = vadd.f32 %v3187_v63, %v3179_v53  ;;  %v9768_v1 = vmul.f32 %v9332_v28, %v7856_v17  ;;  %v3203_v23 = vmul.f32 %v9770_v41, %v7826_v16  ;;  %6156 = vrcp.f32 %v4075_v33 }
 0x33d   :  { %1040 = vrot.lane.b32.xlu0 %v1024_v18, %s6643_s27  ;;  %12639 = vst [vmem:[#allocation147_spill] sm:$0xff] %v9753_v35  ;;  %12640 = vst [vmem:[#allocation148_spill] sm:$0xff] %v9764_v5  ;;  %v6147_v63 = vpop.eup %6146  ;;  %v9780_v53 = vmul.f32 %v9725_v62, %v7826_v16  ;;  %v2539_v40 = vadd.f32 %v2531_v19, %v2522_v12  ;;  %v3420_v3 = vadd.f32 1.0, %v6145_v56  ;;  %6158 = vpow2.f32 %v5416_v39 }
 0x33e   :  { %1054 = vrot.lane.b32.xlu1 %v1031_v9, %s6643_s27  ;;  %12641 = vst [vmem:[#allocation149_spill] sm:$0xff] %v9768_v1  ;;  %v9782_v5 = vpop.eup %6148  ;;  %v1424_v1 = vsel %vm139_vm4, %v9642_v26, %v9784_v20  ;;  %v3211_v0 = vadd.f32 %v3203_v23, %v3195_v51  ;;  %v1225_v33 = vsel %vm139_vm4, %v9659_v57, %v12548_v24  ;;  %v5353_v12 = vmul.f32 -1.442695, %v3386_v50 }
 0x33f   :  { %v9774_v18 = vpop.permute.xlu0 %1416  ;;  %12642 = vst [vmem:[#allocation150_spill] sm:$0xff] %v9780_v53  ;;  %12643 = vst [vmem:[#allocation151_spill] sm:$0xff] %v9782_v5  ;;  %v9797_v19 = vmul.f32 %v9332_v28, %v12518_v43  ;;  %v2548_v9 = vmul.f32 %v9489_v46, %v12518_v43  ;;  %v3905_v26 = vadd.f32 1.0, %v6147_v63  ;;  %v9804_v56 = vmul.f32 %v7844_v15, %v12597_v21  ;;  %v9822_v21 = vld [vmem:[#allocation2 + $0xd8] sm:$0xff] }
 0x340   :  { %v9789_v35 = vpop.permute.xlu1 %1422  ;;  %v9808_v24 = vmul.f32 %v9541_v42, %v12480_v55  ;;  %v3331_v57 = vmul.f32 %v9332_v28, %v7847_v22  ;;  %v9812_v39 = vpop.eup %6150  ;;  %v9820_v23 = vmul.f32 %v7832_v34, %v12458_v38  ;;  %v9826_v63 = vmul.f32 %v9822_v21, %v7832_v34 }
 0x341   :  { %1440 = vrot.lane.b32.xlu0 %v1424_v1, %s6643_s27  ;;  %12644 = vst [vmem:[#allocation152_spill] sm:$0xff] %v9797_v19  ;;  %12645 = vst [vmem:[#allocation153_spill] sm:$0xff] %v9804_v56  ;;  %v2556_v1 = vadd.f32 %v2548_v9, %v2539_v40  ;;  %6160 = vrcp.f32 %v3420_v3  ;;  %v3219_v50 = vadd.f32 %v3211_v0, %v12496_v31  ;;  %v12655_v56 = vld [vmem:[#allocation30_spill] sm:$0xff]  ;;  %v9879_v19 = vld [vmem:[#allocation2 + $0x98] sm:$0xff] }
 0x342   :  { %1242 = vrot.lane.b32.xlu1 %v1225_v33, %s6642_s26  ;;  %12646 = vst [vmem:[#allocation154_spill] sm:$0xff] %v9808_v24  ;;  %12647 = vst [vmem:[#allocation155_spill] sm:$0xff] %v9812_v39  ;;  %v1430_v33 = vsel %vm139_vm4, %v9687_v7, %v9681_v60  ;;  %v3339_v40 = vmul.f32 %v9681_v60, %v7853_v44  ;;  %v1229_v9 = vsel %vm139_vm4, %v9704_v10, %v12554_v27  ;;  %v6153_v0 = vpop.eup %6152 }
 0x343   :  { %v9814_v51 = vpop.permute.xlu0 %1612  ;;  %12648 = vst [vmem:[#allocation156_spill] sm:$0xff] %v9820_v23  ;;  %12649 = vst [vmem:[#allocation157_spill] sm:$0xff] %v9826_v63  ;;  %6162 = vpow2.f32 %v5353_v12  ;;  %v9840_v63 = vld [vmem:[#allocation2 + $0x58] sm:$0xff]  ;;  %v2676_v3 = vmul.f32 %v9170_v25, %v7844_v15  ;;  %v9853_v27 = vmul.f32 %v9822_v21, %v7856_v17  ;;  %v3371_v58 = vmul.f32 %v9770_v41, %v7823_v2 }
 0x344   :  { %v9831_v24 = vpop.permute.xlu1 %1614  ;;  %12650 = vst [vmem:[#allocation158_spill] sm:$0xff] %v9840_v63  ;;  %v9844_v7 = vmul.f32 %v9840_v63, %v12518_v43  ;;  %6164 = vrcp.f32 %v3905_v26  ;;  %v3347_v10 = vadd.f32 %v3339_v40, %v3331_v57  ;;  %v2684_v26 = vmul.f32 %v9224_v4, %v12655_v56  ;;  %v12656_v23 = vld [vmem:[#allocation45_spill] sm:$0xff] }
 0x345   :  { %1452 = vrot.lane.b32.xlu0 %v1430_v33, %s6643_s27  ;;  %12652 = vst [vmem:[#allocation160_spill] sm:$0xff] %v9853_v27  ;;  %v2564_v33 = vadd.f32 %v2556_v1, %v12496_v31  ;;  %v1028_v27 = vsel %vm139_vm4, %v9731_v13, %v12656_v23  ;;  %v5338_v40 = vmul.f32 -1.442695, %v3219_v50  ;;  %v3355_v1 = vmul.f32 %v9725_v62, %v12455_v30  ;;  %v9877_v53 = vpop.eup %6154 }
 0x346   :  { %12651 = vst [vmem:[#allocation159_spill] sm:$0xff] %v9844_v7  ;;  %1250 = vrot.lane.b32.xlu1 %v1229_v9, %s6642_s26  ;;  %v9860_v7 = vmul.f32 %v9840_v63, %v7826_v16  ;;  %v9864_v9 = vmul.f32 %v9822_v21, %v12518_v43  ;;  %v3250_v13 = vadd.f32 1.0, %v6153_v0  ;;  %v2692_v39 = vadd.f32 %v2684_v26, %v2676_v3 }
 0x347   :  { %v9855_v12 = vpop.permute.xlu0 %1608  ;;  %v3329_v50 = vmul.f32 %v9474_v47, %v7847_v22  ;;  %v3363_v5 = vadd.f32 %v3355_v1, %v3347_v10  ;;  %v3185_v63 = vmul.f32 %v9654_v45, %v12453_v59  ;;  %v2700_v3 = vmul.f32 %v9755_v36, %v12480_v55 }
 0x348   :  { %12653 = vst [vmem:[#allocation161_spill] sm:$0xff] %v9860_v7  ;;  %12654 = vst [vmem:[#allocation162_spill] sm:$0xff] %v9864_v9  ;;  %v9871_v57 = vpop.permute.xlu1 %1622  ;;  %v3161_v7 = vmul.f32 %v9474_v47, %v12442_v8  ;;  %v1427_v9 = vsel %vm139_vm4, %v9744_v52, %v9879_v19  ;;  %v3169_v8 = vmul.f32 %v9638_v29, %v7856_v17  ;;  %6166 = vpow2.f32 %v5338_v40 }
 0x349   :  { %1048 = vrot.lane.b32.xlu0 %v1028_v27, %s6643_s27  ;;  %v5275_v27 = vmul.f32 -1.442695, %v2564_v33  ;;  %v3337_v0 = vmul.f32 %v9638_v29, %v7853_v44  ;;  %v3353_v10 = vmul.f32 %v9654_v45, %v12455_v30  ;;  %v1428_v26 = vsel %vm139_vm4, %v9774_v18, %v9638_v29 }
 0x34a   :  { %1446 = vrot.lane.b32.xlu1 %v1427_v9, %s6643_s27  ;;  %v9902_v9 = vpop.eup %6156  ;;  %v3177_v59 = vadd.f32 %v3169_v8, %v3161_v7  ;;  %v1431_v44 = vsel %vm139_vm4, %v9789_v35, %v9224_v4  ;;  %6168 = vrcp.f32 %v3250_v13  ;;  %v2708_v48 = vadd.f32 %v2700_v3, %v2692_v39 }
 0x34b   :  { %v9894_v52 = vpop.permute.xlu0 %1620  ;;  %v6159_v23 = vpop.eup %6158  ;;  %v3345_v54 = vadd.f32 %v3337_v0, %v3329_v50  ;;  %v3379_v18 = vadd.f32 %v3371_v58, %v3363_v5  ;;  %v2716_v38 = vmul.f32 %v9489_v46, %v12487_v6  ;;  %v9920_v40 = vmul.f32 %v9474_v47, %v7832_v34  ;;  %v6564_v58 = vld [vmem:[#allocation2 + $0xd0] sm:$0xff]  ;;  %v9934_v50 = vld [vmem:[#allocation2 + $0x20] sm:$0xff] }
 0x34c   :  { %v9907_v1 = vpop.permute.xlu1 %1322  ;;  %v3193_v8 = vadd.f32 %v3185_v63, %v3177_v59  ;;  %6170 = vpow2.f32 %v5275_v27  ;;  %v9928_v35 = vmul.f32 %v9654_v45, %v12518_v43  ;;  %v1626_v5 = vsel %vm139_vm4, %v9814_v51, %v6564_v58 }
 0x34d   :  { %1448 = vrot.lane.b32.xlu0 %v1428_v26, %s6643_s27  ;;  %12657 = vst [vmem:[#allocation30_spill] sm:$0xff] %v9920_v40  ;;  %v4073_v13 = vadd.f32 1.0, %v6159_v23  ;;  %v3201_v59 = vmul.f32 %v9934_v50, %v7826_v16  ;;  %v2504_v63 = vmul.f32 %v9332_v28, %v7863_v32  ;;  %v2724_v51 = vadd.f32 %v2716_v38, %v2708_v48 }
 0x34e   :  { %1454 = vrot.lane.b32.xlu1 %v1431_v44, %s6643_s27  ;;  %12658 = vst [vmem:[#allocation163_spill] sm:$0xff] %v9928_v35  ;;  %v3361_v44 = vadd.f32 %v3353_v10, %v3345_v54  ;;  %v9940_v27 = vpop.eup %6160  ;;  %v1627_v54 = vsel %vm139_vm4, %v9831_v24, %v9822_v21  ;;  %v9948_v23 = vmul.f32 %v9474_v47, %v7856_v17 }
 0x34f   :  { %v9922_v7 = vpop.permute.xlu0 %1616  ;;  %12659 = vst [vmem:[#allocation164_spill] sm:$0xff] %v9940_v27  ;;  %v3369_v3 = vmul.f32 %v9934_v50, %v7823_v2  ;;  %v3387_v10 = vadd.f32 %v3379_v18, %v12496_v31  ;;  %v3209_v26 = vadd.f32 %v3201_v59, %v3193_v8  ;;  %v2513_v58 = vmul.f32 %v9681_v60, %v7832_v34  ;;  %v6566_v59 = vld [vmem:[#allocation2 + $0xc0] sm:$0xff] }
 0x350   :  { %v9932_v39 = vpop.permute.xlu1 %1214  ;;  %12660 = vst [vmem:[#allocation165_spill] sm:$0xff] %v9948_v23  ;;  %v6163_v0 = vpop.eup %6162  ;;  %v2675_v24 = vmul.f32 %v9332_v28, %v7844_v15  ;;  %v9964_v21 = vmul.f32 %v9654_v45, %v7826_v16  ;;  %v9972_v18 = vmul.f32 %v9170_v25, %v7832_v34  ;;  %6172 = vrcp.f32 %v4073_v13  ;;  %v12703_v27 = vld [vmem:[#allocation122_spill] sm:$0xff] }
 0x351   :  { %1644 = vrot.lane.b32.xlu0 %v1626_v5, %s6642_s26  ;;  %v9958_v38 = vpop.eup %6164  ;;  %v9968_v5 = vmul.f32 %v9474_v47, %v12518_v43  ;;  %v3377_v8 = vadd.f32 %v3369_v3, %v3361_v44  ;;  %v2521_v33 = vadd.f32 %v2513_v58, %v2504_v63  ;;  %v9987_v44 = vmul.f32 %v9755_v36, %v12518_v43 }
 0x352   :  { %1646 = vrot.lane.b32.xlu1 %v1627_v54, %s6642_s26  ;;  %12661 = vst [vmem:[#allocation166_spill] sm:$0xff] %v9958_v38  ;;  %12662 = vst [vmem:[#allocation167_spill] sm:$0xff] %v9964_v21  ;;  %v1624_v54 = vsel %vm139_vm4, %v9855_v12, %v6566_v59  ;;  %v2683_v21 = vmul.f32 %v9681_v60, %v12655_v56  ;;  %v2502_v12 = vmul.f32 %v9474_v47, %v7863_v32  ;;  %v12697_v38 = vld [vmem:[#allocation39_spill] sm:$0xff] }
 0x353   :  { %v9960_v48 = vpop.permute.xlu0 %1212  ;;  %12663 = vst [vmem:[#allocation168_spill] sm:$0xff] %v9968_v5  ;;  %12664 = vst [vmem:[#allocation169_spill] sm:$0xff] %v9972_v18  ;;  %v1631_v5 = vsel %vm139_vm4, %v9871_v57, %v9170_v25  ;;  %v2732_v18 = vadd.f32 %v2724_v51, %v12496_v31  ;;  %v9994_v13 = vmul.f32 %v9170_v25, %v7856_v17  ;;  %v5354_v58 = vmul.f32 -1.442695, %v3387_v10 }
 0x354   :  { %v9976_v4 = vpop.permute.xlu1 %1330  ;;  %12665 = vst [vmem:[#allocation170_spill] sm:$0xff] %v9987_v44  ;;  %v3217_v63 = vadd.f32 %v3209_v26, %v12496_v31  ;;  %v2530_v57 = vmul.f32 %v9725_v62, %v12473_v37  ;;  %v2691_v3 = vadd.f32 %v2683_v21, %v2675_v24  ;;  %v3385_v59 = vadd.f32 %v3377_v8, %v12496_v31  ;;  %v12667_v21 = vld [vmem:[#allocation53_spill] sm:$0xff] }
 0x355   :  { %1640 = vrot.lane.b32.xlu0 %v1624_v54, %s6642_s26  ;;  %12666 = vst [vmem:[#allocation171_spill] sm:$0xff] %v9994_v13  ;;  %v2511_v54 = vmul.f32 %v9638_v29, %v7832_v34  ;;  %v1630_v25 = vsel %vm139_vm4, %v9894_v52, %v9332_v28  ;;  %v3418_v44 = vadd.f32 1.0, %v6163_v0  ;;  %v2699_v24 = vmul.f32 %v9725_v62, %v12480_v55  ;;  %v6167_v10 = vpop.eup %6166 }
 0x356   :  { %1654 = vrot.lane.b32.xlu1 %v1631_v5, %s6642_s26  ;;  %v2528_v5 = vmul.f32 %v9654_v45, %v12473_v37  ;;  %v2538_v13 = vadd.f32 %v2530_v57, %v2521_v33  ;;  %v1337_v8 = vsel %vm139_vm4, %v9907_v1, %v12667_v21  ;;  %v5291_v35 = vmul.f32 -1.442695, %v2732_v18  ;;  %v6567_v33 = vld [vmem:[#allocation2 + $0xf8] sm:$0xff] }
 0x357   :  { %v9999_v51 = vpop.permute.xlu0 %1220  ;;  %v10019_v23 = vmul.f32 %v9755_v36, %v7826_v16  ;;  %v2519_v28 = vadd.f32 %v2511_v54, %v2502_v12  ;;  %v10021_v52 = vpop.eup %6168  ;;  %v10025_v0 = vmul.f32 %v6567_v33, %v12518_v43  ;;  %v5336_v57 = vmul.f32 -1.442695, %v3217_v63 }
 0x358   :  { %v10009_v26 = vpop.permute.xlu1 %1222  ;;  %12669 = vst [vmem:[#allocation172_spill] sm:$0xff] %v10021_v52  ;;  %v2547_v1 = vmul.f32 %v9770_v41, %v12518_v43  ;;  %v2707_v40 = vadd.f32 %v2699_v24, %v2691_v3  ;;  %6174 = vpow2.f32 %v5354_v58  ;;  %v5352_v12 = vmul.f32 -1.442695, %v3385_v59  ;;  %v12696_v52 = vld [vmem:[#allocation44_spill] sm:$0xff] }
 0x359   :  { %1652 = vrot.lane.b32.xlu0 %v1630_v25, %s6642_s26  ;;  %12668 = vst [vmem:[#allocation53_spill] sm:$0xff] %v10019_v23  ;;  %12670 = vst [vmem:[#allocation173_spill] sm:$0xff] %v10025_v0  ;;  %v2536_v54 = vadd.f32 %v2528_v5, %v2519_v28  ;;  %v6171_v23 = vpop.eup %6170  ;;  %6176 = vrcp.f32 %v3418_v44  ;;  %v2715_v3 = vmul.f32 %v9770_v41, %v12487_v6  ;;  %v12687_v0 = vld [vmem:[#allocation61_spill] sm:$0xff] }
 0x35a   :  { %1354 = vrot.lane.b32.xlu1 %v1337_v8, %s6643_s27  ;;  %v1628_v8 = vsel %vm139_vm4, %v9922_v7, %v9474_v47  ;;  %v2555_v63 = vadd.f32 %v2547_v1, %v2538_v13  ;;  %v1227_v24 = vsel %vm139_vm4, %v9932_v39, %v12619_v14  ;;  %6178 = vpow2.f32 %v5291_v35  ;;  %v6568_v13 = vld [vmem:[#allocation2 + $0x10] sm:$0xff] }
 0x35b   :  { %v10029_v25 = vpop.permute.xlu0 %1208  ;;  %v2545_v7 = vmul.f32 %v9934_v50, %v12518_v43  ;;  %6180 = vpow2.f32 %v5336_v57  ;;  %v10051_v44 = vmul.f32 %v9699_v49, %v7844_v15  ;;  %v10054_v59 = vmul.f32 %v6568_v13, %v12480_v55 }
 0x35c   :  { %v10036_v33 = vpop.permute.xlu1 %1522  ;;  %v2723_v14 = vadd.f32 %v2715_v3, %v2707_v40  ;;  %v10060_v35 = vmul.f32 %v9699_v49, %v7847_v22  ;;  %6182 = vpow2.f32 %v5352_v12  ;;  %v2503_v28 = vmul.f32 %v9593_v61, %v7863_v32  ;;  %v12675_v12 = vld [vmem:[#allocation55_spill] sm:$0xff] }
 0x35d   :  { %1648 = vrot.lane.b32.xlu0 %v1628_v8, %s6642_s26  ;;  %12671 = vst [vmem:[#allocation174_spill] sm:$0xff] %v10051_v44  ;;  %12672 = vst [vmem:[#allocation175_spill] sm:$0xff] %v10054_v59  ;;  %v2553_v5 = vadd.f32 %v2545_v7, %v2536_v54  ;;  %v1226_v57 = vsel %vm139_vm4, %v9960_v48, %v12556_v11  ;;  %v10070_v8 = vmul.f32 %v6568_v13, %v12455_v30  ;;  %v6569_v48 = vld [vmem:[#allocation2 + $0x18] sm:$0xff]  ;;  %v12681_v59 = vld [vmem:[#allocation63_spill] sm:$0xff] }
 0x35e   :  { %1246 = vrot.lane.b32.xlu1 %v1227_v24, %s6642_s26  ;;  %12673 = vst [vmem:[#allocation176_spill] sm:$0xff] %v10060_v35  ;;  %v2563_v40 = vadd.f32 %v2555_v63, %v12496_v31  ;;  %v2674_v3 = vmul.f32 %v9593_v61, %v7844_v15  ;;  %v10075_v24 = vpop.eup %6172  ;;  %v1341_v54 = vsel %vm139_vm4, %v9976_v4, %v12675_v12  ;;  %v3251_v61 = vadd.f32 1.0, %v6167_v10 }
 0x35f   :  { %v10056_v39 = vpop.permute.xlu0 %1216  ;;  %12674 = vst [vmem:[#allocation177_spill] sm:$0xff] %v10070_v8  ;;  %v10083_v11 = vmul.f32 %v9879_v19, %v7844_v15  ;;  %v10086_v7 = vmul.f32 %v6569_v48, %v12480_v55  ;;  %v2512_v63 = vmul.f32 %v9541_v42, %v7832_v34  ;;  %v10093_v13 = vmul.f32 %v9879_v19, %v7847_v22 }
 0x360   :  { %v10067_v1 = vpop.permute.xlu1 %1530  ;;  %v2731_v4 = vadd.f32 %v2723_v14, %v12496_v31  ;;  %v10101_v18 = vmul.f32 %v6569_v48, %v12455_v30  ;;  %v2673_v10 = vmul.f32 %v9474_v47, %v7844_v15  ;;  %v1231_v48 = vsel %vm139_vm4, %v10009_v26, %v12681_v59 }
 0x361   :  { %1244 = vrot.lane.b32.xlu0 %v1226_v57, %s6642_s26  ;;  %12676 = vst [vmem:[#allocation55_spill] sm:$0xff] %v10083_v11  ;;  %12677 = vst [vmem:[#allocation178_spill] sm:$0xff] %v10086_v7  ;;  %v2682_v57 = vmul.f32 %v9541_v42, %v12655_v56  ;;  %v2561_v7 = vadd.f32 %v2553_v5, %v12496_v31  ;;  %v2520_v34 = vadd.f32 %v2512_v63, %v2503_v28  ;;  %v12682_v5 = vld [vmem:[#allocation37_spill] sm:$0xff] }
 0x362   :  { %1362 = vrot.lane.b32.xlu1 %v1341_v54, %s6643_s27  ;;  %12678 = vst [vmem:[#allocation179_spill] sm:$0xff] %v10093_v13  ;;  %12679 = vst [vmem:[#allocation180_spill] sm:$0xff] %v10101_v18  ;;  %v12680_v54 = vld [vmem:[#allocation58_spill] sm:$0xff]  ;;  %v5274_v42 = vmul.f32 -1.442695, %v2563_v40  ;;  %v2529_v28 = vmul.f32 %v12682_v5, %v12473_v37  ;;  %v2681_v47 = vmul.f32 %v9638_v29, %v12655_v56  ;;  %6184 = vrcp.f32 %v3251_v61  ;;  %v12684_v18 = vld [vmem:[#allocation59_spill] sm:$0xff] }
 0x363   :  { %v10098_v58 = vpop.permute.xlu0 %1324  ;;  %v1230_v13 = vsel %vm139_vm4, %v9999_v51, %v12680_v54  ;;  %v2690_v8 = vadd.f32 %v2682_v57, %v2674_v3  ;;  %v2697_v51 = vmul.f32 %v9654_v45, %v12480_v55  ;;  %v2596_v40 = vadd.f32 1.0, %v6171_v23 }
 0x364   :  { %v1327_v11 = vpop.permute.xlu1 %1326  ;;  %v5290_v3 = vmul.f32 -1.442695, %v2731_v4  ;;  %v2698_v63 = vmul.f32 %v12682_v5, %v12480_v55  ;;  %v10128_v59 = vmul.f32 %v9784_v20, %v7844_v15  ;;  %v2537_v57 = vadd.f32 %v2529_v28, %v2520_v34  ;;  %v12685_v4 = vld [vmem:[#allocation102_spill] sm:$0xff]  ;;  %v12689_v28 = vld [vmem:[#allocation85_spill] sm:$0xff] }
 0x365   :  { %1252 = vrot.lane.b32.xlu0 %v1230_v13, %s6642_s26  ;;  %v5272_v13 = vmul.f32 -1.442695, %v2561_v7  ;;  %v2689_v54 = vadd.f32 %v2681_v47, %v2673_v10  ;;  %v6175_v14 = vpop.eup %6174  ;;  %v1224_v45 = vsel %vm139_vm4, %v10029_v25, %v12684_v18  ;;  %6186 = vpow2.f32 %v5274_v42  ;;  %v12688_v7 = vld [vmem:[#allocation73_spill] sm:$0xff]  ;;  %v12690_v25 = vld [vmem:[#allocation14_spill] sm:$0xff] }
 0x366   :  { %1254 = vrot.lane.b32.xlu1 %v1231_v48, %s6642_s26  ;;  %12683 = vst [vmem:[#allocation58_spill] sm:$0xff] %v10128_v59  ;;  %v2706_v23 = vadd.f32 %v2698_v63, %v2690_v8  ;;  %v12686_v48 = vld [vmem:[#allocation78_spill] sm:$0xff]  ;;  %v10135_v44 = vpop.eup %6176  ;;  %v1537_v59 = vsel %vm139_vm4, %v10036_v33, %v12687_v0  ;;  %v2546_v34 = vmul.f32 %v12688_v7, %v12518_v43  ;;  %6188 = vpow2.f32 %v5290_v3 }
 0x367   :  { %v10124_v26 = vpop.permute.xlu0 %1332  ;;  %v1889_v35 = vadd.f32 %v12686_v48, %v12685_v4  ;;  %v2705_v10 = vadd.f32 %v2697_v51, %v2689_v54  ;;  %v2058_v18 = vadd.f32 %v12690_v25, %v12689_v28  ;;  %v6179_v42 = vpop.eup %6178  ;;  %v6570_v8 = vld [vmem:[#allocation2] sm:$0xff]  ;;  %v2714_v33 = vmul.f32 %v12688_v7, %v12487_v6  ;;  %v12694_v25 = vld [vmem:[#allocation35_spill] sm:$0xff] }
 0x368   :  { %v1335_v61 = vpop.permute.xlu1 %1334  ;;  %v10147_v47 = vmul.f32 %v6570_v8, %v12480_v55  ;;  %v12692_v63 = vld [vmem:[#allocation38_spill] sm:$0xff]  ;;  %v6181_v48 = vpop.eup %6180  ;;  %v3419_v51 = vadd.f32 1.0, %v6175_v14  ;;  %6190 = vpow2.f32 %v5272_v13  ;;  %v2554_v54 = vadd.f32 %v2546_v34, %v2537_v57 }
 0x369   :  { %1240 = vrot.lane.b32.xlu0 %v1224_v45, %s6642_s26  ;;  %v12693_v45 = vld [vmem:[#allocation117_spill] sm:$0xff]  ;;  %v6183_v28 = vpop.eup %6182  ;;  %v1228_v3 = vsel %vm139_vm4, %v10056_v39, %v12694_v25  ;;  %v10162_v7 = vmul.f32 %v9784_v20, %v7847_v22  ;;  %v1339_v14 = vsel %vm139_vm4, %v1327_v11, %v12696_v52  ;;  %v2764_v13 = vadd.f32 1.0, %v6179_v42  ;;  %v12700_v42 = vld [vmem:[#allocation119_spill] sm:$0xff] }
 0x36a   :  { %1554 = vrot.lane.b32.xlu1 %v1537_v59, %s6642_s26  ;;  %12691 = vst [vmem:[#allocation63_spill] sm:$0xff] %v10147_v47  ;;  %v1888_v4 = vadd.f32 %v12693_v45, %v12692_v63  ;;  %v2713_v59 = vmul.f32 %v9934_v50, %v12487_v6  ;;  %v2722_v63 = vadd.f32 %v2714_v33, %v2706_v23  ;;  %6192 = vrcp.f32 %v2596_v40 }
 0x36b   :  { %v10153_v43 = vpop.permute.xlu0 %1524  ;;  %12695 = vst [vmem:[#allocation37_spill] sm:$0xff] %v10162_v7  ;;  %v1897_v45 = vadd.f32 %v1889_v35, %v12496_v31  ;;  %v2066_v34 = vadd.f32 %v2058_v18, %v12496_v31  ;;  %v3249_v39 = vadd.f32 1.0, %v6181_v48  ;;  %v12698_v7 = vld [vmem:[#allocation107_spill] sm:$0xff]  ;;  %6194 = vrcp.f32 %v3419_v51 }
 0x36c   :  { %v1527_v47 = vpop.permute.xlu1 %1526  ;;  %v2721_v57 = vadd.f32 %v2713_v59, %v2705_v10  ;;  %v1896_v25 = vadd.f32 %v1888_v4, %v12496_v31  ;;  %v1887_v23 = vadd.f32 %v12698_v7, %v12697_v38  ;;  %v3417_v35 = vadd.f32 1.0, %v6183_v28  ;;  %v12701_v59 = vld [vmem:[#allocation49_spill] sm:$0xff] }
 0x36d   :  { %1248 = vrot.lane.b32.xlu0 %v1228_v3, %s6642_s26  ;;  %v2562_v11 = vadd.f32 %v2554_v54, %v12496_v31  ;;  %v12699_v3 = vld [vmem:[#allocation83_spill] sm:$0xff]  ;;  %v1338_v18 = vsel %vm139_vm4, %v10098_v58, %v12701_v59  ;;  %v2730_v48 = vadd.f32 %v2722_v63, %v12496_v31  ;;  %v5211_v4 = vmul.f32 -1.442695, %v1897_v45  ;;  %v12704_v7 = vld [vmem:[#allocation25_spill] sm:$0xff] }
 0x36e   :  { %1358 = vrot.lane.b32.xlu1 %v1339_v14, %s6643_s27  ;;  %v2057_v10 = vadd.f32 %v12700_v42, %v12699_v3  ;;  %v12702_v14 = vld [vmem:[#allocation88_spill] sm:$0xff]  ;;  %v1343_v51 = vsel %vm139_vm4, %v1335_v61, %v12704_v7  ;;  %6196 = vrcp.f32 %v2764_v13  ;;  %v2729_v54 = vadd.f32 %v2721_v57, %v12496_v31  ;;  %v10197_v61 = vld [vmem:[#allocation2 + $0xb8] sm:$0xff] }
 0x36f   :  { %v10173_v33 = vpop.permute.xlu0 %1532  ;;  %v1886_v38 = vadd.f32 %v12703_v27, %v12702_v14  ;;  %v5227_v28 = vmul.f32 -1.442695, %v2066_v34  ;;  %6198 = vrcp.f32 %v3249_v39  ;;  %v10190_v58 = vmul.f32 %v6570_v8, %v12455_v30  ;;  %v10193_v3 = vpop.eup %6184  ;;  %v12707_v39 = vld [vmem:[#allocation54_spill] sm:$0xff] }
 0x370   :  { %v1535_v40 = vpop.permute.xlu1 %1534  ;;  %v5210_v63 = vmul.f32 -1.442695, %v1896_v25  ;;  %v1895_v45 = vadd.f32 %v1887_v23, %v12496_v31  ;;  %6200 = vrcp.f32 %v3417_v35  ;;  %v10201_v13 = vmul.f32 %v10197_v61, %v7844_v15 }
 0x371   :  { %1356 = vrot.lane.b32.xlu0 %v1338_v18, %s6643_s27  ;;  %12705 = vst [vmem:[#allocation59_spill] sm:$0xff] %v10190_v58  ;;  %v5273_v57 = vmul.f32 -1.442695, %v2562_v11  ;;  %v2065_v34 = vadd.f32 %v2057_v10, %v12496_v31  ;;  %v1342_v8 = vsel %vm139_vm4, %v10124_v26, %v12707_v39  ;;  %v5289_v23 = vmul.f32 -1.442695, %v2730_v48  ;;  %v12708_v18 = vld [vmem:[#allocation41_spill] sm:$0xff] }
 0x372   :  { %1366 = vrot.lane.b32.xlu1 %v1343_v51, %s6643_s27  ;;  %12706 = vst [vmem:[#allocation102_spill] sm:$0xff] %v10201_v13  ;;  %6202 = vpow2.f32 %v5211_v4  ;;  %v1894_v42 = vadd.f32 %v1886_v38, %v12496_v31  ;;  %v6187_v35 = vpop.eup %6186  ;;  %v1539_v14 = vsel %vm139_vm4, %v1527_v47, %v12708_v18  ;;  %v10215_v11 = vmul.f32 %v9489_v46, %v12480_v55 }
 0x373   :  { %v10195_v27 = vpop.permute.xlu0 %1320  ;;  %v5288_v10 = vmul.f32 -1.442695, %v2729_v54  ;;  %6204 = vpow2.f32 %v5227_v28  ;;  %v10222_v48 = vmul.f32 %v10197_v61, %v7847_v22  ;;  %v5209_v4 = vmul.f32 -1.442695, %v1895_v45  ;;  %v6189_v47 = vpop.eup %6188 }
 0x374   :  { %v10207_v25 = vpop.permute.xlu1 %934  ;;  %12709 = vst [vmem:[#allocation78_spill] sm:$0xff] %v10215_v11  ;;  %6206 = vpow2.f32 %v5210_v63  ;;  %v10228_v51 = vmul.f32 %v9489_v46, %v12455_v30  ;;  %v10232_v54 = vmul.f32 %v9681_v60, %v7844_v15  ;;  %v5226_v28 = vmul.f32 -1.442695, %v2065_v34 }
 0x375   :  { %1364 = vrot.lane.b32.xlu0 %v1342_v8, %s6643_s27  ;;  %12710 = vst [vmem:[#allocation61_spill] sm:$0xff] %v10222_v48  ;;  %6208 = vpow2.f32 %v5273_v57  ;;  %v6191_v8 = vpop.eup %6190  ;;  %v10241_v45 = vmul.f32 %v9770_v41, %v12480_v55  ;;  %v5208_v46 = vmul.f32 -1.442695, %v1894_v42  ;;  %v2595_v57 = vadd.f32 1.0, %v6187_v35  ;;  %v12719_v42 = vld [vmem:[#allocation108_spill] sm:$0xff] }
 0x376   :  { %1558 = vrot.lane.b32.xlu1 %v1539_v14, %s6642_s26  ;;  %12711 = vst [vmem:[#allocation73_spill] sm:$0xff] %v10228_v51  ;;  %12712 = vst [vmem:[#allocation85_spill] sm:$0xff] %v10232_v54  ;;  %v12713_v14 = vld [vmem:[#allocation47_spill] sm:$0xff]  ;;  %6210 = vpow2.f32 %v5289_v23  ;;  %v12715_v51 = vld [vmem:[#allocation52_spill] sm:$0xff]  ;;  %v10248_v34 = vmul.f32 %v9681_v60, %v7847_v22  ;;  %v10277_v35 = vmul.f32 %v7826_v16, %v12687_v0 }
 0x377   :  { %v10224_v38 = vpop.permute.xlu0 %1328  ;;  %v1538_v26 = vsel %vm139_vm4, %v10153_v43, %v12713_v14  ;;  %12714 = vst [vmem:[#allocation14_spill] sm:$0xff] %v10241_v45  ;;  %v1543_v11 = vsel %vm139_vm4, %v1535_v40, %v12715_v51  ;;  %6212 = vpow2.f32 %v5288_v10  ;;  %v10253_v43 = vmul.f32 %v9770_v41, %v12455_v30  ;;  %v12718_v23 = vld [vmem:[#allocation75_spill] sm:$0xff]  ;;  %v10257_v40 = vpop.eup %6192  ;;  %v12720_v10 = vld [vmem:[#allocation106_spill] sm:$0xff] }
 0x378   :  { %v10237_v63 = vpop.permute.xlu1 %930  ;;  %12716 = vst [vmem:[#allocation38_spill] sm:$0xff] %v10248_v34  ;;  %v2763_v45 = vadd.f32 1.0, %v6189_v47  ;;  %6214 = vpow2.f32 %v5209_v4  ;;  %v2056_v54 = vadd.f32 %v12719_v42, %v12718_v23  ;;  %v2593_v34 = vadd.f32 1.0, %v6191_v8  ;;  %v10265_v13 = vpop.eup %6194  ;;  %v12722_v41 = vld [vmem:[#allocation27_spill] sm:$0xff]  ;;  %12723 = vst [vmem:[#allocation35_spill] sm:$0xff] %v10277_v35 }
 0x379   :  { %1556 = vrot.lane.b32.xlu0 %v1538_v26, %s6642_s26  ;;  %12717 = vst [vmem:[#allocation117_spill] sm:$0xff] %v10253_v43  ;;  %6216 = vpow2.f32 %v5226_v28  ;;  %v1542_v4 = vsel %vm139_vm4, %v10173_v33, %v12722_v41  ;;  %v6572_v23 = vld [vmem:[#allocation2 + $0x48] sm:$0xff]  ;;  %v12724_v28 = vld [vmem:[#allocation28_spill] sm:$0xff]  ;;  %v10285_v33 = vmul.f32 %v9638_v29, %v7844_v15  ;;  %v12798_v43 = vld [vmem:[#allocation18_spill] sm:$0xff] }
 0x37a   :  { %1566 = vrot.lane.b32.xlu1 %v1543_v11, %s6642_s26  ;;  %v12721_v11 = vld [vmem:[#allocation68_spill] sm:$0xff]  ;;  %v10273_v42 = vmul.f32 %v6572_v23, %v7856_v17  ;;  %6218 = vpow2.f32 %v5208_v46  ;;  %v1541_v8 = vsel %vm139_vm4, %v10067_v1, %v12724_v28  ;;  %v10298_v1 = vmul.f32 %v9638_v29, %v7847_v22  ;;  %v12732_v22 = vld [vmem:[#allocation42_spill] sm:$0xff] }
 0x37b   :  { %v10259_v26 = vpop.permute.xlu0 %1520  ;;  %v2055_v48 = vadd.f32 %v12721_v11, %v12720_v10  ;;  %6220 = vrcp.f32 %v2595_v57  ;;  %12725 = vst [vmem:[#allocation44_spill] sm:$0xff] %v10285_v33  ;;  %v10289_v10 = vmul.f32 %v9934_v50, %v12480_v55  ;;  %v10291_v11 = vpop.eup %6196  ;;  %v2064_v46 = vadd.f32 %v2056_v54, %v12496_v31 }
 0x37c   :  { %v10270_v47 = vpop.permute.xlu1 %942  ;;  %6222 = vrcp.f32 %v2763_v45  ;;  %12727 = vst [vmem:[#allocation107_spill] sm:$0xff] %v10298_v1  ;;  %v10301_v57 = vpop.eup %6198  ;;  %v10307_v23 = vmul.f32 %v9934_v50, %v12455_v30  ;;  %v1336_v54 = vsel %vm139_vm4, %v10195_v27, %v12732_v22  ;;  %v10325_v50 = vmul.f32 %v9879_v19, %v12480_v55  ;;  %v12738_v19 = vld [vmem:[#allocation20_spill] sm:$0xff] }
 0x37d   :  { %1564 = vrot.lane.b32.xlu0 %v1542_v4, %s6642_s26  ;;  %12726 = vst [vmem:[#allocation39_spill] sm:$0xff] %v10289_v10  ;;  %v12729_v10 = vld [vmem:[#allocation29_spill] sm:$0xff]  ;;  %6224 = vrcp.f32 %v2593_v34  ;;  %v2063_v45 = vadd.f32 %v2055_v48, %v12496_v31  ;;  %v10314_v0 = vpop.eup %6200  ;;  %v10338_v27 = vmul.f32 %v12682_v5, %v7856_v17  ;;  %v10342_v35 = vmul.f32 %v7826_v16, %v12724_v28  ;;  %v12743_v5 = vld [vmem:[#allocation32_spill] sm:$0xff] }
 0x37e   :  { %1562 = vrot.lane.b32.xlu1 %v1541_v8, %s6642_s26  ;;  %12728 = vst [vmem:[#allocation83_spill] sm:$0xff] %v10307_v23  ;;  %v10311_v8 = vmul.f32 %v7844_v15, %v12729_v10  ;;  %12731 = vst [vmem:[#allocation49_spill] sm:$0xff] %v10314_v0  ;;  %v12734_v10 = vld [vmem:[#allocation24_spill] sm:$0xff]  ;;  %v10346_v22 = vmul.f32 %v7844_v15, %v12738_v19  ;;  %v10362_v28 = vmul.f32 %v10197_v61, %v12480_v55 }
 0x37f   :  { %v10303_v4 = vpop.permute.xlu0 %1528  ;;  %12733 = vst [vmem:[#allocation88_spill] sm:$0xff] %v10325_v50  ;;  %v10329_v34 = vmul.f32 %v7844_v15, %v12734_v10  ;;  %v6203_v48 = vpop.eup %6202  ;;  %12737 = vst [vmem:[#allocation54_spill] sm:$0xff] %v10342_v35  ;;  %v5225_v19 = vmul.f32 -1.442695, %v2064_v46  ;;  %v12746_v50 = vld [vmem:[#allocation26_spill] sm:$0xff]  ;;  %v12749_v61 = vld [vmem:[#allocation56_spill] sm:$0xff]  ;;  %v12799_v58 = vpack.c.bf16 %v12798_v43, %v12798_v43 }
 0x380   :  { %12730 = vst [vmem:[#allocation119_spill] sm:$0xff] %v10311_v8  ;;  %v10319_v1 = vpop.permute.xlu1 %938  ;;  %v10334_v8 = vmul.f32 %v9699_v49, %v12480_v55  ;;  %12739 = vst [vmem:[#allocation41_spill] sm:$0xff] %v10346_v22  ;;  %v6205_v10 = vpop.eup %6204  ;;  %v10354_v49 = vmul.f32 %v9681_v60, %v12480_v55  ;;  %v10372_v60 = vmul.f32 %v9784_v20, %v12480_v55  ;;  %v1929_v20 = vadd.f32 1.0, %v6203_v48  ;;  %v12757_v48 = vld [vmem:[#allocation127_spill] sm:$0xff] }
 0x381   :  { %12735 = vst [vmem:[#allocation122_spill] sm:$0xff] %v10329_v34  ;;  %1352 = vrot.lane.b32.xlu0 %v1336_v54, %s6643_s27  ;;  %v12740_v34 = vld [vmem:[#allocation43_spill] sm:$0xff]  ;;  %12745 = vst [vmem:[#allocation75_spill] sm:$0xff] %v10362_v28  ;;  %v6207_v22 = vpop.eup %6206  ;;  %v1340_v46 = vsel %vm139_vm4, %v10224_v38, %v12749_v61  ;;  %v10398_v38 = vmul.f32 %v7826_v16, %v12708_v18  ;;  %6226 = vpow2.f32 %v5225_v19 }
 0x382   :  { %12736 = vst [vmem:[#allocation25_spill] sm:$0xff] %v10334_v8  ;;  %v12741_v54 = vpack.c.bf16 %v12740_v34, %v12740_v34  ;;  %12742 = vst [vmem:[#allocation47_spill] sm:$0xff] %v10354_v49  ;;  %v10358_v8 = vmul.f32 %v7844_v15, %v12743_v5  ;;  %v10368_v34 = vmul.f32 %v7844_v15, %v12746_v50  ;;  %v5224_v5 = vmul.f32 -1.442695, %v2063_v45  ;;  %v12750_v49 = vld [vmem:[#allocation45_spill] sm:$0xff]  ;;  %v12753_v45 = vld [vmem:[#allocation158_spill] sm:$0xff] }
 0x383   :  { %v10364_v35 = vpop.permute.xlu0 %932  ;;  %12748 = vst [vmem:[#allocation106_spill] sm:$0xff] %v10372_v60  ;;  %v10383_v23 = vmul.f32 %v7844_v15, %v12750_v49  ;;  %v10387_v50 = vmul.f32 %v9638_v29, %v12480_v55  ;;  %12754 = vst [vmem:[#allocation28_spill] sm:$0xff] %v10398_v38  ;;  %v2098_v15 = vadd.f32 1.0, %v6205_v10  ;;  %v12755_v55 = vld [vmem:[#allocation79_spill] sm:$0xff]  ;;  %v10416_v10 = vmul.f32 %v9755_v36, %v7856_v17  ;;  %v12760_v38 = vld [vmem:[#allocation40_spill] sm:$0xff] }
 0x384   :  { %2639 = vrot.lane.b32.xlu1 %v12741_v54, %s6641_s15  ;;  %12744 = vst [vmem:[#allocation52_spill] sm:$0xff] %v10358_v8  ;;  %12747 = vst [vmem:[#allocation108_spill] sm:$0xff] %v10368_v34  ;;  %v10376_v54 = vmul.f32 %v12455_v30, %v12667_v21  ;;  %v6209_v8 = vpop.eup %6208  ;;  %v1135_v28 = vpop.permute.xlu1 %1134  ;;  %v10394_v34 = vmul.f32 %v12753_v45, %v7856_v17  ;;  %v12756_v29 = vpack.c.bf16 %v12755_v55, %v12755_v55 }
 0x385   :  { %12751 = vst [vmem:[#allocation68_spill] sm:$0xff] %v10383_v23  ;;  %12752 = vst [vmem:[#allocation27_spill] sm:$0xff] %v10387_v50  ;;  %v6211_v60 = vpop.eup %6210  ;;  %1360 = vrot.lane.b32.xlu0 %v1340_v46, %s6643_s27  ;;  %v10406_v46 = vmul.f32 %v12757_v48, %v7856_v17  ;;  %v10410_v21 = vmul.f32 %v7826_v16, %v12713_v14  ;;  %v1928_v45 = vadd.f32 1.0, %v6207_v22  ;;  %6228 = vpow2.f32 %v5224_v5  ;;  %v12791_v50 = vld [vmem:[#allocation129_spill] sm:$0xff] }
 0x386   :  { %v6213_v49 = vpop.eup %6212  ;;  %v10420_v55 = vmul.f32 %v7826_v16, %v12715_v51  ;;  %v1536_v14 = vsel %vm139_vm4, %v10259_v26, %v12760_v38  ;;  %v10427_v19 = vmul.f32 %v9725_v62, %v7856_v17  ;;  %6230 = vrcp.f32 %v1929_v20  ;;  %v12763_v38 = vld [vmem:[#allocation109_spill] sm:$0xff]  ;;  %v12783_v17 = vld [vmem:[#allocation111_spill] sm:$0xff] }
 0x387   :  { %12758 = vst [vmem:[#allocation29_spill] sm:$0xff] %v10410_v21  ;;  %v6215_v61 = vpop.eup %6214  ;;  %v10412_v18 = vpop.permute.xlu0 %940  ;;  %v2762_v21 = vadd.f32 1.0, %v6211_v60  ;;  %v2761_v5 = vadd.f32 1.0, %v6213_v49  ;;  %6232 = vrcp.f32 %v2098_v15  ;;  %v12764_v62 = vpack.c.bf16 %v12763_v38, %v12763_v38  ;;  %v12794_v23 = vld [vmem:[#allocation81_spill] sm:$0xff] }
 0x388   :  { %2807 = vrot.lane.b32.xlu1 %v12756_v29, %s6644_s21  ;;  %12759 = vst [vmem:[#allocation24_spill] sm:$0xff] %v10420_v55  ;;  %v2594_v29 = vadd.f32 1.0, %v6209_v8  ;;  %v6217_v48 = vpop.eup %6216  ;;  %v1131_v22 = vpop.permute.xlu1 %1130  ;;  %v10434_v8 = vmul.f32 %v7826_v16, %v12722_v41  ;;  %v10444_v60 = vmul.f32 %v12455_v30, %v12696_v52  ;;  %v10448_v20 = vmul.f32 %v12455_v30, %v12701_v59  ;;  %v12771_v16 = vld [vmem:[#allocation48_spill] sm:$0xff] }
 0x389   :  { %v6219_v36 = vpop.eup %6218  ;;  %1552 = vrot.lane.b32.xlu0 %v1536_v14, %s6642_s26  ;;  %6234 = vrcp.f32 %v1928_v45  ;;  %v1927_v41 = vadd.f32 1.0, %v6215_v61  ;;  %v953_v49 = vsel %vm229_vm7, %v10237_v63, 0.0  ;;  %v10457_v38 = vmul.f32 %v12455_v30, %v12704_v7 }
 0x38a   :  { %12761 = vst [vmem:[#allocation20_spill] sm:$0xff] %v10434_v8  ;;  %v10436_v26 = vpop.eup %6220  ;;  %12765 = vst [vmem:[#allocation32_spill] sm:$0xff] %v10444_v60  ;;  %6236 = vrcp.f32 %v2594_v29  ;;  %v2097_v52 = vadd.f32 1.0, %v6217_v48  ;;  %v1540_v59 = vsel %vm139_vm4, %v10303_v4, %v12771_v16  ;;  %v10466_v45 = vmul.f32 %v12455_v30, %v12707_v39  ;;  %v12774_v4 = vld [vmem:[#allocation17_spill] sm:$0xff] }
 0x38b   :  { %12762 = vst [vmem:[#allocation43_spill] sm:$0xff] %v10436_v26  ;;  %12766 = vst [vmem:[#allocation26_spill] sm:$0xff] %v10448_v20  ;;  %v10450_v14 = vpop.eup %6222  ;;  %v929_v51 = vpop.permute.xlu0 %928  ;;  %6238 = vrcp.f32 %v2762_v21  ;;  %v1926_v63 = vadd.f32 1.0, %v6219_v36  ;;  %v955_v7 = vsel %vm229_vm7, %v10207_v25, 0.0  ;;  %v10476_v48 = vmul.f32 %v12455_v30, %v12675_v12  ;;  %v12775_v39 = vld [vmem:[#allocation65_spill] sm:$0xff]  ;;  %v12831_v26 = vld [vmem:[#allocation98_spill] sm:$0xff] }
 0x38c   :  { %1976 = vrot.lane.b32.xlu1 %v12764_v62, %s6641_s15  ;;  %12767 = vst [vmem:[#allocation45_spill] sm:$0xff] %v10450_v14  ;;  %12769 = vst [vmem:[#allocation158_spill] sm:$0xff] %v10457_v38  ;;  %v10459_v62 = vpop.eup %6224  ;;  %v1143_v61 = vpop.permute.xlu1 %1142  ;;  %6240 = vrcp.f32 %v2761_v5  ;;  %v2173_v16 = vmul.f32 %v12774_v4, %v953_v49  ;;  %v12776_v21 = vpack.c.bf16 %v12775_v39, %v12775_v39  ;;  %v12778_v5 = vld [vmem:[#allocation16_spill] sm:$0xff] }
 0x38d   :  { %12770 = vst [vmem:[#allocation79_spill] sm:$0xff] %v10459_v62  ;;  %12772 = vst [vmem:[#allocation127_spill] sm:$0xff] %v10466_v45  ;;  %1560 = vrot.lane.b32.xlu0 %v1540_v59, %s6642_s26  ;;  %6242 = vrcp.f32 %v1927_v41  ;;  %v1155_v59 = vsel %vm188_vm5, %v1135_v28, 0.0  ;;  %v10494_v39 = vmul.f32 %v12774_v4, %v955_v7  ;;  %v957_v41 = vsel %vm229_vm7, %v10319_v1, 0.0  ;;  %s6645_s26 = smov 96  }
 0x38e   :  { %12773 = vst [vmem:[#allocation109_spill] sm:$0xff] %v10476_v48  ;;  %6244 = vrcp.f32 %v2097_v52  ;;  %v10503_v36 = vmul.f32 %v12473_v37, %v955_v7  ;;  %v10506_v25 = vmul.f32 %v12778_v5, %v955_v7  ;;  %v10509_v52 = vmul.f32 %v12473_v37, %v953_v49  ;;  %v10531_v38 = vpop.eup %6226 }
 0x38f   :  { %v937_v12 = vpop.permute.xlu0 %936  ;;  %6246 = vrcp.f32 %v1926_v63  ;;  %v10512_v29 = vmul.f32 %v12778_v5, %v953_v49  ;;  %v954_v1 = vsel %vm229_vm7, %v10364_v35, 0.0  ;;  %v12782_v63 = vld [vmem:[#allocation31_spill] sm:$0xff]  ;;  %v1153_v7 = vsel %vm188_vm5, %v1131_v22, 0.0 }
 0x390   :  { %2145 = vrot.lane.b32.xlu1 %v12776_v21, %s6644_s21  ;;  %v959_v21 = vsel %vm229_vm7, %v10270_v47, 0.0  ;;  %v1139_v28 = vpop.permute.xlu1 %1138  ;;  %12777 = vst [vmem:[#allocation23_spill] sm:$0xff] %v10503_v36  ;;  %12779 = vst [vmem:[#allocation65_spill] sm:$0xff] %v10506_v25  ;;  %v12780_v47 = vld [vmem:[#allocation74_spill] sm:$0xff]  ;;  %v1685_v48 = vmul.f32 %v12782_v63, %v1155_v59  ;;  %v12784_v45 = vpack.c.bf16 %v12783_v17, %v12783_v17 }
 0x391   :  { %v12781_v30 = vpack.c.bf16 %v12780_v47, %v12780_v47  ;;  %v10529_v49 = vadd.f32 %v10273_v42, %v2173_v16  ;;  %12786 = vst [vmem:[#allocation31_spill] sm:$0xff] %v10531_v38  ;;  %v10537_v35 = vmul.f32 %v12473_v37, %v959_v21  ;;  %v10540_v47 = vmul.f32 %v12778_v5, %v959_v21 }
 0x392   :  { %v2177_v22 = vmul.f32 %v12774_v4, %v957_v41  ;;  %v10543_v8 = vpop.eup %6228  ;;  %v10546_v17 = vmul.f32 %v12473_v37, %v957_v41  ;;  %v10549_v16 = vmul.f32 %v12778_v5, %v957_v41  ;;  %v958_v42 = vsel %vm229_vm7, %v10412_v18, 0.0 }
 0x393   :  { %2637 = vrot.lane.b32.xlu0 %v12781_v30, %s6641_s15  ;;  %12785 = vst [vmem:[#allocation74_spill] sm:$0xff] %v10529_v49  ;;  %v10534_v30 = vmul.f32 %v12774_v4, %v959_v21  ;;  %12787 = vst [vmem:[#allocation111_spill] sm:$0xff] %v10537_v35  ;;  %v1133_v20 = vpop.permute.xlu0 %1132  ;;  %v10556_v38 = vpop.eup %6230  ;;  %v10559_v60 = vmul.f32 %v12774_v4, %v954_v1  ;;  %v10565_v55 = vmul.f32 %v12778_v5, %v954_v1 }
 0x394   :  { %1972 = vrot.lane.b32.xlu1 %v12784_v45, %s6641_s15  ;;  %12788 = vst [vmem:[#allocation181_spill] sm:$0xff] %v10540_v47  ;;  %12789 = vst [vmem:[#allocation182_spill] sm:$0xff] %v10543_v8  ;;  %v1159_v45 = vsel %vm188_vm5, %v1143_v61, 0.0  ;;  %v1043_v21 = vpop.permute.xlu1 %1042  ;;  %v10562_v8 = vmul.f32 %v12473_v37, %v954_v1  ;;  %v1683_v41 = vmul.f32 %v12782_v63, %v1153_v7  ;;  %v10572_v61 = vpop.eup %6232  ;;  %v952_v1 = vsel %vm229_vm7, %v929_v51, 0.0  ;;  %v12803_v47 = vld [vmem:[#allocation70_spill] sm:$0xff] }
 0x395   :  { %12790 = vst [vmem:[#allocation183_spill] sm:$0xff] %v10556_v38  ;;  %v12792_v18 = vpack.c.bf16 %v12791_v50, %v12791_v50  ;;  %12793 = vst [vmem:[#allocation129_spill] sm:$0xff] %v10572_v61  ;;  %v10575_v38 = vadd.f32 %v1685_v48, %v12794_v23  ;;  %v10578_v33 = vmul.f32 %v12487_v6, %v1155_v59 }
 0x396   :  { %v10581_v49 = vmul.f32 %v7823_v2, %v1155_v59  ;;  %v10589_v50 = vpop.eup %6234  ;;  %v10595_v23 = vmul.f32 %v12473_v37, %v958_v42  ;;  %v1689_v48 = vmul.f32 %v12782_v63, %v1159_v45  ;;  %v1065_v59 = vsel %vm229_vm7, %v1043_v21, 0.0 }
 0x397   :  { %2805 = vrot.lane.b32.xlu0 %v12792_v18, %s6644_s21  ;;  %12795 = vst [vmem:[#allocation81_spill] sm:$0xff] %v10575_v38  ;;  %12796 = vst [vmem:[#allocation184_spill] sm:$0xff] %v10578_v33  ;;  %v10592_v18 = vmul.f32 %v12774_v4, %v958_v42  ;;  %v1141_v61 = vpop.permute.xlu0 %1140  ;;  %v10600_v51 = vpop.eup %6236  ;;  %v10603_v38 = vmul.f32 %v12778_v5, %v958_v42  ;;  %v10609_v43 = vmul.f32 %v7823_v2, %v1153_v7 }
 0x398   :  { %12797 = vst [vmem:[#allocation185_spill] sm:$0xff] %v10581_v49  ;;  %2141 = vrot.lane.b32.xlu1 %v12799_v58, %s6644_s21  ;;  %12800 = vst [vmem:[#allocation18_spill] sm:$0xff] %v10589_v50  ;;  %v10606_v58 = vmul.f32 %v12487_v6, %v1153_v7  ;;  %v1154_v50 = vsel %vm188_vm5, %v1133_v20, 0.0  ;;  %v1051_v49 = vpop.permute.xlu1 %1050  ;;  %v10613_v33 = vpop.eup %6238  ;;  %v1691_v21 = vadd.f32 %v1683_v41, %v12803_v47  ;;  %v10621_v42 = vsel %vm229_vm7, %v937_v12, 0.0  ;;  %v12806_v7 = vld [vmem:[#allocation126_spill] sm:$0xff] }
 0x399   :  { %12801 = vst [vmem:[#allocation186_spill] sm:$0xff] %v10600_v51  ;;  %12802 = vst [vmem:[#allocation187_spill] sm:$0xff] %v10613_v33  ;;  %v10617_v35 = vmul.f32 %v12774_v4, %v952_v1  ;;  %v1157_v51 = vsel %vm188_vm5, %v1139_v28, 0.0  ;;  %v12807_v62 = vpack.c.bf16 %v12806_v7, %v12806_v7  ;;  %v10629_v20 = vpop.eup %6240  ;;  %v10632_v33 = vmul.f32 %v12473_v37, %v952_v1  ;;  %v12810_v28 = vld [vmem:[#allocation132_spill] sm:$0xff] }
 0x39a   :  { %12805 = vst [vmem:[#allocation188_spill] sm:$0xff] %v10621_v42  ;;  %12808 = vst [vmem:[#allocation126_spill] sm:$0xff] %v10629_v20  ;;  %v10635_v47 = vmul.f32 %v12778_v5, %v952_v1  ;;  %v10638_v41 = vmul.f32 %v12487_v6, %v1159_v45  ;;  %v4150_v12 = vmul.f32 %v7863_v32, %v1065_v59  ;;  %v10645_v7 = vpop.eup %6242 }
 0x39b   :  { %12804 = vst [vmem:[#allocation70_spill] sm:$0xff] %v10617_v35  ;;  %1974 = vrot.lane.b32.xlu0 %v12807_v62, %s6641_s15  ;;  %v12811_v35 = vpack.c.bf16 %v12810_v28, %v12810_v28  ;;  %12812 = vst [vmem:[#allocation132_spill] sm:$0xff] %v10645_v7  ;;  %v12813_v62 = vld [vmem:[#allocation90_spill] sm:$0xff]  ;;  %v10651_v25 = vmul.f32 %v7823_v2, %v1159_v45  ;;  %v1684_v1 = vmul.f32 %v12782_v63, %v1154_v50  ;;  %v1045_v36 = vpop.permute.xlu0 %1044  ;;  %v10657_v59 = vpop.eup %6244 }
 0x39c   :  { %12809 = vst [vmem:[#allocation189_spill] sm:$0xff] %v10638_v41  ;;  %v10648_v20 = vadd.f32 %v1689_v48, %v12813_v62  ;;  %v10655_v41 = vadd.f32 %v10338_v27, %v2177_v22  ;;  %12817 = vst [vmem:[#allocation192_spill] sm:$0xff] %v10657_v59  ;;  %v10661_v28 = vmul.f32 %v12473_v37, %v10621_v42  ;;  %v1069_v45 = vsel %vm229_vm7, %v1051_v49, 0.0  ;;  %v1443_v62 = vpop.permute.xlu1 %1442  ;;  %v10672_v7 = vpop.eup %6246  ;;  %v12824_v49 = vld [vmem:[#allocation92_spill] sm:$0xff] }
 0x39d   :  { %3963 = vrot.lane.b32.xlu1 %v12811_v35, %s6641_s15  ;;  %12815 = vst [vmem:[#allocation190_spill] sm:$0xff] %v10651_v25  ;;  %v10665_v35 = vmul.f32 %v12778_v5, %v10621_v42  ;;  %v10668_v48 = vmul.f32 %v12782_v63, %v1157_v51  ;;  %12821 = vst [vmem:[#allocation196_spill] sm:$0xff] %v10672_v7  ;;  %v10675_v27 = vmul.f32 %v12487_v6, %v1157_v51  ;;  %v12825_v25 = vld [vmem:[#allocation135_spill] sm:$0xff] }
 0x39e   :  { %12814 = vst [vmem:[#allocation90_spill] sm:$0xff] %v10648_v20  ;;  %12816 = vst [vmem:[#allocation191_spill] sm:$0xff] %v10655_v41  ;;  %v10678_v22 = vmul.f32 %v7823_v2, %v1157_v51  ;;  %v1158_v59 = vsel %vm188_vm5, %v1141_v61, 0.0  ;;  %v1465_v42 = vsel %vm229_vm7, %v1443_v62, 0.0  ;;  %v4166_v41 = vadd.f32 %v12824_v49, %v4150_v12 }
 0x39f   :  { %12818 = vst [vmem:[#allocation193_spill] sm:$0xff] %v10661_v28  ;;  %12819 = vst [vmem:[#allocation194_spill] sm:$0xff] %v10665_v35  ;;  %v2838_v7 = vmul.f32 %v7863_v32, %v1465_v42  ;;  %v3494_v5 = vmul.f32 %v12774_v4, %v1465_v42  ;;  %v4174_v51 = vmul.f32 %v12473_v37, %v1465_v42  ;;  %v12827_v35 = vld [vmem:[#allocation91_spill] sm:$0xff]  ;;  %v12830_v42 = vld [vmem:[#allocation96_spill] sm:$0xff] }
 0x3a0   :  { %12820 = vst [vmem:[#allocation195_spill] sm:$0xff] %v10668_v48  ;;  %v12822_v48 = vld [vmem:[#allocation60_spill] sm:$0xff]  ;;  %v12826_v61 = vpack.c.bf16 %v12825_v25, %v12825_v25  ;;  %v10697_v62 = vadd.f32 %v1684_v1, %v12827_v35  ;;  %v10700_v28 = vmul.f32 %v12487_v6, %v1154_v50  ;;  %v4154_v12 = vmul.f32 %v7863_v32, %v1069_v45  ;;  %v1451_v0 = vpop.permute.xlu1 %1450  ;;  %v12834_v45 = vld [vmem:[#allocation139_spill] sm:$0xff] }
 0x3a1   :  { %v12823_v20 = vpack.c.bf16 %v12822_v48, %v12822_v48  ;;  %v1053_v48 = vpop.permute.xlu0 %1052  ;;  %v10707_v49 = vmul.f32 %v12782_v63, %v1158_v59  ;;  %v2854_v14 = vadd.f32 %v12830_v42, %v2838_v7  ;;  %v3510_v25 = vadd.f32 %v12831_v26, %v3494_v5  ;;  %v12838_v42 = vld [vmem:[#allocation144_spill] sm:$0xff] }
 0x3a2   :  { %4131 = vrot.lane.b32.xlu1 %v12826_v61, %s6644_s21  ;;  %12828 = vst [vmem:[#allocation60_spill] sm:$0xff] %v10697_v62  ;;  %v4182_v61 = vadd.f32 %v4174_v51, %v4166_v41  ;;  %v10712_v1 = vmul.f32 %v12487_v6, %v1158_v59  ;;  %v10715_v35 = vmul.f32 %v7823_v2, %v1158_v59  ;;  %v12837_v41 = vld [vmem:[#allocation66_spill] sm:$0xff] }
 0x3a3   :  { %2143 = vrot.lane.b32.xlu0 %v12823_v20, %s6644_s21  ;;  %v10703_v20 = vmul.f32 %v7823_v2, %v1154_v50  ;;  %12829 = vst [vmem:[#allocation92_spill] sm:$0xff] %v10707_v49  ;;  %v1469_v50 = vsel %vm229_vm7, %v1451_v0, 0.0  ;;  %v12835_v62 = vpack.c.bf16 %v12834_v45, %v12834_v45  ;;  %v10724_v7 = vadd.f32 %v10376_v54, %v1691_v21  ;;  %v12840_v49 = vld [vmem:[#allocation57_spill] sm:$0xff] }
 0x3a4   :  { %12832 = vst [vmem:[#allocation135_spill] sm:$0xff] %v10712_v1  ;;  %12833 = vst [vmem:[#allocation91_spill] sm:$0xff] %v10715_v35  ;;  %v2870_v26 = vadd.f32 %v10509_v52, %v2854_v14  ;;  %v3526_v5 = vadd.f32 %v10512_v29, %v3510_v25  ;;  %v4198_v51 = vadd.f32 %v12837_v41, %v4182_v61  ;;  %v12841_v29 = vld [vmem:[#allocation64_spill] sm:$0xff]  ;;  %v12842_v25 = vld [vmem:[#allocation33_spill] sm:$0xff] }
 0x3a5   :  { %12836 = vst [vmem:[#allocation96_spill] sm:$0xff] %v10724_v7  ;;  %v2842_v59 = vmul.f32 %v7863_v32, %v1469_v50  ;;  %v12839_v0 = vpack.c.bf16 %v12838_v42, %v12838_v42  ;;  %v4170_v35 = vadd.f32 %v12840_v49, %v4154_v12  ;;  %v4178_v54 = vmul.f32 %v12473_v37, %v1469_v50  ;;  %v1129_v21 = vpop.permute.xlu0 %1128  ;;  %v12843_v41 = vld [vmem:[#allocation101_spill] sm:$0xff]  ;;  %v12844_v49 = vld [vmem:[#allocation67_spill] sm:$0xff]  ;;  %v12845_v1 = vld [vmem:[#allocation146_spill] sm:$0xff] }
 0x3a6   :  { %v10739_v14 = vadd.f32 %v10394_v34, %v10494_v39  ;;  %v2886_v52 = vadd.f32 %v12841_v29, %v2870_v26  ;;  %v3542_v61 = vadd.f32 %v12842_v25, %v3526_v5  ;;  %v4206_v45 = vadd.f32 %v4198_v51, %v12496_v31  ;;  %v12850_v25 = vld [vmem:[#allocation51_spill] sm:$0xff] }
 0x3a7   :  { %1970 = vrot.lane.b32.xlu0 %v12835_v62, %s6641_s15  ;;  %3959 = vrot.lane.b32.xlu1 %v12839_v0, %s6641_s15  ;;  %v3498_v62 = vmul.f32 %v12774_v4, %v1469_v50  ;;  %v2858_v42 = vadd.f32 %v12843_v41, %v2842_v59  ;;  %v1643_v0 = vpop.permute.xlu1 %1642  ;;  %v1066_v12 = vsel %vm229_vm7, %v1045_v36, 0.0  ;;  %v4186_v50 = vadd.f32 %v4178_v54, %v4170_v35  ;;  %v12847_v35 = vld [vmem:[#allocation151_spill] sm:$0xff]  ;;  %v12849_v54 = vld [vmem:[#allocation76_spill] sm:$0xff] }
 0x3a8   :  { %v12846_v34 = vpack.c.bf16 %v12845_v1, %v12845_v1  ;;  %v10754_v39 = vadd.f32 %v10406_v46, %v10559_v60  ;;  %v2894_v26 = vadd.f32 %v2886_v52, %v12496_v31  ;;  %v3550_v5 = vadd.f32 %v3542_v61, %v12496_v31 }
 0x3a9   :  { %v3514_v7 = vadd.f32 %v12844_v49, %v3498_v62  ;;  %v1070_v51 = vsel %vm229_vm7, %v1053_v48, 0.0  ;;  %v2874_v36 = vadd.f32 %v10546_v17, %v2858_v42  ;;  %v12848_v59 = vpack.c.bf16 %v12847_v35, %v12847_v35  ;;  %v10769_v29 = vpop.permute.xlu0 %1136 }
 0x3aa   :  { %v5429_v1 = vmul.f32 -1.442695, %v4206_v45  ;;  %v4202_v46 = vadd.f32 %v12849_v54, %v4186_v50  ;;  %v1665_v60 = vsel %vm188_vm5, %v1643_v0, 0.0  ;;  %v4151_v52 = vmul.f32 %v7863_v32, %v1066_v12  ;;  %v12852_v0 = vld [vmem:[#allocation155_spill] sm:$0xff] }
 0x3ab   :  { %2139 = vrot.lane.b32.xlu0 %v12846_v34, %s6644_s21  ;;  %4127 = vrot.lane.b32.xlu1 %v12848_v59, %s6644_s21  ;;  %v3530_v62 = vadd.f32 %v10549_v16, %v3514_v7  ;;  %v5301_v48 = vmul.f32 -1.442695, %v2894_v26  ;;  %v2890_v17 = vadd.f32 %v12850_v25, %v2874_v36  ;;  %v1651_v61 = vpop.permute.xlu1 %1650  ;;  %v10775_v41 = vadd.f32 %v10416_v10, %v10534_v30  ;;  %v12851_v7 = vld [vmem:[#allocation104_spill] sm:$0xff] }
 0x3ac   :  { %v5365_v45 = vmul.f32 -1.442695, %v3550_v5  ;;  %v4155_v16 = vmul.f32 %v7863_v32, %v1070_v51  ;;  %v4210_v49 = vadd.f32 %v4202_v46, %v12496_v31  ;;  %v12853_v50 = vpack.c.bf16 %v12852_v0, %v12852_v0  ;;  %v12857_v46 = vld [vmem:[#allocation112_spill] sm:$0xff] }
 0x3ad   :  { %v3546_v42 = vadd.f32 %v12851_v7, %v3530_v62  ;;  %v2898_v12 = vadd.f32 %v2890_v17, %v12496_v31  ;;  %v2352_v34 = vmul.f32 %v12655_v56, %v1665_v60  ;;  %v3014_v26 = vmul.f32 %v12782_v63, %v1665_v60  ;;  %v1445_v35 = vpop.permute.xlu0 %1444  ;;  %v12856_v62 = vld [vmem:[#allocation71_spill] sm:$0xff]  ;;  %v12858_v17 = vld [vmem:[#allocation46_spill] sm:$0xff]  ;;  %v12862_v0 = vld [vmem:[#allocation72_spill] sm:$0xff] }
 0x3ae   :  { %v12854_v10 = vpack.c.bf16 %v9877_v53, %v9877_v53  ;;  %v10793_v30 = vadd.f32 %v10427_v19, %v10592_v18  ;;  %6248 = vpow2.f32 %v5429_v1  ;;  %v5433_v51 = vmul.f32 -1.442695, %v4210_v49  ;;  %v12859_v19 = vld [vmem:[#allocation82_spill] sm:$0xff] }
 0x3af   :  { %3961 = vrot.lane.b32.xlu0 %v12853_v50, %s6641_s15  ;;  %v3554_v5 = vadd.f32 %v3546_v42, %v12496_v31  ;;  %v10798_v36 = vsel %vm188_vm5, %v1129_v21, 0.0  ;;  %6250 = vpow2.f32 %v5301_v48  ;;  %v5305_v59 = vmul.f32 -1.442695, %v2898_v12  ;;  %v1047_v25 = vpop.permute.xlu1 %1046  ;;  %v12861_v42 = vld [vmem:[#allocation89_spill] sm:$0xff] }
 0x3b0   :  { %3307 = vrot.lane.b32.xlu1 %v12854_v10, %s6641_s15  ;;  %12855 = vst [vmem:[#allocation98_spill] sm:$0xff] %v10798_v36  ;;  %v2360_v54 = vadd.f32 %v2352_v34, %v12856_v62  ;;  %v3022_v53 = vadd.f32 %v3014_v26, %v12857_v46  ;;  %v4167_v7 = vadd.f32 %v12858_v17, %v4151_v52  ;;  %6252 = vpow2.f32 %v5365_v45  ;;  %v12863_v52 = vld [vmem:[#allocation164_spill] sm:$0xff]  ;;  %v12867_v46 = vld [vmem:[#allocation114_spill] sm:$0xff] }
 0x3b1   :  { %v10804_v18 = vadd.f32 %v12859_v19, %v4155_v16  ;;  %v5369_v1 = vmul.f32 -1.442695, %v3554_v5  ;;  %v12860_v21 = vpack.c.bf16 %v9902_v9, %v9902_v9  ;;  %6254 = vpow2.f32 %v5433_v51  ;;  %v1041_v34 = vpop.permute.xlu0 %1040  ;;  %v12868_v17 = vld [vmem:[#allocation124_spill] sm:$0xff] }
 0x3b2   :  { %v10812_v48 = vmul.f32 %v12487_v6, %v10798_v36  ;;  %v2377_v49 = vadd.f32 %v12861_v42, %v2360_v54  ;;  %v3038_v50 = vadd.f32 %v12862_v0, %v3022_v53  ;;  %v12864_v45 = vpack.c.bf16 %v12863_v52, %v12863_v52  ;;  %v12865_v54 = vld [vmem:[#allocation166_spill] sm:$0xff]  ;;  %v12871_v42 = vld [vmem:[#allocation99_spill] sm:$0xff] }
 0x3b3   :  { %4129 = vrot.lane.b32.xlu0 %v12860_v21, %s6644_s21  ;;  %6256 = vpow2.f32 %v5305_v59  ;;  %v10821_v16 = vmul.f32 %v12487_v6, %v1665_v60  ;;  %v1669_v9 = vsel %vm188_vm5, %v1651_v61, 0.0  ;;  %v1466_v12 = vsel %vm229_vm7, %v1445_v35, 0.0  ;;  %v1055_v62 = vpop.permute.xlu1 %1054  ;;  %v12872_v0 = vld [vmem:[#allocation130_spill] sm:$0xff] }
 0x3b4   :  { %3475 = vrot.lane.b32.xlu1 %v12864_v45, %s6644_s21  ;;  %v2394_v26 = vadd.f32 %v10606_v58, %v2377_v49  ;;  %v3054_v10 = vadd.f32 %v10609_v43, %v3038_v50  ;;  %v2356_v5 = vmul.f32 %v12655_v56, %v1669_v9  ;;  %v3018_v51 = vmul.f32 %v12782_v63, %v1669_v9 }
 0x3b5   :  { %6258 = vpow2.f32 %v5369_v1  ;;  %v2839_v60 = vmul.f32 %v7863_v32, %v1466_v12  ;;  %v3495_v59 = vmul.f32 %v12774_v4, %v1466_v12  ;;  %v4175_v61 = vmul.f32 %v12473_v37, %v1466_v12  ;;  %v12869_v1 = vld [vmem:[#allocation172_spill] sm:$0xff]  ;;  %v1441_v12 = vpop.permute.xlu0 %1440 }
 0x3b6   :  { %v12866_v35 = vpack.c.bf16 %v12865_v54, %v12865_v54  ;;  %v2402_v58 = vadd.f32 %v2394_v26, %v12496_v31  ;;  %v3062_v43 = vadd.f32 %v3054_v10, %v12496_v31  ;;  %v2364_v53 = vadd.f32 %v2356_v5, %v12867_v46  ;;  %v12873_v54 = vld [vmem:[#allocation94_spill] sm:$0xff] }
 0x3b7   :  { %v3026_v19 = vadd.f32 %v3018_v51, %v12868_v17  ;;  %v12870_v21 = vpack.c.bf16 %v12869_v1, %v12869_v1  ;;  %v2855_v49 = vadd.f32 %v12871_v42, %v2839_v60  ;;  %v3511_v50 = vadd.f32 %v12872_v0, %v3495_v59  ;;  %v1243_v46 = vpop.permute.xlu1 %1242  ;;  %v12875_v59 = vld [vmem:[#allocation133_spill] sm:$0xff] }
 0x3b8   :  { %3957 = vrot.lane.b32.xlu0 %v12866_v35, %s6641_s15  ;;  %v4183_v52 = vadd.f32 %v4175_v61, %v4167_v7  ;;  %v1067_v45 = vsel %vm229_vm7, %v1047_v25, 0.0  ;;  %v5253_v26 = vmul.f32 -1.442695, %v2402_v58  ;;  %v5317_v10 = vmul.f32 -1.442695, %v3062_v43  ;;  %v12874_v35 = vld [vmem:[#allocation125_spill] sm:$0xff] }
 0x3b9   :  { %3303 = vrot.lane.b32.xlu1 %v12870_v21, %s6641_s15  ;;  %v2381_v5 = vadd.f32 %v12873_v54, %v2364_v53  ;;  %v3042_v51 = vadd.f32 %v12874_v35, %v3026_v19  ;;  %v10853_v17 = vmul.f32 %v12487_v6, %v1669_v9  ;;  %v2871_v1 = vadd.f32 %v10562_v8, %v2855_v49  ;;  %v12878_v8 = vld [vmem:[#allocation128_spill] sm:$0xff]  ;;  %v12879_v19 = vld [vmem:[#allocation131_spill] sm:$0xff] }
 0x3ba   :  { %v3527_v60 = vadd.f32 %v10565_v55, %v3511_v50  ;;  %v4199_v7 = vadd.f32 %v12875_v59, %v4183_v52  ;;  %v12876_v25 = vpack.c.bf16 %v10075_v24, %v10075_v24  ;;  %v4152_v43 = vmul.f32 %v7863_v32, %v1067_v45 }
 0x3bb   :  { %v2398_v61 = vadd.f32 %v10675_v27, %v2381_v5  ;;  %v3058_v58 = vadd.f32 %v10678_v22, %v3042_v51  ;;  %v1064_v9 = vsel %vm229_vm7, %v1041_v34, 0.0  ;;  %v12877_v55 = vpack.c.bf16 %v10135_v44, %v10135_v44  ;;  %v1453_v27 = vpop.permute.xlu0 %1452  ;;  %v10874_v42 = vpop.eup %6248  ;;  %v12881_v51 = vld [vmem:[#allocation115_spill] sm:$0xff] }
 0x3bc   :  { %4125 = vrot.lane.b32.xlu0 %v12876_v25, %s6644_s21  ;;  %6260 = vpow2.f32 %v5253_v26  ;;  %v2887_v53 = vadd.f32 %v12878_v8, %v2871_v1  ;;  %v3543_v24 = vadd.f32 %v12879_v19, %v3527_v60  ;;  %v4207_v21 = vadd.f32 %v4199_v7, %v12496_v31  ;;  %v1251_v0 = vpop.permute.xlu1 %1250  ;;  %v10879_v44 = vpop.eup %6250  ;;  %v12882_v60 = vld [vmem:[#allocation134_spill] sm:$0xff] }
 0x3bd   :  { %3471 = vrot.lane.b32.xlu1 %v12877_v55, %s6644_s21  ;;  %6262 = vpow2.f32 %v5317_v10  ;;  %v2406_v22 = vadd.f32 %v2398_v61, %v12496_v31  ;;  %v3066_v34 = vadd.f32 %v3058_v58, %v12496_v31  ;;  %v4149_v49 = vmul.f32 %v7863_v32, %v1064_v9  ;;  %v10889_v54 = vpop.eup %6252 }
 0x3be   :  { %v2895_v50 = vadd.f32 %v2887_v53, %v12496_v31  ;;  %v3551_v52 = vadd.f32 %v3543_v24, %v12496_v31  ;;  %v5430_v45 = vmul.f32 -1.442695, %v4207_v21  ;;  %v1071_v26 = vsel %vm229_vm7, %v1055_v62, 0.0  ;;  %v10899_v62 = vpop.eup %6254 }
 0x3bf   :  { %v12880_v10 = vpack.c.bf16 %v10193_v3, %v10193_v3  ;;  %v5257_v5 = vmul.f32 -1.442695, %v2406_v22  ;;  %v5321_v35 = vmul.f32 -1.442695, %v3066_v34  ;;  %v10892_v1 = vadd.f32 %v12881_v51, %v4152_v43  ;;  %v10903_v58 = vpop.permute.xlu0 %1048  ;;  %v12886_v22 = vld [vmem:[#allocation137_spill] sm:$0xff] }
 0x3c0   :  { %v4165_v59 = vadd.f32 %v12882_v60, %v4149_v49  ;;  %v12883_v7 = vpack.c.bf16 %v10257_v40, %v10257_v40  ;;  %v5302_v25 = vmul.f32 -1.442695, %v2895_v50  ;;  %v5366_v61 = vmul.f32 -1.442695, %v3551_v52  ;;  %v10905_v9 = vpop.eup %6256  ;;  %v10912_v8 = vpop.permute.xlu1 %1446  ;;  %v12887_v49 = vld [vmem:[#allocation140_spill] sm:$0xff] }
 0x3c1   :  { %3305 = vrot.lane.b32.xlu0 %v12880_v10, %s6641_s15  ;;  %6264 = vpow2.f32 %v5430_v45  ;;  %v1464_v3 = vsel %vm229_vm7, %v1441_v12, 0.0  ;;  %12884 = vst [vmem:[#allocation139_spill] sm:$0xff] %v10905_v9  ;;  %v10908_v43 = vmul.f32 %v7863_v32, %v1071_v26  ;;  %v1265_v12 = vsel %vm188_vm5, %v1243_v46, 0.0 }
 0x3c2   :  { %2651 = vrot.lane.b32.xlu1 %v12883_v7, %s6641_s15  ;;  %6266 = vpow2.f32 %v5257_v5  ;;  %v2837_v55 = vmul.f32 %v7863_v32, %v1464_v3  ;;  %v3493_v40 = vmul.f32 %v12774_v4, %v1464_v3  ;;  %v4173_v53 = vmul.f32 %v12473_v37, %v1464_v3  ;;  %v10923_v21 = vpop.eup %6258  ;;  %v12891_v3 = vld [vmem:[#allocation147_spill] sm:$0xff] }
 0x3c3   :  { %6268 = vpow2.f32 %v5321_v35  ;;  %v1470_v19 = vsel %vm229_vm7, %v1453_v27, 0.0  ;;  %v12885_v24 = vpack.c.bf16 %v10265_v13, %v10265_v13  ;;  %v3670_v52 = vmul.f32 %v12655_v56, %v1265_v12  ;;  %v1449_v26 = vpop.permute.xlu0 %1448  ;;  %v12889_v35 = vld [vmem:[#allocation143_spill] sm:$0xff]  ;;  %v12895_v12 = vld [vmem:[#allocation141_spill] sm:$0xff] }
 0x3c4   :  { %6270 = vpow2.f32 %v5302_v25  ;;  %v2853_v34 = vadd.f32 %v12886_v22, %v2837_v55  ;;  %v3509_v50 = vadd.f32 %v12887_v49, %v3493_v40  ;;  %v12888_v46 = vpack.c.bf16 %v10291_v11, %v10291_v11  ;;  %v10938_v7 = vpop.permute.xlu1 %1454  ;;  %v12890_v25 = vld [vmem:[#allocation142_spill] sm:$0xff] }
 0x3c5   :  { %3473 = vrot.lane.b32.xlu0 %v12885_v24, %s6644_s21  ;;  %6272 = vpow2.f32 %v5366_v61  ;;  %v4181_v27 = vadd.f32 %v4173_v53, %v4165_v59  ;;  %v2843_v45 = vmul.f32 %v7863_v32, %v1470_v19  ;;  %v3499_v13 = vmul.f32 %v12774_v4, %v1470_v19  ;;  %v12892_v59 = vld [vmem:[#allocation149_spill] sm:$0xff] }
 0x3c6   :  { %2819 = vrot.lane.b32.xlu1 %v12888_v46, %s6644_s21  ;;  %v2869_v10 = vadd.f32 %v10632_v33, %v2853_v34  ;;  %v3525_v5 = vadd.f32 %v10635_v47, %v3509_v50  ;;  %v3678_v51 = vadd.f32 %v3670_v52, %v12889_v35  ;;  %v4179_v60 = vmul.f32 %v12473_v37, %v1470_v19  ;;  %v12894_v47 = vld [vmem:[#allocation138_spill] sm:$0xff]  ;;  %v12896_v24 = vld [vmem:[#allocation145_spill] sm:$0xff] }
 0x3c7   :  { %v4197_v11 = vadd.f32 %v12890_v25, %v4181_v27  ;;  %v2859_v61 = vadd.f32 %v12891_v3, %v2843_v45  ;;  %v3515_v55 = vadd.f32 %v12892_v59, %v3499_v13  ;;  %v1269_v40 = vsel %vm188_vm5, %v1251_v0, 0.0  ;;  %v10957_v46 = vpop.permute.xlu0 %1644 }
 0x3c8   :  { %v12893_v33 = vpack.c.bf16 %v10301_v57, %v10301_v57  ;;  %v2885_v53 = vadd.f32 %v12894_v47, %v2869_v10  ;;  %v3541_v19 = vadd.f32 %v12895_v12, %v3525_v5  ;;  %v3694_v22 = vadd.f32 %v12896_v24, %v3678_v51  ;;  %v12898_v10 = vld [vmem:[#allocation152_spill] sm:$0xff]  ;;  %v10965_v5 = vpop.permute.xlu1 %1646  ;;  %v12905_v12 = vld [vmem:[#allocation154_spill] sm:$0xff] }
 0x3c9   :  { %v4187_v34 = vadd.f32 %v4179_v60, %v10804_v18  ;;  %v4205_v49 = vadd.f32 %v4197_v11, %v12496_v31  ;;  %v2875_v50 = vadd.f32 %v10595_v23, %v2859_v61  ;;  %v3531_v52 = vadd.f32 %v10603_v38, %v3515_v55  ;;  %v10959_v57 = vpop.eup %6260  ;;  %v12900_v38 = vld [vmem:[#allocation148_spill] sm:$0xff]  ;;  %v12901_v60 = vld [vmem:[#allocation150_spill] sm:$0xff]  ;;  %v12902_v11 = vld [vmem:[#allocation153_spill] sm:$0xff] }
 0x3ca   :  { %3301 = vrot.lane.b32.xlu0 %v12893_v33, %s6641_s15  ;;  %v3674_v0 = vmul.f32 %v12655_v56, %v1269_v40  ;;  %12897 = vst [vmem:[#allocation66_spill] sm:$0xff] %v10959_v57  ;;  %v2893_v27 = vadd.f32 %v2885_v53, %v12496_v31  ;;  %v3549_v45 = vadd.f32 %v3541_v19, %v12496_v31  ;;  %v10967_v35 = vpop.eup %6262  ;;  %v12903_v61 = vld [vmem:[#allocation49_spill] sm:$0xff] }
 0x3cb   :  { %v3710_v13 = vadd.f32 %v10821_v16, %v3694_v22  ;;  %v4203_v18 = vadd.f32 %v12898_v10, %v4187_v34  ;;  %12899 = vst [vmem:[#allocation144_spill] sm:$0xff] %v10967_v35  ;;  %v5428_v23 = vmul.f32 -1.442695, %v4205_v49  ;;  %v2891_v51 = vadd.f32 %v12900_v38, %v2875_v50  ;;  %v10981_v24 = vpop.permute.xlu0 %1640  ;;  %v12907_v10 = vld [vmem:[#allocation43_spill] sm:$0xff] }
 0x3cc   :  { %v3547_v25 = vadd.f32 %v12901_v60, %v3531_v52  ;;  %v3682_v3 = vadd.f32 %v3674_v0, %v12902_v11  ;;  %v12904_v59 = vpack.c.bf16 %v12903_v61, %v12903_v61  ;;  %v5300_v55 = vmul.f32 -1.442695, %v2893_v27  ;;  %v10988_v52 = vpop.permute.xlu1 %1654 }
 0x3cd   :  { %v5364_v16 = vmul.f32 -1.442695, %v3549_v45  ;;  %v3718_v40 = vadd.f32 %v3710_v13, %v12496_v31  ;;  %v4211_v33 = vadd.f32 %v4203_v18, %v12496_v31  ;;  %6274 = vpow2.f32 %v5428_v23 }
 0x3ce   :  { %3469 = vrot.lane.b32.xlu0 %v12904_v59, %s6644_s21  ;;  %v2899_v47 = vadd.f32 %v2891_v51, %v12496_v31  ;;  %v3555_v53 = vadd.f32 %v3547_v25, %v12496_v31  ;;  %v3698_v19 = vadd.f32 %v12905_v12, %v3682_v3  ;;  %v10983_v22 = vpop.eup %6264  ;;  %6276 = vpow2.f32 %v5300_v55  ;;  %v12911_v59 = vld [vmem:[#allocation156_spill] sm:$0xff] }
 0x3cf   :  { %v5381_v34 = vmul.f32 -1.442695, %v3718_v40  ;;  %v5434_v49 = vmul.f32 -1.442695, %v4211_v33  ;;  %v1068_v50 = vsel %vm229_vm7, %v10903_v58, 0.0  ;;  %v10990_v0 = vpop.eup %6266  ;;  %6278 = vpow2.f32 %v5364_v16  ;;  %v11010_v3 = vpop.permute.xlu0 %1652  ;;  %v12912_v33 = vld [vmem:[#allocation157_spill] sm:$0xff] }
 0x3d0   :  { %12906 = vst [vmem:[#allocation57_spill] sm:$0xff] %v10990_v0  ;;  %v5306_v27 = vmul.f32 -1.442695, %v2899_v47  ;;  %v5370_v45 = vmul.f32 -1.442695, %v3555_v53  ;;  %v3714_v13 = vadd.f32 %v10853_v17, %v3698_v19  ;;  %v12908_v18 = vpack.c.bf16 %v12907_v10, %v12907_v10  ;;  %v10997_v23 = vpop.eup %6268  ;;  %v11017_v16 = vpop.permute.xlu1 %1354  ;;  %v12913_v53 = vld [vmem:[#allocation160_spill] sm:$0xff] }
 0x3d1   :  { %12909 = vst [vmem:[#allocation64_spill] sm:$0xff] %v10997_v23  ;;  %6280 = vpow2.f32 %v5381_v34  ;;  %v4153_v38 = vmul.f32 %v7863_v32, %v1068_v50  ;;  %v1467_v58 = vsel %vm229_vm7, %v10912_v8, 0.0  ;;  %v1468_v51 = vsel %vm229_vm7, %v1449_v26, 0.0  ;;  %v11005_v60 = vpop.eup %6270  ;;  %v12914_v19 = vld [vmem:[#allocation45_spill] sm:$0xff] }
 0x3d2   :  { %2649 = vrot.lane.b32.xlu0 %v12908_v18, %s6641_s15  ;;  %12910 = vst [vmem:[#allocation33_spill] sm:$0xff] %v11005_v60  ;;  %6282 = vpow2.f32 %v5306_v27  ;;  %v3722_v17 = vadd.f32 %v3714_v13, %v12496_v31  ;;  %v2840_v25 = vmul.f32 %v7863_v32, %v1467_v58  ;;  %v3496_v11 = vmul.f32 %v12774_v4, %v1467_v58  ;;  %v11012_v61 = vpop.eup %6272  ;;  %v12916_v27 = vld [vmem:[#allocation30_spill] sm:$0xff] }
 0x3d3   :  { %6284 = vpow2.f32 %v5370_v45  ;;  %v4169_v55 = vadd.f32 %v12911_v59, %v4153_v38  ;;  %v4176_v8 = vmul.f32 %v12473_v37, %v1467_v58  ;;  %v2841_v26 = vmul.f32 %v7863_v32, %v1468_v51  ;;  %v12918_v38 = vld [vmem:[#allocation65_spill] sm:$0xff] }
 0x3d4   :  { %6286 = vpow2.f32 %v5434_v49  ;;  %v5385_v40 = vmul.f32 -1.442695, %v3722_v17  ;;  %v2856_v47 = vadd.f32 %v12912_v33, %v2840_v25  ;;  %v3512_v12 = vadd.f32 %v12913_v53, %v3496_v11  ;;  %v12917_v49 = vld [vmem:[#allocation23_spill] sm:$0xff]  ;;  %v11034_v25 = vpop.permute.xlu0 %1648  ;;  %v12919_v11 = vld [vmem:[#allocation162_spill] sm:$0xff] }
 0x3d5   :  { %v12915_v34 = vpack.c.bf16 %v12914_v19, %v12914_v19  ;;  %v4184_v50 = vadd.f32 %v4176_v8, %v10892_v1  ;;  %v2857_v45 = vadd.f32 %v12916_v27, %v2841_v26  ;;  %v3497_v13 = vmul.f32 %v12774_v4, %v1468_v51  ;;  %v12920_v1 = vld [vmem:[#allocation193_spill] sm:$0xff]  ;;  %v11039_v19 = vpop.permute.xlu1 %1246 }
 0x3d6   :  { %v4177_v10 = vmul.f32 %v12473_v37, %v1468_v51  ;;  %6288 = vpow2.f32 %v5385_v40  ;;  %v2872_v18 = vadd.f32 %v12917_v49, %v2856_v47  ;;  %v3528_v58 = vadd.f32 %v12918_v38, %v3512_v12  ;;  %v12921_v26 = vld [vmem:[#allocation165_spill] sm:$0xff]  ;;  %v12922_v51 = vld [vmem:[#allocation159_spill] sm:$0xff]  ;;  %v12928_v38 = vld [vmem:[#allocation168_spill] sm:$0xff] }
 0x3d7   :  { %2817 = vrot.lane.b32.xlu0 %v12915_v34, %s6644_s21  ;;  %v1471_v17 = vsel %vm229_vm7, %v10938_v7, 0.0  ;;  %v4200_v59 = vadd.f32 %v12919_v11, %v4184_v50  ;;  %v2873_v8 = vadd.f32 %v12920_v1, %v2857_v45  ;;  %v3513_v33 = vadd.f32 %v12921_v26, %v3497_v13  ;;  %v12923_v47 = vld [vmem:[#allocation161_spill] sm:$0xff]  ;;  %v12924_v7 = vld [vmem:[#allocation79_spill] sm:$0xff] }
 0x3d8   :  { %v4185_v53 = vadd.f32 %v4177_v10, %v4169_v55  ;;  %v2888_v40 = vadd.f32 %v12922_v51, %v2872_v18  ;;  %v3544_v34 = vadd.f32 %v12923_v47, %v3528_v58  ;;  %v2844_v12 = vmul.f32 %v7863_v32, %v1471_v17  ;;  %v12926_v45 = vld [vmem:[#allocation163_spill] sm:$0xff]  ;;  %v12927_v55 = vld [vmem:[#allocation194_spill] sm:$0xff]  ;;  %v12929_v32 = vld [vmem:[#allocation169_spill] sm:$0xff]  ;;  %v11057_v47 = vpop.permute.xlu0 %1244 }
 0x3d9   :  { %v3500_v27 = vmul.f32 %v12774_v4, %v1471_v17  ;;  %v12925_v49 = vpack.c.bf16 %v12924_v7, %v12924_v7  ;;  %v4208_v50 = vadd.f32 %v4200_v59, %v12496_v31  ;;  %v2889_v13 = vadd.f32 %v12926_v45, %v2873_v8  ;;  %v12930_v26 = vld [vmem:[#allocation171_spill] sm:$0xff] }
 0x3da   :  { %v3529_v10 = vadd.f32 %v12927_v55, %v3513_v33  ;;  %v4201_v11 = vadd.f32 %v12928_v38, %v4185_v53  ;;  %v2896_v18 = vadd.f32 %v2888_v40, %v12496_v31  ;;  %v3552_v58 = vadd.f32 %v3544_v34, %v12496_v31  ;;  %v11059_v7 = vpop.eup %6274  ;;  %v12931_v8 = vld [vmem:[#allocation167_spill] sm:$0xff]  ;;  %v11064_v53 = vpop.permute.xlu1 %1362 }
 0x3db   :  { %2645 = vrot.lane.b32.xlu0 %v12925_v49, %s6641_s15  ;;  %v2860_v1 = vadd.f32 %v12929_v32, %v2844_v12  ;;  %v3516_v51 = vadd.f32 %v12930_v26, %v3500_v27  ;;  %v5431_v49 = vmul.f32 -1.442695, %v4208_v50  ;;  %v2897_v59 = vadd.f32 %v2889_v13, %v12496_v31  ;;  %v11066_v40 = vpop.eup %6276  ;;  %v12933_v12 = vld [vmem:[#allocation111_spill] sm:$0xff]  ;;  %v12934_v27 = vld [vmem:[#allocation181_spill] sm:$0xff]  ;;  %v12936_v50 = vld [vmem:[#allocation136_spill] sm:$0xff] }
 0x3dc   :  { %v3545_v45 = vadd.f32 %v12931_v8, %v3529_v10  ;;  %v4209_v33 = vadd.f32 %v4201_v11, %v12496_v31  ;;  %12932 = vst [vmem:[#allocation101_spill] sm:$0xff] %v11066_v40  ;;  %v5303_v34 = vmul.f32 -1.442695, %v2896_v18  ;;  %v5367_v55 = vmul.f32 -1.442695, %v3552_v58  ;;  %v11070_v26 = vpop.eup %6278  ;;  %v12938_v8 = vld [vmem:[#allocation170_spill] sm:$0xff] }
 0x3dd   :  { %v2876_v38 = vadd.f32 %v12933_v12, %v2860_v1  ;;  %v3532_v32 = vadd.f32 %v12934_v27, %v3516_v51  ;;  %12935 = vst [vmem:[#allocation67_spill] sm:$0xff] %v11070_v26  ;;  %v4172_v0 = vadd.f32 %v12936_v50, %v10908_v43  ;;  %6290 = vpow2.f32 %v5431_v49  ;;  %v12939_v18 = vld [vmem:[#allocation53_spill] sm:$0xff]  ;;  %v11080_v12 = vpop.permute.xlu0 %1252  ;;  %v12983_v26 = vld [vmem:[#allocation35_spill] sm:$0xff] }
 0x3de   :  { %v5304_v13 = vmul.f32 -1.442695, %v2897_v59  ;;  %v3553_v10 = vadd.f32 %v3545_v45, %v12496_v31  ;;  %v11075_v11 = vpop.eup %6280  ;;  %6292 = vpow2.f32 %v5303_v34  ;;  %v4180_v1 = vmul.f32 %v12473_v37, %v1471_v17  ;;  %v11089_v59 = vpop.permute.xlu1 %1254  ;;  %v12942_v50 = vld [vmem:[#allocation173_spill] sm:$0xff] }
 0x3df   :  { %12937 = vst [vmem:[#allocation146_spill] sm:$0xff] %v11075_v11  ;;  %v2892_v35 = vadd.f32 %v12938_v8, %v2876_v38  ;;  %v3548_v58 = vadd.f32 %v12939_v18, %v3532_v32  ;;  %v11082_v51 = vpop.eup %6282  ;;  %6294 = vpow2.f32 %v5367_v55  ;;  %v5432_v43 = vmul.f32 -1.442695, %v4209_v33  ;;  %v12944_v18 = vld [vmem:[#allocation174_spill] sm:$0xff] }
 0x3e0   :  { %12940 = vst [vmem:[#allocation151_spill] sm:$0xff] %v11082_v51  ;;  %v5368_v27 = vmul.f32 -1.442695, %v3553_v10  ;;  %v11087_v49 = vsel %vm188_vm5, %v10957_v46, 0.0  ;;  %v11091_v45 = vpop.eup %6284  ;;  %v4188_v17 = vadd.f32 %v4180_v1, %v4172_v0  ;;  %v11098_v55 = vsel %vm188_vm5, %v10965_v5, 0.0  ;;  %v12945_v1 = vld [vmem:[#allocation176_spill] sm:$0xff] }
 0x3e1   :  { %12941 = vst [vmem:[#allocation76_spill] sm:$0xff] %v11091_v45  ;;  %v2900_v34 = vadd.f32 %v2892_v35, %v12496_v31  ;;  %v3556_v37 = vadd.f32 %v3548_v58, %v12496_v31  ;;  %v11100_v33 = vpop.eup %6286  ;;  %v3045_v46 = vmul.f32 %v7823_v2, %v10798_v36  ;;  %6296 = vpow2.f32 %v5304_v13  ;;  %v11109_v8 = vpop.permute.xlu0 %1240  ;;  %v12950_v51 = vld [vmem:[#allocation179_spill] sm:$0xff] }
 0x3e2   :  { %v2353_v38 = vmul.f32 %v12655_v56, %v11087_v49  ;;  %v3015_v35 = vmul.f32 %v12782_v63, %v11087_v49  ;;  %6298 = vpow2.f32 %v5368_v27  ;;  %v4204_v10 = vadd.f32 %v12942_v50, %v4188_v17  ;;  %v11119_v23 = vpop.permute.xlu1 %1554  ;;  %v12947_v17 = vld [vmem:[#allocation175_spill] sm:$0xff] }
 0x3e3   :  { %v5307_v32 = vmul.f32 -1.442695, %v2900_v34  ;;  %v5371_v0 = vmul.f32 -1.442695, %v3556_v37  ;;  %v11111_v5 = vpop.eup %6288  ;;  %v2354_v13 = vmul.f32 %v12655_v56, %v11098_v55  ;;  %v3016_v9 = vmul.f32 %v12782_v63, %v11098_v55 }
 0x3e4   :  { %12943 = vst [vmem:[#allocation51_spill] sm:$0xff] %v11111_v5  ;;  %v2361_v58 = vadd.f32 %v2353_v38, %v12944_v18  ;;  %v3023_v11 = vadd.f32 %v3015_v35, %v12945_v1  ;;  %v11124_v27 = vsel %vm188_vm5, %v10769_v29, 0.0  ;;  %6300 = vpow2.f32 %v5432_v43  ;;  %v12948_v35 = vld [vmem:[#allocation177_spill] sm:$0xff]  ;;  %v12949_v18 = vld [vmem:[#allocation55_spill] sm:$0xff] }
 0x3e5   :  { %12946 = vst [vmem:[#allocation104_spill] sm:$0xff] %v11124_v27  ;;  %v4212_v34 = vadd.f32 %v4204_v10, %v12496_v31  ;;  %v11130_v37 = vsel %vm188_vm5, %v10981_v24, 0.0  ;;  %6302 = vpow2.f32 %v5307_v32  ;;  %v2362_v1 = vadd.f32 %v2354_v13, %v12949_v18  ;;  %v11140_v10 = vpop.permute.xlu0 %1248  ;;  %v12952_v13 = vld [vmem:[#allocation180_spill] sm:$0xff] }
 0x3e6   :  { %v2378_v38 = vadd.f32 %v12947_v17, %v2361_v58  ;;  %v3039_v50 = vadd.f32 %v12948_v35, %v3023_v11  ;;  %v3024_v45 = vadd.f32 %v3016_v9, %v12950_v51  ;;  %v2351_v29 = vmul.f32 %v12655_v56, %v11130_v37  ;;  %v12951_v58 = vld [vmem:[#allocation178_spill] sm:$0xff]  ;;  %v11145_v17 = vpop.permute.xlu1 %1358  ;;  %v12954_v35 = vld [vmem:[#allocation37_spill] sm:$0xff] }
 0x3e7   :  { %v5435_v5 = vmul.f32 -1.442695, %v4212_v34  ;;  %v3013_v43 = vmul.f32 %v12782_v63, %v11130_v37  ;;  %6304 = vpow2.f32 %v5371_v0  ;;  %v2379_v11 = vadd.f32 %v12951_v58, %v2362_v1  ;;  %v12953_v51 = vld [vmem:[#allocation58_spill] sm:$0xff]  ;;  %v12955_v0 = vld [vmem:[#allocation184_spill] sm:$0xff]  ;;  %v12958_v1 = vld [vmem:[#allocation59_spill] sm:$0xff] }
 0x3e8   :  { %v2395_v24 = vadd.f32 %v10700_v28, %v2378_v38  ;;  %v3055_v32 = vadd.f32 %v10703_v20, %v3039_v50  ;;  %v3040_v9 = vadd.f32 %v12952_v13, %v3024_v45  ;;  %v2359_v34 = vadd.f32 %v2351_v29, %v12953_v51  ;;  %v12957_v45 = vld [vmem:[#allocation63_spill] sm:$0xff] }
 0x3e9   :  { %6306 = vpow2.f32 %v5435_v5  ;;  %v3021_v18 = vadd.f32 %v3013_v43, %v12954_v35  ;;  %v2396_v57 = vadd.f32 %v12955_v0, %v2379_v11  ;;  %v11156_v28 = vsel %vm188_vm5, %v10988_v52, 0.0  ;;  %v12956_v5 = vld [vmem:[#allocation185_spill] sm:$0xff]  ;;  %v12961_v0 = vld [vmem:[#allocation102_spill] sm:$0xff] }
 0x3ea   :  { %v2403_v4 = vadd.f32 %v2395_v24, %v12496_v31  ;;  %v3063_v40 = vadd.f32 %v3055_v32, %v12496_v31  ;;  %v11158_v20 = vpop.eup %6290  ;;  %v3056_v38 = vadd.f32 %v12956_v5, %v3040_v9  ;;  %v2376_v50 = vadd.f32 %v12957_v45, %v2359_v34  ;;  %v11165_v24 = vpop.permute.xlu0 %1356 }
 0x3eb   :  { %v3037_v29 = vadd.f32 %v12958_v1, %v3021_v18  ;;  %v2358_v43 = vmul.f32 %v12655_v56, %v11156_v28  ;;  %v11167_v32 = vpop.eup %6292  ;;  %v2404_v52 = vadd.f32 %v2396_v57, %v12496_v31  ;;  %v3020_v13 = vmul.f32 %v12782_v63, %v11156_v28  ;;  %v11172_v51 = vpop.permute.xlu1 %1366 }
 0x3ec   :  { %12959 = vst [vmem:[#allocation155_spill] sm:$0xff] %v11167_v32  ;;  %v5254_v58 = vmul.f32 -1.442695, %v2403_v4  ;;  %v5318_v11 = vmul.f32 -1.442695, %v3063_v40  ;;  %v11174_v9 = vpop.eup %6294  ;;  %v3064_v34 = vadd.f32 %v3056_v38, %v12496_v31  ;;  %v2393_v35 = vadd.f32 %v10812_v48, %v2376_v50  ;;  %v12962_v40 = vld [vmem:[#allocation61_spill] sm:$0xff] }
 0x3ed   :  { %12960 = vst [vmem:[#allocation71_spill] sm:$0xff] %v11174_v9  ;;  %v3053_v18 = vadd.f32 %v3045_v46, %v3037_v29  ;;  %v2366_v5 = vadd.f32 %v2358_v43, %v12961_v0  ;;  %v11181_v4 = vmul.f32 %v12487_v6, %v11124_v27  ;;  %v5255_v57 = vmul.f32 -1.442695, %v2404_v52  ;;  %v12965_v43 = vld [vmem:[#allocation78_spill] sm:$0xff]  ;;  %v12966_v52 = vld [vmem:[#allocation73_spill] sm:$0xff] }
 0x3ee   :  { %6308 = vpow2.f32 %v5254_v58  ;;  %v3028_v45 = vadd.f32 %v3020_v13, %v12962_v40  ;;  %v11184_v1 = vpop.eup %6296  ;;  %v11188_v32 = vmul.f32 %v7823_v2, %v11124_v27  ;;  %v5319_v38 = vmul.f32 -1.442695, %v3064_v34  ;;  %v11191_v46 = vpop.permute.xlu0 %1364  ;;  %v12975_v27 = vld [vmem:[#allocation16_spill] sm:$0xff] }
 0x3ef   :  { %12963 = vst [vmem:[#allocation112_spill] sm:$0xff] %v11184_v1  ;;  %6310 = vpow2.f32 %v5318_v11  ;;  %v2401_v48 = vadd.f32 %v2393_v35, %v12496_v31  ;;  %v11193_v50 = vpop.eup %6298  ;;  %v3061_v29 = vadd.f32 %v3053_v18, %v12496_v31  ;;  %v2383_v58 = vadd.f32 %v12965_v43, %v2366_v5  ;;  %v11199_v40 = vpop.permute.xlu1 %1558  ;;  %v12968_v5 = vld [vmem:[#allocation189_spill] sm:$0xff] }
 0x3f0   :  { %12964 = vst [vmem:[#allocation46_spill] sm:$0xff] %v11193_v50  ;;  %v3044_v13 = vadd.f32 %v12966_v52, %v3028_v45  ;;  %v4238_v0 = vadd.f32 1.0, %v10874_v42  ;;  %v11203_v11 = vmul.f32 %v12487_v6, %v11087_v49  ;;  %6312 = vpow2.f32 %v5255_v57  ;;  %v12969_v45 = vld [vmem:[#allocation190_spill] sm:$0xff] }
 0x3f1   :  { %v5252_v34 = vmul.f32 -1.442695, %v2401_v48  ;;  %v11208_v35 = vsel %vm188_vm5, %v11010_v3, 0.0  ;;  %v11210_v18 = vpop.eup %6300  ;;  %v2400_v43 = vadd.f32 %v12968_v5, %v2383_v58  ;;  %v11220_v49 = vmul.f32 %v12487_v6, %v11098_v55  ;;  %v12971_v5 = vld [vmem:[#allocation85_spill] sm:$0xff] }
 0x3f2   :  { %12967 = vst [vmem:[#allocation82_spill] sm:$0xff] %v11210_v18  ;;  %v3060_v52 = vadd.f32 %v12969_v45, %v3044_v13  ;;  %6314 = vrcp.f32 %v4238_v0  ;;  %v2357_v42 = vmul.f32 %v12655_v56, %v11208_v35  ;;  %v11216_v1 = vpop.eup %6302  ;;  %v3019_v3 = vmul.f32 %v12782_v63, %v11208_v35  ;;  %v11227_v48 = vpop.permute.xlu0 %1556 }
 0x3f3   :  { %12970 = vst [vmem:[#allocation89_spill] sm:$0xff] %v11216_v1  ;;  %6316 = vpow2.f32 %v5319_v38  ;;  %v1377_v57 = vsel %vm229_vm7, %v11017_v16, 0.0  ;;  %v5316_v58 = vmul.f32 -1.442695, %v3061_v29  ;;  %v2408_v13 = vadd.f32 %v2400_v43, %v12496_v31  ;;  %v11232_v45 = vpop.permute.xlu1 %1566  ;;  %v12974_v1 = vld [vmem:[#allocation38_spill] sm:$0xff] }
 0x3f4   :  { %v3068_v0 = vadd.f32 %v3060_v52, %v12496_v31  ;;  %v2365_v38 = vadd.f32 %v2357_v42, %v12971_v5  ;;  %12972 = vst [vmem:[#allocation72_spill] sm:$0xff] %v11232_v45  ;;  %v11234_v55 = vpop.eup %6304  ;;  %v3027_v50 = vadd.f32 %v3019_v3, %v12974_v1  ;;  %v2197_v9 = vmul.f32 %v12975_v27, %v1377_v57  ;;  %v12977_v52 = vld [vmem:[#allocation14_spill] sm:$0xff] }
 0x3f5   :  { %12973 = vst [vmem:[#allocation164_spill] sm:$0xff] %v11234_v55  ;;  %v4242_v18 = vadd.f32 1.0, %v10899_v62  ;;  %v11242_v16 = vsel %vm188_vm5, %v11034_v25, 0.0  ;;  %6318 = vpow2.f32 %v5252_v34  ;;  %v5259_v43 = vmul.f32 -1.442695, %v2408_v13  ;;  %v12978_v55 = vld [vmem:[#allocation117_spill] sm:$0xff] }
 0x3f6   :  { %v11244_v29 = vpop.eup %6306  ;;  %v2382_v42 = vadd.f32 %v12977_v52, %v2365_v38  ;;  %v2355_v5 = vmul.f32 %v12655_v56, %v11242_v16  ;;  %v3043_v1 = vadd.f32 %v12978_v55, %v3027_v50  ;;  %v12979_v3 = vld [vmem:[#allocation74_spill] sm:$0xff]  ;;  %v3017_v62 = vmul.f32 %v12782_v63, %v11242_v16  ;;  %v11253_v60 = vpop.permute.xlu0 %1564  ;;  %v12981_v13 = vld [vmem:[#allocation44_spill] sm:$0xff]  ;;  %v12982_v38 = vld [vmem:[#allocation91_spill] sm:$0xff] }
 0x3f7   :  { %12976 = vst [vmem:[#allocation166_spill] sm:$0xff] %v11244_v29  ;;  %v2205_v57 = vadd.f32 %v2197_v9, %v12979_v3  ;;  %6320 = vrcp.f32 %v4242_v18  ;;  %v5323_v25 = vmul.f32 -1.442695, %v3068_v0  ;;  %v12980_v29 = vld [vmem:[#allocation135_spill] sm:$0xff]  ;;  %v3582_v0 = vadd.f32 1.0, %v10889_v54 }
 0x3f8   :  { %6322 = vpow2.f32 %v5316_v58  ;;  %v2399_v34 = vadd.f32 %v12980_v29, %v2382_v42  ;;  %v2363_v36 = vadd.f32 %v2355_v5, %v12981_v13  ;;  %v3059_v52 = vadd.f32 %v12982_v38, %v3043_v1  ;;  %v12984_v50 = vld [vmem:[#allocation107_spill] sm:$0xff]  ;;  %v11266_v29 = vpop.permute.xlu1 %1562 }
 0x3f9   :  { %6324 = vpow2.f32 %v5259_v43  ;;  %v2221_v45 = vadd.f32 %v12983_v26, %v2205_v57  ;;  %v3025_v55 = vadd.f32 %v3017_v62, %v12984_v50  ;;  %v12985_v18 = vld [vmem:[#allocation39_spill] sm:$0xff]  ;;  %v1267_v58 = vsel %vm188_vm5, %v11039_v19, 0.0 }
 0x3fa   :  { %v2407_v9 = vadd.f32 %v2399_v34, %v12496_v31  ;;  %v2380_v3 = vadd.f32 %v12985_v18, %v2363_v36  ;;  %v3067_v43 = vadd.f32 %v3059_v52, %v12496_v31  ;;  %v12987_v5 = vld [vmem:[#allocation83_spill] sm:$0xff]  ;;  %v3672_v57 = vmul.f32 %v12655_v56, %v1267_v58  ;;  %v11274_v62 = vpop.permute.xlu0 %1352 }
 0x3fb   :  { %v11268_v42 = vpop.eup %6308  ;;  %v2229_v26 = vadd.f32 %v2221_v45, %v12496_v31  ;;  %v3041_v1 = vadd.f32 %v12987_v5, %v3025_v55  ;;  %6326 = vrcp.f32 %v3582_v0  ;;  %v1266_v54 = vsel %vm188_vm5, %v11057_v47, 0.0  ;;  %v12988_v38 = vld [vmem:[#allocation119_spill] sm:$0xff] }
 0x3fc   :  { %12986 = vst [vmem:[#allocation114_spill] sm:$0xff] %v11268_v42  ;;  %v11276_v36 = vpop.eup %6310  ;;  %v5258_v34 = vmul.f32 -1.442695, %v2407_v9  ;;  %v2397_v19 = vadd.f32 %v11181_v4, %v2380_v3  ;;  %v11284_v13 = vmul.f32 %v12487_v6, %v11130_v37  ;;  %6328 = vpow2.f32 %v5323_v25  ;;  %v12990_v25 = vld [vmem:[#allocation88_spill] sm:$0xff]  ;;  %v13035_v42 = vld [vmem:[#allocation42_spill] sm:$0xff] }
 0x3fd   :  { %v3057_v45 = vadd.f32 %v11188_v32, %v3041_v1  ;;  %v3680_v52 = vadd.f32 %v3672_v57, %v12988_v38  ;;  %v11288_v50 = vpop.eup %6312  ;;  %v5322_v55 = vmul.f32 -1.442695, %v3067_v43  ;;  %v3671_v4 = vmul.f32 %v12655_v56, %v1266_v54  ;;  %v12992_v57 = vld [vmem:[#allocation122_spill] sm:$0xff] }
 0x3fe   :  { %12989 = vst [vmem:[#allocation124_spill] sm:$0xff] %v11288_v50  ;;  %v2405_v9 = vadd.f32 %v2397_v19, %v12496_v31  ;;  %v1381_v47 = vsel %vm229_vm7, %v11064_v53, 0.0  ;;  %v5237_v3 = vmul.f32 -1.442695, %v2229_v26  ;;  %v11298_v0 = vpop.permute.xlu0 %1360  ;;  %v11304_v43 = vmul.f32 %v12487_v6, %v11156_v28  ;;  %v11307_v19 = vpop.permute.xlu1 %2639 }
 0x3ff   :  { %v6315_v18 = vpop.eup %6314  ;;  %v3065_v37 = vadd.f32 %v3057_v45, %v12496_v31  ;;  %v3696_v58 = vadd.f32 %v12990_v25, %v3680_v52  ;;  %v2201_v32 = vmul.f32 %v12975_v27, %v1381_v47  ;;  %6330 = vpow2.f32 %v5258_v34  ;;  %v12993_v45 = vld [vmem:[#allocation191_spill] sm:$0xff]  ;;  %v12994_v47 = vld [vmem:[#allocation25_spill] sm:$0xff] }
 0x400   :  { %v11300_v5 = vpop.eup %6316  ;;  %v5629_v1 = vpack.c.bf16 %v6315_v18, %v6315_v18  ;;  %v3679_v53 = vadd.f32 %v3671_v4, %v12992_v57  ;;  %v5256_v26 = vmul.f32 -1.442695, %v2405_v9  ;;  %v2926_v52 = vadd.f32 1.0, %v10879_v44 }
 0x401   :  { %12991 = vst [vmem:[#allocation172_spill] sm:$0xff] %v11300_v5  ;;  %v3712_v54 = vadd.f32 %v11220_v49, %v3696_v58  ;;  %v2209_v38 = vadd.f32 %v2201_v32, %v12993_v45  ;;  %6332 = vpow2.f32 %v5322_v55  ;;  %v1270_v34 = vsel %vm188_vm5, %v11080_v12, 0.0 }
 0x402   :  { %4287 = vrot.lane.b32.xlu1 %v5629_v1, %s6645_s26  ;;  %v3695_v28 = vadd.f32 %v12994_v47, %v3679_v53  ;;  %v4239_v4 = vadd.f32 1.0, %v10983_v22  ;;  %v11318_v18 = vpop.eup %6318  ;;  %v3707_v49 = vmul.f32 %v12487_v6, %v11208_v35  ;;  %6334 = vpow2.f32 %v5237_v3  ;;  %v11323_v25 = vpop.permute.xlu0 %1552  ;;  %v12996_v35 = vld [vmem:[#allocation54_spill] sm:$0xff] }
 0x403   :  { %v5320_v9 = vmul.f32 -1.442695, %v3065_v37  ;;  %v3675_v44 = vmul.f32 %v12655_v56, %v1270_v34  ;;  %v3720_v58 = vadd.f32 %v3712_v54, %v12496_v31  ;;  %6336 = vrcp.f32 %v2926_v52  ;;  %v12997_v37 = vld [vmem:[#allocation41_spill] sm:$0xff]  ;;  %v12999_v34 = vld [vmem:[#allocation52_spill] sm:$0xff] }
 0x404   :  { %v6321_v55 = vpop.eup %6320  ;;  %v1271_v12 = vsel %vm188_vm5, %v11089_v59, 0.0  ;;  %v3586_v22 = vadd.f32 1.0, %v10923_v21  ;;  %6338 = vpow2.f32 %v5256_v26  ;;  %v2225_v3 = vadd.f32 %v12996_v35, %v2209_v38  ;;  %v11341_v21 = vpop.permute.xlu1 %2807  ;;  %v12998_v38 = vld [vmem:[#allocation47_spill] sm:$0xff] }
 0x405   :  { %v11330_v32 = vpop.eup %6322  ;;  %v5633_v1 = vpack.c.bf16 %v6321_v55, %v6321_v55  ;;  %v3683_v57 = vadd.f32 %v3675_v44, %v12997_v37  ;;  %v3711_v45 = vadd.f32 %v11203_v11, %v3695_v28  ;;  %6340 = vrcp.f32 %v4239_v4  ;;  %v13001_v37 = vld [vmem:[#allocation75_spill] sm:$0xff] }
 0x406   :  { %12995 = vst [vmem:[#allocation99_spill] sm:$0xff] %v11330_v32  ;;  %v11334_v53 = vpop.eup %6324  ;;  %v3676_v54 = vmul.f32 %v12655_v56, %v1271_v12  ;;  %v1264_v59 = vsel %vm188_vm5, %v11109_v8, 0.0  ;;  %6342 = vpow2.f32 %v5320_v9  ;;  %v3705_v26 = vmul.f32 %v12487_v6, %v11242_v16  ;;  %v11348_v11 = vpop.permute.xlu0 %1560  ;;  %v13000_v12 = vld [vmem:[#allocation108_spill] sm:$0xff]  ;;  %v13036_v32 = vld [vmem:[#allocation19_spill] sm:$0xff] }
 0x407   :  { %4295 = vrot.lane.b32.xlu1 %v5633_v1, %s6645_s26  ;;  %v3699_v52 = vadd.f32 %v12998_v38, %v3683_v57  ;;  %v3669_v47 = vmul.f32 %v12655_v56, %v1264_v59  ;;  %v5383_v28 = vmul.f32 -1.442695, %v3720_v58  ;;  %6344 = vrcp.f32 %v3586_v22 }
 0x408   :  { %v3684_v4 = vadd.f32 %v3676_v54, %v12999_v34  ;;  %v1577_v8 = vsel %vm188_vm5, %v11119_v23, 0.0  ;;  %v6327_v44 = vpop.eup %6326  ;;  %v2233_v9 = vadd.f32 %v2225_v3, %v12496_v31  ;;  %v3719_v58 = vadd.f32 %v3711_v45, %v12496_v31  ;;  %v13002_v54 = vld [vmem:[#allocation106_spill] sm:$0xff] }
 0x409   :  { %v3715_v55 = vadd.f32 %v3707_v49, %v3699_v52  ;;  %v3677_v6 = vadd.f32 %v3669_v47, %v13000_v12  ;;  %v1717_v16 = vmul.f32 %v7823_v2, %v1577_v8  ;;  %v11357_v1 = vpop.eup %6328  ;;  %v5597_v35 = vpack.c.bf16 %v6327_v44, %v6327_v44  ;;  %v13003_v49 = vld [vmem:[#allocation96_spill] sm:$0xff] }
 0x40a   :  { %v3700_v57 = vadd.f32 %v13001_v37, %v3684_v4  ;;  %v1268_v22 = vsel %vm188_vm5, %v11140_v10, 0.0  ;;  %v11368_v52 = vpop.permute.xlu0 %2637  ;;  %v1379_v47 = vsel %vm229_vm7, %v11145_v17, 0.0  ;;  %v1378_v10 = vsel %vm229_vm7, %v11165_v24, 0.0  ;;  %v11379_v4 = vpop.permute.xlu1 %1976  ;;  %v13005_v37 = vld [vmem:[#allocation27_spill] sm:$0xff] }
 0x40b   :  { %v3723_v23 = vadd.f32 %v3715_v55, %v12496_v31  ;;  %v3693_v3 = vadd.f32 %v13002_v54, %v3677_v6  ;;  %v1725_v59 = vadd.f32 %v1717_v16, %v13003_v49  ;;  %v3673_v38 = vmul.f32 %v12655_v56, %v1268_v22  ;;  %3631 = vrot.lane.b32.xlu1 %v5597_v35, %s6645_s26 }
 0x40c   :  { %v3716_v45 = vadd.f32 %v11304_v43, %v3700_v57  ;;  %v4243_v34 = vadd.f32 1.0, %v11100_v33  ;;  %v11381_v8 = vpop.eup %6330  ;;  %v5241_v56 = vmul.f32 -1.442695, %v2233_v9  ;;  %v13004_v43 = vld [vmem:[#allocation68_spill] sm:$0xff]  ;;  %v5382_v6 = vmul.f32 -1.442695, %v3719_v58 }
 0x40d   :  { %v3709_v44 = vadd.f32 %v11284_v13, %v3693_v3  ;;  %v1734_v55 = vadd.f32 %v12496_v31, %v1725_v59  ;;  %v3681_v12 = vadd.f32 %v3673_v38, %v13004_v43  ;;  %v2199_v17 = vmul.f32 %v12975_v27, %v1379_v47  ;;  %v13006_v47 = vld [vmem:[#allocation28_spill] sm:$0xff] }
 0x40e   :  { %v2198_v16 = vmul.f32 %v12975_v27, %v1378_v10  ;;  %6346 = vrcp.f32 %v4243_v34  ;;  %v11388_v24 = vpop.eup %6332  ;;  %v5386_v33 = vmul.f32 -1.442695, %v3723_v23  ;;  %v3724_v35 = vadd.f32 %v3716_v45, %v12496_v31  ;;  %v11392_v57 = vpop.permute.xlu0 %2805  ;;  %v13007_v34 = vld [vmem:[#allocation29_spill] sm:$0xff] }
 0x40f   :  { %6348 = vpow2.f32 %v5383_v28  ;;  %v3697_v9 = vadd.f32 %v13005_v37, %v3681_v12  ;;  %v11394_v13 = vpop.eup %6334  ;;  %v3717_v22 = vadd.f32 %v3709_v44, %v12496_v31  ;;  %v2207_v58 = vadd.f32 %v2199_v17, %v10739_v14  ;;  %v11407_v44 = vpop.permute.xlu1 %2145  ;;  %v13008_v37 = vld [vmem:[#allocation93_spill] sm:$0xff] }
 0x410   :  { %v2206_v54 = vadd.f32 %v2198_v16, %v10754_v39  ;;  %v1383_v3 = vsel %vm229_vm7, %v11172_v51, 0.0  ;;  %v6337_v28 = vpop.eup %6336  ;;  %6350 = vpow2.f32 %v5241_v56  ;;  %v5189_v23 = vmul.f32 -1.442695, %v1734_v55 }
 0x411   :  { %v3713_v49 = vadd.f32 %v3705_v26, %v3697_v9  ;;  %v2203_v59 = vmul.f32 %v12975_v27, %v1383_v3  ;;  %v11403_v38 = vpop.eup %6338  ;;  %6352 = vpow2.f32 %v5382_v6  ;;  %v5565_v45 = vpack.c.bf16 %v6337_v28, %v6337_v28  ;;  %v13009_v9 = vld [vmem:[#allocation92_spill] sm:$0xff] }
 0x412   :  { %v2223_v10 = vadd.f32 %v13006_v47, %v2207_v58  ;;  %v2222_v14 = vadd.f32 %v13007_v34, %v2206_v54  ;;  %v6341_v39 = vpop.eup %6340  ;;  %v5387_v43 = vmul.f32 -1.442695, %v3724_v35  ;;  %v1382_v26 = vsel %vm229_vm7, %v11191_v46, 0.0  ;;  %v11414_v55 = vpop.permute.xlu0 %1974  ;;  %v13013_v34 = vld [vmem:[#allocation20_spill] sm:$0xff] }
 0x413   :  { %v3721_v51 = vadd.f32 %v3713_v49, %v12496_v31  ;;  %v2211_v56 = vadd.f32 %v2203_v59, %v10775_v41  ;;  %v11416_v12 = vpop.eup %6342  ;;  %2975 = vrot.lane.b32.xlu1 %v5565_v45, %s6645_s26  ;;  %6354 = vpow2.f32 %v5386_v33  ;;  %v5630_v6 = vpack.c.bf16 %v6341_v39, %v6341_v39  ;;  %v13011_v59 = vld [vmem:[#allocation81_spill] sm:$0xff]  ;;  %v13012_v45 = vld [vmem:[#allocation32_spill] sm:$0xff]  ;;  %v11439_v39 = vpop.permute.xlu1 %1972 }
 0x414   :  { %v5380_v17 = vmul.f32 -1.442695, %v3717_v22  ;;  %v2202_v16 = vmul.f32 %v12975_v27, %v1382_v26  ;;  %v6345_v35 = vpop.eup %6344  ;;  %v1696_v58 = vadd.f32 %v13009_v9, %v13008_v37  ;;  %6356 = vpow2.f32 %v5189_v23  ;;  %v13010_v22 = vld [vmem:[#allocation24_spill] sm:$0xff]  ;;  %v13015_v37 = vld [vmem:[#allocation26_spill] sm:$0xff] }
 0x415   :  { %v5384_v41 = vmul.f32 -1.442695, %v3721_v51  ;;  %v2231_v54 = vadd.f32 %v2223_v10, %v12496_v31  ;;  %4289 = vrot.lane.b32.xlu0 %v5630_v6, %s6645_s26  ;;  %v5601_v46 = vpack.c.bf16 %v6345_v35, %v6345_v35  ;;  %v2230_v3 = vadd.f32 %v2222_v14, %v12496_v31  ;;  %v13014_v35 = vld [vmem:[#allocation60_spill] sm:$0xff] }
 0x416   :  { %v2210_v28 = vadd.f32 %v2202_v16, %v10793_v30  ;;  %v4237_v33 = vadd.f32 1.0, %v11059_v7  ;;  %6358 = vpow2.f32 %v5387_v43  ;;  %v2227_v49 = vadd.f32 %v13010_v22, %v2211_v56  ;;  %v11433_v10 = vpop.permute.xlu0 %2143 }
 0x417   :  { %v1710_v47 = vadd.f32 %v13012_v45, %v13011_v59  ;;  %v1579_v23 = vsel %vm188_vm5, %v11199_v40, 0.0  ;;  %3639 = vrot.lane.b32.xlu1 %v5601_v46, %s6645_s26  ;;  %6360 = vpow2.f32 %v5380_v17  ;;  %v4240_v7 = vadd.f32 1.0, %v11158_v20 }
 0x418   :  { %v2226_v14 = vadd.f32 %v13013_v34, %v2210_v28  ;;  %v1719_v30 = vmul.f32 %v7823_v2, %v1579_v23  ;;  %6362 = vpow2.f32 %v5384_v41  ;;  %v5239_v43 = vmul.f32 -1.442695, %v2231_v54  ;;  %v13016_v41 = vld [vmem:[#allocation72_spill] sm:$0xff]  ;;  %v13017_v28 = vld [vmem:[#allocation90_spill] sm:$0xff]  ;;  %v13020_v34 = vld [vmem:[#allocation127_spill] sm:$0xff] }
 0x419   :  { %v1578_v51 = vsel %vm188_vm5, %v11227_v48, 0.0  ;;  %v3583_v40 = vadd.f32 1.0, %v11012_v61  ;;  %v5238_v56 = vmul.f32 -1.442695, %v2230_v3  ;;  %6364 = vrcp.f32 %v4237_v33  ;;  %v13018_v33 = vld [vmem:[#allocation158_spill] sm:$0xff] }
 0x41a   :  { %v1727_v26 = vadd.f32 %v1719_v30, %v1710_v47  ;;  %v1718_v6 = vmul.f32 %v7823_v2, %v1578_v51  ;;  %v2235_v16 = vadd.f32 %v2227_v49, %v12496_v31  ;;  %v2234_v20 = vadd.f32 %v2226_v14, %v12496_v31  ;;  %v11453_v48 = vpop.permute.xlu0 %1970 }
 0x41b   :  { %v6347_v17 = vpop.eup %6346  ;;  %v1709_v9 = vadd.f32 %v13015_v37, %v13014_v35  ;;  %v1583_v54 = vsel %vm188_vm5, %v13016_v41, 0.0  ;;  %6366 = vrcp.f32 %v4240_v7  ;;  %v1714_v22 = vadd.f32 %v13018_v33, %v13017_v28  ;;  %v13021_v7 = vld [vmem:[#allocation67_spill] sm:$0xff]  ;;  %v13023_v37 = vld [vmem:[#allocation97_spill] sm:$0xff]  ;;  %v13026_v33 = vld [vmem:[#allocation98_spill] sm:$0xff] }
 0x41c   :  { %v11455_v61 = vpop.eup %6348  ;;  %v5634_v46 = vpack.c.bf16 %v6347_v17, %v6347_v17  ;;  %v1736_v3 = vadd.f32 %v12496_v31, %v1727_v26  ;;  %6368 = vrcp.f32 %v3583_v40  ;;  %v1723_v59 = vmul.f32 %v7823_v2, %v1583_v54  ;;  %v11470_v26 = vpop.permute.xlu1 %2141  ;;  %v6573_v54 = vld [vmem:[#allocation2 + $0x40] sm:$0xff] }
 0x41d   :  { %v1726_v49 = vadd.f32 %v1718_v6, %v1709_v9  ;;  %v1582_v45 = vsel %vm188_vm5, %v11253_v60, 0.0  ;;  %v11464_v47 = vpop.eup %6350  ;;  %v1713_v14 = vadd.f32 %v13020_v34, %v1696_v58  ;;  %v3581_v51 = vadd.f32 1.0, %v13021_v7  ;;  %v13024_v9 = vld [vmem:[#allocation195_spill] sm:$0xff] }
 0x41e   :  { %13019 = vst [vmem:[#allocation130_spill] sm:$0xff] %v11464_v47  ;;  %4297 = vrot.lane.b32.xlu0 %v5634_v46, %s6645_s26  ;;  %v5191_v23 = vmul.f32 -1.442695, %v1736_v3  ;;  %v1722_v30 = vmul.f32 %v7823_v2, %v1582_v45  ;;  %v11472_v40 = vpop.eup %6352  ;;  %6370 = vpow2.f32 %v5239_v43  ;;  %v5243_v6 = vmul.f32 -1.442695, %v2235_v16  ;;  %v11475_v35 = vpop.permute.xlu0 %2139  ;;  %v13025_v46 = vld [vmem:[#allocation34_spill] sm:$0xff] }
 0x41f   :  { %v1735_v17 = vadd.f32 %v12496_v31, %v1726_v49  ;;  %v1731_v60 = vadd.f32 %v1723_v59, %v1714_v22  ;;  %13022 = vst [vmem:[#allocation94_spill] sm:$0xff] %v11475_v35  ;;  %v1695_v41 = vadd.f32 %v13024_v9, %v13023_v37  ;;  %v2180_v3 = vmul.f32 %v6573_v54, %v13025_v46  ;;  %v13030_v37 = vld [vmem:[#allocation21_spill] sm:$0xff] }
 0x420   :  { %6372 = vpow2.f32 %v5191_v23  ;;  %v1730_v58 = vadd.f32 %v1722_v30, %v1713_v14  ;;  %v11480_v28 = vpop.eup %6354  ;;  %v1682_v45 = vmul.f32 %v12782_v63, %v13026_v33  ;;  %v5242_v43 = vmul.f32 -1.442695, %v2234_v20  ;;  %v13027_v23 = vld [vmem:[#allocation33_spill] sm:$0xff]  ;;  %v13028_v30 = vld [vmem:[#allocation70_spill] sm:$0xff] }
 0x421   :  { %6374 = vrcp.f32 %v3581_v51  ;;  %v1581_v16 = vsel %vm188_vm5, %v11266_v29, 0.0  ;;  %v11487_v22 = vpop.eup %6356  ;;  %v5190_v49 = vmul.f32 -1.442695, %v1735_v17  ;;  %v1376_v59 = vsel %vm229_vm7, %v11274_v62, 0.0  ;;  %v13029_v17 = vld [vmem:[#allocation40_spill] sm:$0xff]  ;;  %v11502_v62 = vpop.permute.xlu1 %3963  ;;  %v13032_v33 = vld [vmem:[#allocation66_spill] sm:$0xff] }
 0x422   :  { %6376 = vpow2.f32 %v5238_v56  ;;  %v2927_v34 = vadd.f32 1.0, %v13027_v23  ;;  %v1740_v14 = vadd.f32 %v12496_v31, %v1731_v60  ;;  %v2188_v20 = vadd.f32 %v2180_v3, %v13028_v30  ;;  %v11508_v23 = vpop.permute.xlu0 %3961  ;;  %v13034_v47 = vld [vmem:[#allocation101_spill] sm:$0xff] }
 0x423   :  { %6378 = vpow2.f32 %v5243_v6  ;;  %v2196_v7 = vmul.f32 %v12975_v27, %v1376_v59  ;;  %v11496_v51 = vpop.eup %6358  ;;  %v1739_v29 = vadd.f32 %v12496_v31, %v1730_v58  ;;  %v1721_v56 = vmul.f32 %v7823_v2, %v1581_v16  ;;  %v13031_v6 = vld [vmem:[#allocation105_spill] sm:$0xff] }
 0x424   :  { %v2212_v9 = vmul.f32 %v13030_v37, %v13029_v17  ;;  %6380 = vrcp.f32 %v2927_v34  ;;  %v11504_v54 = vpop.eup %6360  ;;  %v1690_v60 = vadd.f32 %v1682_v45, %v13031_v6  ;;  %v2434_v59 = vadd.f32 1.0, %v13032_v33  ;;  %v13033_v58 = vld [vmem:[#allocation109_spill] sm:$0xff] }
 0x425   :  { %6382 = vpow2.f32 %v5242_v43  ;;  %v2204_v3 = vadd.f32 %v2196_v7, %v2188_v20  ;;  %v11510_v30 = vpop.eup %6362  ;;  %v1712_v16 = vadd.f32 %v13033_v58, %v1695_v41  ;;  %v2925_v17 = vadd.f32 1.0, %v13034_v47 }
 0x426   :  { %6384 = vpow2.f32 %v5190_v49  ;;  %v6365_v34 = vpop.eup %6364  ;;  %v5195_v50 = vmul.f32 -1.442695, %v1740_v14  ;;  %v1699_v45 = vmul.f32 %v13036_v32, %v13035_v42  ;;  %v5194_v20 = vmul.f32 -1.442695, %v1739_v29  ;;  %v13037_v29 = vld [vmem:[#allocation82_spill] sm:$0xff]  ;;  %v11529_v58 = vpop.permute.xlu0 %4129 }
 0x427   :  { %v2220_v5 = vadd.f32 %v2212_v9, %v2204_v3  ;;  %6386 = vrcp.f32 %v2434_v59  ;;  %v5628_v43 = vpack.c.bf16 %v6365_v34, %v6365_v34  ;;  %v1729_v7 = vadd.f32 %v1721_v56, %v1712_v16  ;;  %v11524_v9 = vpop.permute.xlu1 %4131  ;;  %v13039_v3 = vld [vmem:[#allocation17_spill] sm:$0xff] }
 0x428   :  { %v2261_v6 = vadd.f32 1.0, %v11394_v13  ;;  %v6367_v33 = vpop.eup %6366  ;;  %6388 = vrcp.f32 %v2925_v17  ;;  %v1707_v49 = vadd.f32 %v1699_v45, %v1690_v60  ;;  %v1576_v47 = vsel %vm188_vm5, %v11323_v25, 0.0  ;;  %v13038_v13 = vld [vmem:[#allocation188_spill] sm:$0xff]  ;;  %v13040_v60 = vld [vmem:[#allocation166_spill] sm:$0xff] }
 0x429   :  { %v2228_v35 = vadd.f32 %v2220_v5, %v12496_v31  ;;  %v6369_v41 = vpop.eup %6368  ;;  %4285 = vrot.lane.b32.xlu0 %v5628_v43, %s6645_s26  ;;  %v5631_v14 = vpack.c.bf16 %v6367_v33, %v6367_v33  ;;  %v1716_v42 = vmul.f32 %v7823_v2, %v1576_v47  ;;  %v4241_v56 = vadd.f32 1.0, %v13037_v29  ;;  %v6574_v29 = vld [vmem:[#allocation2 + $0x20] sm:$0xff] }
 0x42a   :  { %6390 = vrcp.f32 %v2261_v6  ;;  %v2176_v5 = vmul.f32 %v13039_v3, %v13038_v13  ;;  %v4244_v59 = vadd.f32 1.0, %v13040_v60  ;;  %v5598_v16 = vpack.c.bf16 %v6369_v41, %v6369_v41  ;;  %v13041_v6 = vld [vmem:[#allocation76_spill] sm:$0xff]  ;;  %v13042_v13 = vld [vmem:[#allocation15_spill] sm:$0xff] }
 0x42b   :  { %6392 = vpow2.f32 %v5195_v50  ;;  %v11531_v25 = vpop.eup %6370  ;;  %4291 = vrot.lane.b32.xlu1 %v5631_v14, %s6645_s26  ;;  %v1380_v17 = vsel %vm229_vm7, %v11298_v0, 0.0  ;;  %v1724_v34 = vadd.f32 %v1716_v42, %v1707_v49  ;;  %v1738_v43 = vadd.f32 %v12496_v31, %v1729_v7  ;;  %v6575_v49 = vld [vmem:[#allocation2 + $0x60] sm:$0xff] }
 0x42c   :  { %6394 = vrcp.f32 %v4241_v56  ;;  %v5236_v50 = vmul.f32 -1.442695, %v2228_v35  ;;  %v3587_v33 = vadd.f32 1.0, %v13041_v6  ;;  %v1677_v3 = vmul.f32 %v6574_v29, %v13042_v13  ;;  %v13043_v35 = vld [vmem:[#allocation71_spill] sm:$0xff] }
 0x42d   :  { %v6373_v45 = vpop.eup %6372  ;;  %6396 = vpow2.f32 %v5194_v20  ;;  %3633 = vrot.lane.b32.xlu0 %v5598_v16, %s6645_s26  ;;  %v1733_v41 = vadd.f32 %v12496_v31, %v1724_v34  ;;  %v2184_v20 = vmul.f32 %v6575_v49, %v13025_v46  ;;  %v2200_v7 = vmul.f32 %v12975_v27, %v1380_v17  ;;  %v11550_v34 = vpop.permute.xlu1 %3959 }
 0x42e   :  { %v6375_v47 = vpop.eup %6374  ;;  %v1768_v14 = vadd.f32 1.0, %v6373_v45  ;;  %6398 = vrcp.f32 %v4244_v59  ;;  %v3584_v42 = vadd.f32 1.0, %v13043_v35  ;;  %v2433_v16 = vadd.f32 1.0, %v11318_v18  ;;  %v13044_v45 = vld [vmem:[#allocation104_spill] sm:$0xff]  ;;  %v11554_v27 = vpop.permute.xlu0 %3957 }
 0x42f   :  { %v11542_v0 = vpop.eup %6376  ;;  %6400 = vrcp.f32 %v3587_v33  ;;  %v5596_v60 = vpack.c.bf16 %v6375_v47, %v6375_v47  ;;  %v5188_v6 = vmul.f32 -1.442695, %v1733_v41  ;;  %v1686_v29 = vmul.f32 %v12782_v63, %v13044_v45  ;;  %v13045_v33 = vld [vmem:[#allocation48_spill] sm:$0xff]  ;;  %v13049_v45 = vld [vmem:[#allocation151_spill] sm:$0xff] }
 0x430   :  { %v11547_v56 = vpop.eup %6378  ;;  %6402 = vrcp.f32 %v1768_v14  ;;  %v5193_v13 = vmul.f32 -1.442695, %v1738_v43  ;;  %v2192_v46 = vadd.f32 %v2184_v20, %v2176_v5  ;;  %v2216_v47 = vmul.f32 %v13030_v37, %v13045_v33  ;;  %v13046_v18 = vld [vmem:[#allocation56_spill] sm:$0xff]  ;;  %v13047_v14 = vld [vmem:[#allocation46_spill] sm:$0xff]  ;;  %v13048_v5 = vld [vmem:[#allocation155_spill] sm:$0xff] }
 0x431   :  { %v6381_v59 = vpop.eup %6380  ;;  %6404 = vpow2.f32 %v5236_v50  ;;  %3629 = vrot.lane.b32.xlu0 %v5596_v60, %s6645_s26  ;;  %v1703_v41 = vmul.f32 %v13036_v32, %v13046_v18  ;;  %v3585_v49 = vadd.f32 1.0, %v13047_v14  ;;  %v2928_v43 = vadd.f32 1.0, %v13048_v5  ;;  %v13051_v14 = vld [vmem:[#allocation89_spill] sm:$0xff] }
 0x432   :  { %v11556_v17 = vpop.eup %6382  ;;  %6406 = vpow2.f32 %v5188_v6  ;;  %v2208_v63 = vadd.f32 %v2200_v7, %v2192_v46  ;;  %v5566_v20 = vpack.c.bf16 %v6381_v59, %v6381_v59  ;;  %v1580_v60 = vsel %vm188_vm5, %v11348_v11, 0.0  ;;  %v13050_v7 = vld [vmem:[#allocation164_spill] sm:$0xff]  ;;  %v11572_v59 = vpop.permute.xlu1 %4127 }
 0x433   :  { %v6385_v35 = vpop.eup %6384  ;;  %6408 = vrcp.f32 %v3584_v42  ;;  %v1766_v37 = vadd.f32 1.0, %v11487_v22  ;;  %v1694_v6 = vadd.f32 %v1686_v29, %v1677_v3  ;;  %v2931_v33 = vadd.f32 1.0, %v13049_v45 }
 0x434   :  { %v6387_v50 = vpop.eup %6386  ;;  %6410 = vrcp.f32 %v2433_v16  ;;  %v3588_v42 = vadd.f32 1.0, %v13050_v7  ;;  %v2224_v11 = vadd.f32 %v2216_v47, %v2208_v63  ;;  %v1720_v22 = vmul.f32 %v7823_v2, %v1580_v60  ;;  %v11576_v16 = vpop.permute.xlu0 %4125 }
 0x435   :  { %6412 = vpow2.f32 %v5193_v13  ;;  %v5541_v32 = vpack.c.bf16 %v6387_v50, %v6387_v50  ;;  %v6389_v18 = vpop.eup %6388  ;;  %2977 = vrot.lane.b32.xlu0 %v5566_v20, %s6645_s26  ;;  %v1767_v3 = vadd.f32 1.0, %v6385_v35  ;;  %v1711_v47 = vadd.f32 %v1703_v41, %v1694_v6 }
 0x436   :  { %6414 = vrcp.f32 %v3585_v49  ;;  %v5564_v13 = vpack.c.bf16 %v6389_v18, %v6389_v18  ;;  %v2932_v49 = vadd.f32 1.0, %v13051_v14  ;;  %v3756_v2 = vadd.f32 1.0, %v11496_v51  ;;  %v13052_v51 = vld [vmem:[#allocation51_spill] sm:$0xff]  ;;  %v11594_v6 = vpop.permute.xlu1 %3307 }
 0x437   :  { %v6391_v15 = vpop.eup %6390  ;;  %2490 = vst.msk [vmem:[#allocation3 + $0x14] sm:$0xf] %vm1821_vm8, %v5541_v32  ;;  %6416 = vrcp.f32 %v2928_v43  ;;  %v2232_v43 = vadd.f32 %v2224_v11, %v12496_v31  ;;  %v1728_v50 = vadd.f32 %v1720_v22, %v1711_v47  ;;  %v3755_v45 = vadd.f32 1.0, %v11480_v28 }
 0x438   :  { %v11578_v29 = vpop.eup %6392  ;;  %2662 = vst.msk [vmem:[#allocation3 + $0x14] sm:$0xf] %vm1994_vm9, %v11307_v19  ;;  %v5533_v46 = vpack.c.bf16 %v6391_v15, %v6391_v15  ;;  %6418 = vrcp.f32 %v1766_v37  ;;  %v2262_v19 = vadd.f32 1.0, %v11542_v0  ;;  %v3754_v37 = vadd.f32 1.0, %v13052_v51  ;;  %v11597_v0 = vpop.permute.xlu0 %3305 }
 0x439   :  { %v6395_v5 = vpop.eup %6394  ;;  %2830 = vst.msk [vmem:[#allocation3 + $0x14] sm:$0xf] %vm2163_vm10, %v11341_v21  ;;  %6420 = vrcp.f32 %v2931_v33  ;;  %2973 = vrot.lane.b32.xlu0 %v5564_v13, %s6645_s26  ;;  %v2263_v21 = vadd.f32 1.0, %v11531_v25  ;;  %v5240_v7 = vmul.f32 -1.442695, %v2232_v43  ;;  %v3100_v28 = vadd.f32 1.0, %v11357_v1 }
 0x43a   :  { %v11586_v35 = vpop.eup %6396  ;;  %2310 = vrot.lane.b32.xlu1 %v5533_v46, %s6645_s26  ;;  %6422 = vrcp.f32 %v3588_v42  ;;  %v5632_v20 = vpack.c.bf16 %v6395_v5, %v6395_v5  ;;  %v1737_v42 = vadd.f32 %v12496_v31, %v1728_v50  ;;  %v3753_v1 = vadd.f32 1.0, %v11510_v30  ;;  %v13054_v30 = vld [vmem:[#allocation112_spill] sm:$0xff] }
 0x43b   :  { %v6399_v63 = vpop.eup %6398  ;;  %6424 = vrcp.f32 %v1767_v3 }
 0x43c   :  { %v6401_v41 = vpop.eup %6400  ;;  %v5635_v60 = vpack.c.bf16 %v6399_v63, %v6399_v63  ;;  %6426 = vrcp.f32 %v2932_v49  ;;  %v11611_v49 = vpop.permute.xlu1 %3475  ;;  %v5192_v63 = vmul.f32 -1.442695, %v1737_v42 }
 0x43d   :  { %v6403_v32 = vpop.eup %6402  ;;  %6428 = vrcp.f32 %v3756_v2  ;;  %4293 = vrot.lane.b32.xlu0 %v5632_v20, %s6645_s26  ;;  %v5602_v11 = vpack.c.bf16 %v6401_v41, %v6401_v41  ;;  %v11616_v2 = vpop.permute.xlu0 %3473 }
 0x43e   :  { %v6405_v33 = vpop.eup %6404  ;;  %v5511_v18 = vpack.c.bf16 %v6403_v32, %v6403_v32  ;;  %4299 = vrot.lane.b32.xlu1 %v5635_v60, %s6645_s26  ;;  %6430 = vrcp.f32 %v2262_v19  ;;  %v3099_v60 = vadd.f32 1.0, %v11388_v24 }
 0x43f   :  { %v6407_v25 = vpop.eup %6406  ;;  %6432 = vrcp.f32 %v2263_v21  ;;  %v2260_v46 = vadd.f32 1.0, %v6405_v33  ;;  %v2929_v21 = vadd.f32 1.0, %v13054_v30 }
 0x440   :  { %v6409_v15 = vpop.eup %6408  ;;  %1825 = vst.msk [vmem:[#allocation3 + $0xc] sm:$0xf] %vm1821_vm8, %v5511_v18  ;;  %v1765_v22 = vadd.f32 1.0, %v6407_v25  ;;  %6434 = vrcp.f32 %v3754_v37  ;;  %v11630_v18 = vpop.permute.xlu1 %3303 }
 0x441   :  { %v6411_v3 = vpop.eup %6410  ;;  %1998 = vst.msk [vmem:[#allocation3 + $0xc] sm:$0xf] %vm1994_vm9, %v11379_v4  ;;  %v5599_v13 = vpack.c.bf16 %v6409_v15, %v6409_v15  ;;  %6436 = vrcp.f32 %v3755_v45  ;;  %3641 = vrot.lane.b32.xlu0 %v5602_v11, %s6645_s26  ;;  %v13053_v4 = vld [vmem:[#allocation64_spill] sm:$0xff]  ;;  %v13055_v45 = vld [vmem:[#allocation139_spill] sm:$0xff]  ;;  %v11635_v42 = vpop.permute.xlu0 %3301  ;;  %v2267_v15 = vadd.f32 1.0, %v11547_v56 }
 0x442   :  { %v11606_v14 = vpop.eup %6412  ;;  %2167 = vst.msk [vmem:[#allocation3 + $0xc] sm:$0xf] %vm2163_vm10, %v11407_v44  ;;  %v5540_v31 = vpack.c.bf16 %v6411_v3, %v6411_v3  ;;  %6438 = vrcp.f32 %v1765_v22  ;;  %v3098_v47 = vadd.f32 1.0, %v13053_v4  ;;  %v2930_v33 = vadd.f32 1.0, %v13055_v45  ;;  %v13056_v22 = vld [vmem:[#allocation146_spill] sm:$0xff]  ;;  %v13062_v45 = vld [vmem:[#allocation172_spill] sm:$0xff] }
 0x443   :  { %v6415_v5 = vpop.eup %6414  ;;  %6440 = vpow2.f32 %v5240_v7  ;;  %3635 = vrot.lane.b32.xlu1 %v5599_v13, %s6645_s26  ;;  %v3097_v7 = vadd.f32 1.0, %v11416_v12  ;;  %v3750_v12 = vadd.f32 1.0, %v13056_v22  ;;  %v13066_v22 = vld [vmem:[#allocation187_spill] sm:$0xff] }
 0x444   :  { %v6417_v19 = vpop.eup %6416  ;;  %2489 = vst.msk [vmem:[#allocation3 + $0x10] sm:$0xf] %vm1821_vm8, %v5540_v31  ;;  %v5600_v43 = vpack.c.bf16 %v6415_v5, %v6415_v5  ;;  %6442 = vrcp.f32 %v3100_v28 }
 0x445   :  { %v6419_v44 = vpop.eup %6418  ;;  %2661 = vst.msk [vmem:[#allocation3 + $0x10] sm:$0xf] %vm1994_vm9, %v11368_v52  ;;  %v5567_v50 = vpack.c.bf16 %v6417_v19, %v6417_v19  ;;  %6444 = vrcp.f32 %v2260_v46  ;;  %v2440_v52 = vadd.f32 1.0, %v11334_v53  ;;  %v2266_v46 = vadd.f32 1.0, %v11556_v17  ;;  %v11660_v17 = vpop.permute.xlu0 %3469 }
 0x446   :  { %v6421_v41 = vpop.eup %6420  ;;  %3637 = vrot.lane.b32.xlu0 %v5600_v43, %s6645_s26  ;;  %v5509_v20 = vpack.c.bf16 %v6419_v44, %v6419_v44  ;;  %2829 = vst.msk [vmem:[#allocation3 + $0x10] sm:$0xf] %vm2163_vm10, %v11392_v57  ;;  %6446 = vrcp.f32 %v3753_v1  ;;  %v11654_v1 = vpop.permute.xlu1 %3471  ;;  %v3749_v44 = vadd.f32 1.0, %v11504_v54 }
 0x447   :  { %v6423_v51 = vpop.eup %6422  ;;  %2979 = vrot.lane.b32.xlu1 %v5567_v50, %s6645_s26  ;;  %6448 = vrcp.f32 %v3098_v47  ;;  %v5570_v32 = vpack.c.bf16 %v6421_v41, %v6421_v41  ;;  %v13059_v41 = vld [vmem:[#allocation99_spill] sm:$0xff] }
 0x448   :  { %v6425_v37 = vpop.eup %6424  ;;  %6450 = vpow2.f32 %v5192_v63  ;;  %1823 = vst.msk [vmem:[#allocation3 + $0x4] sm:$0xf] %vm1821_vm8, %v5509_v20  ;;  %v5603_v24 = vpack.c.bf16 %v6423_v51, %v6423_v51  ;;  %v3751_v63 = vadd.f32 1.0, %v11472_v40  ;;  %v3093_v20 = vadd.f32 1.0, %v13059_v41 }
 0x449   :  { %v6427_v25 = vpop.eup %6426  ;;  %1996 = vst.msk [vmem:[#allocation3 + $0x4] sm:$0xf] %vm1994_vm9, %v11439_v39  ;;  %v5510_v57 = vpack.c.bf16 %v6425_v37, %v6425_v37  ;;  %6452 = vrcp.f32 %v2929_v21 }
 0x44a   :  { %v6429_v53 = vpop.eup %6428  ;;  %2985 = vrot.lane.b32.xlu0 %v5570_v32, %s6645_s26  ;;  %2165 = vst.msk [vmem:[#allocation3 + $0x4] sm:$0xf] %vm2163_vm10, %v11470_v26  ;;  %6454 = vrcp.f32 %v3099_v60  ;;  %v2439_v26 = vadd.f32 1.0, %v11381_v8  ;;  %v5571_v56 = vpack.c.bf16 %v6427_v25, %v6427_v25  ;;  %v13057_v8 = vld [vmem:[#allocation144_spill] sm:$0xff]  ;;  %v2652_v21 = vpop.permute.xlu1 %2651 }
 0x44b   :  { %v6431_v11 = vpop.eup %6430  ;;  %3643 = vrot.lane.b32.xlu1 %v5603_v24, %s6645_s26  ;;  %1824 = vst.msk [vmem:[#allocation3 + $0x8] sm:$0xf] %vm1821_vm8, %v5510_v57  ;;  %v5611_v39 = vpack.c.bf16 %v6429_v53, %v6429_v53  ;;  %6456 = vrcp.f32 %v2440_v52  ;;  %v3094_v5 = vadd.f32 1.0, %v13057_v8  ;;  %v13061_v52 = vld [vmem:[#allocation114_spill] sm:$0xff]  ;;  %v13064_v57 = vld [vmem:[#allocation124_spill] sm:$0xff] }
 0x44c   :  { %v6433_v28 = vpop.eup %6432  ;;  %1997 = vst.msk [vmem:[#allocation3 + $0x8] sm:$0xf] %vm1994_vm9, %v11414_v55  ;;  %v5534_v3 = vpack.c.bf16 %v6431_v11, %v6431_v11  ;;  %6458 = vrcp.f32 %v2930_v33  ;;  %v2435_v37 = vadd.f32 1.0, %v13061_v52  ;;  %v3096_v33 = vadd.f32 1.0, %v13062_v45  ;;  %v13078_v45 = vld [vmem:[#allocation123_spill] sm:$0xff] }
 0x44d   :  { %v6435_v13 = vpop.eup %6434  ;;  %3812 = vst.msk [vmem:[#allocation3 + $0x7c] sm:$0xf] %vm1821_vm8, %v5611_v39  ;;  %6460 = vrcp.f32 %v3097_v7  ;;  %v5535_v50 = vpack.c.bf16 %v6433_v28, %v6433_v28  ;;  %v2436_v7 = vadd.f32 1.0, %v13064_v57 }
 0x44e   :  { %2166 = vst.msk [vmem:[#allocation3 + $0x8] sm:$0xf] %vm2163_vm10, %v11433_v10  ;;  %v6437_v31 = vpop.eup %6436  ;;  %2312 = vrot.lane.b32.xlu0 %v5534_v3, %s6645_s26  ;;  %v5609_v55 = vpack.c.bf16 %v6435_v13, %v6435_v13  ;;  %6462 = vrcp.f32 %v2267_v15  ;;  %v13065_v15 = vld [vmem:[#allocation57_spill] sm:$0xff] }
 0x44f   :  { %3980 = vst.msk [vmem:[#allocation3 + $0x7c] sm:$0xf] %vm1994_vm9, %v11502_v62  ;;  %v6439_v4 = vpop.eup %6438  ;;  %2987 = vrot.lane.b32.xlu1 %v5571_v56, %s6645_s26  ;;  %v5610_v10 = vpack.c.bf16 %v6437_v31, %v6437_v31  ;;  %6464 = vrcp.f32 %v3750_v12  ;;  %v2437_v62 = vadd.f32 1.0, %v11403_v38  ;;  %v3752_v38 = vadd.f32 1.0, %v11455_v61  ;;  %v13068_v31 = vld [vmem:[#allocation182_spill] sm:$0xff] }
 0x450   :  { %4148 = vst.msk [vmem:[#allocation3 + $0x7c] sm:$0xf] %vm2163_vm10, %v11524_v9  ;;  %v11663_v47 = vpop.eup %6440  ;;  %v5508_v19 = vpack.c.bf16 %v6439_v4, %v6439_v4  ;;  %6466 = vrcp.f32 %v2439_v26  ;;  %v3095_v61 = vadd.f32 1.0, %v11276_v36  ;;  %v2438_v11 = vadd.f32 1.0, %v13065_v15  ;;  %v2820_v26 = vpop.permute.xlu1 %2819  ;;  %v13082_v15 = vld [vmem:[#allocation50_spill] sm:$0xff] }
 0x451   :  { %3810 = vst.msk [vmem:[#allocation3 + $0x74] sm:$0xf] %vm1821_vm8, %v5609_v55  ;;  %v6443_v43 = vpop.eup %6442  ;;  %3811 = vst.msk [vmem:[#allocation3 + $0x78] sm:$0xf] %vm1821_vm8, %v5610_v10  ;;  %6468 = vrcp.f32 %v2266_v46 }
 0x452   :  { %3978 = vst.msk [vmem:[#allocation3 + $0x74] sm:$0xf] %vm1994_vm9, %v11550_v34  ;;  %v6445_v9 = vpop.eup %6444  ;;  %3979 = vst.msk [vmem:[#allocation3 + $0x78] sm:$0xf] %vm1994_vm9, %v11508_v23  ;;  %v5579_v40 = vpack.c.bf16 %v6443_v43, %v6443_v43  ;;  %6470 = vrcp.f32 %v3094_v5 }
 0x453   :  { %1822 = vst.msk [vmem:[#allocation3] sm:$0xf] %vm1821_vm8, %v5508_v19  ;;  %v6447_v54 = vpop.eup %6446  ;;  %2314 = vrot.lane.b32.xlu1 %v5535_v50, %s6645_s26  ;;  %v5532_v34 = vpack.c.bf16 %v6445_v9, %v6445_v9  ;;  %6472 = vrcp.f32 %v2437_v62  ;;  %v1770_v62 = vadd.f32 1.0, %v11606_v14  ;;  %v13070_v50 = vld [vmem:[#allocation103_spill] sm:$0xff] }
 0x454   :  { %4146 = vst.msk [vmem:[#allocation3 + $0x74] sm:$0xf] %vm2163_vm10, %v11572_v59  ;;  %4147 = vst.msk [vmem:[#allocation3 + $0x78] sm:$0xf] %vm2163_vm10, %v11529_v58  ;;  %v6449_v30 = vpop.eup %6448  ;;  %v13058_v59 = vld [vmem:[#allocation94_spill] sm:$0xff]  ;;  %v5608_v23 = vpack.c.bf16 %v6447_v54, %v6447_v54  ;;  %6474 = vrcp.f32 %v3751_v63  ;;  %v11694_v58 = vpop.permute.xlu0 %2649  ;;  %v13071_v9 = vld [vmem:[#allocation183_spill] sm:$0xff] }
 0x455   :  { %1995 = vst.msk [vmem:[#allocation3] sm:$0xf] %vm1994_vm9, %v11453_v48  ;;  %v11687_v60 = vpop.eup %6450  ;;  %v13060_v48 = vld [vmem:[#allocation186_spill] sm:$0xff]  ;;  %2308 = vrot.lane.b32.xlu0 %v5532_v34, %s6645_s26  ;;  %v5577_v36 = vpack.c.bf16 %v6449_v30, %v6449_v30  ;;  %6476 = vrcp.f32 %v3749_v44  ;;  %v2264_v44 = vadd.f32 1.0, %v11663_v47 }
 0x456   :  { %2164 = vst.msk [vmem:[#allocation3] sm:$0xf] %vm2163_vm10, %v13058_v59  ;;  %v5553_v51 = vpack.c.bf16 %v13060_v48, %v13060_v48  ;;  %v6453_v32 = vpop.eup %6452  ;;  %6478 = vrcp.f32 %v3752_v38  ;;  %v13069_v63 = vld [vmem:[#allocation18_spill] sm:$0xff]  ;;  %v5523_v38 = vpack.c.bf16 %v13071_v9, %v13071_v9 }
 0x457   :  { %3156 = vst.msk [vmem:[#allocation3 + $0x6c] sm:$0xf] %vm1821_vm8, %v5579_v40  ;;  %3809 = vst.msk [vmem:[#allocation3 + $0x70] sm:$0xf] %vm1821_vm8, %v5608_v23  ;;  %v6455_v25 = vpop.eup %6454  ;;  %6480 = vrcp.f32 %v3095_v61  ;;  %v5568_v56 = vpack.c.bf16 %v6453_v32, %v6453_v32  ;;  %v5522_v43 = vpack.c.bf16 %v13069_v63, %v13069_v63  ;;  %v13073_v54 = vld [vmem:[#allocation110_spill] sm:$0xff] }
 0x458   :  { %3324 = vst.msk [vmem:[#allocation3 + $0x6c] sm:$0xf] %vm1994_vm9, %v11594_v6  ;;  %2647 = vrot.lane.b32.xlu1 %v5553_v51, %s6641_s15  ;;  %v13063_v6 = vld [vmem:[#allocation126_spill] sm:$0xff]  ;;  %3977 = vst.msk [vmem:[#allocation3 + $0x70] sm:$0xf] %vm1994_vm9, %v11554_v27  ;;  %v5578_v53 = vpack.c.bf16 %v6455_v25, %v6455_v25  ;;  %6482 = vrcp.f32 %v3093_v20  ;;  %v5561_v27 = vpack.c.bf16 %v13066_v22, %v13066_v22  ;;  %v2818_v55 = vpop.permute.xlu0 %2817  ;;  %v13075_v20 = vld [vmem:[#allocation95_spill] sm:$0xff] }
 0x459   :  { %3492 = vst.msk [vmem:[#allocation3 + $0x6c] sm:$0xf] %vm2163_vm10, %v11611_v49  ;;  %v5560_v24 = vpack.c.bf16 %v13063_v6, %v13063_v6  ;;  %v6457_v49 = vpop.eup %6456  ;;  %4145 = vst.msk [vmem:[#allocation3 + $0x70] sm:$0xf] %vm2163_vm10, %v11576_v16  ;;  %6484 = vrcp.f32 %v2435_v37  ;;  %v13067_v16 = vld [vmem:[#allocation31_spill] sm:$0xff]  ;;  %v11763_v59 = vld [vmem:[%s11974_s3] sm:$0xff]  }
 0x45a   :  { %3154 = vst.msk [vmem:[#allocation3 + $0x64] sm:$0xf] %vm1821_vm8, %v5577_v36  ;;  %v6459_v39 = vpop.eup %6458  ;;  %v5547_v12 = vpack.c.bf16 %v6457_v49, %v6457_v49  ;;  %3155 = vst.msk [vmem:[#allocation3 + $0x68] sm:$0xf] %vm1821_vm8, %v5578_v53  ;;  %v2096_v3 = vadd.f32 1.0, %v13067_v16  ;;  %6486 = vrcp.f32 %v3096_v33  ;;  %v13076_v36 = vld [vmem:[#allocation100_spill] sm:$0xff]  ;;  %5842 = vmatprep.mubr.bf16.mxu0 %v11763_v59 }
 0x45b   :  { %3322 = vst.msk [vmem:[#allocation3 + $0x64] sm:$0xf] %vm1994_vm9, %v11630_v18  ;;  %2813 = vrot.lane.b32.xlu0 %v5560_v24, %s6644_s21  ;;  %v1772_v18 = vadd.f32 1.0, %v11578_v29  ;;  %v6461_v28 = vpop.eup %6460  ;;  %3323 = vst.msk [vmem:[#allocation3 + $0x68] sm:$0xf] %vm1994_vm9, %v11597_v0  ;;  %v2095_v29 = vadd.f32 1.0, %v13068_v31  ;;  %6488 = vrcp.f32 %v2436_v7  ;;  %v5569_v5 = vpack.c.bf16 %v6459_v39, %v6459_v39 }
 0x45c   :  { %3490 = vst.msk [vmem:[#allocation3 + $0x64] sm:$0xf] %vm2163_vm10, %v11654_v1  ;;  %v11721_v13 = vpop.eup %6462  ;;  %2815 = vrot.lane.b32.xlu1 %v5561_v27, %s6644_s21  ;;  %v5576_v46 = vpack.c.bf16 %v6461_v28, %v6461_v28  ;;  %3491 = vst.msk [vmem:[#allocation3 + $0x68] sm:$0xf] %vm2163_vm10, %v11616_v2  ;;  %6490 = vrcp.f32 %v2438_v11  ;;  %v1771_v2 = vadd.f32 1.0, %v11586_v35  ;;  %v2646_v34 = vpop.permute.xlu0 %2645  ;;  %v13077_v37 = vld [vmem:[#allocation129_spill] sm:$0xff] }
 0x45d   :  { %2496 = vst.msk [vmem:[#allocation3 + $0x5c] sm:$0xf] %vm1821_vm8, %v5547_v12  ;;  %v6465_v1 = vpop.eup %6464  ;;  %6492 = vrcp.f32 %v1772_v18  ;;  %v5531_v32 = vpack.c.bf16 %v13077_v37, %v13077_v37  ;;  %v13079_v6 = vld [vmem:[#allocation86_spill] sm:$0xff]  ;;  %v13080_v24 = vld [vmem:[#allocation36_spill] sm:$0xff]  ;;  %v13081_v53 = vld [vmem:[#allocation87_spill] sm:$0xff]  ;;  %v5539_v28 = vpack.c.bf16 %v11721_v13, %v11721_v13 }
 0x45e   :  { %2668 = vst.msk [vmem:[#allocation3 + $0x5c] sm:$0xf] %vm1994_vm9, %v2652_v21  ;;  %v6467_v8 = vpop.eup %6466  ;;  %v5605_v0 = vpack.c.bf16 %v6465_v1, %v6465_v1  ;;  %6494 = vrcp.f32 %v2096_v3  ;;  %v13074_v21 = vld [vmem:[#allocation192_spill] sm:$0xff]  ;;  %v13084_v27 = vld [vmem:[#allocation113_spill] sm:$0xff]  ;;  %v13086_v3 = vld [vmem:[#allocation22_spill] sm:$0xff] }
 0x45f   :  { %2981 = vrot.lane.b32.xlu0 %v5568_v56, %s6645_s26  ;;  %2836 = vst.msk [vmem:[#allocation3 + $0x5c] sm:$0xf] %vm2163_vm10, %v2820_v26  ;;  %v11734_v4 = vpop.eup %6468  ;;  %v5546_v10 = vpack.c.bf16 %v6467_v8, %v6467_v8  ;;  %6496 = vrcp.f32 %v2095_v29  ;;  %v5530_v41 = vpack.c.bf16 %v13074_v21, %v13074_v21  ;;  %v13083_v22 = vld [vmem:[#allocation84_spill] sm:$0xff]  ;;  %v13088_v31 = vld [vmem:[#allocation69_spill] sm:$0xff]  ;;  %v1769_v29 = vadd.f32 1.0, %v11687_v60 }
 0x460   :  { %3153 = vst.msk [vmem:[#allocation3 + $0x60] sm:$0xf] %vm1821_vm8, %v5576_v46  ;;  %v6471_v19 = vpop.eup %6470  ;;  %2983 = vrot.lane.b32.xlu1 %v5569_v5, %s6645_s26  ;;  %3806 = vst.msk [vmem:[#allocation3 + $0x34] sm:$0xf] %vm1821_vm8, %v5605_v0  ;;  %6498 = vrcp.f32 %v1771_v2  ;;  %v5538_v49 = vpack.c.bf16 %v11734_v4, %v11734_v4  ;;  %v13085_v16 = vld [vmem:[#allocation116_spill] sm:$0xff]  ;;  %v13087_v46 = vld [vmem:[#allocation121_spill] sm:$0xff] }
 0x461   :  { %3321 = vst.msk [vmem:[#allocation3 + $0x60] sm:$0xf] %vm1994_vm9, %v11635_v42  ;;  %v6473_v42 = vpop.eup %6472  ;;  %3974 = vst.msk [vmem:[#allocation3 + $0x34] sm:$0xf] %vm1994_vm9, %v13070_v50  ;;  %v5573_v35 = vpack.c.bf16 %v6471_v19, %v6471_v19  ;;  %6500 = vrcp.f32 %v1770_v62  ;;  %v13089_v1 = vld [vmem:[#allocation196_spill] sm:$0xff]  ;;  %v13090_v5 = vld [vmem:[#allocation77_spill] sm:$0xff] }
 0x462   :  { %3489 = vst.msk [vmem:[#allocation3 + $0x60] sm:$0xf] %vm2163_vm10, %v11660_v17  ;;  %v6475_v14 = vpop.eup %6474  ;;  %v13072_v17 = vld [vmem:[#allocation130_spill] sm:$0xff]  ;;  %4142 = vst.msk [vmem:[#allocation3 + $0x34] sm:$0xf] %vm2163_vm10, %v13073_v54  ;;  %v5544_v47 = vpack.c.bf16 %v6473_v42, %v6473_v42  ;;  %6502 = vrcp.f32 %v2264_v44  ;;  %v5520_v8 = vpack.c.bf16 %v13089_v1, %v13089_v1  ;;  %v13093_v60 = vld [vmem:[#allocation120_spill] sm:$0xff] }
 0x463   :  { %2495 = vst.msk [vmem:[#allocation3 + $0x58] sm:$0xf] %vm1821_vm8, %v5546_v10  ;;  %1982 = vrot.lane.b32.xlu0 %v5522_v43, %s6641_s15  ;;  %v2265_v40 = vadd.f32 1.0, %v13072_v17  ;;  %v6477_v61 = vpop.eup %6476  ;;  %3150 = vst.msk [vmem:[#allocation3 + $0x24] sm:$0xf] %vm1821_vm8, %v5573_v35  ;;  %v5606_v30 = vpack.c.bf16 %v6475_v14, %v6475_v14  ;;  %v13091_v0 = vld [vmem:[#allocation62_spill] sm:$0xff] }
 0x464   :  { %2667 = vst.msk [vmem:[#allocation3 + $0x58] sm:$0xf] %vm1994_vm9, %v11694_v58  ;;  %v6479_v23 = vpop.eup %6478  ;;  %1984 = vrot.lane.b32.xlu1 %v5523_v38, %s6641_s15  ;;  %3318 = vst.msk [vmem:[#allocation3 + $0x24] sm:$0xf] %vm1994_vm9, %v13075_v20  ;;  %v5604_v48 = vpack.c.bf16 %v6477_v61, %v6477_v61  ;;  %v13092_v2 = vld [vmem:[#allocation118_spill] sm:$0xff]  ;;  %v13094_v19 = vld [vmem:[#allocation132_spill] sm:$0xff] }
 0x465   :  { %2835 = vst.msk [vmem:[#allocation3 + $0x58] sm:$0xf] %vm2163_vm10, %v2818_v55  ;;  %v6481_v51 = vpop.eup %6480  ;;  %3486 = vst.msk [vmem:[#allocation3 + $0x24] sm:$0xf] %vm2163_vm10, %v13076_v36  ;;  %v5607_v58 = vpack.c.bf16 %v6479_v23, %v6479_v23  ;;  %6504 = vrcp.f32 %v2265_v40  ;;  %v5521_v63 = vpack.c.bf16 %v13094_v19, %v13094_v19  ;;  %v13095_v43 = vld [vmem:[#allocation80_spill] sm:$0xff]  ;;  %v11850_v20 = vld [vmem:[%s11975_s4 + $0x38] sm:$0xff]  }
 0x466   :  { %2493 = vst.msk [vmem:[#allocation3 + $0x50] sm:$0xf] %vm1821_vm8, %v5544_v47  ;;  %3807 = vst.msk [vmem:[#allocation3 + $0x38] sm:$0xf] %vm1821_vm8, %v5606_v30  ;;  %v6483_v52 = vpop.eup %6482  ;;  %v5574_v33 = vpack.c.bf16 %v6481_v51, %v6481_v51  ;;  %6506 = vrcp.f32 %v1769_v29  ;;  %5858 = vmatprep.subr.bf16.mxu1 %v11850_v20  ;;  %v11864_v36 = vld [vmem:[%s11975_s4 + $0x28] sm:$0xff]  }
 0x467   :  { %2665 = vst.msk [vmem:[#allocation3 + $0x50] sm:$0xf] %vm1994_vm9, %v2646_v34  ;;  %2151 = vrot.lane.b32.xlu0 %v5530_v41, %s6644_s21  ;;  %3975 = vst.msk [vmem:[#allocation3 + $0x38] sm:$0xf] %vm1994_vm9, %v13078_v45  ;;  %v6485_v25 = vpop.eup %6484  ;;  %v5572_v57 = vpack.c.bf16 %v6483_v52, %v6483_v52  ;;  %5859 = vmatpush3.bf16.msra.mxu1 %v11850_v20  ;;  %v11878_v52 = vld [vmem:[%s11975_s4 + $0x18] sm:$0xff]   ;;  %v11887_v45 = vld [vmem:[%s11975_s4 + $0x10] sm:$0xff]  }
 0x468   :  { %3805 = vst.msk [vmem:[#allocation3 + $0x30] sm:$0xf] %vm1821_vm8, %v5604_v48  ;;  %3808 = vst.msk [vmem:[#allocation3 + $0x3c] sm:$0xf] %vm1821_vm8, %v5607_v58  ;;  %v6487_v7 = vpop.eup %6486  ;;  %2153 = vrot.lane.b32.xlu1 %v5531_v32, %s6644_s21  ;;  %v5542_v11 = vpack.c.bf16 %v6485_v25, %v6485_v25  ;;  %v11855_v48 = vld [vmem:[%s11975_s4 + $0x30] sm:$0xff]   ;;  %v11871_v58 = vld [vmem:[%s11975_s4 + $0x20] sm:$0xff]  }
 0x469   :  { %4143 = vst.msk [vmem:[#allocation3 + $0x38] sm:$0xf] %vm2163_vm10, %v13079_v6  ;;  %v6489_v39 = vpop.eup %6488  ;;  %v5575_v12 = vpack.c.bf16 %v6487_v7, %v6487_v7  ;;  %5860 = vmatprep.subr.bf16.mxu1 %v11855_v48 }
 0x46a   :  { %3973 = vst.msk [vmem:[#allocation3 + $0x30] sm:$0xf] %vm1994_vm9, %v13080_v24  ;;  %3976 = vst.msk [vmem:[#allocation3 + $0x3c] sm:$0xf] %vm1994_vm9, %v13082_v15  ;;  %v6491_v18 = vpop.eup %6490  ;;  %v5543_v26 = vpack.c.bf16 %v6489_v39, %v6489_v39 }
 0x46b   :  { %4141 = vst.msk [vmem:[#allocation3 + $0x30] sm:$0xf] %vm2163_vm10, %v13081_v53  ;;  %4144 = vst.msk [vmem:[#allocation3 + $0x3c] sm:$0xf] %vm2163_vm10, %v13083_v22  ;;  %2320 = vrot.lane.b32.xlu0 %v5538_v49, %s6645_s26  ;;  %v6493_v56 = vpop.eup %6492  ;;  %v5545_v13 = vpack.c.bf16 %v6491_v18, %v6491_v18  ;;  %5861 = vmatpush3.bf16.msra.mxu1 %v11855_v48 }
 0x46c   :  { %3151 = vst.msk [vmem:[#allocation3 + $0x28] sm:$0xf] %vm1821_vm8, %v5574_v33  ;;  %3149 = vst.msk [vmem:[#allocation3 + $0x20] sm:$0xf] %vm1821_vm8, %v5572_v57  ;;  %v6495_v55 = vpop.eup %6494  ;;  %2322 = vrot.lane.b32.xlu1 %v5539_v28, %s6645_s26  ;;  %v5515_v4 = vpack.c.bf16 %v6493_v56, %v6493_v56  ;;  %5862 = vmatprep.subr.bf16.mxu1 %v11864_v36 }
 0x46d   :  { %3319 = vst.msk [vmem:[#allocation3 + $0x28] sm:$0xf] %vm1994_vm9, %v13084_v27  ;;  %3317 = vst.msk [vmem:[#allocation3 + $0x20] sm:$0xf] %vm1994_vm9, %v13086_v3  ;;  %v6497_v10 = vpop.eup %6496  ;;  %v5529_v9 = vpack.c.bf16 %v6495_v55, %v6495_v55 }
 0x46e   :  { %3487 = vst.msk [vmem:[#allocation3 + $0x28] sm:$0xf] %vm2163_vm10, %v13085_v16  ;;  %3485 = vst.msk [vmem:[#allocation3 + $0x20] sm:$0xf] %vm2163_vm10, %v13087_v46  ;;  %v6499_v62 = vpop.eup %6498  ;;  %v5528_v50 = vpack.c.bf16 %v6497_v10, %v6497_v10 }
 0x46f   :  { %2491 = vst.msk [vmem:[#allocation3 + $0x18] sm:$0xf] %vm1821_vm8, %v5542_v11  ;;  %3152 = vst.msk [vmem:[#allocation3 + $0x2c] sm:$0xf] %vm1821_vm8, %v5575_v12  ;;  %1978 = vrot.lane.b32.xlu0 %v5520_v8, %s6641_s15  ;;  %v6501_v44 = vpop.eup %6500  ;;  %v5514_v42 = vpack.c.bf16 %v6499_v62, %v6499_v62  ;;  %5863 = vmatpush3.bf16.msra.mxu1 %v11864_v36  ;;  %v5977_v62 = vld [vmem:[%s11974_s3 + $0x10] sm:$0xff]  }
 0x470   :  { %2663 = vst.msk [vmem:[#allocation3 + $0x18] sm:$0xf] %vm1994_vm9, %v13088_v31  ;;  %3320 = vst.msk [vmem:[#allocation3 + $0x2c] sm:$0xf] %vm1994_vm9, %v13091_v0  ;;  %1980 = vrot.lane.b32.xlu1 %v5521_v63, %s6641_s15  ;;  %v5513_v35 = vpack.c.bf16 %v6501_v44, %v6501_v44  ;;  %v6503_v14 = vpop.eup %6502  ;;  %5864 = vmatprep.subr.bf16.mxu1 %v11871_v58 }
 0x471   :  { %2831 = vst.msk [vmem:[#allocation3 + $0x18] sm:$0xf] %vm2163_vm10, %v13090_v5  ;;  %3488 = vst.msk [vmem:[#allocation3 + $0x2c] sm:$0xf] %vm2163_vm10, %v13092_v2  ;;  %v5536_v17 = vpack.c.bf16 %v6503_v14, %v6503_v14  ;;  %v5981_v14 = vld [vmem:[%s11974_s3 + $0x20] sm:$0xff]  }
 0x472   :  { %2492 = vst.msk [vmem:[#allocation3 + $0x1c] sm:$0xf] %vm1821_vm8, %v5543_v26  ;;  %2494 = vst.msk [vmem:[#allocation3 + $0x54] sm:$0xf] %vm1821_vm8, %v5545_v13  ;;  %v6505_v38 = vpop.eup %6504 }
 0x473   :  { %2664 = vst.msk [vmem:[#allocation3 + $0x1c] sm:$0xf] %vm1994_vm9, %v13093_v60  ;;  %2147 = vrot.lane.b32.xlu0 %v5528_v50, %s6644_s21  ;;  %v5537_v54 = vpack.c.bf16 %v6505_v38, %v6505_v38  ;;  %v6507_v47 = vpop.eup %6506  ;;  %5865 = vmatpush3.bf16.msra.mxu1 %v11871_v58  ;;  %v5974_v60 = vld [vmem:[%s11974_s3 + $0x8] sm:$0xff]  }
 0x474   :  { %2832 = vst.msk [vmem:[#allocation3 + $0x1c] sm:$0xf] %vm2163_vm10, %v13095_v43  ;;  %2149 = vrot.lane.b32.xlu1 %v5529_v9, %s6644_s21  ;;  %v4288_v40 = vpop.permute.xlu1 %4287  ;;  %v5512_v61 = vpack.c.bf16 %v6507_v47, %v6507_v47  ;;  %5866 = vmatprep.subr.bf16.mxu1 %v11878_v52 }
 0x475   :  { %1829 = vst.msk [vmem:[#allocation3 + $0x4c] sm:$0xf] %vm1821_vm8, %v5515_v4  ;;  %1828 = vst.msk [vmem:[#allocation3 + $0x48] sm:$0xf] %vm1821_vm8, %v5514_v42 }
 0x476   :  { %1827 = vst.msk [vmem:[#allocation3 + $0x44] sm:$0xf] %vm1821_vm8, %v5513_v35  ;;  %1826 = vst.msk [vmem:[#allocation3 + $0x40] sm:$0xf] %vm1821_vm8, %v5512_v61  ;;  %v5978_v35 = vld [vmem:[%s11974_s3 + $0x18] sm:$0xff]   ;;  %v5985_v61 = vld [vmem:[%s11974_s3 + $0x30] sm:$0xff]  }
 0x477   :  { %4310 = vst.msk [vmem:[#allocation3 + $0x34] sm:$0xf] %vm2332_vm11, %v4288_v40  ;;  %2316 = vrot.lane.b32.xlu0 %v5536_v17, %s6645_s26  ;;  %5867 = vmatpush3.bf16.msra.mxu1 %v11878_v52 }
 0x478   :  { %2318 = vrot.lane.b32.xlu1 %v5537_v54, %s6645_s26  ;;  %5868 = vmatprep.subr.bf16.mxu1 %v11887_v45 }
 0x479   :  { %v4296_v34 = vpop.permute.xlu1 %4295 }
 0x47a   :  { %4314 = vst.msk [vmem:[#allocation3 + $0x74] sm:$0xf] %vm2332_vm11, %v4296_v34  ;;  %v5982_v34 = vld [vmem:[%s11974_s3 + $0x28] sm:$0xff]  }
 0x47b   :  { %5869 = vmatpush3.bf16.msra.mxu1 %v11887_v45 }
 0x47d   :  { %v3632_v30 = vpop.permute.xlu1 %3631 }
 0x47e   :  { %3654 = vst.msk [vmem:[#allocation3 + $0x24] sm:$0xf] %vm2332_vm11, %v3632_v30 }
 0x485   :  { %v2976_v23 = vpop.permute.xlu1 %2975 }
 0x486   :  { %2998 = vst.msk [vmem:[#allocation3 + $0x14] sm:$0xf] %vm2332_vm11, %v2976_v23 }
 0x487   :  { %v4290_v21 = vpop.permute.xlu0 %4289 }
 0x488   :  { %4311 = vst.msk [vmem:[#allocation3 + $0x38] sm:$0xf] %vm2332_vm11, %v4290_v21 }
 0x489   :  { %v3640_v41 = vpop.permute.xlu1 %3639 }
 0x48a   :  { %3658 = vst.msk [vmem:[#allocation3 + $0x64] sm:$0xf] %vm2332_vm11, %v3640_v41 }
 0x490   :  { %v4298_v51 = vpop.permute.xlu0 %4297 }
 0x491   :  { %4315 = vst.msk [vmem:[#allocation3 + $0x78] sm:$0xf] %vm2332_vm11, %v4298_v51 }
 0x49b   :  { %v4286_v37 = vpop.permute.xlu0 %4285 }
 0x49c   :  { %4309 = vst.msk [vmem:[#allocation3 + $0x30] sm:$0xf] %vm2332_vm11, %v4286_v37  ;;  %v5986_v37 = vld [vmem:[%s11974_s3 + $0x38] sm:$0xff]  }
 0x49d   :  { %v4292_v32 = vpop.permute.xlu1 %4291 }
 0x49e   :  { %4312 = vst.msk [vmem:[#allocation3 + $0x3c] sm:$0xf] %vm2332_vm11, %v4292_v32 }
 0x49f   :  { %v3634_v33 = vpop.permute.xlu0 %3633 }
 0x4a0   :  { %3655 = vst.msk [vmem:[#allocation3 + $0x28] sm:$0xf] %vm2332_vm11, %v3634_v33  ;;  %v5994_v33 = vld [vmem:[%s11975_s4 + $0x8] sm:$0xff]  }
 0x4a1   :  { %5870 = vmatprep.subr.bf16.mxu1 %v5994_v33 }
 0x4a2   :  { %5871 = vmatpush3.bf16.msra.mxu1 %v5994_v33 }
 0x4a3   :  { %v3630_v25 = vpop.permute.xlu0 %3629  ;;  %v5965_v57 = vld [vmem:[#allocation3 + $0x30] sm:$0xff]  }
 0x4a4   :  { %3653 = vst.msk [vmem:[#allocation3 + $0x20] sm:$0xf] %vm2332_vm11, %v3630_v25 }
 0x4a5   :  { %v5964_v6 = vld [vmem:[#allocation3 + $0x38] sm:$0xff]  }
 0x4a6   :  { %5826 = vmatprep.subr.bf16.mxu0 %v5964_v6 }
 0x4a7   :  { %v2978_v24 = vpop.permute.xlu0 %2977  ;;  %5827 = vmatpush3.bf16.msra.mxu0 %v5964_v6 }
 0x4a8   :  { %2999 = vst.msk [vmem:[#allocation3 + $0x18] sm:$0xf] %vm2332_vm11, %v2978_v24  ;;  %5828 = vmatprep.subr.bf16.mxu0 %v5965_v57 }
 0x4ab   :  { %v2974_v7 = vpop.permute.xlu0 %2973  ;;  %5829 = vmatpush3.bf16.msra.mxu0 %v5965_v57  ;;  %v5967_v16 = vld [vmem:[#allocation3 + $0x20] sm:$0xff]  }
 0x4ac   :  { %v2311_v49 = vpop.permute.xlu1 %2310  ;;  %2997 = vst.msk [vmem:[#allocation3 + $0x10] sm:$0xf] %vm2332_vm11, %v2974_v7 }
 0x4ad   :  { %2334 = vst.msk [vmem:[#allocation3 + $0x4] sm:$0xf] %vm2332_vm11, %v2311_v49 }
 0x4af   :  { %v4294_v53 = vpop.permute.xlu0 %4293 }
 0x4b0   :  { %v4300_v15 = vpop.permute.xlu1 %4299  ;;  %4313 = vst.msk [vmem:[#allocation3 + $0x70] sm:$0xf] %vm2332_vm11, %v4294_v53 }
 0x4b1   :  { %4316 = vst.msk [vmem:[#allocation3 + $0x7c] sm:$0xf] %vm2332_vm11, %v4300_v15 }
 0x4b3   :  { %v3642_v11 = vpop.permute.xlu0 %3641  ;;  %v5969_v31 = vld [vmem:[#allocation3 + $0x10] sm:$0xff]  }
 0x4b4   :  { %3659 = vst.msk [vmem:[#allocation3 + $0x68] sm:$0xf] %vm2332_vm11, %v3642_v11 }
 0x4b5   :  { %v3636_v39 = vpop.permute.xlu1 %3635 }
 0x4b6   :  { %3656 = vst.msk [vmem:[#allocation3 + $0x2c] sm:$0xf] %vm2332_vm11, %v3636_v39 }
 0x4b7   :  { %v5975_v43 = vld [vmem:[#allocation3 + $0x70] sm:$0xff]  }
 0x4b8   :  { %v3638_v22 = vpop.permute.xlu0 %3637  ;;  %v5972_v2 = vld [vmem:[#allocation3 + $0x78] sm:$0xff]  }
 0x4b9   :  { %3657 = vst.msk [vmem:[#allocation3 + $0x60] sm:$0xf] %vm2332_vm11, %v3638_v22  ;;  %v2980_v27 = vpop.permute.xlu1 %2979 }
 0x4ba   :  { %3000 = vst.msk [vmem:[#allocation3 + $0x1c] sm:$0xf] %vm2332_vm11, %v2980_v27 }
 0x4bc   :  { %v2986_v12 = vpop.permute.xlu0 %2985 }
 0x4bd   :  { %3003 = vst.msk [vmem:[#allocation3 + $0x58] sm:$0xf] %vm2332_vm11, %v2986_v12  ;;  %v3644_v18 = vpop.permute.xlu1 %3643  ;;  %v5966_v28 = vld [vmem:[#allocation3 + $0x28] sm:$0xff]  }
 0x4be   :  { %3660 = vst.msk [vmem:[#allocation3 + $0x6c] sm:$0xf] %vm2332_vm11, %v3644_v18  ;;  %5830 = vmatprep.subr.bf16.mxu0 %v5966_v28 }
 0x4bf   :  { %5831 = vmatpush3.bf16.msra.mxu0 %v5966_v28 }
 0x4c0   :  { %v2313_v3 = vpop.permute.xlu0 %2312  ;;  %5832 = vmatprep.subr.bf16.mxu0 %v5967_v16  ;;  %v5979_v17 = vld [vmem:[#allocation3 + $0x60] sm:$0xff]  }
 0x4c1   :  { %v2988_v26 = vpop.permute.xlu1 %2987  ;;  %2335 = vst.msk [vmem:[#allocation3 + $0x8] sm:$0xf] %vm2332_vm11, %v2313_v3  ;;  %v5968_v56 = vld [vmem:[#allocation3 + $0x18] sm:$0xff]  }
 0x4c2   :  { %3004 = vst.msk [vmem:[#allocation3 + $0x5c] sm:$0xf] %vm2332_vm11, %v2988_v26 }
 0x4c3   :  { %5833 = vmatpush3.bf16.msra.mxu0 %v5967_v16 }
 0x4c4   :  { %5834 = vmatprep.subr.bf16.mxu0 %v5968_v56 }
 0x4c5   :  { %v2315_v46 = vpop.permute.xlu1 %2314  ;;  %v5976_v50 = vld [vmem:[#allocation3 + $0x68] sm:$0xff]  }
 0x4c6   :  { %2336 = vst.msk [vmem:[#allocation3 + $0xc] sm:$0xf] %vm2332_vm11, %v2315_v46 }
 0x4c7   :  { %v2309_v13 = vpop.permute.xlu0 %2308  ;;  %5835 = vmatpush3.bf16.msra.mxu0 %v5968_v56 }
 0x4c8   :  { %2333 = vst.msk [vmem:[#allocation3] sm:$0xf] %vm2332_vm11, %v2309_v13  ;;  %5836 = vmatprep.subr.bf16.mxu0 %v5969_v31 }
 0x4c9   :  { %v5980_v47 = vld [vmem:[#allocation3 + $0x58] sm:$0xff]  }
 0x4ca   :  { %v2648_v29 = vpop.permute.xlu1 %2647 }
 0x4cb   :  { %2666 = vst.msk [vmem:[#allocation3 + $0x54] sm:$0xf] %vm1994_vm9, %v2648_v29  ;;  %5837 = vmatpush3.bf16.msra.mxu0 %v5969_v31 }
 0x4cd   :  { %v2814_v55 = vpop.permute.xlu0 %2813  ;;  %v5970_v8 = vld [vmem:[#allocation3 + $0x8] sm:$0xff]  }
 0x4ce   :  { %2833 = vst.msk [vmem:[#allocation3 + $0x50] sm:$0xf] %vm2163_vm10, %v2814_v55  ;;  %v2816_v1 = vpop.permute.xlu1 %2815  ;;  %5838 = vmatprep.subr.bf16.mxu0 %v5970_v8 }
 0x4cf   :  { %2834 = vst.msk [vmem:[#allocation3 + $0x54] sm:$0xf] %vm2163_vm10, %v2816_v1  ;;  %v5971_v0 = vld [vmem:[#allocation3] sm:$0xff]   ;;  %5839 = vmatpush3.bf16.msra.mxu0 %v5970_v8 }
 0x4d0   :  { %5840 = vmatprep.subr.bf16.mxu0 %v5971_v0 }
 0x4d1   :  { %v2982_v5 = vpop.permute.xlu0 %2981 }
 0x4d2   :  { %3001 = vst.msk [vmem:[#allocation3 + $0x50] sm:$0xf] %vm2332_vm11, %v2982_v5  ;;  %v2984_v4 = vpop.permute.xlu1 %2983 }
 0x4d3   :  { %3002 = vst.msk [vmem:[#allocation3 + $0x54] sm:$0xf] %vm2332_vm11, %v2984_v4  ;;  %5841 = vmatpush3.bf16.msra.mxu0 %v5971_v0 }
 0x4d4   :  { %5890 = vmatprep.subr.bf16.mxu0 %v5972_v2 }
 0x4d5   :  { %v1983_v10 = vpop.permute.xlu0 %1982 }
 0x4d6   :  { %2001 = vst.msk [vmem:[#allocation3 + $0x48] sm:$0xf] %vm1994_vm9, %v1983_v10  ;;  %v1985_v19 = vpop.permute.xlu1 %1984  ;;  %5843 = vmatmul.mubr.bf16.vlgmr.msra.gmra.mxu0 %v5974_v60 }
 0x4d7   :  { %2002 = vst.msk [vmem:[#allocation3 + $0x4c] sm:$0xf] %vm1994_vm9, %v1985_v19  ;;  %5891 = vmatpush3.bf16.msra.mxu0 %v5972_v2  ;;  %5846 = vmatprep.mubr.bf16.mxu0 %v5977_v62 }
 0x4d8   :  { %5892 = vmatprep.subr.bf16.mxu0 %v5975_v43 }
 0x4d9   :  { %v2152_v63 = vpop.permute.xlu0 %2151 }
 0x4da   :  { %2170 = vst.msk [vmem:[#allocation3 + $0x48] sm:$0xf] %vm2163_vm10, %v2152_v63  ;;  %v2154_v44 = vpop.permute.xlu1 %2153  ;;  %v5983_v21 = vld [vmem:[#allocation3 + $0x50] sm:$0xff]  }
 0x4db   :  { %2171 = vst.msk [vmem:[#allocation3 + $0x4c] sm:$0xf] %vm2163_vm10, %v2154_v44  ;;  %5893 = vmatpush3.bf16.msra.mxu0 %v5975_v43 }
 0x4dc   :  { %5894 = vmatprep.subr.bf16.mxu0 %v5976_v50 }
 0x4dd   :  { %v2321_v42 = vpop.permute.xlu0 %2320 }
 0x4de   :  { %2339 = vst.msk [vmem:[#allocation3 + $0x48] sm:$0xf] %vm2332_vm11, %v2321_v42  ;;  %v2323_v9 = vpop.permute.xlu1 %2322  ;;  %5847 = vmatmul.mubr.bf16.gmra.mxu0 %v5978_v35 }
 0x4df   :  { %2340 = vst.msk [vmem:[#allocation3 + $0x4c] sm:$0xf] %vm2332_vm11, %v2323_v9  ;;  %5895 = vmatpush3.bf16.msra.mxu0 %v5976_v50  ;;  %5850 = vmatprep.mubr.bf16.mxu0 %v5981_v14 }
 0x4e0   :  { %5896 = vmatprep.subr.bf16.mxu0 %v5979_v17 }
 0x4e1   :  { %v1979_v38 = vpop.permute.xlu0 %1978 }
 0x4e2   :  { %1999 = vst.msk [vmem:[#allocation3 + $0x40] sm:$0xf] %vm1994_vm9, %v1979_v38  ;;  %v1981_v40 = vpop.permute.xlu1 %1980 }
 0x4e3   :  { %2000 = vst.msk [vmem:[#allocation3 + $0x44] sm:$0xf] %vm1994_vm9, %v1981_v40  ;;  %5897 = vmatpush3.bf16.msra.mxu0 %v5979_v17 }
 0x4e4   :  { %5898 = vmatprep.subr.bf16.mxu0 %v5980_v47 }
 0x4e5   :  { %v2148_v54 = vpop.permute.xlu0 %2147 }
 0x4e6   :  { %2168 = vst.msk [vmem:[#allocation3 + $0x40] sm:$0xf] %vm2163_vm10, %v2148_v54  ;;  %v2150_v30 = vpop.permute.xlu1 %2149  ;;  %5851 = vmatmul.mubr.bf16.gmra.mxu0 %v5982_v34  ;;  %v5984_v51 = vld [vmem:[#allocation3 + $0x48] sm:$0xff]  }
 0x4e7   :  { %2169 = vst.msk [vmem:[#allocation3 + $0x44] sm:$0xf] %vm2163_vm10, %v2150_v30  ;;  %5899 = vmatpush3.bf16.msra.mxu0 %v5980_v47  ;;  %5854 = vmatprep.mubr.bf16.mxu0 %v5985_v61 }
 0x4e8   :  { %5900 = vmatprep.subr.bf16.mxu0 %v5983_v21 }
 0x4e9   :  { %v2317_v23 = vpop.permute.xlu0 %2316 }
 0x4ea   :  { %2337 = vst.msk [vmem:[#allocation3 + $0x40] sm:$0xf] %vm2332_vm11, %v2317_v23  ;;  %v2319_v41 = vpop.permute.xlu1 %2318 }
 0x4eb   :  { %2338 = vst.msk [vmem:[#allocation3 + $0x44] sm:$0xf] %vm2332_vm11, %v2319_v41  ;;  %5901 = vmatpush3.bf16.msra.mxu0 %v5983_v21 }
 0x4ec   :  { %5902 = vmatprep.subr.bf16.mxu0 %v5984_v51 }
 0x4ee   :  { %5855 = vmatmul.mubr.bf16.gmra.mxu0 %v5986_v37 }
 0x4ef   :  { %5903 = vmatpush3.bf16.msra.mxu0 %v5984_v51  ;;  %5906 = vmatprep.mubr.bf16.mxu0 %v11763_v59  ;;  %v5995_v59 = vld [vmem:[%s11975_s4] sm:$0xff]   ;;  %s6646_s4 = smov [#allocation10]  }
 0x4f0   :  { %5872 = vmatprep.subr.bf16.mxu1 %v5995_v59  ;;  %s5144_s24 = sshll.u32 %s6646_s4, 4  ;;  %s5145_s24 = int_to_ptr.vmem [resolvable:$true] %s5144_s24 }
 0x4f1   :  { %5873 = vmatpush3.bf16.msra.mxu1 %v5995_v59  ;;  %s6612_s25 = scalar_lea.vmem %s5145_s24, 2048  ;;  %p6617_p2 = scmp.lt.s32.totalorder %s5145_s24, %s5145_s24 }
 0x4f2   :  { %v5987_v32 = vld [vmem:[#allocation3 + $0x40] sm:$0xff]   ;;  %5922 = vmatprep.subr.bf16.mxu1 %v11850_v20  ;;  %p6613_p1 = scmp.ne.s32.totalorder %s5145_s24, %s6612_s25  ;;  %p6618_p3 = scmp.lt.s32.totalorder %s6612_s25, %s6612_s25 }
 0x4f3   :  { %5904 = vmatprep.subr.bf16.mxu0 %v5987_v32 }
 0x4f4   :  { %5905 = vmatpush3.bf16.msra.mxu0 %v5987_v32  ;;  %p6619_p4 = por %p6618_p3, %p6617_p2 }
 0x4f6   :  { %p6620_p5 = pnand %p6619_p4, %p6613_p1 }
 0x4f7   :  { %5907 = vmatmul.mubr.bf16.vlgmr.msra.gmra.mxu0 %v5974_v60 }
 0x4f8   :  { %5910 = vmatprep.mubr.bf16.mxu0 %v5977_v62 }
 0x4ff   :  { %5911 = vmatmul.mubr.bf16.gmra.mxu0 %v5978_v35 }
 0x500   :  { %5914 = vmatprep.mubr.bf16.mxu0 %v5981_v14 }
 0x507   :  { %5915 = vmatmul.mubr.bf16.gmra.mxu0 %v5982_v34 }
 0x508   :  { %5918 = vmatprep.mubr.bf16.mxu0 %v5985_v61 }
 0x50f   :  { %5919 = vmatmul.mubr.bf16.gmra.mxu0 %v5986_v37 }
 0x596   :  { %v5844_v25 = vpop.f32.mrf.mxu0 }
 0x598   :  { %v4495_v6 = vpop.f32.mrf.mxu0 }
 0x59a   :  { %v5845_v24 = vpop.f32.mrf.mxu0 }
 0x59b   :  { %v4559_v49 = vpack.c.bf16 %v5845_v24, %v5844_v25 }
 0x59c   :  { %v4498_v57 = vpop.f32.mrf.mxu0 }
 0x59d   :  { %v4558_v7 = vpack.c.bf16 %v4498_v57, %v4495_v6 }
 0x59e   :  { %v5848_v53 = vpop.f32.mrf.mxu0 }
 0x59f   :  { %5874 = vmatprep.mubr.bf16.mxu1 %v4558_v7 }
 0x5a0   :  { %v4511_v15 = vpop.f32.mrf.mxu0  ;;  %5875 = vmatmul.mubr.bf16.vlgmr.msra.gmra.mxu1 %v4559_v49 }
 0x5a1   :  { %5923 = vmatpush3.bf16.msra.mxu1 %v11850_v20 }
 0x5a2   :  { %v5849_v11 = vpop.f32.mrf.mxu0  ;;  %5924 = vmatprep.subr.bf16.mxu1 %v11855_v48 }
 0x5a3   :  { %v4561_v27 = vpack.c.bf16 %v5849_v11, %v5848_v53 }
 0x5a4   :  { %v4514_v39 = vpop.f32.mrf.mxu0 }
 0x5a5   :  { %v4560_v22 = vpack.c.bf16 %v4514_v39, %v4511_v15  ;;  %5925 = vmatpush3.bf16.msra.mxu1 %v11855_v48 }
 0x5a6   :  { %v5852_v12 = vpop.f32.mrf.mxu0  ;;  %5926 = vmatprep.subr.bf16.mxu1 %v11864_v36 }
 0x5a7   :  { %5878 = vmatprep.mubr.bf16.mxu1 %v4560_v22 }
 0x5a8   :  { %v4527_v18 = vpop.f32.mrf.mxu0  ;;  %5879 = vmatmul.mubr.bf16.gmra.mxu1 %v4561_v27 }
 0x5a9   :  { %5927 = vmatpush3.bf16.msra.mxu1 %v11864_v36 }
 0x5aa   :  { %v5853_v28 = vpop.f32.mrf.mxu0  ;;  %5928 = vmatprep.subr.bf16.mxu1 %v11871_v58 }
 0x5ab   :  { %v4563_v3 = vpack.c.bf16 %v5853_v28, %v5852_v12 }
 0x5ac   :  { %v4530_v20 = vpop.f32.mrf.mxu0 }
 0x5ad   :  { %v4562_v16 = vpack.c.bf16 %v4530_v20, %v4527_v18  ;;  %5929 = vmatpush3.bf16.msra.mxu1 %v11871_v58 }
 0x5ae   :  { %v5856_v26 = vpop.f32.mrf.mxu0  ;;  %5930 = vmatprep.subr.bf16.mxu1 %v11878_v52 }
 0x5af   :  { %5882 = vmatprep.mubr.bf16.mxu1 %v4562_v16 }
 0x5b0   :  { %v4543_v48 = vpop.f32.mrf.mxu0  ;;  %5883 = vmatmul.mubr.bf16.gmra.mxu1 %v4563_v3 }
 0x5b1   :  { %5931 = vmatpush3.bf16.msra.mxu1 %v11878_v52 }
 0x5b2   :  { %v5857_v56 = vpop.f32.mrf.mxu0  ;;  %5932 = vmatprep.subr.bf16.mxu1 %v11887_v45 }
 0x5b3   :  { %v4565_v31 = vpack.c.bf16 %v5857_v56, %v5856_v26 }
 0x5b4   :  { %v4546_v36 = vpop.f32.mrf.mxu0 }
 0x5b5   :  { %v4564_v46 = vpack.c.bf16 %v4546_v36, %v4543_v48  ;;  %5933 = vmatpush3.bf16.msra.mxu1 %v11887_v45 }
 0x5b6   :  { %5934 = vmatprep.subr.bf16.mxu1 %v5994_v33 }
 0x5b7   :  { %v5908_v13 = vpop.f32.mrf.mxu0  ;;  %5886 = vmatprep.mubr.bf16.mxu1 %v4564_v46 }
 0x5b8   :  { %5887 = vmatmul.mubr.bf16.gmra.mxu1 %v4565_v31 }
 0x5b9   :  { %v4890_v58 = vpop.f32.mrf.mxu0  ;;  %5935 = vmatpush3.bf16.msra.mxu1 %v5994_v33 }
 0x5ba   :  { %5936 = vmatprep.subr.bf16.mxu1 %v5995_v59 }
 0x5bb   :  { %v5909_v29 = vpop.f32.mrf.mxu0 }
 0x5bc   :  { %v4954_v52 = vpack.c.bf16 %v5909_v29, %v5908_v13 }
 0x5bd   :  { %v4893_v55 = vpop.f32.mrf.mxu0  ;;  %5937 = vmatpush3.bf16.msra.mxu1 %v5995_v59 }
 0x5be   :  { %v4953_v1 = vpack.c.bf16 %v4893_v55, %v4890_v58 }
 0x5bf   :  { %v5912_v8 = vpop.f32.mrf.mxu0 }
 0x5c0   :  { %5938 = vmatprep.mubr.bf16.mxu1 %v4953_v1 }
 0x5c1   :  { %v4906_v5 = vpop.f32.mrf.mxu0  ;;  %5939 = vmatmul.mubr.bf16.vlgmr.msra.gmra.mxu1 %v4954_v52 }
 0x5c3   :  { %v5913_v0 = vpop.f32.mrf.mxu0 }
 0x5c4   :  { %v4956_v10 = vpack.c.bf16 %v5913_v0, %v5912_v8 }
 0x5c5   :  { %v4909_v4 = vpop.f32.mrf.mxu0 }
 0x5c6   :  { %v4955_v45 = vpack.c.bf16 %v4909_v4, %v4906_v5 }
 0x5c7   :  { %v5916_v2 = vpop.f32.mrf.mxu0 }
 0x5c8   :  { %5942 = vmatprep.mubr.bf16.mxu1 %v4955_v45 }
 0x5c9   :  { %v4922_v60 = vpop.f32.mrf.mxu0  ;;  %5943 = vmatmul.mubr.bf16.gmra.mxu1 %v4956_v10 }
 0x5cb   :  { %v5917_v62 = vpop.f32.mrf.mxu0 }
 0x5cc   :  { %v4958_v43 = vpack.c.bf16 %v5917_v62, %v5916_v2 }
 0x5cd   :  { %v4925_v19 = vpop.f32.mrf.mxu0 }
 0x5ce   :  { %v4957_v63 = vpack.c.bf16 %v4925_v19, %v4922_v60 }
 0x5cf   :  { %v5920_v44 = vpop.f32.mrf.mxu0 }
 0x5d0   :  { %5946 = vmatprep.mubr.bf16.mxu1 %v4957_v63 }
 0x5d1   :  { %v4938_v42 = vpop.f32.mrf.mxu0  ;;  %5947 = vmatmul.mubr.bf16.gmra.mxu1 %v4958_v43 }
 0x5d3   :  { %v5921_v50 = vpop.f32.mrf.mxu0 }
 0x5d4   :  { %v4960_v9 = vpack.c.bf16 %v5921_v50, %v5920_v44 }
 0x5d5   :  { %v4941_v35 = vpop.f32.mrf.mxu0 }
 0x5d6   :  { %v4959_v14 = vpack.c.bf16 %v4941_v35, %v4938_v42 }
 0x5d8   :  { %5950 = vmatprep.mubr.bf16.mxu1 %v4959_v14 }
 0x5d9   :  { %5951 = vmatmul.mubr.bf16.gmra.mxu1 %v4960_v9 }
 0x660   :  { %v5876_v38 = vpop.f32.mrf.mxu1 }
 0x662   :  { %v4648_v17 = vpop.f32.mrf.mxu1 }
 0x664   :  { %v5877_v40 = vpop.f32.mrf.mxu1 }
 0x665   :  { %v5676_v54 = vpack.c.bf16 %v5877_v40, %v5876_v38 }
 0x666   :  { %v4651_v47 = vpop.f32.mrf.mxu1 }
 0x667   :  { %5748 = vst [vmem:[#allocation10 + $0x8] sm:$0xff] %v5676_v54   ;;  %v5671_v34 = vpack.c.bf16 %v4651_v47, %v4648_v17 }
 0x668   :  { %v5880_v61 = vpop.f32.mrf.mxu1 }
 0x669   :  { %5672 = vst [vmem:[#allocation10] sm:$0xff] %v5671_v34  }
 0x66a   :  { %v4664_v30 = vpop.f32.mrf.mxu1 }
 0x66c   :  { %v5881_v23 = vpop.f32.mrf.mxu1 }
 0x66d   :  { %v5686_v21 = vpack.c.bf16 %v5881_v23, %v5880_v61 }
 0x66e   :  { %v4667_v41 = vpop.f32.mrf.mxu1 }
 0x66f   :  { %5750 = vst [vmem:[#allocation10 + $0x18] sm:$0xff] %v5686_v21   ;;  %v5681_v51 = vpack.c.bf16 %v4667_v41, %v4664_v30 }
 0x670   :  { %v5884_v37 = vpop.f32.mrf.mxu1 }
 0x671   :  { %5749 = vst [vmem:[#allocation10 + $0x10] sm:$0xff] %v5681_v51  }
 0x672   :  { %v4680_v32 = vpop.f32.mrf.mxu1 }
 0x674   :  { %v5885_v33 = vpop.f32.mrf.mxu1 }
 0x675   :  { %v5696_v59 = vpack.c.bf16 %v5885_v33, %v5884_v37 }
 0x676   :  { %v4683_v25 = vpop.f32.mrf.mxu1 }
 0x677   :  { %5752 = vst [vmem:[#allocation10 + $0x28] sm:$0xff] %v5696_v59   ;;  %v5691_v6 = vpack.c.bf16 %v4683_v25, %v4680_v32 }
 0x678   :  { %v5888_v24 = vpop.f32.mrf.mxu1 }
 0x679   :  { %5751 = vst [vmem:[#allocation10 + $0x20] sm:$0xff] %v5691_v6  }
 0x67a   :  { %v4696_v57 = vpop.f32.mrf.mxu1 }
 0x67c   :  { %v5889_v7 = vpop.f32.mrf.mxu1 }
 0x67d   :  { %v5706_v49 = vpack.c.bf16 %v5889_v7, %v5888_v24 }
 0x67e   :  { %v4699_v53 = vpop.f32.mrf.mxu1 }
 0x67f   :  { %5754 = vst [vmem:[#allocation10 + $0x38] sm:$0xff] %v5706_v49   ;;  %v5701_v15 = vpack.c.bf16 %v4699_v53, %v4696_v57 }
 0x681   :  { %v5940_v11 = vpop.f32.mrf.mxu1  ;;  %5753 = vst [vmem:[#allocation10 + $0x30] sm:$0xff] %v5701_v15  }
 0x683   :  { %v4995_v39 = vpop.f32.mrf.mxu1 }
 0x685   :  { %v5941_v22 = vpop.f32.mrf.mxu1 }
 0x686   :  { %v5716_v27 = vpack.c.bf16 %v5941_v22, %v5940_v11 }
 0x687   :  { %v4998_v12 = vpop.f32.mrf.mxu1 }
 0x688   :  { %5755 = vst [vmem:[#allocation10 + $0x48] sm:$0xff] %v5716_v27   ;;  %v5711_v18 = vpack.c.bf16 %v4998_v12, %v4995_v39 }
 0x689   :  { %v5944_v28 = vpop.f32.mrf.mxu1 }
 0x68a   :  { %5712 = vst [vmem:[#allocation10 + $0x40] sm:$0xff] %v5711_v18  }
 0x68b   :  { %v5011_v20 = vpop.f32.mrf.mxu1 }
 0x68d   :  { %v5945_v16 = vpop.f32.mrf.mxu1 }
 0x68e   :  { %v5726_v3 = vpack.c.bf16 %v5945_v16, %v5944_v28 }
 0x68f   :  { %v5014_v26 = vpop.f32.mrf.mxu1 }
 0x690   :  { %5757 = vst [vmem:[#allocation10 + $0x58] sm:$0xff] %v5726_v3   ;;  %v5721_v48 = vpack.c.bf16 %v5014_v26, %v5011_v20 }
 0x691   :  { %v5948_v56 = vpop.f32.mrf.mxu1 }
 0x692   :  { %5756 = vst [vmem:[#allocation10 + $0x50] sm:$0xff] %v5721_v48  }
 0x693   :  { %v5027_v36 = vpop.f32.mrf.mxu1 }
 0x695   :  { %v5949_v46 = vpop.f32.mrf.mxu1 }
 0x696   :  { %v5736_v31 = vpack.c.bf16 %v5949_v46, %v5948_v56 }
 0x697   :  { %v5030_v13 = vpop.f32.mrf.mxu1 }
 0x698   :  { %5759 = vst [vmem:[#allocation10 + $0x68] sm:$0xff] %v5736_v31   ;;  %v5731_v58 = vpack.c.bf16 %v5030_v13, %v5027_v36 }
 0x699   :  { %v5952_v29 = vpop.f32.mrf.mxu1 }
 0x69a   :  { %5758 = vst [vmem:[#allocation10 + $0x60] sm:$0xff] %v5731_v58  }
 0x69b   :  { %v5043_v55 = vpop.f32.mrf.mxu1 }
 0x69d   :  { %v5953_v1 = vpop.f32.mrf.mxu1 }
 0x69e   :  { %v5746_v52 = vpack.c.bf16 %v5953_v1, %v5952_v29 }
 0x69f   :  { %v5046_v8 = vpop.f32.mrf.mxu1 }
 0x6a0   :  { %5761 = vst [vmem:[#allocation10 + $0x78] sm:$0xff] %v5746_v52   ;;  %v5741_v5 = vpack.c.bf16 %v5046_v8, %v5043_v55 }
 0x6a2   :  { %5760 = vst [vmem:[#allocation10 + $0x70] sm:$0xff] %v5741_v5  }
 0x6a3   :  { %6623 = shalt.err (!%p6620_p5)
}
 0x6a4   :  { %s6647_s28 = smov 4  }
 0x6a5   :  { %5150 = dma.vmem_to_hbm [thread:$0]  %s5145_s24, 2048, %s11977_s6, [#allocation5], %s6644_s21, %s6644_s21, %s6647_s28  }
 0x6a6   :  { %6636 = dma.done.wait [#allocation5], 2048  }
 0x6a7   :  { %6637 = vsyncadd [#allocation5], 4294965248 }
 0x6a8   :  { %5154 = vsyncpa [#allocation5], 1 }
 0x6a9   :  { %5155 = vsyncpa [#allocation6], 1 }
 0x6aa   :  { %5156 = vsyncpa [#allocation8], 1 }

</bundles_post_ra>
